<compile_context>
chip_gen: v7x
topology: tpu7x:2x2x1
jax: 0.10.0
libtpu: 0.0.40
codegen_flags: <defaults>
</compile_context>

<pallas_src>
import jax
import jax.numpy as jnp
from jax.experimental import pallas as pl
from jax.experimental.pallas import tpu as pltpu

INPUT = 32 * 3   # 96
HIDDEN = 128
LAYERS = 3
NCLASS = 10


def _lstm_gates(gates, c_prev):
    """gates: (Bp, 4*HIDDEN) pre-activations in PyTorch order i,f,g,o."""
    i = jax.nn.sigmoid(gates[:, 0 * HIDDEN:1 * HIDDEN])
    f = jax.nn.sigmoid(gates[:, 1 * HIDDEN:2 * HIDDEN])
    g = jnp.tanh(gates[:, 2 * HIDDEN:3 * HIDDEN])
    o = jax.nn.sigmoid(gates[:, 3 * HIDDEN:4 * HIDDEN])
    c_new = f * c_prev + i * g
    h_new = o * jnp.tanh(c_new)
    return h_new, c_new


def lstm_kernel(x_ref,                       # (T*Bp, INPUT) time-major rows, VMEM
                wih0_ref, whh0_ref, b0_ref,  # (96,512) (128,512) (1,512) VMEM
                w1_hbm, b1_ref,              # (256,512) HBM [Wih1;Whh1], (1,512)
                w2_hbm, b2_ref,              # (256,512) HBM [Wih2;Whh2], (1,512)
                wlo_ref, blo_ref,            # (128,10) (1,10)  fused tail linear
                out_ref,                     # (Bp, NCLASS)
                w1_vmem, w2_vmem, dma_sem):  # scratch
    Bp = out_ref.shape[0]
    T = x_ref.shape[0] // Bp

    # Kick off the big layer-1/2 weight DMAs immediately; they overlap with
    # the hoisted layer-0 projection and the first layer-0 cell below.
    cp1 = pltpu.make_async_copy(w1_hbm, w1_vmem, dma_sem.at[0])
    cp2 = pltpu.make_async_copy(w2_hbm, w2_vmem, dma_sem.at[1])
    cp1.start()
    cp2.start()

    # Hoisted layer-0 input projection: one big (T*Bp, 96) x (96, 512) matmul
    # removes one matmul per timestep from the serial chain.
    gates_x0 = (jnp.dot(x_ref[...], wih0_ref[...],
                        preferred_element_type=jnp.float32)
                + b0_ref[...])                              # (T*Bp, 4H)

    whh0 = whh0_ref[...]

    # Hoisted bias broadcasts (not CSE'd by JAX if left inside the loop).
    b1 = jnp.broadcast_to(b1_ref[...], (Bp, 4 * HIDDEN))
    b2 = jnp.broadcast_to(b2_ref[...], (Bp, 4 * HIDDEN))

    zeros = jnp.zeros((Bp, HIDDEN), jnp.float32)
    h0, c0 = zeros, zeros
    h1, c1 = zeros, zeros
    h2, c2 = zeros, zeros

    # Filled in at t == 0 after the DMAs complete.
    w1_below = w1_rec = w2_below = w2_rec = None

    # T is small and static: fully unroll so states stay in vregs and the
    # scheduler can overlap the three cells' MXU pushes.
    for t in range(T):
        # layer 0: only the recurrent matmul remains in the serial chain.
        # Bp = 8 -> this slice is a whole-vreg (8-sublane) window.
        g0 = gates_x0[t * Bp:(t + 1) * Bp, :] + jnp.dot(
            h0, whh0, preferred_element_type=jnp.float32)
        h0, c0 = _lstm_gates(g0, c0)

        if t == 0:
            # First use of the layer-1/2 weights: wait for the DMAs now.
            cp1.wait()
            cp2.wait()
            w1_below = w1_vmem[0:HIDDEN, :]
            w1_rec = w1_vmem[HIDDEN:2 * HIDDEN, :]
            w2_below = w2_vmem[0:HIDDEN, :]
            w2_rec = w2_vmem[HIDDEN:2 * HIDDEN, :]

        # layers 1/2: split dots (no concat) -> the recurrent half only
        # depends on the previous timestep and can issue a cell early.
        g1 = (jnp.dot(h1, w1_rec, preferred_element_type=jnp.float32)
              + jnp.dot(h0, w1_below, preferred_element_type=jnp.float32)
              + b1)
        h1, c1 = _lstm_gates(g1, c1)

        g2 = (jnp.dot(h2, w2_rec, preferred_element_type=jnp.float32)
              + jnp.dot(h1, w2_below, preferred_element_type=jnp.float32)
              + b2)
        h2, c2 = _lstm_gates(g2, c2)

    # Fused (activation-free) Linear(128,128) -> Linear(128,10) epilogue.
    out_ref[...] = (jnp.dot(h2, wlo_ref[...],
                            preferred_element_type=jnp.float32)
                    + blo_ref[...])


def net_forward(x, params):
    (wih0, whh0, b0,
     wih1, whh1, b1,
     wih2, whh2, b2,
     wl, bl, wo, bo) = params
    B, T, _ = x.shape

    # Pad batch to one 8-row sublane tile so per-step slices / MXU pushes are
    # whole-vreg; padded rows are zeros and get sliced off at the end.
    Bp = max(8, ((B + 7) // 8) * 8)
    x_pad = jnp.zeros((Bp, T, INPUT), jnp.float32).at[:B].set(x)
    # Wrapper-side layout plumbing: time-major, row-flattened.
    x_flat = jnp.transpose(x_pad, (1, 0, 2)).reshape(T * Bp, INPUT)

    # Combined [Wih; Whh] slabs for layers 1/2 (one DMA each; split in-kernel).
    w1 = jnp.concatenate([wih1, whh1], axis=0)   # (256, 512)
    w2 = jnp.concatenate([wih2, whh2], axis=0)   # (256, 512)

    # Fuse the two activation-free tail Linears (exact for this Net).
    wlo = wl @ wo                                # (128, 10)
    blo = bl @ wo + bo                           # (1, 10)

    vmem = pl.BlockSpec(memory_space=pltpu.MemorySpace.VMEM)
    hbm = pl.BlockSpec(memory_space=pl.ANY)

    out = pl.pallas_call(
        lstm_kernel,
        out_shape=jax.ShapeDtypeStruct((Bp, NCLASS), jnp.float32),
        in_specs=[vmem,                # x_flat
                  vmem, vmem, vmem,    # wih0, whh0, b0
                  hbm, vmem,           # w1 (HBM, manual DMA), b1
                  hbm, vmem,           # w2 (HBM, manual DMA), b2
                  vmem, vmem],         # wlo, blo
        out_specs=vmem,
        scratch_shapes=[
            pltpu.VMEM((2 * HIDDEN, 4 * HIDDEN), jnp.float32),
            pltpu.VMEM((2 * HIDDEN, 4 * HIDDEN), jnp.float32),
            pltpu.SemaphoreType.DMA((2,)),
        ],
    )(x_flat, wih0, whh0, b0, w1, b1, w2, b2, wlo, blo)
    return out[:B]


def net_forward_ref(x, params):
    (wih0, whh0, b0,
     wih1, whh1, b1,
     wih2, whh2, b2,
     wl, bl, wo, bo) = params
    B, T, _ = x.shape
    layer_w = [(wih0, whh0, b0), (wih1, whh1, b1), (wih2, whh2, b2)]
    h = [jnp.zeros((B, HIDDEN), jnp.float32) for _ in range(LAYERS)]
    c = [jnp.zeros((B, HIDDEN), jnp.float32) for _ in range(LAYERS)]

    def cell(x_in, h_prev, c_prev, wih, whh, b):
        gates = x_in @ wih + h_prev @ whh + b
        i = jax.nn.sigmoid(gates[:, 0 * HIDDEN:1 * HIDDEN])
        f = jax.nn.sigmoid(gates[:, 1 * HIDDEN:2 * HIDDEN])
        g = jnp.tanh(gates[:, 2 * HIDDEN:3 * HIDDEN])
        o = jax.nn.sigmoid(gates[:, 3 * HIDDEN:4 * HIDDEN])
        c_new = f * c_prev + i * g
        return o * jnp.tanh(c_new), c_new

    for t in range(T):
        inp = x[:, t, :]
        for l in range(LAYERS):
            h[l], c[l] = cell(inp, h[l], c[l], *layer_w[l])
            inp = h[l]
    hid = h[-1] @ wl + bl
    return hid @ wo + bo


def make_params(key):
    ks = jax.random.split(key, 20)
    scale = 1.0 / jnp.sqrt(jnp.float32(HIDDEN))

    def u(k, shape):
        return jax.random.uniform(k, shape, jnp.float32, -scale, scale)

    params = []
    ki = 0
    for layer in range(LAYERS):
        in_dim = INPUT if layer == 0 else HIDDEN
        wih = u(ks[ki], (in_dim, 4 * HIDDEN)); ki += 1    # transposed W_ih
        whh = u(ks[ki], (HIDDEN, 4 * HIDDEN)); ki += 1    # transposed W_hh
        b_ih = u(ks[ki], (1, 4 * HIDDEN)); ki += 1
        b_hh = u(ks[ki], (1, 4 * HIDDEN)); ki += 1
        params += [wih, whh, b_ih + b_hh]                 # combined bias
    wl = u(ks[ki], (HIDDEN, HIDDEN)); ki += 1
    bl = u(ks[ki], (1, HIDDEN)); ki += 1
    wo = u(ks[ki], (HIDDEN, NCLASS)); ki += 1
    bo = u(ks[ki], (1, NCLASS)); ki += 1
    params += [wl, bl, wo, bo]
    return tuple(params)


if __name__ == "__main__":
    key = jax.random.PRNGKey(0)
    kx, kp = jax.random.split(key)
    B, T = 2, 8
    x = jax.random.normal(kx, (B, T, INPUT), jnp.float32)
    params = make_params(kp)

    out = jax.block_until_ready(net_forward(x, params))
    ref = jax.block_until_ready(net_forward_ref(x, params))

    assert out.shape == (B, NCLASS)
    assert jnp.max(jnp.abs(out - ref)) < 2e-3, "mismatch vs pure-JAX reference"
    print("KERNEL_OK")
</pallas_src>

<mosaic_0001>
module attributes {stable_mosaic.version = 11 : i64} {
  func.func @lstm_kernel(%arg0: memref<64x96xf32, #tpu.memory_space<vmem>>, %arg1: memref<96x512xf32, #tpu.memory_space<vmem>>, %arg2: memref<128x512xf32, #tpu.memory_space<vmem>>, %arg3: memref<1x512xf32, #tpu.memory_space<vmem>>, %arg4: memref<256x512xf32, #tpu.memory_space<any>>, %arg5: memref<1x512xf32, #tpu.memory_space<vmem>>, %arg6: memref<256x512xf32, #tpu.memory_space<any>>, %arg7: memref<1x512xf32, #tpu.memory_space<vmem>>, %arg8: memref<128x10xf32, #tpu.memory_space<vmem>>, %arg9: memref<1x10xf32, #tpu.memory_space<vmem>>, %arg10: memref<8x10xf32, #tpu.memory_space<vmem>>, %arg11: memref<256x512xf32, #tpu.memory_space<vmem>>, %arg12: memref<256x512xf32, #tpu.memory_space<vmem>>, %arg13: memref<2x!tpu.dma_semaphore, #tpu.memory_space<semaphore_mem>>) attributes {dimension_semantics = [], scalar_prefetch = 0 : i64, scratch_operands = 3 : i64, tpu.core_type = #tpu.core_type<tc>} {
    %c0_i32 = arith.constant 0 : i32
    %0 = tpu.memref_slice %arg13[%c0_i32] : memref<2x!tpu.dma_semaphore, #tpu.memory_space<semaphore_mem>> -> memref<1x!tpu.dma_semaphore, #tpu.memory_space<semaphore_mem>>
    %1 = tpu.memref_squeeze %0 : memref<1x!tpu.dma_semaphore, #tpu.memory_space<semaphore_mem>> -> memref<!tpu.dma_semaphore, #tpu.memory_space<semaphore_mem>>
    tpu.enqueue_dma source(%arg4 : memref<256x512xf32, #tpu.memory_space<any>>) target(%arg11 : memref<256x512xf32, #tpu.memory_space<vmem>>) target_semaphore(%1 : memref<!tpu.dma_semaphore, #tpu.memory_space<semaphore_mem>>)
    %c1_i32 = arith.constant 1 : i32
    %2 = tpu.memref_slice %arg13[%c1_i32] : memref<2x!tpu.dma_semaphore, #tpu.memory_space<semaphore_mem>> -> memref<1x!tpu.dma_semaphore, #tpu.memory_space<semaphore_mem>>
    %3 = tpu.memref_squeeze %2 : memref<1x!tpu.dma_semaphore, #tpu.memory_space<semaphore_mem>> -> memref<!tpu.dma_semaphore, #tpu.memory_space<semaphore_mem>>
    tpu.enqueue_dma source(%arg6 : memref<256x512xf32, #tpu.memory_space<any>>) target(%arg12 : memref<256x512xf32, #tpu.memory_space<vmem>>) target_semaphore(%3 : memref<!tpu.dma_semaphore, #tpu.memory_space<semaphore_mem>>)
    %c0 = arith.constant 0 : index
    %c0_0 = arith.constant 0 : index
    %4 = vector.load %arg0[%c0, %c0_0] : memref<64x96xf32, #tpu.memory_space<vmem>>, vector<64x96xf32>
    %c0_1 = arith.constant 0 : index
    %c0_2 = arith.constant 0 : index
    %5 = vector.load %arg1[%c0_1, %c0_2] : memref<96x512xf32, #tpu.memory_space<vmem>>, vector<96x512xf32>
    %cst = arith.constant dense<0.000000e+00> : vector<64x512xf32>
    %6 = tpu.matmul %4, %5, %cst {dimension_numbers = #tpu.dot_dimension_numbers<[1], [0], [0], [1], [0, 0, 1, 1], [], []>} : vector<64x96xf32>, vector<96x512xf32>, vector<64x512xf32> -> vector<64x512xf32>
    %c0_3 = arith.constant 0 : index
    %c0_4 = arith.constant 0 : index
    %7 = vector.load %arg3[%c0_3, %c0_4] : memref<1x512xf32, #tpu.memory_space<vmem>>, vector<1x512xf32>
    %8 = vector.broadcast %7 : vector<1x512xf32> to vector<64x512xf32>
    %9 = arith.addf %6, %8 : vector<64x512xf32>
    %c0_5 = arith.constant 0 : index
    %c0_6 = arith.constant 0 : index
    %10 = vector.load %arg2[%c0_5, %c0_6] : memref<128x512xf32, #tpu.memory_space<vmem>>, vector<128x512xf32>
    %c0_7 = arith.constant 0 : index
    %c0_8 = arith.constant 0 : index
    %11 = vector.load %arg5[%c0_7, %c0_8] : memref<1x512xf32, #tpu.memory_space<vmem>>, vector<1x512xf32>
    %12 = vector.shape_cast %11 : vector<1x512xf32> to vector<1x512xf32>
    %13 = vector.broadcast %12 : vector<1x512xf32> to vector<8x512xf32>
    %c0_9 = arith.constant 0 : index
    %c0_10 = arith.constant 0 : index
    %14 = vector.load %arg7[%c0_9, %c0_10] : memref<1x512xf32, #tpu.memory_space<vmem>>, vector<1x512xf32>
    %15 = vector.shape_cast %14 : vector<1x512xf32> to vector<1x512xf32>
    %16 = vector.broadcast %15 : vector<1x512xf32> to vector<8x512xf32>
    %cst_11 = arith.constant 0.000000e+00 : f32
    %17 = vector.broadcast %cst_11 : f32 to vector<8x128xf32>
    %18 = vector.extract_strided_slice %9 {offsets = [0, 0], sizes = [8, 512], strides = [1, 1]} : vector<64x512xf32> to vector<8x512xf32>
    %cst_12 = arith.constant dense<0.000000e+00> : vector<8x512xf32>
    %19 = tpu.matmul %17, %10, %cst_12 {dimension_numbers = #tpu.dot_dimension_numbers<[1], [0], [0], [1], [0, 0, 1, 1], [], []>} : vector<8x128xf32>, vector<128x512xf32>, vector<8x512xf32> -> vector<8x512xf32>
    %20 = arith.addf %18, %19 : vector<8x512xf32>
    %21 = vector.extract_strided_slice %20 {offsets = [0, 0], sizes = [8, 128], strides = [1, 1]} : vector<8x512xf32> to vector<8x128xf32>
    %22 = arith.negf %21 : vector<8x128xf32>
    %23 = math.exp %22 : vector<8x128xf32>
    %cst_13 = arith.constant 1.000000e+00 : f32
    %24 = vector.broadcast %cst_13 : f32 to vector<8x128xf32>
    %25 = arith.addf %24, %23 : vector<8x128xf32>
    %26 = arith.divf %24, %25 : vector<8x128xf32>
    %27 = vector.extract_strided_slice %20 {offsets = [0, 128], sizes = [8, 128], strides = [1, 1]} : vector<8x512xf32> to vector<8x128xf32>
    %28 = arith.negf %27 : vector<8x128xf32>
    %29 = math.exp %28 : vector<8x128xf32>
    %cst_14 = arith.constant 1.000000e+00 : f32
    %30 = vector.broadcast %cst_14 : f32 to vector<8x128xf32>
    %31 = arith.addf %30, %29 : vector<8x128xf32>
    %32 = arith.divf %30, %31 : vector<8x128xf32>
    %33 = vector.extract_strided_slice %20 {offsets = [0, 256], sizes = [8, 128], strides = [1, 1]} : vector<8x512xf32> to vector<8x128xf32>
    %34 = math.tanh %33 : vector<8x128xf32>
    %35 = vector.extract_strided_slice %20 {offsets = [0, 384], sizes = [8, 128], strides = [1, 1]} : vector<8x512xf32> to vector<8x128xf32>
    %36 = arith.negf %35 : vector<8x128xf32>
    %37 = math.exp %36 : vector<8x128xf32>
    %cst_15 = arith.constant 1.000000e+00 : f32
    %38 = vector.broadcast %cst_15 : f32 to vector<8x128xf32>
    %39 = arith.addf %38, %37 : vector<8x128xf32>
    %40 = arith.divf %38, %39 : vector<8x128xf32>
    %41 = arith.mulf %32, %17 : vector<8x128xf32>
    %42 = arith.mulf %26, %34 : vector<8x128xf32>
    %43 = arith.addf %41, %42 : vector<8x128xf32>
    %44 = math.tanh %43 : vector<8x128xf32>
    %45 = arith.mulf %40, %44 : vector<8x128xf32>
    %c0_i32_16 = arith.constant 0 : i32
    %46 = tpu.memref_slice %arg13[%c0_i32_16] : memref<2x!tpu.dma_semaphore, #tpu.memory_space<semaphore_mem>> -> memref<1x!tpu.dma_semaphore, #tpu.memory_space<semaphore_mem>>
    %47 = tpu.memref_squeeze %46 : memref<1x!tpu.dma_semaphore, #tpu.memory_space<semaphore_mem>> -> memref<!tpu.dma_semaphore, #tpu.memory_space<semaphore_mem>>
    tpu.wait_dma2 semaphore(%47 : memref<!tpu.dma_semaphore, #tpu.memory_space<semaphore_mem>>) src(%arg4 : memref<256x512xf32, #tpu.memory_space<any>>) dst(%arg11 : memref<256x512xf32, #tpu.memory_space<vmem>>)
    %c1_i32_17 = arith.constant 1 : i32
    %48 = tpu.memref_slice %arg13[%c1_i32_17] : memref<2x!tpu.dma_semaphore, #tpu.memory_space<semaphore_mem>> -> memref<1x!tpu.dma_semaphore, #tpu.memory_space<semaphore_mem>>
    %49 = tpu.memref_squeeze %48 : memref<1x!tpu.dma_semaphore, #tpu.memory_space<semaphore_mem>> -> memref<!tpu.dma_semaphore, #tpu.memory_space<semaphore_mem>>
    tpu.wait_dma2 semaphore(%49 : memref<!tpu.dma_semaphore, #tpu.memory_space<semaphore_mem>>) src(%arg6 : memref<256x512xf32, #tpu.memory_space<any>>) dst(%arg12 : memref<256x512xf32, #tpu.memory_space<vmem>>)
    %c0_18 = arith.constant 0 : index
    %c0_19 = arith.constant 0 : index
    %50 = vector.load %arg11[%c0_18, %c0_19] : memref<256x512xf32, #tpu.memory_space<vmem>>, vector<128x512xf32>
    %c128 = arith.constant 128 : index
    %c0_20 = arith.constant 0 : index
    %51 = vector.load %arg11[%c128, %c0_20] : memref<256x512xf32, #tpu.memory_space<vmem>>, vector<128x512xf32>
    %c0_21 = arith.constant 0 : index
    %c0_22 = arith.constant 0 : index
    %52 = vector.load %arg12[%c0_21, %c0_22] : memref<256x512xf32, #tpu.memory_space<vmem>>, vector<128x512xf32>
    %c128_23 = arith.constant 128 : index
    %c0_24 = arith.constant 0 : index
    %53 = vector.load %arg12[%c128_23, %c0_24] : memref<256x512xf32, #tpu.memory_space<vmem>>, vector<128x512xf32>
    %cst_25 = arith.constant dense<0.000000e+00> : vector<8x512xf32>
    %54 = tpu.matmul %17, %51, %cst_25 {dimension_numbers = #tpu.dot_dimension_numbers<[1], [0], [0], [1], [0, 0, 1, 1], [], []>} : vector<8x128xf32>, vector<128x512xf32>, vector<8x512xf32> -> vector<8x512xf32>
    %cst_26 = arith.constant dense<0.000000e+00> : vector<8x512xf32>
    %55 = tpu.matmul %45, %50, %cst_26 {dimension_numbers = #tpu.dot_dimension_numbers<[1], [0], [0], [1], [0, 0, 1, 1], [], []>} : vector<8x128xf32>, vector<128x512xf32>, vector<8x512xf32> -> vector<8x512xf32>
    %56 = arith.addf %54, %55 : vector<8x512xf32>
    %57 = arith.addf %56, %13 : vector<8x512xf32>
    %58 = vector.extract_strided_slice %57 {offsets = [0, 0], sizes = [8, 128], strides = [1, 1]} : vector<8x512xf32> to vector<8x128xf32>
    %59 = arith.negf %58 : vector<8x128xf32>
    %60 = math.exp %59 : vector<8x128xf32>
    %cst_27 = arith.constant 1.000000e+00 : f32
    %61 = vector.broadcast %cst_27 : f32 to vector<8x128xf32>
    %62 = arith.addf %61, %60 : vector<8x128xf32>
    %63 = arith.divf %61, %62 : vector<8x128xf32>
    %64 = vector.extract_strided_slice %57 {offsets = [0, 128], sizes = [8, 128], strides = [1, 1]} : vector<8x512xf32> to vector<8x128xf32>
    %65 = arith.negf %64 : vector<8x128xf32>
    %66 = math.exp %65 : vector<8x128xf32>
    %cst_28 = arith.constant 1.000000e+00 : f32
    %67 = vector.broadcast %cst_28 : f32 to vector<8x128xf32>
    %68 = arith.addf %67, %66 : vector<8x128xf32>
    %69 = arith.divf %67, %68 : vector<8x128xf32>
    %70 = vector.extract_strided_slice %57 {offsets = [0, 256], sizes = [8, 128], strides = [1, 1]} : vector<8x512xf32> to vector<8x128xf32>
    %71 = math.tanh %70 : vector<8x128xf32>
    %72 = vector.extract_strided_slice %57 {offsets = [0, 384], sizes = [8, 128], strides = [1, 1]} : vector<8x512xf32> to vector<8x128xf32>
    %73 = arith.negf %72 : vector<8x128xf32>
    %74 = math.exp %73 : vector<8x128xf32>
    %cst_29 = arith.constant 1.000000e+00 : f32
    %75 = vector.broadcast %cst_29 : f32 to vector<8x128xf32>
    %76 = arith.addf %75, %74 : vector<8x128xf32>
    %77 = arith.divf %75, %76 : vector<8x128xf32>
    %78 = arith.mulf %69, %17 : vector<8x128xf32>
    %79 = arith.mulf %63, %71 : vector<8x128xf32>
    %80 = arith.addf %78, %79 : vector<8x128xf32>
    %81 = math.tanh %80 : vector<8x128xf32>
    %82 = arith.mulf %77, %81 : vector<8x128xf32>
    %cst_30 = arith.constant dense<0.000000e+00> : vector<8x512xf32>
    %83 = tpu.matmul %17, %53, %cst_30 {dimension_numbers = #tpu.dot_dimension_numbers<[1], [0], [0], [1], [0, 0, 1, 1], [], []>} : vector<8x128xf32>, vector<128x512xf32>, vector<8x512xf32> -> vector<8x512xf32>
    %cst_31 = arith.constant dense<0.000000e+00> : vector<8x512xf32>
    %84 = tpu.matmul %82, %52, %cst_31 {dimension_numbers = #tpu.dot_dimension_numbers<[1], [0], [0], [1], [0, 0, 1, 1], [], []>} : vector<8x128xf32>, vector<128x512xf32>, vector<8x512xf32> -> vector<8x512xf32>
    %85 = arith.addf %83, %84 : vector<8x512xf32>
    %86 = arith.addf %85, %16 : vector<8x512xf32>
    %87 = vector.extract_strided_slice %86 {offsets = [0, 0], sizes = [8, 128], strides = [1, 1]} : vector<8x512xf32> to vector<8x128xf32>
    %88 = arith.negf %87 : vector<8x128xf32>
    %89 = math.exp %88 : vector<8x128xf32>
    %cst_32 = arith.constant 1.000000e+00 : f32
    %90 = vector.broadcast %cst_32 : f32 to vector<8x128xf32>
    %91 = arith.addf %90, %89 : vector<8x128xf32>
    %92 = arith.divf %90, %91 : vector<8x128xf32>
    %93 = vector.extract_strided_slice %86 {offsets = [0, 128], sizes = [8, 128], strides = [1, 1]} : vector<8x512xf32> to vector<8x128xf32>
    %94 = arith.negf %93 : vector<8x128xf32>
    %95 = math.exp %94 : vector<8x128xf32>
    %cst_33 = arith.constant 1.000000e+00 : f32
    %96 = vector.broadcast %cst_33 : f32 to vector<8x128xf32>
    %97 = arith.addf %96, %95 : vector<8x128xf32>
    %98 = arith.divf %96, %97 : vector<8x128xf32>
    %99 = vector.extract_strided_slice %86 {offsets = [0, 256], sizes = [8, 128], strides = [1, 1]} : vector<8x512xf32> to vector<8x128xf32>
    %100 = math.tanh %99 : vector<8x128xf32>
    %101 = vector.extract_strided_slice %86 {offsets = [0, 384], sizes = [8, 128], strides = [1, 1]} : vector<8x512xf32> to vector<8x128xf32>
    %102 = arith.negf %101 : vector<8x128xf32>
    %103 = math.exp %102 : vector<8x128xf32>
    %cst_34 = arith.constant 1.000000e+00 : f32
    %104 = vector.broadcast %cst_34 : f32 to vector<8x128xf32>
    %105 = arith.addf %104, %103 : vector<8x128xf32>
    %106 = arith.divf %104, %105 : vector<8x128xf32>
    %107 = arith.mulf %98, %17 : vector<8x128xf32>
    %108 = arith.mulf %92, %100 : vector<8x128xf32>
    %109 = arith.addf %107, %108 : vector<8x128xf32>
    %110 = math.tanh %109 : vector<8x128xf32>
    %111 = arith.mulf %106, %110 : vector<8x128xf32>
    %112 = vector.extract_strided_slice %9 {offsets = [8, 0], sizes = [8, 512], strides = [1, 1]} : vector<64x512xf32> to vector<8x512xf32>
    %cst_35 = arith.constant dense<0.000000e+00> : vector<8x512xf32>
    %113 = tpu.matmul %45, %10, %cst_35 {dimension_numbers = #tpu.dot_dimension_numbers<[1], [0], [0], [1], [0, 0, 1, 1], [], []>} : vector<8x128xf32>, vector<128x512xf32>, vector<8x512xf32> -> vector<8x512xf32>
    %114 = arith.addf %112, %113 : vector<8x512xf32>
    %115 = vector.extract_strided_slice %114 {offsets = [0, 0], sizes = [8, 128], strides = [1, 1]} : vector<8x512xf32> to vector<8x128xf32>
    %116 = arith.negf %115 : vector<8x128xf32>
    %117 = math.exp %116 : vector<8x128xf32>
    %cst_36 = arith.constant 1.000000e+00 : f32
    %118 = vector.broadcast %cst_36 : f32 to vector<8x128xf32>
    %119 = arith.addf %118, %117 : vector<8x128xf32>
    %120 = arith.divf %118, %119 : vector<8x128xf32>
    %121 = vector.extract_strided_slice %114 {offsets = [0, 128], sizes = [8, 128], strides = [1, 1]} : vector<8x512xf32> to vector<8x128xf32>
    %122 = arith.negf %121 : vector<8x128xf32>
    %123 = math.exp %122 : vector<8x128xf32>
    %cst_37 = arith.constant 1.000000e+00 : f32
    %124 = vector.broadcast %cst_37 : f32 to vector<8x128xf32>
    %125 = arith.addf %124, %123 : vector<8x128xf32>
    %126 = arith.divf %124, %125 : vector<8x128xf32>
    %127 = vector.extract_strided_slice %114 {offsets = [0, 256], sizes = [8, 128], strides = [1, 1]} : vector<8x512xf32> to vector<8x128xf32>
    %128 = math.tanh %127 : vector<8x128xf32>
    %129 = vector.extract_strided_slice %114 {offsets = [0, 384], sizes = [8, 128], strides = [1, 1]} : vector<8x512xf32> to vector<8x128xf32>
    %130 = arith.negf %129 : vector<8x128xf32>
    %131 = math.exp %130 : vector<8x128xf32>
    %cst_38 = arith.constant 1.000000e+00 : f32
    %132 = vector.broadcast %cst_38 : f32 to vector<8x128xf32>
    %133 = arith.addf %132, %131 : vector<8x128xf32>
    %134 = arith.divf %132, %133 : vector<8x128xf32>
    %135 = arith.mulf %126, %43 : vector<8x128xf32>
    %136 = arith.mulf %120, %128 : vector<8x128xf32>
    %137 = arith.addf %135, %136 : vector<8x128xf32>
    %138 = math.tanh %137 : vector<8x128xf32>
    %139 = arith.mulf %134, %138 : vector<8x128xf32>
    %cst_39 = arith.constant dense<0.000000e+00> : vector<8x512xf32>
    %140 = tpu.matmul %82, %51, %cst_39 {dimension_numbers = #tpu.dot_dimension_numbers<[1], [0], [0], [1], [0, 0, 1, 1], [], []>} : vector<8x128xf32>, vector<128x512xf32>, vector<8x512xf32> -> vector<8x512xf32>
    %cst_40 = arith.constant dense<0.000000e+00> : vector<8x512xf32>
    %141 = tpu.matmul %139, %50, %cst_40 {dimension_numbers = #tpu.dot_dimension_numbers<[1], [0], [0], [1], [0, 0, 1, 1], [], []>} : vector<8x128xf32>, vector<128x512xf32>, vector<8x512xf32> -> vector<8x512xf32>
    %142 = arith.addf %140, %141 : vector<8x512xf32>
    %143 = arith.addf %142, %13 : vector<8x512xf32>
    %144 = vector.extract_strided_slice %143 {offsets = [0, 0], sizes = [8, 128], strides = [1, 1]} : vector<8x512xf32> to vector<8x128xf32>
    %145 = arith.negf %144 : vector<8x128xf32>
    %146 = math.exp %145 : vector<8x128xf32>
    %cst_41 = arith.constant 1.000000e+00 : f32
    %147 = vector.broadcast %cst_41 : f32 to vector<8x128xf32>
    %148 = arith.addf %147, %146 : vector<8x128xf32>
    %149 = arith.divf %147, %148 : vector<8x128xf32>
    %150 = vector.extract_strided_slice %143 {offsets = [0, 128], sizes = [8, 128], strides = [1, 1]} : vector<8x512xf32> to vector<8x128xf32>
    %151 = arith.negf %150 : vector<8x128xf32>
    %152 = math.exp %151 : vector<8x128xf32>
    %cst_42 = arith.constant 1.000000e+00 : f32
    %153 = vector.broadcast %cst_42 : f32 to vector<8x128xf32>
    %154 = arith.addf %153, %152 : vector<8x128xf32>
    %155 = arith.divf %153, %154 : vector<8x128xf32>
    %156 = vector.extract_strided_slice %143 {offsets = [0, 256], sizes = [8, 128], strides = [1, 1]} : vector<8x512xf32> to vector<8x128xf32>
    %157 = math.tanh %156 : vector<8x128xf32>
    %158 = vector.extract_strided_slice %143 {offsets = [0, 384], sizes = [8, 128], strides = [1, 1]} : vector<8x512xf32> to vector<8x128xf32>
    %159 = arith.negf %158 : vector<8x128xf32>
    %160 = math.exp %159 : vector<8x128xf32>
    %cst_43 = arith.constant 1.000000e+00 : f32
    %161 = vector.broadcast %cst_43 : f32 to vector<8x128xf32>
    %162 = arith.addf %161, %160 : vector<8x128xf32>
    %163 = arith.divf %161, %162 : vector<8x128xf32>
    %164 = arith.mulf %155, %80 : vector<8x128xf32>
    %165 = arith.mulf %149, %157 : vector<8x128xf32>
    %166 = arith.addf %164, %165 : vector<8x128xf32>
    %167 = math.tanh %166 : vector<8x128xf32>
    %168 = arith.mulf %163, %167 : vector<8x128xf32>
    %cst_44 = arith.constant dense<0.000000e+00> : vector<8x512xf32>
    %169 = tpu.matmul %111, %53, %cst_44 {dimension_numbers = #tpu.dot_dimension_numbers<[1], [0], [0], [1], [0, 0, 1, 1], [], []>} : vector<8x128xf32>, vector<128x512xf32>, vector<8x512xf32> -> vector<8x512xf32>
    %cst_45 = arith.constant dense<0.000000e+00> : vector<8x512xf32>
    %170 = tpu.matmul %168, %52, %cst_45 {dimension_numbers = #tpu.dot_dimension_numbers<[1], [0], [0], [1], [0, 0, 1, 1], [], []>} : vector<8x128xf32>, vector<128x512xf32>, vector<8x512xf32> -> vector<8x512xf32>
    %171 = arith.addf %169, %170 : vector<8x512xf32>
    %172 = arith.addf %171, %16 : vector<8x512xf32>
    %173 = vector.extract_strided_slice %172 {offsets = [0, 0], sizes = [8, 128], strides = [1, 1]} : vector<8x512xf32> to vector<8x128xf32>
    %174 = arith.negf %173 : vector<8x128xf32>
    %175 = math.exp %174 : vector<8x128xf32>
    %cst_46 = arith.constant 1.000000e+00 : f32
    %176 = vector.broadcast %cst_46 : f32 to vector<8x128xf32>
    %177 = arith.addf %176, %175 : vector<8x128xf32>
    %178 = arith.divf %176, %177 : vector<8x128xf32>
    %179 = vector.extract_strided_slice %172 {offsets = [0, 128], sizes = [8, 128], strides = [1, 1]} : vector<8x512xf32> to vector<8x128xf32>
    %180 = arith.negf %179 : vector<8x128xf32>
    %181 = math.exp %180 : vector<8x128xf32>
    %cst_47 = arith.constant 1.000000e+00 : f32
    %182 = vector.broadcast %cst_47 : f32 to vector<8x128xf32>
    %183 = arith.addf %182, %181 : vector<8x128xf32>
    %184 = arith.divf %182, %183 : vector<8x128xf32>
    %185 = vector.extract_strided_slice %172 {offsets = [0, 256], sizes = [8, 128], strides = [1, 1]} : vector<8x512xf32> to vector<8x128xf32>
    %186 = math.tanh %185 : vector<8x128xf32>
    %187 = vector.extract_strided_slice %172 {offsets = [0, 384], sizes = [8, 128], strides = [1, 1]} : vector<8x512xf32> to vector<8x128xf32>
    %188 = arith.negf %187 : vector<8x128xf32>
    %189 = math.exp %188 : vector<8x128xf32>
    %cst_48 = arith.constant 1.000000e+00 : f32
    %190 = vector.broadcast %cst_48 : f32 to vector<8x128xf32>
    %191 = arith.addf %190, %189 : vector<8x128xf32>
    %192 = arith.divf %190, %191 : vector<8x128xf32>
    %193 = arith.mulf %184, %109 : vector<8x128xf32>
    %194 = arith.mulf %178, %186 : vector<8x128xf32>
    %195 = arith.addf %193, %194 : vector<8x128xf32>
    %196 = math.tanh %195 : vector<8x128xf32>
    %197 = arith.mulf %192, %196 : vector<8x128xf32>
    %198 = vector.extract_strided_slice %9 {offsets = [16, 0], sizes = [8, 512], strides = [1, 1]} : vector<64x512xf32> to vector<8x512xf32>
    %cst_49 = arith.constant dense<0.000000e+00> : vector<8x512xf32>
    %199 = tpu.matmul %139, %10, %cst_49 {dimension_numbers = #tpu.dot_dimension_numbers<[1], [0], [0], [1], [0, 0, 1, 1], [], []>} : vector<8x128xf32>, vector<128x512xf32>, vector<8x512xf32> -> vector<8x512xf32>
    %200 = arith.addf %198, %199 : vector<8x512xf32>
    %201 = vector.extract_strided_slice %200 {offsets = [0, 0], sizes = [8, 128], strides = [1, 1]} : vector<8x512xf32> to vector<8x128xf32>
    %202 = arith.negf %201 : vector<8x128xf32>
    %203 = math.exp %202 : vector<8x128xf32>
    %cst_50 = arith.constant 1.000000e+00 : f32
    %204 = vector.broadcast %cst_50 : f32 to vector<8x128xf32>
    %205 = arith.addf %204, %203 : vector<8x128xf32>
    %206 = arith.divf %204, %205 : vector<8x128xf32>
    %207 = vector.extract_strided_slice %200 {offsets = [0, 128], sizes = [8, 128], strides = [1, 1]} : vector<8x512xf32> to vector<8x128xf32>
    %208 = arith.negf %207 : vector<8x128xf32>
    %209 = math.exp %208 : vector<8x128xf32>
    %cst_51 = arith.constant 1.000000e+00 : f32
    %210 = vector.broadcast %cst_51 : f32 to vector<8x128xf32>
    %211 = arith.addf %210, %209 : vector<8x128xf32>
    %212 = arith.divf %210, %211 : vector<8x128xf32>
    %213 = vector.extract_strided_slice %200 {offsets = [0, 256], sizes = [8, 128], strides = [1, 1]} : vector<8x512xf32> to vector<8x128xf32>
    %214 = math.tanh %213 : vector<8x128xf32>
    %215 = vector.extract_strided_slice %200 {offsets = [0, 384], sizes = [8, 128], strides = [1, 1]} : vector<8x512xf32> to vector<8x128xf32>
    %216 = arith.negf %215 : vector<8x128xf32>
    %217 = math.exp %216 : vector<8x128xf32>
    %cst_52 = arith.constant 1.000000e+00 : f32
    %218 = vector.broadcast %cst_52 : f32 to vector<8x128xf32>
    %219 = arith.addf %218, %217 : vector<8x128xf32>
    %220 = arith.divf %218, %219 : vector<8x128xf32>
    %221 = arith.mulf %212, %137 : vector<8x128xf32>
    %222 = arith.mulf %206, %214 : vector<8x128xf32>
    %223 = arith.addf %221, %222 : vector<8x128xf32>
    %224 = math.tanh %223 : vector<8x128xf32>
    %225 = arith.mulf %220, %224 : vector<8x128xf32>
    %cst_53 = arith.constant dense<0.000000e+00> : vector<8x512xf32>
    %226 = tpu.matmul %168, %51, %cst_53 {dimension_numbers = #tpu.dot_dimension_numbers<[1], [0], [0], [1], [0, 0, 1, 1], [], []>} : vector<8x128xf32>, vector<128x512xf32>, vector<8x512xf32> -> vector<8x512xf32>
    %cst_54 = arith.constant dense<0.000000e+00> : vector<8x512xf32>
    %227 = tpu.matmul %225, %50, %cst_54 {dimension_numbers = #tpu.dot_dimension_numbers<[1], [0], [0], [1], [0, 0, 1, 1], [], []>} : vector<8x128xf32>, vector<128x512xf32>, vector<8x512xf32> -> vector<8x512xf32>
    %228 = arith.addf %226, %227 : vector<8x512xf32>
    %229 = arith.addf %228, %13 : vector<8x512xf32>
    %230 = vector.extract_strided_slice %229 {offsets = [0, 0], sizes = [8, 128], strides = [1, 1]} : vector<8x512xf32> to vector<8x128xf32>
    %231 = arith.negf %230 : vector<8x128xf32>
    %232 = math.exp %231 : vector<8x128xf32>
    %cst_55 = arith.constant 1.000000e+00 : f32
    %233 = vector.broadcast %cst_55 : f32 to vector<8x128xf32>
    %234 = arith.addf %233, %232 : vector<8x128xf32>
    %235 = arith.divf %233, %234 : vector<8x128xf32>
    %236 = vector.extract_strided_slice %229 {offsets = [0, 128], sizes = [8, 128], strides = [1, 1]} : vector<8x512xf32> to vector<8x128xf32>
    %237 = arith.negf %236 : vector<8x128xf32>
    %238 = math.exp %237 : vector<8x128xf32>
    %cst_56 = arith.constant 1.000000e+00 : f32
    %239 = vector.broadcast %cst_56 : f32 to vector<8x128xf32>
    %240 = arith.addf %239, %238 : vector<8x128xf32>
    %241 = arith.divf %239, %240 : vector<8x128xf32>
    %242 = vector.extract_strided_slice %229 {offsets = [0, 256], sizes = [8, 128], strides = [1, 1]} : vector<8x512xf32> to vector<8x128xf32>
    %243 = math.tanh %242 : vector<8x128xf32>
    %244 = vector.extract_strided_slice %229 {offsets = [0, 384], sizes = [8, 128], strides = [1, 1]} : vector<8x512xf32> to vector<8x128xf32>
    %245 = arith.negf %244 : vector<8x128xf32>
    %246 = math.exp %245 : vector<8x128xf32>
    %cst_57 = arith.constant 1.000000e+00 : f32
    %247 = vector.broadcast %cst_57 : f32 to vector<8x128xf32>
    %248 = arith.addf %247, %246 : vector<8x128xf32>
    %249 = arith.divf %247, %248 : vector<8x128xf32>
    %250 = arith.mulf %241, %166 : vector<8x128xf32>
    %251 = arith.mulf %235, %243 : vector<8x128xf32>
    %252 = arith.addf %250, %251 : vector<8x128xf32>
    %253 = math.tanh %252 : vector<8x128xf32>
    %254 = arith.mulf %249, %253 : vector<8x128xf32>
    %cst_58 = arith.constant dense<0.000000e+00> : vector<8x512xf32>
    %255 = tpu.matmul %197, %53, %cst_58 {dimension_numbers = #tpu.dot_dimension_numbers<[1], [0], [0], [1], [0, 0, 1, 1], [], []>} : vector<8x128xf32>, vector<128x512xf32>, vector<8x512xf32> -> vector<8x512xf32>
    %cst_59 = arith.constant dense<0.000000e+00> : vector<8x512xf32>
    %256 = tpu.matmul %254, %52, %cst_59 {dimension_numbers = #tpu.dot_dimension_numbers<[1], [0], [0], [1], [0, 0, 1, 1], [], []>} : vector<8x128xf32>, vector<128x512xf32>, vector<8x512xf32> -> vector<8x512xf32>
    %257 = arith.addf %255, %256 : vector<8x512xf32>
    %258 = arith.addf %257, %16 : vector<8x512xf32>
    %259 = vector.extract_strided_slice %258 {offsets = [0, 0], sizes = [8, 128], strides = [1, 1]} : vector<8x512xf32> to vector<8x128xf32>
    %260 = arith.negf %259 : vector<8x128xf32>
    %261 = math.exp %260 : vector<8x128xf32>
    %cst_60 = arith.constant 1.000000e+00 : f32
    %262 = vector.broadcast %cst_60 : f32 to vector<8x128xf32>
    %263 = arith.addf %262, %261 : vector<8x128xf32>
    %264 = arith.divf %262, %263 : vector<8x128xf32>
    %265 = vector.extract_strided_slice %258 {offsets = [0, 128], sizes = [8, 128], strides = [1, 1]} : vector<8x512xf32> to vector<8x128xf32>
    %266 = arith.negf %265 : vector<8x128xf32>
    %267 = math.exp %266 : vector<8x128xf32>
    %cst_61 = arith.constant 1.000000e+00 : f32
    %268 = vector.broadcast %cst_61 : f32 to vector<8x128xf32>
    %269 = arith.addf %268, %267 : vector<8x128xf32>
    %270 = arith.divf %268, %269 : vector<8x128xf32>
    %271 = vector.extract_strided_slice %258 {offsets = [0, 256], sizes = [8, 128], strides = [1, 1]} : vector<8x512xf32> to vector<8x128xf32>
    %272 = math.tanh %271 : vector<8x128xf32>
    %273 = vector.extract_strided_slice %258 {offsets = [0, 384], sizes = [8, 128], strides = [1, 1]} : vector<8x512xf32> to vector<8x128xf32>
    %274 = arith.negf %273 : vector<8x128xf32>
    %275 = math.exp %274 : vector<8x128xf32>
    %cst_62 = arith.constant 1.000000e+00 : f32
    %276 = vector.broadcast %cst_62 : f32 to vector<8x128xf32>
    %277 = arith.addf %276, %275 : vector<8x128xf32>
    %278 = arith.divf %276, %277 : vector<8x128xf32>
    %279 = arith.mulf %270, %195 : vector<8x128xf32>
    %280 = arith.mulf %264, %272 : vector<8x128xf32>
    %281 = arith.addf %279, %280 : vector<8x128xf32>
    %282 = math.tanh %281 : vector<8x128xf32>
    %283 = arith.mulf %278, %282 : vector<8x128xf32>
    %284 = vector.extract_strided_slice %9 {offsets = [24, 0], sizes = [8, 512], strides = [1, 1]} : vector<64x512xf32> to vector<8x512xf32>
    %cst_63 = arith.constant dense<0.000000e+00> : vector<8x512xf32>
    %285 = tpu.matmul %225, %10, %cst_63 {dimension_numbers = #tpu.dot_dimension_numbers<[1], [0], [0], [1], [0, 0, 1, 1], [], []>} : vector<8x128xf32>, vector<128x512xf32>, vector<8x512xf32> -> vector<8x512xf32>
    %286 = arith.addf %284, %285 : vector<8x512xf32>
    %287 = vector.extract_strided_slice %286 {offsets = [0, 0], sizes = [8, 128], strides = [1, 1]} : vector<8x512xf32> to vector<8x128xf32>
    %288 = arith.negf %287 : vector<8x128xf32>
    %289 = math.exp %288 : vector<8x128xf32>
    %cst_64 = arith.constant 1.000000e+00 : f32
    %290 = vector.broadcast %cst_64 : f32 to vector<8x128xf32>
    %291 = arith.addf %290, %289 : vector<8x128xf32>
    %292 = arith.divf %290, %291 : vector<8x128xf32>
    %293 = vector.extract_strided_slice %286 {offsets = [0, 128], sizes = [8, 128], strides = [1, 1]} : vector<8x512xf32> to vector<8x128xf32>
    %294 = arith.negf %293 : vector<8x128xf32>
    %295 = math.exp %294 : vector<8x128xf32>
    %cst_65 = arith.constant 1.000000e+00 : f32
    %296 = vector.broadcast %cst_65 : f32 to vector<8x128xf32>
    %297 = arith.addf %296, %295 : vector<8x128xf32>
    %298 = arith.divf %296, %297 : vector<8x128xf32>
    %299 = vector.extract_strided_slice %286 {offsets = [0, 256], sizes = [8, 128], strides = [1, 1]} : vector<8x512xf32> to vector<8x128xf32>
    %300 = math.tanh %299 : vector<8x128xf32>
    %301 = vector.extract_strided_slice %286 {offsets = [0, 384], sizes = [8, 128], strides = [1, 1]} : vector<8x512xf32> to vector<8x128xf32>
    %302 = arith.negf %301 : vector<8x128xf32>
    %303 = math.exp %302 : vector<8x128xf32>
    %cst_66 = arith.constant 1.000000e+00 : f32
    %304 = vector.broadcast %cst_66 : f32 to vector<8x128xf32>
    %305 = arith.addf %304, %303 : vector<8x128xf32>
    %306 = arith.divf %304, %305 : vector<8x128xf32>
    %307 = arith.mulf %298, %223 : vector<8x128xf32>
    %308 = arith.mulf %292, %300 : vector<8x128xf32>
    %309 = arith.addf %307, %308 : vector<8x128xf32>
    %310 = math.tanh %309 : vector<8x128xf32>
    %311 = arith.mulf %306, %310 : vector<8x128xf32>
    %cst_67 = arith.constant dense<0.000000e+00> : vector<8x512xf32>
    %312 = tpu.matmul %254, %51, %cst_67 {dimension_numbers = #tpu.dot_dimension_numbers<[1], [0], [0], [1], [0, 0, 1, 1], [], []>} : vector<8x128xf32>, vector<128x512xf32>, vector<8x512xf32> -> vector<8x512xf32>
    %cst_68 = arith.constant dense<0.000000e+00> : vector<8x512xf32>
    %313 = tpu.matmul %311, %50, %cst_68 {dimension_numbers = #tpu.dot_dimension_numbers<[1], [0], [0], [1], [0, 0, 1, 1], [], []>} : vector<8x128xf32>, vector<128x512xf32>, vector<8x512xf32> -> vector<8x512xf32>
    %314 = arith.addf %312, %313 : vector<8x512xf32>
    %315 = arith.addf %314, %13 : vector<8x512xf32>
    %316 = vector.extract_strided_slice %315 {offsets = [0, 0], sizes = [8, 128], strides = [1, 1]} : vector<8x512xf32> to vector<8x128xf32>
    %317 = arith.negf %316 : vector<8x128xf32>
    %318 = math.exp %317 : vector<8x128xf32>
    %cst_69 = arith.constant 1.000000e+00 : f32
    %319 = vector.broadcast %cst_69 : f32 to vector<8x128xf32>
    %320 = arith.addf %319, %318 : vector<8x128xf32>
    %321 = arith.divf %319, %320 : vector<8x128xf32>
    %322 = vector.extract_strided_slice %315 {offsets = [0, 128], sizes = [8, 128], strides = [1, 1]} : vector<8x512xf32> to vector<8x128xf32>
    %323 = arith.negf %322 : vector<8x128xf32>
    %324 = math.exp %323 : vector<8x128xf32>
    %cst_70 = arith.constant 1.000000e+00 : f32
    %325 = vector.broadcast %cst_70 : f32 to vector<8x128xf32>
    %326 = arith.addf %325, %324 : vector<8x128xf32>
    %327 = arith.divf %325, %326 : vector<8x128xf32>
    %328 = vector.extract_strided_slice %315 {offsets = [0, 256], sizes = [8, 128], strides = [1, 1]} : vector<8x512xf32> to vector<8x128xf32>
    %329 = math.tanh %328 : vector<8x128xf32>
    %330 = vector.extract_strided_slice %315 {offsets = [0, 384], sizes = [8, 128], strides = [1, 1]} : vector<8x512xf32> to vector<8x128xf32>
    %331 = arith.negf %330 : vector<8x128xf32>
    %332 = math.exp %331 : vector<8x128xf32>
    %cst_71 = arith.constant 1.000000e+00 : f32
    %333 = vector.broadcast %cst_71 : f32 to vector<8x128xf32>
    %334 = arith.addf %333, %332 : vector<8x128xf32>
    %335 = arith.divf %333, %334 : vector<8x128xf32>
    %336 = arith.mulf %327, %252 : vector<8x128xf32>
    %337 = arith.mulf %321, %329 : vector<8x128xf32>
    %338 = arith.addf %336, %337 : vector<8x128xf32>
    %339 = math.tanh %338 : vector<8x128xf32>
    %340 = arith.mulf %335, %339 : vector<8x128xf32>
    %cst_72 = arith.constant dense<0.000000e+00> : vector<8x512xf32>
    %341 = tpu.matmul %283, %53, %cst_72 {dimension_numbers = #tpu.dot_dimension_numbers<[1], [0], [0], [1], [0, 0, 1, 1], [], []>} : vector<8x128xf32>, vector<128x512xf32>, vector<8x512xf32> -> vector<8x512xf32>
    %cst_73 = arith.constant dense<0.000000e+00> : vector<8x512xf32>
    %342 = tpu.matmul %340, %52, %cst_73 {dimension_numbers = #tpu.dot_dimension_numbers<[1], [0], [0], [1], [0, 0, 1, 1], [], []>} : vector<8x128xf32>, vector<128x512xf32>, vector<8x512xf32> -> vector<8x512xf32>
    %343 = arith.addf %341, %342 : vector<8x512xf32>
    %344 = arith.addf %343, %16 : vector<8x512xf32>
    %345 = vector.extract_strided_slice %344 {offsets = [0, 0], sizes = [8, 128], strides = [1, 1]} : vector<8x512xf32> to vector<8x128xf32>
    %346 = arith.negf %345 : vector<8x128xf32>
    %347 = math.exp %346 : vector<8x128xf32>
    %cst_74 = arith.constant 1.000000e+00 : f32
    %348 = vector.broadcast %cst_74 : f32 to vector<8x128xf32>
    %349 = arith.addf %348, %347 : vector<8x128xf32>
    %350 = arith.divf %348, %349 : vector<8x128xf32>
    %351 = vector.extract_strided_slice %344 {offsets = [0, 128], sizes = [8, 128], strides = [1, 1]} : vector<8x512xf32> to vector<8x128xf32>
    %352 = arith.negf %351 : vector<8x128xf32>
    %353 = math.exp %352 : vector<8x128xf32>
    %cst_75 = arith.constant 1.000000e+00 : f32
    %354 = vector.broadcast %cst_75 : f32 to vector<8x128xf32>
    %355 = arith.addf %354, %353 : vector<8x128xf32>
    %356 = arith.divf %354, %355 : vector<8x128xf32>
    %357 = vector.extract_strided_slice %344 {offsets = [0, 256], sizes = [8, 128], strides = [1, 1]} : vector<8x512xf32> to vector<8x128xf32>
    %358 = math.tanh %357 : vector<8x128xf32>
    %359 = vector.extract_strided_slice %344 {offsets = [0, 384], sizes = [8, 128], strides = [1, 1]} : vector<8x512xf32> to vector<8x128xf32>
    %360 = arith.negf %359 : vector<8x128xf32>
    %361 = math.exp %360 : vector<8x128xf32>
    %cst_76 = arith.constant 1.000000e+00 : f32
    %362 = vector.broadcast %cst_76 : f32 to vector<8x128xf32>
    %363 = arith.addf %362, %361 : vector<8x128xf32>
    %364 = arith.divf %362, %363 : vector<8x128xf32>
    %365 = arith.mulf %356, %281 : vector<8x128xf32>
    %366 = arith.mulf %350, %358 : vector<8x128xf32>
    %367 = arith.addf %365, %366 : vector<8x128xf32>
    %368 = math.tanh %367 : vector<8x128xf32>
    %369 = arith.mulf %364, %368 : vector<8x128xf32>
    %370 = vector.extract_strided_slice %9 {offsets = [32, 0], sizes = [8, 512], strides = [1, 1]} : vector<64x512xf32> to vector<8x512xf32>
    %cst_77 = arith.constant dense<0.000000e+00> : vector<8x512xf32>
    %371 = tpu.matmul %311, %10, %cst_77 {dimension_numbers = #tpu.dot_dimension_numbers<[1], [0], [0], [1], [0, 0, 1, 1], [], []>} : vector<8x128xf32>, vector<128x512xf32>, vector<8x512xf32> -> vector<8x512xf32>
    %372 = arith.addf %370, %371 : vector<8x512xf32>
    %373 = vector.extract_strided_slice %372 {offsets = [0, 0], sizes = [8, 128], strides = [1, 1]} : vector<8x512xf32> to vector<8x128xf32>
    %374 = arith.negf %373 : vector<8x128xf32>
    %375 = math.exp %374 : vector<8x128xf32>
    %cst_78 = arith.constant 1.000000e+00 : f32
    %376 = vector.broadcast %cst_78 : f32 to vector<8x128xf32>
    %377 = arith.addf %376, %375 : vector<8x128xf32>
    %378 = arith.divf %376, %377 : vector<8x128xf32>
    %379 = vector.extract_strided_slice %372 {offsets = [0, 128], sizes = [8, 128], strides = [1, 1]} : vector<8x512xf32> to vector<8x128xf32>
    %380 = arith.negf %379 : vector<8x128xf32>
    %381 = math.exp %380 : vector<8x128xf32>
    %cst_79 = arith.constant 1.000000e+00 : f32
    %382 = vector.broadcast %cst_79 : f32 to vector<8x128xf32>
    %383 = arith.addf %382, %381 : vector<8x128xf32>
    %384 = arith.divf %382, %383 : vector<8x128xf32>
    %385 = vector.extract_strided_slice %372 {offsets = [0, 256], sizes = [8, 128], strides = [1, 1]} : vector<8x512xf32> to vector<8x128xf32>
    %386 = math.tanh %385 : vector<8x128xf32>
    %387 = vector.extract_strided_slice %372 {offsets = [0, 384], sizes = [8, 128], strides = [1, 1]} : vector<8x512xf32> to vector<8x128xf32>
    %388 = arith.negf %387 : vector<8x128xf32>
    %389 = math.exp %388 : vector<8x128xf32>
    %cst_80 = arith.constant 1.000000e+00 : f32
    %390 = vector.broadcast %cst_80 : f32 to vector<8x128xf32>
    %391 = arith.addf %390, %389 : vector<8x128xf32>
    %392 = arith.divf %390, %391 : vector<8x128xf32>
    %393 = arith.mulf %384, %309 : vector<8x128xf32>
    %394 = arith.mulf %378, %386 : vector<8x128xf32>
    %395 = arith.addf %393, %394 : vector<8x128xf32>
    %396 = math.tanh %395 : vector<8x128xf32>
    %397 = arith.mulf %392, %396 : vector<8x128xf32>
    %cst_81 = arith.constant dense<0.000000e+00> : vector<8x512xf32>
    %398 = tpu.matmul %340, %51, %cst_81 {dimension_numbers = #tpu.dot_dimension_numbers<[1], [0], [0], [1], [0, 0, 1, 1], [], []>} : vector<8x128xf32>, vector<128x512xf32>, vector<8x512xf32> -> vector<8x512xf32>
    %cst_82 = arith.constant dense<0.000000e+00> : vector<8x512xf32>
    %399 = tpu.matmul %397, %50, %cst_82 {dimension_numbers = #tpu.dot_dimension_numbers<[1], [0], [0], [1], [0, 0, 1, 1], [], []>} : vector<8x128xf32>, vector<128x512xf32>, vector<8x512xf32> -> vector<8x512xf32>
    %400 = arith.addf %398, %399 : vector<8x512xf32>
    %401 = arith.addf %400, %13 : vector<8x512xf32>
    %402 = vector.extract_strided_slice %401 {offsets = [0, 0], sizes = [8, 128], strides = [1, 1]} : vector<8x512xf32> to vector<8x128xf32>
    %403 = arith.negf %402 : vector<8x128xf32>
    %404 = math.exp %403 : vector<8x128xf32>
    %cst_83 = arith.constant 1.000000e+00 : f32
    %405 = vector.broadcast %cst_83 : f32 to vector<8x128xf32>
    %406 = arith.addf %405, %404 : vector<8x128xf32>
    %407 = arith.divf %405, %406 : vector<8x128xf32>
    %408 = vector.extract_strided_slice %401 {offsets = [0, 128], sizes = [8, 128], strides = [1, 1]} : vector<8x512xf32> to vector<8x128xf32>
    %409 = arith.negf %408 : vector<8x128xf32>
    %410 = math.exp %409 : vector<8x128xf32>
    %cst_84 = arith.constant 1.000000e+00 : f32
    %411 = vector.broadcast %cst_84 : f32 to vector<8x128xf32>
    %412 = arith.addf %411, %410 : vector<8x128xf32>
    %413 = arith.divf %411, %412 : vector<8x128xf32>
    %414 = vector.extract_strided_slice %401 {offsets = [0, 256], sizes = [8, 128], strides = [1, 1]} : vector<8x512xf32> to vector<8x128xf32>
    %415 = math.tanh %414 : vector<8x128xf32>
    %416 = vector.extract_strided_slice %401 {offsets = [0, 384], sizes = [8, 128], strides = [1, 1]} : vector<8x512xf32> to vector<8x128xf32>
    %417 = arith.negf %416 : vector<8x128xf32>
    %418 = math.exp %417 : vector<8x128xf32>
    %cst_85 = arith.constant 1.000000e+00 : f32
    %419 = vector.broadcast %cst_85 : f32 to vector<8x128xf32>
    %420 = arith.addf %419, %418 : vector<8x128xf32>
    %421 = arith.divf %419, %420 : vector<8x128xf32>
    %422 = arith.mulf %413, %338 : vector<8x128xf32>
    %423 = arith.mulf %407, %415 : vector<8x128xf32>
    %424 = arith.addf %422, %423 : vector<8x128xf32>
    %425 = math.tanh %424 : vector<8x128xf32>
    %426 = arith.mulf %421, %425 : vector<8x128xf32>
    %cst_86 = arith.constant dense<0.000000e+00> : vector<8x512xf32>
    %427 = tpu.matmul %369, %53, %cst_86 {dimension_numbers = #tpu.dot_dimension_numbers<[1], [0], [0], [1], [0, 0, 1, 1], [], []>} : vector<8x128xf32>, vector<128x512xf32>, vector<8x512xf32> -> vector<8x512xf32>
    %cst_87 = arith.constant dense<0.000000e+00> : vector<8x512xf32>
    %428 = tpu.matmul %426, %52, %cst_87 {dimension_numbers = #tpu.dot_dimension_numbers<[1], [0], [0], [1], [0, 0, 1, 1], [], []>} : vector<8x128xf32>, vector<128x512xf32>, vector<8x512xf32> -> vector<8x512xf32>
    %429 = arith.addf %427, %428 : vector<8x512xf32>
    %430 = arith.addf %429, %16 : vector<8x512xf32>
    %431 = vector.extract_strided_slice %430 {offsets = [0, 0], sizes = [8, 128], strides = [1, 1]} : vector<8x512xf32> to vector<8x128xf32>
    %432 = arith.negf %431 : vector<8x128xf32>
    %433 = math.exp %432 : vector<8x128xf32>
    %cst_88 = arith.constant 1.000000e+00 : f32
    %434 = vector.broadcast %cst_88 : f32 to vector<8x128xf32>
    %435 = arith.addf %434, %433 : vector<8x128xf32>
    %436 = arith.divf %434, %435 : vector<8x128xf32>
    %437 = vector.extract_strided_slice %430 {offsets = [0, 128], sizes = [8, 128], strides = [1, 1]} : vector<8x512xf32> to vector<8x128xf32>
    %438 = arith.negf %437 : vector<8x128xf32>
    %439 = math.exp %438 : vector<8x128xf32>
    %cst_89 = arith.constant 1.000000e+00 : f32
    %440 = vector.broadcast %cst_89 : f32 to vector<8x128xf32>
    %441 = arith.addf %440, %439 : vector<8x128xf32>
    %442 = arith.divf %440, %441 : vector<8x128xf32>
    %443 = vector.extract_strided_slice %430 {offsets = [0, 256], sizes = [8, 128], strides = [1, 1]} : vector<8x512xf32> to vector<8x128xf32>
    %444 = math.tanh %443 : vector<8x128xf32>
    %445 = vector.extract_strided_slice %430 {offsets = [0, 384], sizes = [8, 128], strides = [1, 1]} : vector<8x512xf32> to vector<8x128xf32>
    %446 = arith.negf %445 : vector<8x128xf32>
    %447 = math.exp %446 : vector<8x128xf32>
    %cst_90 = arith.constant 1.000000e+00 : f32
    %448 = vector.broadcast %cst_90 : f32 to vector<8x128xf32>
    %449 = arith.addf %448, %447 : vector<8x128xf32>
    %450 = arith.divf %448, %449 : vector<8x128xf32>
    %451 = arith.mulf %442, %367 : vector<8x128xf32>
    %452 = arith.mulf %436, %444 : vector<8x128xf32>
    %453 = arith.addf %451, %452 : vector<8x128xf32>
    %454 = math.tanh %453 : vector<8x128xf32>
    %455 = arith.mulf %450, %454 : vector<8x128xf32>
    %456 = vector.extract_strided_slice %9 {offsets = [40, 0], sizes = [8, 512], strides = [1, 1]} : vector<64x512xf32> to vector<8x512xf32>
    %cst_91 = arith.constant dense<0.000000e+00> : vector<8x512xf32>
    %457 = tpu.matmul %397, %10, %cst_91 {dimension_numbers = #tpu.dot_dimension_numbers<[1], [0], [0], [1], [0, 0, 1, 1], [], []>} : vector<8x128xf32>, vector<128x512xf32>, vector<8x512xf32> -> vector<8x512xf32>
    %458 = arith.addf %456, %457 : vector<8x512xf32>
    %459 = vector.extract_strided_slice %458 {offsets = [0, 0], sizes = [8, 128], strides = [1, 1]} : vector<8x512xf32> to vector<8x128xf32>
    %460 = arith.negf %459 : vector<8x128xf32>
    %461 = math.exp %460 : vector<8x128xf32>
    %cst_92 = arith.constant 1.000000e+00 : f32
    %462 = vector.broadcast %cst_92 : f32 to vector<8x128xf32>
    %463 = arith.addf %462, %461 : vector<8x128xf32>
    %464 = arith.divf %462, %463 : vector<8x128xf32>
    %465 = vector.extract_strided_slice %458 {offsets = [0, 128], sizes = [8, 128], strides = [1, 1]} : vector<8x512xf32> to vector<8x128xf32>
    %466 = arith.negf %465 : vector<8x128xf32>
    %467 = math.exp %466 : vector<8x128xf32>
    %cst_93 = arith.constant 1.000000e+00 : f32
    %468 = vector.broadcast %cst_93 : f32 to vector<8x128xf32>
    %469 = arith.addf %468, %467 : vector<8x128xf32>
    %470 = arith.divf %468, %469 : vector<8x128xf32>
    %471 = vector.extract_strided_slice %458 {offsets = [0, 256], sizes = [8, 128], strides = [1, 1]} : vector<8x512xf32> to vector<8x128xf32>
    %472 = math.tanh %471 : vector<8x128xf32>
    %473 = vector.extract_strided_slice %458 {offsets = [0, 384], sizes = [8, 128], strides = [1, 1]} : vector<8x512xf32> to vector<8x128xf32>
    %474 = arith.negf %473 : vector<8x128xf32>
    %475 = math.exp %474 : vector<8x128xf32>
    %cst_94 = arith.constant 1.000000e+00 : f32
    %476 = vector.broadcast %cst_94 : f32 to vector<8x128xf32>
    %477 = arith.addf %476, %475 : vector<8x128xf32>
    %478 = arith.divf %476, %477 : vector<8x128xf32>
    %479 = arith.mulf %470, %395 : vector<8x128xf32>
    %480 = arith.mulf %464, %472 : vector<8x128xf32>
    %481 = arith.addf %479, %480 : vector<8x128xf32>
    %482 = math.tanh %481 : vector<8x128xf32>
    %483 = arith.mulf %478, %482 : vector<8x128xf32>
    %cst_95 = arith.constant dense<0.000000e+00> : vector<8x512xf32>
    %484 = tpu.matmul %426, %51, %cst_95 {dimension_numbers = #tpu.dot_dimension_numbers<[1], [0], [0], [1], [0, 0, 1, 1], [], []>} : vector<8x128xf32>, vector<128x512xf32>, vector<8x512xf32> -> vector<8x512xf32>
    %cst_96 = arith.constant dense<0.000000e+00> : vector<8x512xf32>
    %485 = tpu.matmul %483, %50, %cst_96 {dimension_numbers = #tpu.dot_dimension_numbers<[1], [0], [0], [1], [0, 0, 1, 1], [], []>} : vector<8x128xf32>, vector<128x512xf32>, vector<8x512xf32> -> vector<8x512xf32>
    %486 = arith.addf %484, %485 : vector<8x512xf32>
    %487 = arith.addf %486, %13 : vector<8x512xf32>
    %488 = vector.extract_strided_slice %487 {offsets = [0, 0], sizes = [8, 128], strides = [1, 1]} : vector<8x512xf32> to vector<8x128xf32>
    %489 = arith.negf %488 : vector<8x128xf32>
    %490 = math.exp %489 : vector<8x128xf32>
    %cst_97 = arith.constant 1.000000e+00 : f32
    %491 = vector.broadcast %cst_97 : f32 to vector<8x128xf32>
    %492 = arith.addf %491, %490 : vector<8x128xf32>
    %493 = arith.divf %491, %492 : vector<8x128xf32>
    %494 = vector.extract_strided_slice %487 {offsets = [0, 128], sizes = [8, 128], strides = [1, 1]} : vector<8x512xf32> to vector<8x128xf32>
    %495 = arith.negf %494 : vector<8x128xf32>
    %496 = math.exp %495 : vector<8x128xf32>
    %cst_98 = arith.constant 1.000000e+00 : f32
    %497 = vector.broadcast %cst_98 : f32 to vector<8x128xf32>
    %498 = arith.addf %497, %496 : vector<8x128xf32>
    %499 = arith.divf %497, %498 : vector<8x128xf32>
    %500 = vector.extract_strided_slice %487 {offsets = [0, 256], sizes = [8, 128], strides = [1, 1]} : vector<8x512xf32> to vector<8x128xf32>
    %501 = math.tanh %500 : vector<8x128xf32>
    %502 = vector.extract_strided_slice %487 {offsets = [0, 384], sizes = [8, 128], strides = [1, 1]} : vector<8x512xf32> to vector<8x128xf32>
    %503 = arith.negf %502 : vector<8x128xf32>
    %504 = math.exp %503 : vector<8x128xf32>
    %cst_99 = arith.constant 1.000000e+00 : f32
    %505 = vector.broadcast %cst_99 : f32 to vector<8x128xf32>
    %506 = arith.addf %505, %504 : vector<8x128xf32>
    %507 = arith.divf %505, %506 : vector<8x128xf32>
    %508 = arith.mulf %499, %424 : vector<8x128xf32>
    %509 = arith.mulf %493, %501 : vector<8x128xf32>
    %510 = arith.addf %508, %509 : vector<8x128xf32>
    %511 = math.tanh %510 : vector<8x128xf32>
    %512 = arith.mulf %507, %511 : vector<8x128xf32>
    %cst_100 = arith.constant dense<0.000000e+00> : vector<8x512xf32>
    %513 = tpu.matmul %455, %53, %cst_100 {dimension_numbers = #tpu.dot_dimension_numbers<[1], [0], [0], [1], [0, 0, 1, 1], [], []>} : vector<8x128xf32>, vector<128x512xf32>, vector<8x512xf32> -> vector<8x512xf32>
    %cst_101 = arith.constant dense<0.000000e+00> : vector<8x512xf32>
    %514 = tpu.matmul %512, %52, %cst_101 {dimension_numbers = #tpu.dot_dimension_numbers<[1], [0], [0], [1], [0, 0, 1, 1], [], []>} : vector<8x128xf32>, vector<128x512xf32>, vector<8x512xf32> -> vector<8x512xf32>
    %515 = arith.addf %513, %514 : vector<8x512xf32>
    %516 = arith.addf %515, %16 : vector<8x512xf32>
    %517 = vector.extract_strided_slice %516 {offsets = [0, 0], sizes = [8, 128], strides = [1, 1]} : vector<8x512xf32> to vector<8x128xf32>
    %518 = arith.negf %517 : vector<8x128xf32>
    %519 = math.exp %518 : vector<8x128xf32>
    %cst_102 = arith.constant 1.000000e+00 : f32
    %520 = vector.broadcast %cst_102 : f32 to vector<8x128xf32>
    %521 = arith.addf %520, %519 : vector<8x128xf32>
    %522 = arith.divf %520, %521 : vector<8x128xf32>
    %523 = vector.extract_strided_slice %516 {offsets = [0, 128], sizes = [8, 128], strides = [1, 1]} : vector<8x512xf32> to vector<8x128xf32>
    %524 = arith.negf %523 : vector<8x128xf32>
    %525 = math.exp %524 : vector<8x128xf32>
    %cst_103 = arith.constant 1.000000e+00 : f32
    %526 = vector.broadcast %cst_103 : f32 to vector<8x128xf32>
    %527 = arith.addf %526, %525 : vector<8x128xf32>
    %528 = arith.divf %526, %527 : vector<8x128xf32>
    %529 = vector.extract_strided_slice %516 {offsets = [0, 256], sizes = [8, 128], strides = [1, 1]} : vector<8x512xf32> to vector<8x128xf32>
    %530 = math.tanh %529 : vector<8x128xf32>
    %531 = vector.extract_strided_slice %516 {offsets = [0, 384], sizes = [8, 128], strides = [1, 1]} : vector<8x512xf32> to vector<8x128xf32>
    %532 = arith.negf %531 : vector<8x128xf32>
    %533 = math.exp %532 : vector<8x128xf32>
    %cst_104 = arith.constant 1.000000e+00 : f32
    %534 = vector.broadcast %cst_104 : f32 to vector<8x128xf32>
    %535 = arith.addf %534, %533 : vector<8x128xf32>
    %536 = arith.divf %534, %535 : vector<8x128xf32>
    %537 = arith.mulf %528, %453 : vector<8x128xf32>
    %538 = arith.mulf %522, %530 : vector<8x128xf32>
    %539 = arith.addf %537, %538 : vector<8x128xf32>
    %540 = math.tanh %539 : vector<8x128xf32>
    %541 = arith.mulf %536, %540 : vector<8x128xf32>
    %542 = vector.extract_strided_slice %9 {offsets = [48, 0], sizes = [8, 512], strides = [1, 1]} : vector<64x512xf32> to vector<8x512xf32>
    %cst_105 = arith.constant dense<0.000000e+00> : vector<8x512xf32>
    %543 = tpu.matmul %483, %10, %cst_105 {dimension_numbers = #tpu.dot_dimension_numbers<[1], [0], [0], [1], [0, 0, 1, 1], [], []>} : vector<8x128xf32>, vector<128x512xf32>, vector<8x512xf32> -> vector<8x512xf32>
    %544 = arith.addf %542, %543 : vector<8x512xf32>
    %545 = vector.extract_strided_slice %544 {offsets = [0, 0], sizes = [8, 128], strides = [1, 1]} : vector<8x512xf32> to vector<8x128xf32>
    %546 = arith.negf %545 : vector<8x128xf32>
    %547 = math.exp %546 : vector<8x128xf32>
    %cst_106 = arith.constant 1.000000e+00 : f32
    %548 = vector.broadcast %cst_106 : f32 to vector<8x128xf32>
    %549 = arith.addf %548, %547 : vector<8x128xf32>
    %550 = arith.divf %548, %549 : vector<8x128xf32>
    %551 = vector.extract_strided_slice %544 {offsets = [0, 128], sizes = [8, 128], strides = [1, 1]} : vector<8x512xf32> to vector<8x128xf32>
    %552 = arith.negf %551 : vector<8x128xf32>
    %553 = math.exp %552 : vector<8x128xf32>
    %cst_107 = arith.constant 1.000000e+00 : f32
    %554 = vector.broadcast %cst_107 : f32 to vector<8x128xf32>
    %555 = arith.addf %554, %553 : vector<8x128xf32>
    %556 = arith.divf %554, %555 : vector<8x128xf32>
    %557 = vector.extract_strided_slice %544 {offsets = [0, 256], sizes = [8, 128], strides = [1, 1]} : vector<8x512xf32> to vector<8x128xf32>
    %558 = math.tanh %557 : vector<8x128xf32>
    %559 = vector.extract_strided_slice %544 {offsets = [0, 384], sizes = [8, 128], strides = [1, 1]} : vector<8x512xf32> to vector<8x128xf32>
    %560 = arith.negf %559 : vector<8x128xf32>
    %561 = math.exp %560 : vector<8x128xf32>
    %cst_108 = arith.constant 1.000000e+00 : f32
    %562 = vector.broadcast %cst_108 : f32 to vector<8x128xf32>
    %563 = arith.addf %562, %561 : vector<8x128xf32>
    %564 = arith.divf %562, %563 : vector<8x128xf32>
    %565 = arith.mulf %556, %481 : vector<8x128xf32>
    %566 = arith.mulf %550, %558 : vector<8x128xf32>
    %567 = arith.addf %565, %566 : vector<8x128xf32>
    %568 = math.tanh %567 : vector<8x128xf32>
    %569 = arith.mulf %564, %568 : vector<8x128xf32>
    %cst_109 = arith.constant dense<0.000000e+00> : vector<8x512xf32>
    %570 = tpu.matmul %512, %51, %cst_109 {dimension_numbers = #tpu.dot_dimension_numbers<[1], [0], [0], [1], [0, 0, 1, 1], [], []>} : vector<8x128xf32>, vector<128x512xf32>, vector<8x512xf32> -> vector<8x512xf32>
    %cst_110 = arith.constant dense<0.000000e+00> : vector<8x512xf32>
    %571 = tpu.matmul %569, %50, %cst_110 {dimension_numbers = #tpu.dot_dimension_numbers<[1], [0], [0], [1], [0, 0, 1, 1], [], []>} : vector<8x128xf32>, vector<128x512xf32>, vector<8x512xf32> -> vector<8x512xf32>
    %572 = arith.addf %570, %571 : vector<8x512xf32>
    %573 = arith.addf %572, %13 : vector<8x512xf32>
    %574 = vector.extract_strided_slice %573 {offsets = [0, 0], sizes = [8, 128], strides = [1, 1]} : vector<8x512xf32> to vector<8x128xf32>
    %575 = arith.negf %574 : vector<8x128xf32>
    %576 = math.exp %575 : vector<8x128xf32>
    %cst_111 = arith.constant 1.000000e+00 : f32
    %577 = vector.broadcast %cst_111 : f32 to vector<8x128xf32>
    %578 = arith.addf %577, %576 : vector<8x128xf32>
    %579 = arith.divf %577, %578 : vector<8x128xf32>
    %580 = vector.extract_strided_slice %573 {offsets = [0, 128], sizes = [8, 128], strides = [1, 1]} : vector<8x512xf32> to vector<8x128xf32>
    %581 = arith.negf %580 : vector<8x128xf32>
    %582 = math.exp %581 : vector<8x128xf32>
    %cst_112 = arith.constant 1.000000e+00 : f32
    %583 = vector.broadcast %cst_112 : f32 to vector<8x128xf32>
    %584 = arith.addf %583, %582 : vector<8x128xf32>
    %585 = arith.divf %583, %584 : vector<8x128xf32>
    %586 = vector.extract_strided_slice %573 {offsets = [0, 256], sizes = [8, 128], strides = [1, 1]} : vector<8x512xf32> to vector<8x128xf32>
    %587 = math.tanh %586 : vector<8x128xf32>
    %588 = vector.extract_strided_slice %573 {offsets = [0, 384], sizes = [8, 128], strides = [1, 1]} : vector<8x512xf32> to vector<8x128xf32>
    %589 = arith.negf %588 : vector<8x128xf32>
    %590 = math.exp %589 : vector<8x128xf32>
    %cst_113 = arith.constant 1.000000e+00 : f32
    %591 = vector.broadcast %cst_113 : f32 to vector<8x128xf32>
    %592 = arith.addf %591, %590 : vector<8x128xf32>
    %593 = arith.divf %591, %592 : vector<8x128xf32>
    %594 = arith.mulf %585, %510 : vector<8x128xf32>
    %595 = arith.mulf %579, %587 : vector<8x128xf32>
    %596 = arith.addf %594, %595 : vector<8x128xf32>
    %597 = math.tanh %596 : vector<8x128xf32>
    %598 = arith.mulf %593, %597 : vector<8x128xf32>
    %cst_114 = arith.constant dense<0.000000e+00> : vector<8x512xf32>
    %599 = tpu.matmul %541, %53, %cst_114 {dimension_numbers = #tpu.dot_dimension_numbers<[1], [0], [0], [1], [0, 0, 1, 1], [], []>} : vector<8x128xf32>, vector<128x512xf32>, vector<8x512xf32> -> vector<8x512xf32>
    %cst_115 = arith.constant dense<0.000000e+00> : vector<8x512xf32>
    %600 = tpu.matmul %598, %52, %cst_115 {dimension_numbers = #tpu.dot_dimension_numbers<[1], [0], [0], [1], [0, 0, 1, 1], [], []>} : vector<8x128xf32>, vector<128x512xf32>, vector<8x512xf32> -> vector<8x512xf32>
    %601 = arith.addf %599, %600 : vector<8x512xf32>
    %602 = arith.addf %601, %16 : vector<8x512xf32>
    %603 = vector.extract_strided_slice %602 {offsets = [0, 0], sizes = [8, 128], strides = [1, 1]} : vector<8x512xf32> to vector<8x128xf32>
    %604 = arith.negf %603 : vector<8x128xf32>
    %605 = math.exp %604 : vector<8x128xf32>
    %cst_116 = arith.constant 1.000000e+00 : f32
    %606 = vector.broadcast %cst_116 : f32 to vector<8x128xf32>
    %607 = arith.addf %606, %605 : vector<8x128xf32>
    %608 = arith.divf %606, %607 : vector<8x128xf32>
    %609 = vector.extract_strided_slice %602 {offsets = [0, 128], sizes = [8, 128], strides = [1, 1]} : vector<8x512xf32> to vector<8x128xf32>
    %610 = arith.negf %609 : vector<8x128xf32>
    %611 = math.exp %610 : vector<8x128xf32>
    %cst_117 = arith.constant 1.000000e+00 : f32
    %612 = vector.broadcast %cst_117 : f32 to vector<8x128xf32>
    %613 = arith.addf %612, %611 : vector<8x128xf32>
    %614 = arith.divf %612, %613 : vector<8x128xf32>
    %615 = vector.extract_strided_slice %602 {offsets = [0, 256], sizes = [8, 128], strides = [1, 1]} : vector<8x512xf32> to vector<8x128xf32>
    %616 = math.tanh %615 : vector<8x128xf32>
    %617 = vector.extract_strided_slice %602 {offsets = [0, 384], sizes = [8, 128], strides = [1, 1]} : vector<8x512xf32> to vector<8x128xf32>
    %618 = arith.negf %617 : vector<8x128xf32>
    %619 = math.exp %618 : vector<8x128xf32>
    %cst_118 = arith.constant 1.000000e+00 : f32
    %620 = vector.broadcast %cst_118 : f32 to vector<8x128xf32>
    %621 = arith.addf %620, %619 : vector<8x128xf32>
    %622 = arith.divf %620, %621 : vector<8x128xf32>
    %623 = arith.mulf %614, %539 : vector<8x128xf32>
    %624 = arith.mulf %608, %616 : vector<8x128xf32>
    %625 = arith.addf %623, %624 : vector<8x128xf32>
    %626 = math.tanh %625 : vector<8x128xf32>
    %627 = arith.mulf %622, %626 : vector<8x128xf32>
    %628 = vector.extract_strided_slice %9 {offsets = [56, 0], sizes = [8, 512], strides = [1, 1]} : vector<64x512xf32> to vector<8x512xf32>
    %cst_119 = arith.constant dense<0.000000e+00> : vector<8x512xf32>
    %629 = tpu.matmul %569, %10, %cst_119 {dimension_numbers = #tpu.dot_dimension_numbers<[1], [0], [0], [1], [0, 0, 1, 1], [], []>} : vector<8x128xf32>, vector<128x512xf32>, vector<8x512xf32> -> vector<8x512xf32>
    %630 = arith.addf %628, %629 : vector<8x512xf32>
    %631 = vector.extract_strided_slice %630 {offsets = [0, 0], sizes = [8, 128], strides = [1, 1]} : vector<8x512xf32> to vector<8x128xf32>
    %632 = arith.negf %631 : vector<8x128xf32>
    %633 = math.exp %632 : vector<8x128xf32>
    %cst_120 = arith.constant 1.000000e+00 : f32
    %634 = vector.broadcast %cst_120 : f32 to vector<8x128xf32>
    %635 = arith.addf %634, %633 : vector<8x128xf32>
    %636 = arith.divf %634, %635 : vector<8x128xf32>
    %637 = vector.extract_strided_slice %630 {offsets = [0, 128], sizes = [8, 128], strides = [1, 1]} : vector<8x512xf32> to vector<8x128xf32>
    %638 = arith.negf %637 : vector<8x128xf32>
    %639 = math.exp %638 : vector<8x128xf32>
    %cst_121 = arith.constant 1.000000e+00 : f32
    %640 = vector.broadcast %cst_121 : f32 to vector<8x128xf32>
    %641 = arith.addf %640, %639 : vector<8x128xf32>
    %642 = arith.divf %640, %641 : vector<8x128xf32>
    %643 = vector.extract_strided_slice %630 {offsets = [0, 256], sizes = [8, 128], strides = [1, 1]} : vector<8x512xf32> to vector<8x128xf32>
    %644 = math.tanh %643 : vector<8x128xf32>
    %645 = vector.extract_strided_slice %630 {offsets = [0, 384], sizes = [8, 128], strides = [1, 1]} : vector<8x512xf32> to vector<8x128xf32>
    %646 = arith.negf %645 : vector<8x128xf32>
    %647 = math.exp %646 : vector<8x128xf32>
    %cst_122 = arith.constant 1.000000e+00 : f32
    %648 = vector.broadcast %cst_122 : f32 to vector<8x128xf32>
    %649 = arith.addf %648, %647 : vector<8x128xf32>
    %650 = arith.divf %648, %649 : vector<8x128xf32>
    %651 = arith.mulf %642, %567 : vector<8x128xf32>
    %652 = arith.mulf %636, %644 : vector<8x128xf32>
    %653 = arith.addf %651, %652 : vector<8x128xf32>
    %654 = math.tanh %653 : vector<8x128xf32>
    %655 = arith.mulf %650, %654 : vector<8x128xf32>
    %cst_123 = arith.constant dense<0.000000e+00> : vector<8x512xf32>
    %656 = tpu.matmul %598, %51, %cst_123 {dimension_numbers = #tpu.dot_dimension_numbers<[1], [0], [0], [1], [0, 0, 1, 1], [], []>} : vector<8x128xf32>, vector<128x512xf32>, vector<8x512xf32> -> vector<8x512xf32>
    %cst_124 = arith.constant dense<0.000000e+00> : vector<8x512xf32>
    %657 = tpu.matmul %655, %50, %cst_124 {dimension_numbers = #tpu.dot_dimension_numbers<[1], [0], [0], [1], [0, 0, 1, 1], [], []>} : vector<8x128xf32>, vector<128x512xf32>, vector<8x512xf32> -> vector<8x512xf32>
    %658 = arith.addf %656, %657 : vector<8x512xf32>
    %659 = arith.addf %658, %13 : vector<8x512xf32>
    %660 = vector.extract_strided_slice %659 {offsets = [0, 0], sizes = [8, 128], strides = [1, 1]} : vector<8x512xf32> to vector<8x128xf32>
    %661 = arith.negf %660 : vector<8x128xf32>
    %662 = math.exp %661 : vector<8x128xf32>
    %cst_125 = arith.constant 1.000000e+00 : f32
    %663 = vector.broadcast %cst_125 : f32 to vector<8x128xf32>
    %664 = arith.addf %663, %662 : vector<8x128xf32>
    %665 = arith.divf %663, %664 : vector<8x128xf32>
    %666 = vector.extract_strided_slice %659 {offsets = [0, 128], sizes = [8, 128], strides = [1, 1]} : vector<8x512xf32> to vector<8x128xf32>
    %667 = arith.negf %666 : vector<8x128xf32>
    %668 = math.exp %667 : vector<8x128xf32>
    %cst_126 = arith.constant 1.000000e+00 : f32
    %669 = vector.broadcast %cst_126 : f32 to vector<8x128xf32>
    %670 = arith.addf %669, %668 : vector<8x128xf32>
    %671 = arith.divf %669, %670 : vector<8x128xf32>
    %672 = vector.extract_strided_slice %659 {offsets = [0, 256], sizes = [8, 128], strides = [1, 1]} : vector<8x512xf32> to vector<8x128xf32>
    %673 = math.tanh %672 : vector<8x128xf32>
    %674 = vector.extract_strided_slice %659 {offsets = [0, 384], sizes = [8, 128], strides = [1, 1]} : vector<8x512xf32> to vector<8x128xf32>
    %675 = arith.negf %674 : vector<8x128xf32>
    %676 = math.exp %675 : vector<8x128xf32>
    %cst_127 = arith.constant 1.000000e+00 : f32
    %677 = vector.broadcast %cst_127 : f32 to vector<8x128xf32>
    %678 = arith.addf %677, %676 : vector<8x128xf32>
    %679 = arith.divf %677, %678 : vector<8x128xf32>
    %680 = arith.mulf %671, %596 : vector<8x128xf32>
    %681 = arith.mulf %665, %673 : vector<8x128xf32>
    %682 = arith.addf %680, %681 : vector<8x128xf32>
    %683 = math.tanh %682 : vector<8x128xf32>
    %684 = arith.mulf %679, %683 : vector<8x128xf32>
    %cst_128 = arith.constant dense<0.000000e+00> : vector<8x512xf32>
    %685 = tpu.matmul %627, %53, %cst_128 {dimension_numbers = #tpu.dot_dimension_numbers<[1], [0], [0], [1], [0, 0, 1, 1], [], []>} : vector<8x128xf32>, vector<128x512xf32>, vector<8x512xf32> -> vector<8x512xf32>
    %cst_129 = arith.constant dense<0.000000e+00> : vector<8x512xf32>
    %686 = tpu.matmul %684, %52, %cst_129 {dimension_numbers = #tpu.dot_dimension_numbers<[1], [0], [0], [1], [0, 0, 1, 1], [], []>} : vector<8x128xf32>, vector<128x512xf32>, vector<8x512xf32> -> vector<8x512xf32>
    %687 = arith.addf %685, %686 : vector<8x512xf32>
    %688 = arith.addf %687, %16 : vector<8x512xf32>
    %689 = vector.extract_strided_slice %688 {offsets = [0, 0], sizes = [8, 128], strides = [1, 1]} : vector<8x512xf32> to vector<8x128xf32>
    %690 = arith.negf %689 : vector<8x128xf32>
    %691 = math.exp %690 : vector<8x128xf32>
    %cst_130 = arith.constant 1.000000e+00 : f32
    %692 = vector.broadcast %cst_130 : f32 to vector<8x128xf32>
    %693 = arith.addf %692, %691 : vector<8x128xf32>
    %694 = arith.divf %692, %693 : vector<8x128xf32>
    %695 = vector.extract_strided_slice %688 {offsets = [0, 128], sizes = [8, 128], strides = [1, 1]} : vector<8x512xf32> to vector<8x128xf32>
    %696 = arith.negf %695 : vector<8x128xf32>
    %697 = math.exp %696 : vector<8x128xf32>
    %cst_131 = arith.constant 1.000000e+00 : f32
    %698 = vector.broadcast %cst_131 : f32 to vector<8x128xf32>
    %699 = arith.addf %698, %697 : vector<8x128xf32>
    %700 = arith.divf %698, %699 : vector<8x128xf32>
    %701 = vector.extract_strided_slice %688 {offsets = [0, 256], sizes = [8, 128], strides = [1, 1]} : vector<8x512xf32> to vector<8x128xf32>
    %702 = math.tanh %701 : vector<8x128xf32>
    %703 = vector.extract_strided_slice %688 {offsets = [0, 384], sizes = [8, 128], strides = [1, 1]} : vector<8x512xf32> to vector<8x128xf32>
    %704 = arith.negf %703 : vector<8x128xf32>
    %705 = math.exp %704 : vector<8x128xf32>
    %cst_132 = arith.constant 1.000000e+00 : f32
    %706 = vector.broadcast %cst_132 : f32 to vector<8x128xf32>
    %707 = arith.addf %706, %705 : vector<8x128xf32>
    %708 = arith.divf %706, %707 : vector<8x128xf32>
    %709 = arith.mulf %700, %625 : vector<8x128xf32>
    %710 = arith.mulf %694, %702 : vector<8x128xf32>
    %711 = arith.addf %709, %710 : vector<8x128xf32>
    %712 = math.tanh %711 : vector<8x128xf32>
    %713 = arith.mulf %708, %712 : vector<8x128xf32>
    %c0_133 = arith.constant 0 : index
    %c0_134 = arith.constant 0 : index
    %714 = vector.load %arg8[%c0_133, %c0_134] : memref<128x10xf32, #tpu.memory_space<vmem>>, vector<128x10xf32>
    %cst_135 = arith.constant dense<0.000000e+00> : vector<8x10xf32>
    %715 = tpu.matmul %713, %714, %cst_135 {dimension_numbers = #tpu.dot_dimension_numbers<[1], [0], [0], [1], [0, 0, 1, 1], [], []>} : vector<8x128xf32>, vector<128x10xf32>, vector<8x10xf32> -> vector<8x10xf32>
    %c0_136 = arith.constant 0 : index
    %c0_137 = arith.constant 0 : index
    %716 = vector.load %arg9[%c0_136, %c0_137] : memref<1x10xf32, #tpu.memory_space<vmem>>, vector<1x10xf32>
    %717 = vector.broadcast %716 : vector<1x10xf32> to vector<8x10xf32>
    %718 = arith.addf %715, %717 : vector<8x10xf32>
    %c0_138 = arith.constant 0 : index
    %c0_139 = arith.constant 0 : index
    %719 = vector.load %arg10[%c0_138, %c0_139] : memref<8x10xf32, #tpu.memory_space<vmem>>, vector<8x10xf32>
    tpu.vector_store %arg10[%c0_138, %c0_139], %718 {strides = array<i32>} : memref<8x10xf32, #tpu.memory_space<vmem>>, vector<8x10xf32>,
    return
  }
}

</mosaic_0001>

<bundles_post_ra>
// kernel: tpu_custom_call.1
= control target key start
LH: loop header
LB: loop body
LE: loop exit
PB: predicated region body
PF: predicated region fallthrough
CT: control target
= control target key end

     0   :  { %15 = vsyncpa [#allocation6], 0  ;;  %s12935_s0 = inlined_call_operand.vmem [shape: f32[64,96], index: 0, kind: input, shape index: {}]   ;;  %s12936_s1 = inlined_call_operand.hbm [shape: f32[96,512], index: 1, kind: input, shape index: {}]   ;;  %s12937_s2 = inlined_call_operand.hbm [shape: f32[128,512], index: 2, kind: input, shape index: {}]   ;;  %s12938_s3 = inlined_call_operand.vmem [shape: f32[1,512], index: 3, kind: input, shape index: {}]   ;;  %s12939_s4 = inlined_call_operand.hbm [shape: f32[256,512], index: 4, kind: input, shape index: {}]   ;;  %s12940_s5 = inlined_call_operand.vmem [shape: f32[1,512], index: 5, kind: input, shape index: {}]   ;;  %s12941_s6 = inlined_call_operand.hbm [shape: f32[256,512], index: 6, kind: input, shape index: {}]   ;;  %s12942_s7 = inlined_call_operand.vmem [shape: f32[1,512], index: 7, kind: input, shape index: {}]   ;;  %s12943_s8 = inlined_call_operand.vmem [shape: f32[128,10], index: 8, kind: input, shape index: {}]   ;;  %s12944_s9 = inlined_call_operand.vmem [shape: f32[1,10], index: 9, kind: input, shape index: {}]   ;;  %s12945_s10 = inlined_call_operand.hbm [shape: f32[8,10], index: 10, kind: output, shape index: {}]  }
   0x1   :  { %16 = vsyncpa [#allocation9], 0 }
   0x2   :  { %17 = vsyncpa [#allocation7], 0  ;;  %s10675_s13 = smov [#allocation5]   ;;  %s10555_s17 = scalar_lea.hbm %s12936_s1, 6144 }
   0x3   :  { %s25_s14 = sshll.u32 %s10675_s13, 4  ;;  %p10556_p0 = scmp.ne.s32.totalorder %s12936_s1, %s10555_s17  ;;  %s26_s14 = int_to_ptr.vmem [resolvable:$true] %s25_s14 }
   0x4   :  { %p10559_p1 = scmp.lt.u32.totalorder %s10555_s17, %s12936_s1 }
   0x6   :  { %p10561_p2 = pnand %p10559_p1, %p10556_p0 }
   0x8   :  { %10564 = shalt.err (!%p10561_p2)
}
   0x9   :  { %s10565_s22 = scalar_lea.vmem %s26_s14, 6144  ;;  %p10570_p4 = scmp.lt.s32.totalorder %s26_s14, %s26_s14 }
   0xa   :  { %p10566_p3 = scmp.ne.s32.totalorder %s26_s14, %s10565_s22  ;;  %p10571_p5 = scmp.lt.s32.totalorder %s10565_s22, %s10565_s22 }
   0xc   :  { %p10572_p6 = por %p10571_p5, %p10570_p4 }
   0xe   :  { %p10573_p7 = pnand %p10572_p6, %p10566_p3 }
  0x10   :  { %10576 = shalt.err (!%p10573_p7)
}
  0x11   :  { %s10676_s23 = smov 512   ;;  %s10677_s24 = smov 32  }
  0x12   :  { %31 = dma.hbm_to_vmem [thread:$0]  %s12936_s1, 6144, %s26_s14, [#allocation6], %s10676_s23, %s10676_s23, %s10677_s24  }
  0x13   :  { %s10678_s27 = smov [#allocation8]   ;;  %s10577_s11 = scalar_lea.hbm %s12937_s2, 8192 }
  0x14   :  { %s37_s28 = sshll.u32 %s10678_s27, 4  ;;  %p10578_p8 = scmp.ne.s32.totalorder %s12937_s2, %s10577_s11  ;;  %s38_s28 = int_to_ptr.vmem [resolvable:$true] %s37_s28 }
  0x15   :  { %p10581_p9 = scmp.lt.u32.totalorder %s10577_s11, %s12937_s2 }
  0x17   :  { %p10583_p10 = pnand %p10581_p9, %p10578_p8 }
  0x19   :  { %10586 = shalt.err (!%p10583_p10)
}
  0x1a   :  { %s10587_s17 = scalar_lea.vmem %s38_s28, 8192  ;;  %p10592_p12 = scmp.lt.s32.totalorder %s38_s28, %s38_s28 }
  0x1b   :  { %p10588_p11 = scmp.ne.s32.totalorder %s38_s28, %s10587_s17  ;;  %p10593_p13 = scmp.lt.s32.totalorder %s10587_s17, %s10587_s17 }
  0x1d   :  { %p10594_p0 = por %p10593_p13, %p10592_p12 }
  0x1f   :  { %p10595_p1 = pnand %p10594_p0, %p10588_p11 }
  0x21   :  { %10598 = shalt.err (!%p10595_p1)
}
  0x22   :  { %43 = dma.hbm_to_vmem [thread:$0]  %s12937_s2, 8192, %s38_s28, [#allocation9], %s10676_s23, %s10676_s23, %s10677_s24  }
  0x23   :  { %10665 = dma.done.wait [#allocation6], 6144  }
  0x24   :  { %10666 = vsyncadd [#allocation6], 4294961152 }
  0x25   :  { %10667 = dma.done.wait [#allocation9], 8192  }
  0x26   :  { %10668 = vsyncadd [#allocation9], 4294959104  ;;  %v12946_v0 = vmov 0.0   ;;  %v92_v1 = vld [vmem:[#allocation5 + $0x8] sm:$0xff]  ;;  %v94_v3 = vld [vmem:[#allocation5 + $0x18] sm:$0xff]  ;;  %vm161_vm0 = vcmask 785408  }
  0x27   :  { %250 = vmatprep.mubr.f32.mxu0 %v12946_v0  ;;  %363 = vmatprep.mubr.f32.mxu1 %v12946_v0  ;;  %v96_v2 = vld [vmem:[#allocation5 + $0x28] sm:$0xff]  ;;  %v98_v5 = vld [vmem:[#allocation5 + $0x38] sm:$0xff]  ;;  %v91_v6 = vld [vmem:[#allocation5] sm:$0xff]  ;;  %s10681_s17 = smov [#allocation3]   ;;  %s10599_s18 = scalar_lea.hbm %s12939_s4, 16384 }
  0x28   :  { %v7401_v4 = vpack.c.bf16 %v96_v2, %v92_v1  ;;  %v95_v7 = vld [vmem:[#allocation5 + $0x20] sm:$0xff]  ;;  %v7425_v8 = vpack.c.bf16 %v98_v5, %v94_v3  ;;  %v93_v10 = vld [vmem:[#allocation5 + $0x10] sm:$0xff]  ;;  %v100_v12 = vld [vmem:[#allocation5 + $0x48] sm:$0xff]  ;;  %s79_s1 = sshll.u32 %s10681_s17, 4  ;;  %p10600_p2 = scmp.ne.s32.totalorder %s12939_s4, %s10599_s18  ;;  %s80_s1 = int_to_ptr.vmem [resolvable:$true] %s79_s1 }
  0x29   :  { %v7403_v9 = vpack.c.bf16 %v95_v7, %v91_v6  ;;  %v97_v11 = vld [vmem:[#allocation5 + $0x30] sm:$0xff]  ;;  %v104_v14 = vld [vmem:[#allocation5 + $0x68] sm:$0xff]  ;;  %v102_v15 = vld [vmem:[#allocation5 + $0x58] sm:$0xff]  ;;  %p10603_p3 = scmp.lt.u32.totalorder %s10599_s18, %s12939_s4 }
  0x2a   :  { %7402 = vmatprep.subr.bf16.mxu0 %v7401_v4  ;;  %v7427_v13 = vpack.c.bf16 %v97_v11, %v93_v10  ;;  %v106_v16 = vld [vmem:[#allocation5 + $0x78] sm:$0xff]  ;;  %7426 = vmatprep.subr.bf16.mxu1 %v7425_v8  ;;  %v7405_v17 = vpack.c.bf16 %v104_v14, %v100_v12  ;;  %v99_v19 = vld [vmem:[#allocation5 + $0x40] sm:$0xff]  ;;  %v101_v21 = vld [vmem:[#allocation5 + $0x50] sm:$0xff] }
  0x2b   :  { %7404 = vmatpush1.bf16.msra.mxu0 %v7403_v9  ;;  %v7429_v18 = vpack.c.bf16 %v106_v16, %v102_v15  ;;  %v103_v20 = vld [vmem:[#allocation5 + $0x60] sm:$0xff]  ;;  %v105_v23 = vld [vmem:[#allocation5 + $0x70] sm:$0xff]  ;;  %v108_v24 = vld [vmem:[#allocation5 + $0x88] sm:$0xff]  ;;  %p10605_p4 = pnand %p10603_p3, %p10600_p2 }
  0x2c   :  { %7428 = vmatpush1.bf16.msra.mxu1 %v7427_v13  ;;  %v7407_v22 = vpack.c.bf16 %v103_v20, %v99_v19  ;;  %v112_v25 = vld [vmem:[#allocation5 + $0xa8] sm:$0xff]  ;;  %7406 = vmatprep.subr.bf16.mxu0 %v7405_v17  ;;  %v7431_v26 = vpack.c.bf16 %v105_v23, %v101_v21  ;;  %v110_v28 = vld [vmem:[#allocation5 + $0x98] sm:$0xff]  ;;  %v107_v30 = vld [vmem:[#allocation5 + $0x80] sm:$0xff] }
  0x2d   :  { %7430 = vmatprep.subr.bf16.mxu1 %v7429_v18  ;;  %v7409_v27 = vpack.c.bf16 %v112_v25, %v108_v24  ;;  %v114_v29 = vld [vmem:[#allocation5 + $0xb8] sm:$0xff]  ;;  %v111_v32 = vld [vmem:[#allocation5 + $0xa0] sm:$0xff]  ;;  %v109_v33 = vld [vmem:[#allocation5 + $0x90] sm:$0xff] }
  0x2e   :  { %v7433_v31 = vpack.c.bf16 %v114_v29, %v110_v28  ;;  %v113_v34 = vld [vmem:[#allocation5 + $0xb0] sm:$0xff]  ;;  %v7411_v35 = vpack.c.bf16 %v111_v32, %v107_v30  ;;  %v116_v36 = vld [vmem:[#allocation5 + $0xc8] sm:$0xff]  ;;  %v118_v38 = vld [vmem:[#allocation5 + $0xd8] sm:$0xff] }
  0x2f   :  { %7408 = vmatpush1.bf16.msra.mxu0 %v7407_v22  ;;  %v120_v37 = vld [vmem:[#allocation5 + $0xe8] sm:$0xff]  ;;  %v7435_v39 = vpack.c.bf16 %v113_v34, %v109_v33  ;;  %v122_v41 = vld [vmem:[#allocation5 + $0xf8] sm:$0xff]  ;;  %v115_v42 = vld [vmem:[#allocation5 + $0xc0] sm:$0xff] }
  0x30   :  { %7432 = vmatpush1.bf16.msra.mxu1 %v7431_v26  ;;  %7410 = vmatprep.subr.bf16.mxu0 %v7409_v27  ;;  %v7413_v40 = vpack.c.bf16 %v120_v37, %v116_v36  ;;  %v119_v43 = vld [vmem:[#allocation5 + $0xe0] sm:$0xff]  ;;  %v7437_v44 = vpack.c.bf16 %v122_v41, %v118_v38  ;;  %v117_v45 = vld [vmem:[#allocation5 + $0xd0] sm:$0xff]  ;;  %v124_v47 = vld [vmem:[#allocation5 + $0x108] sm:$0xff] }
  0x31   :  { %7434 = vmatprep.subr.bf16.mxu1 %v7433_v31  ;;  %v121_v46 = vld [vmem:[#allocation5 + $0xf0] sm:$0xff]  ;;  %v128_v48 = vld [vmem:[#allocation5 + $0x128] sm:$0xff]  ;;  %v126_v49 = vld [vmem:[#allocation5 + $0x118] sm:$0xff]  ;;  %v7415_v51 = vpack.c.bf16 %v119_v43, %v115_v42 }
  0x32   :  { %v130_v50 = vld [vmem:[#allocation5 + $0x138] sm:$0xff]  ;;  %v7439_v52 = vpack.c.bf16 %v121_v46, %v117_v45  ;;  %v7417_v53 = vpack.c.bf16 %v128_v48, %v124_v47  ;;  %v123_v54 = vld [vmem:[#allocation5 + $0x100] sm:$0xff]  ;;  %v125_v56 = vld [vmem:[#allocation5 + $0x110] sm:$0xff]  ;;  %v141_v48 = vlaneseq }
  0x33   :  { %7412 = vmatpush1.bf16.msra.mxu0 %v7411_v35  ;;  %v127_v55 = vld [vmem:[#allocation5 + $0x120] sm:$0xff]  ;;  %v7441_v57 = vpack.c.bf16 %v130_v50, %v126_v49  ;;  %v129_v58 = vld [vmem:[#allocation5 + $0x130] sm:$0xff]  ;;  %v132_v59 = vld [vmem:[#allocation5 + $0x148] sm:$0xff] }
  0x34   :  { %7436 = vmatpush1.bf16.msra.mxu1 %v7435_v39  ;;  %7414 = vmatprep.subr.bf16.mxu0 %v7413_v40  ;;  %v136_v60 = vld [vmem:[#allocation5 + $0x168] sm:$0xff]  ;;  %v134_v61 = vld [vmem:[#allocation5 + $0x158] sm:$0xff]  ;;  %v7419_v63 = vpack.c.bf16 %v127_v55, %v123_v54  ;;  %v7443_v1 = vpack.c.bf16 %v129_v58, %v125_v56  ;;  %v131_v3 = vld [vmem:[#allocation5 + $0x140] sm:$0xff] }
  0x35   :  { %7438 = vmatprep.subr.bf16.mxu1 %v7437_v44  ;;  %v138_v62 = vld [vmem:[#allocation5 + $0x178] sm:$0xff]  ;;  %v7421_v2 = vpack.c.bf16 %v136_v60, %v132_v59  ;;  %v135_v4 = vld [vmem:[#allocation5 + $0x160] sm:$0xff]  ;;  %v133_v5 = vld [vmem:[#allocation5 + $0x150] sm:$0xff] }
  0x36   :  { %v7445_v6 = vpack.c.bf16 %v138_v62, %v134_v61  ;;  %v137_v7 = vld [vmem:[#allocation5 + $0x170] sm:$0xff]  ;;  %v413_v8 = vld [vmem:[#allocation8 + $0x8] sm:$0xff]  ;;  %v415_v10 = vld [vmem:[#allocation8 + $0x18] sm:$0xff]  ;;  %v7423_v12 = vpack.c.bf16 %v135_v4, %v131_v3  ;;  %v10822_v62 = vshrl.u32 %v141_v48, 7 }
  0x37   :  { %7416 = vmatpush1.bf16.msra.mxu0 %v7415_v51  ;;  %v417_v9 = vld [vmem:[#allocation8 + $0x28] sm:$0xff]  ;;  %v419_v11 = vld [vmem:[#allocation8 + $0x38] sm:$0xff]  ;;  %v7447_v13 = vpack.c.bf16 %v137_v7, %v133_v5  ;;  %v412_v15 = vld [vmem:[#allocation8] sm:$0xff] }
  0x38   :  { %7440 = vmatpush1.bf16.msra.mxu1 %v7439_v52  ;;  %7418 = vmatprep.subr.bf16.mxu0 %v7417_v53  ;;  %v10766_v14 = vpack.c.bf16 %v417_v9, %v413_v8  ;;  %v416_v16 = vld [vmem:[#allocation8 + $0x20] sm:$0xff]  ;;  %v10768_v17 = vpack.c.bf16 %v419_v11, %v415_v10  ;;  %v414_v18 = vld [vmem:[#allocation8 + $0x10] sm:$0xff]  ;;  %v421_v20 = vld [vmem:[#allocation8 + $0x48] sm:$0xff] }
  0x39   :  { %7442 = vmatprep.subr.bf16.mxu1 %v7441_v57  ;;  %v418_v19 = vld [vmem:[#allocation8 + $0x30] sm:$0xff]  ;;  %v425_v21 = vld [vmem:[#allocation8 + $0x68] sm:$0xff]  ;;  %v83_v22 = vld [vmem:[%s12935_s0] sm:$0xff]  ;;  %v10773_v23 = vpack.c.bf16 %v416_v16, %v412_v15  ;;  %v10847_v16 = vsub.s32 0, %v10822_v62 }
  0x3a   :  { %v423_v24 = vld [vmem:[#allocation8 + $0x58] sm:$0xff]  ;;  %v10776_v26 = vpack.c.bf16 %v418_v19, %v414_v18  ;;  %v420_v27 = vld [vmem:[#allocation8 + $0x40] sm:$0xff]  ;;  %v10779_v29 = vpack.c.bf16 %v425_v21, %v421_v20  ;;  %v422_v30 = vld [vmem:[#allocation8 + $0x50] sm:$0xff] }
  0x3b   :  { %7420 = vmatpush1.bf16.msra.mxu0 %v7419_v63  ;;  %13266 = vst [vmem:[#allocation22_spill] sm:$0xff] %v10773_v23  ;;  %v427_v25 = vld [vmem:[#allocation8 + $0x78] sm:$0xff]  ;;  %v424_v28 = vld [vmem:[#allocation8 + $0x60] sm:$0xff]  ;;  %v426_v31 = vld [vmem:[#allocation8 + $0x70] sm:$0xff] }
  0x3c   :  { %7444 = vmatpush1.bf16.msra.mxu1 %v7443_v1  ;;  %7422 = vmatprep.subr.bf16.mxu0 %v7421_v2  ;;  %13267 = vst [vmem:[#allocation23_spill] sm:$0xff] %v10776_v26  ;;  %13268 = vst [vmem:[#allocation24_spill] sm:$0xff] %v10779_v29  ;;  %v10782_v32 = vpack.c.bf16 %v427_v25, %v423_v24  ;;  %v429_v33 = vld [vmem:[#allocation8 + $0x88] sm:$0xff]  ;;  %v10789_v36 = vpack.c.bf16 %v424_v28, %v420_v27  ;;  %v431_v37 = vld [vmem:[#allocation8 + $0x98] sm:$0xff] }
  0x3d   :  { %7446 = vmatprep.subr.bf16.mxu1 %v7445_v6  ;;  %v433_v34 = vld [vmem:[#allocation8 + $0xa8] sm:$0xff]  ;;  %v435_v38 = vld [vmem:[#allocation8 + $0xb8] sm:$0xff]  ;;  %v10793_v39 = vpack.c.bf16 %v426_v31, %v422_v30  ;;  %v428_v40 = vld [vmem:[#allocation8 + $0x80] sm:$0xff] }
  0x3e   :  { %13269 = vst [vmem:[#allocation25_spill] sm:$0xff] %v10782_v32  ;;  %v84_v35 = vld [vmem:[%s12935_s0 + $0x8] sm:$0xff]  ;;  %13270 = vst [vmem:[#allocation26_spill] sm:$0xff] %v10789_v36  ;;  %v432_v41 = vld [vmem:[#allocation8 + $0xa0] sm:$0xff]  ;;  %v10797_v42 = vpack.c.bf16 %v433_v34, %v429_v33  ;;  %v10801_v45 = vpack.c.bf16 %v435_v38, %v431_v37 }
  0x3f   :  { %7424 = vmatpush1.bf16.msra.mxu0 %v7423_v12  ;;  %13271 = vst [vmem:[#allocation27_spill] sm:$0xff] %v10793_v39  ;;  %v430_v43 = vld [vmem:[#allocation8 + $0x90] sm:$0xff]  ;;  %v437_v46 = vld [vmem:[#allocation8 + $0xc8] sm:$0xff]  ;;  %v10808_v50 = vpack.c.bf16 %v432_v41, %v428_v40  ;;  %v439_v51 = vld [vmem:[#allocation8 + $0xd8] sm:$0xff] }
  0x40   :  { %7448 = vmatpush1.bf16.msra.mxu1 %v7447_v13  ;;  %7450 = vmatprep.subr.bf16.mxu0 %v10766_v14  ;;  %13272 = vst [vmem:[#allocation28_spill] sm:$0xff] %v10797_v42  ;;  %v434_v44 = vld [vmem:[#allocation8 + $0xb0] sm:$0xff]  ;;  %13273 = vst [vmem:[#allocation29_spill] sm:$0xff] %v10801_v45  ;;  %v441_v47 = vld [vmem:[#allocation8 + $0xe8] sm:$0xff] }
  0x41   :  { %7482 = vmatprep.subr.bf16.mxu1 %v10768_v17  ;;  %v85_v49 = vld [vmem:[%s12935_s0 + $0x10] sm:$0xff]  ;;  %13274 = vst [vmem:[#allocation30_spill] sm:$0xff] %v10808_v50  ;;  %v443_v52 = vld [vmem:[#allocation8 + $0xf8] sm:$0xff]  ;;  %v10812_v53 = vpack.c.bf16 %v434_v44, %v430_v43  ;;  %v436_v54 = vld [vmem:[#allocation8 + $0xc0] sm:$0xff]  ;;  %v10816_v56 = vpack.c.bf16 %v441_v47, %v437_v46 }
  0x42   :  { %7258 = vmatmul.mubr.msk.f32.vlgmr.msra.gmra.mrb[0].mxu0 %vm161_vm0, %v83_v22  ;;  %v440_v55 = vld [vmem:[#allocation8 + $0xe0] sm:$0xff]  ;;  %v438_v57 = vld [vmem:[#allocation8 + $0xd0] sm:$0xff]  ;;  %v10820_v59 = vpack.c.bf16 %v443_v52, %v439_v51  ;;  %v445_v60 = vld [vmem:[#allocation8 + $0x108] sm:$0xff] }
  0x43   :  { %7266 = vmatmul.mubr.msk.f32.vlgmr.msra.gmra.mrb[0].mxu1 %vm161_vm0, %v83_v22  ;;  %7452 = vmatpush1.bf16.msra.mxu0 %v10773_v23  ;;  %13275 = vst [vmem:[#allocation31_spill] sm:$0xff] %v10812_v53  ;;  %13276 = vst [vmem:[#allocation32_spill] sm:$0xff] %v10816_v56  ;;  %v442_v58 = vld [vmem:[#allocation8 + $0xf0] sm:$0xff]  ;;  %v449_v61 = vld [vmem:[#allocation8 + $0x128] sm:$0xff]  ;;  %v10829_v1 = vpack.c.bf16 %v440_v55, %v436_v54 }
  0x44   :  { %7484 = vmatpush1.bf16.msra.mxu1 %v10776_v26  ;;  %256 = vmatprep.mubr.f32.mxu0 %v12946_v0  ;;  %13277 = vst [vmem:[#allocation33_spill] sm:$0xff] %v10820_v59  ;;  %v86_v63 = vld [vmem:[%s12935_s0 + $0x18] sm:$0xff]  ;;  %v10833_v4 = vpack.c.bf16 %v442_v58, %v438_v57  ;;  %v444_v5 = vld [vmem:[#allocation8 + $0x100] sm:$0xff]  ;;  %v10840_v8 = vpack.c.bf16 %v449_v61, %v445_v60  ;;  %v446_v9 = vld [vmem:[#allocation8 + $0x110] sm:$0xff] }
  0x45   :  { %369 = vmatprep.mubr.f32.mxu1 %v12946_v0  ;;  %7454 = vmatprep.subr.bf16.mxu0 %v10779_v29  ;;  %13278 = vst [vmem:[#allocation34_spill] sm:$0xff] %v10829_v1  ;;  %v447_v2 = vld [vmem:[#allocation8 + $0x118] sm:$0xff]  ;;  %v448_v6 = vld [vmem:[#allocation8 + $0x120] sm:$0xff]  ;;  %v450_v10 = vld [vmem:[#allocation8 + $0x130] sm:$0xff] }
  0x46   :  { %7259 = vmatmul.mubr.msk.f32.gmra.mrb[2].mxu0 %vm161_vm0, %v84_v35  ;;  %7486 = vmatprep.subr.bf16.mxu1 %v10782_v32  ;;  %v451_v3 = vld [vmem:[#allocation8 + $0x138] sm:$0xff]  ;;  %13279 = vst [vmem:[#allocation35_spill] sm:$0xff] %v10833_v4  ;;  %v87_v7 = vld [vmem:[%s12935_s0 + $0x20] sm:$0xff]  ;;  %13280 = vst [vmem:[#allocation36_spill] sm:$0xff] %v10840_v8  ;;  %v10851_v18 = vpack.c.bf16 %v448_v6, %v444_v5  ;;  %v10865_v22 = vpack.c.bf16 %v450_v10, %v446_v9 }
  0x47   :  { %7267 = vmatmul.mubr.msk.f32.gmra.mrb[2].mxu1 %vm161_vm0, %v84_v35  ;;  %7456 = vmatpush1.bf16.msra.mxu0 %v10789_v36  ;;  %v10844_v11 = vpack.c.bf16 %v451_v3, %v447_v2  ;;  %v453_v12 = vld [vmem:[#allocation8 + $0x148] sm:$0xff]  ;;  %v455_v15 = vld [vmem:[#allocation8 + $0x158] sm:$0xff]  ;;  %v10856_v20 = vld [vmem:[%s12940_s5] sm:$0xf] }
  0x48   :  { %7488 = vmatpush1.bf16.msra.mxu1 %v10793_v39  ;;  %262 = vmatprep.mubr.f32.mxu0 %v12946_v0  ;;  %v457_v13 = vld [vmem:[#allocation8 + $0x168] sm:$0xff]  ;;  %13282 = vst [vmem:[#allocation38_spill] sm:$0xff] %v10851_v18  ;;  %v459_v19 = vld [vmem:[#allocation8 + $0x178] sm:$0xff]  ;;  %v10861_v21 = vld [vmem:[%s12942_s7] sm:$0xf]  ;;  %v10869_v27 = vrot.slane %v10856_v20, %v10847_v16 }
  0x49   :  { %375 = vmatprep.mubr.f32.mxu1 %v12946_v0  ;;  %7458 = vmatprep.subr.bf16.mxu0 %v10797_v42  ;;  %13281 = vst [vmem:[#allocation37_spill] sm:$0xff] %v10844_v11  ;;  %13283 = vst [vmem:[#allocation39_spill] sm:$0xff] %v10865_v22  ;;  %v452_v24 = vld [vmem:[#allocation8 + $0x140] sm:$0xff]  ;;  %v10873_v28 = vrot.slane %v10861_v21, %v10847_v16  ;;  %v10877_v30 = vpack.c.bf16 %v457_v13, %v453_v12  ;;  %v454_v31 = vld [vmem:[#allocation8 + $0x150] sm:$0xff] }
  0x4a   :  { %7260 = vmatmul.mubr.msk.f32.gmra.mrb[4].mxu0 %vm161_vm0, %v85_v49  ;;  %7490 = vmatprep.subr.bf16.mxu1 %v10801_v45  ;;  %v456_v25 = vld [vmem:[#allocation8 + $0x160] sm:$0xff]  ;;  %13284 = vst [vmem:[#allocation40_spill] sm:$0xff] %v10869_v27  ;;  %v458_v33 = vld [vmem:[#allocation8 + $0x170] sm:$0xff]  ;;  %v10881_v34 = vpack.c.bf16 %v459_v19, %v455_v15  ;;  %v461_v35 = vld [vmem:[#allocation8 + $0x188] sm:$0xff]  ;;  %v151_v15 = vsub.s32 2, %v10822_v62  ;;  %v147_v19 = vsub.s32 1, %v10822_v62 }
  0x4b   :  { %7268 = vmatmul.mubr.msk.f32.gmra.mrb[4].mxu1 %vm161_vm0, %v85_v49  ;;  %7460 = vmatpush1.bf16.msra.mxu0 %v10808_v50  ;;  %13285 = vst [vmem:[#allocation41_spill] sm:$0xff] %v10873_v28  ;;  %13286 = vst [vmem:[#allocation42_spill] sm:$0xff] %v10877_v30  ;;  %v465_v37 = vld [vmem:[#allocation8 + $0x1a8] sm:$0xff]  ;;  %v10888_v40 = vpack.c.bf16 %v456_v25, %v452_v24  ;;  %v463_v41 = vld [vmem:[#allocation8 + $0x198] sm:$0xff]  ;;  %v10892_v44 = vpack.c.bf16 %v458_v33, %v454_v31 }
  0x4c   :  { %7492 = vmatpush1.bf16.msra.mxu1 %v10812_v53  ;;  %268 = vmatprep.mubr.f32.mxu0 %v12946_v0  ;;  %13287 = vst [vmem:[#allocation43_spill] sm:$0xff] %v10881_v34  ;;  %v88_v38 = vld [vmem:[%s12935_s0 + $0x28] sm:$0xff]  ;;  %v467_v43 = vld [vmem:[#allocation8 + $0x1b8] sm:$0xff]  ;;  %v460_v46 = vld [vmem:[#allocation8 + $0x180] sm:$0xff]  ;;  %v10896_v48 = vpack.c.bf16 %v465_v37, %v461_v35  ;;  %v10946_v24 = vrot.slane %v10856_v20, %v151_v15  ;;  %v155_v35 = vsub.s32 3, %v10822_v62 }
  0x4d   :  { %381 = vmatprep.mubr.f32.mxu1 %v12946_v0  ;;  %7462 = vmatprep.subr.bf16.mxu0 %v10816_v56  ;;  %13288 = vst [vmem:[#allocation44_spill] sm:$0xff] %v10888_v40  ;;  %13289 = vst [vmem:[#allocation45_spill] sm:$0xff] %v10892_v44  ;;  %v464_v47 = vld [vmem:[#allocation8 + $0x1a0] sm:$0xff]  ;;  %v462_v49 = vld [vmem:[#allocation8 + $0x190] sm:$0xff]  ;;  %v10900_v52 = vpack.c.bf16 %v467_v43, %v463_v41  ;;  %v10949_v25 = vrot.slane %v10861_v21, %v151_v15 }
  0x4e   :  { %7261 = vmatmul.mubr.msk.f32.gmra.mrb[6].mxu0 %vm161_vm0, %v86_v63  ;;  %7494 = vmatprep.subr.bf16.mxu1 %v10820_v59  ;;  %13290 = vst [vmem:[#allocation46_spill] sm:$0xff] %v10896_v48  ;;  %v466_v51 = vld [vmem:[#allocation8 + $0x1b0] sm:$0xff]  ;;  %v469_v54 = vld [vmem:[#allocation8 + $0x1c8] sm:$0xff]  ;;  %v10907_v58 = vpack.c.bf16 %v464_v47, %v460_v46  ;;  %v471_v60 = vld [vmem:[#allocation8 + $0x1d8] sm:$0xff]  ;;  %v10952_v31 = vrot.slane %v10856_v20, %v147_v19 }
  0x4f   :  { %7269 = vmatmul.mubr.msk.f32.gmra.mrb[6].mxu1 %vm161_vm0, %v86_v63  ;;  %7464 = vmatpush1.bf16.msra.mxu0 %v10829_v1  ;;  %13291 = vst [vmem:[#allocation47_spill] sm:$0xff] %v10900_v52  ;;  %v473_v55 = vld [vmem:[#allocation8 + $0x1e8] sm:$0xff]  ;;  %v89_v57 = vld [vmem:[%s12935_s0 + $0x30] sm:$0xff]  ;;  %v475_v61 = vld [vmem:[#allocation8 + $0x1f8] sm:$0xff]  ;;  %v10911_v63 = vpack.c.bf16 %v466_v51, %v462_v49  ;;  %v10955_v33 = vrot.slane %v10861_v21, %v147_v19 }
  0x50   :  { %7496 = vmatpush1.bf16.msra.mxu1 %v10833_v4  ;;  %274 = vmatprep.mubr.f32.mxu0 %v12946_v0  ;;  %13292 = vst [vmem:[#allocation48_spill] sm:$0xff] %v10907_v58  ;;  %v468_v2 = vld [vmem:[#allocation8 + $0x1c0] sm:$0xff]  ;;  %v10915_v5 = vpack.c.bf16 %v473_v55, %v469_v54  ;;  %v470_v6 = vld [vmem:[#allocation8 + $0x1d0] sm:$0xff]  ;;  %v10919_v9 = vpack.c.bf16 %v475_v61, %v471_v60  ;;  %v90_v10 = vld [vmem:[%s12935_s0 + $0x38] sm:$0xff]  ;;  %s10680_s0 = smov [#allocation2]  }
  0x51   :  { %387 = vmatprep.mubr.f32.mxu1 %v12946_v0  ;;  %7466 = vmatprep.subr.bf16.mxu0 %v10840_v8  ;;  %13293 = vst [vmem:[#allocation49_spill] sm:$0xff] %v10911_v63  ;;  %v472_v3 = vld [vmem:[#allocation8 + $0x1e0] sm:$0xff]  ;;  %13298 = vst [vmem:[#allocation54_spill] sm:$0xff] %v10946_v24  ;;  %v10959_v37 = vrot.slane %v10856_v20, %v155_v35  ;;  %s67_s16 = sshll.u32 %s10680_s0, 4  ;;  %s68_s16 = int_to_ptr.vmem [resolvable:$true] %s67_s16 }
  0x52   :  { %7262 = vmatmul.mubr.msk.f32.gmra.mrb[8].mxu0 %vm161_vm0, %v87_v7  ;;  %7498 = vmatprep.subr.bf16.mxu1 %v10844_v11  ;;  %13294 = vst [vmem:[#allocation50_spill] sm:$0xff] %v10915_v5  ;;  %13295 = vst [vmem:[#allocation51_spill] sm:$0xff] %v10919_v9  ;;  %v10926_v12 = vpack.c.bf16 %v472_v3, %v468_v2 }
  0x53   :  { %7270 = vmatmul.mubr.msk.f32.gmra.mrb[8].mxu1 %vm161_vm0, %v87_v7  ;;  %7468 = vmatpush1.bf16.msra.mxu0 %v10851_v18  ;;  %v474_v7 = vld [vmem:[#allocation8 + $0x1f0] sm:$0xff]  ;;  %13299 = vst [vmem:[#allocation55_spill] sm:$0xff] %v10949_v25  ;;  %13300 = vst [vmem:[#allocation56_spill] sm:$0xff] %v10952_v31 }
  0x54   :  { %7500 = vmatpush1.bf16.msra.mxu1 %v10865_v22  ;;  %280 = vmatprep.mubr.f32.mxu0 %v12946_v0  ;;  %13296 = vst [vmem:[#allocation52_spill] sm:$0xff] %v10926_v12  ;;  %v10930_v13 = vpack.c.bf16 %v474_v7, %v470_v6  ;;  %13301 = vst [vmem:[#allocation57_spill] sm:$0xff] %v10955_v33 }
  0x55   :  { %393 = vmatprep.mubr.f32.mxu1 %v12946_v0  ;;  %7470 = vmatprep.subr.bf16.mxu0 %v10877_v30  ;;  %13302 = vst [vmem:[#allocation58_spill] sm:$0xff] %v10959_v37 }
  0x56   :  { %7263 = vmatmul.mubr.msk.f32.gmra.mrb[10].mxu0 %vm161_vm0, %v88_v38  ;;  %7502 = vmatprep.subr.bf16.mxu1 %v10881_v34  ;;  %13297 = vst [vmem:[#allocation53_spill] sm:$0xff] %v10930_v13 }
  0x57   :  { %7271 = vmatmul.mubr.msk.f32.gmra.mrb[10].mxu1 %vm161_vm0, %v88_v38  ;;  %7472 = vmatpush1.bf16.msra.mxu0 %v10888_v40  ;;  %v10962_v38 = vrot.slane %v10861_v21, %v155_v35 }
  0x58   :  { %7504 = vmatpush1.bf16.msra.mxu1 %v10892_v44  ;;  %286 = vmatprep.mubr.f32.mxu0 %v12946_v0 }
  0x59   :  { %399 = vmatprep.mubr.f32.mxu1 %v12946_v0  ;;  %7474 = vmatprep.subr.bf16.mxu0 %v10896_v48  ;;  %13303 = vst [vmem:[#allocation59_spill] sm:$0xff] %v10962_v38 }
  0x5a   :  { %7264 = vmatmul.mubr.msk.f32.gmra.mrb[12].mxu0 %vm161_vm0, %v89_v57  ;;  %7506 = vmatprep.subr.bf16.mxu1 %v10900_v52 }
  0x5b   :  { %7272 = vmatmul.mubr.msk.f32.gmra.mrb[12].mxu1 %vm161_vm0, %v89_v57  ;;  %7476 = vmatpush1.bf16.msra.mxu0 %v10907_v58 }
  0x5c   :  { %7508 = vmatpush1.bf16.msra.mxu1 %v10911_v63  ;;  %292 = vmatprep.mubr.f32.mxu0 %v12946_v0 }
  0x5d   :  { %405 = vmatprep.mubr.f32.mxu1 %v12946_v0  ;;  %7478 = vmatprep.subr.bf16.mxu0 %v10915_v5 }
  0x5e   :  { %7265 = vmatmul.mubr.msk.f32.gmra.mrb[14].mxu0 %vm161_vm0, %v90_v10  ;;  %7510 = vmatprep.subr.bf16.mxu1 %v10919_v9 }
  0x5f   :  { %7273 = vmatmul.mubr.msk.f32.gmra.mrb[14].mxu1 %vm161_vm0, %v90_v10  ;;  %7480 = vmatpush1.bf16.msra.mxu0 %v10926_v12 }
  0x60   :  { %7512 = vmatpush1.bf16.msra.mxu1 %v10930_v13  ;;  %584 = vmatprep.mubr.f32.mxu0 %v12946_v0 }
  0x61   :  { %655 = vmatprep.mubr.f32.mxu1 %v12946_v0 }
  0x62   :  { %585 = vmatmul.mubr.f32.vlgmr.msra.gmra.mrb[0].mxu0 %v12946_v0 }
  0x63   :  { %656 = vmatmul.mubr.f32.vlgmr.msra.gmra.mrb[0].mxu1 %v12946_v0 }
  0x64   :  { %10608 = shalt.err (!%p10605_p4)  }
  0x65   :  { %s10609_s23 = scalar_lea.vmem %s68_s16, 16384  ;;  %p10614_p6 = scmp.lt.s32.totalorder %s68_s16, %s68_s16 }
  0x66   :  { %p10610_p5 = scmp.ne.s32.totalorder %s68_s16, %s10609_s23  ;;  %p10615_p7 = scmp.lt.s32.totalorder %s10609_s23, %s10609_s23 }
  0x68   :  { %p10616_p8 = por %p10615_p7, %p10614_p6 }
  0x6a   :  { %p10617_p9 = pnand %p10616_p8, %p10610_p5 }
  0x6c   :  { %10620 = shalt.err (!%p10617_p9)  }
  0x6d   :  { %70 = dma.hbm_to_vmem [thread:$0]  %s12939_s4, 16384, %s68_s16, [#allocation4] }
  0x6e   :  { %s10621_s28 = scalar_lea.hbm %s12941_s6, 16384 }
  0x6f   :  { %p10622_p10 = scmp.ne.s32.totalorder %s12941_s6, %s10621_s28  ;;  %p10625_p11 = scmp.lt.u32.totalorder %s10621_s28, %s12941_s6 }
  0x71   :  { %p10627_p12 = pnand %p10625_p11, %p10622_p10 }
  0x73   :  { %10630 = shalt.err (!%p10627_p12)  }
  0x74   :  { %s10631_s11 = scalar_lea.vmem %s80_s1, 16384  ;;  %p10636_p0 = scmp.lt.s32.totalorder %s80_s1, %s80_s1 }
  0x75   :  { %p10632_p13 = scmp.ne.s32.totalorder %s80_s1, %s10631_s11  ;;  %p10637_p1 = scmp.lt.s32.totalorder %s10631_s11, %s10631_s11 }
  0x77   :  { %p10638_p2 = por %p10637_p1, %p10636_p0 }
  0x79   :  { %p10639_p3 = pnand %p10638_p2, %p10632_p13 }
  0x7b   :  { %10642 = shalt.err (!%p10639_p3)  }
  0x7c   :  { %82 = dma.hbm_to_vmem [thread:$0]  %s12941_s6, 16384, %s80_s1, [#allocation4 + $0x1]  ;;  %v139_v62 = vld [vmem:[%s12938_s3] sm:$0xf] }
  0x7d   :  { %v10992_v20 = vrot.slane %v139_v62, %v10847_v16  ;;  %v10994_v21 = vrot.slane %v139_v62, %v147_v19  ;;  %v10998_v57 = vrot.slane %v139_v62, %v155_v35  ;;  %v11001_v16 = vrot.slane %v139_v62, %v151_v15 }
  0x7f   :  { %13304 = vst [vmem:[#allocation60_spill] sm:$0xff] %v10992_v20  ;;  %13305 = vst [vmem:[#allocation61_spill] sm:$0xff] %v10994_v21 }
  0x80   :  { %13306 = vst [vmem:[#allocation62_spill] sm:$0xff] %v10998_v57  ;;  %13307 = vst [vmem:[#allocation63_spill] sm:$0xff] %v11001_v16 }
 0x135   :  { %v586_v41 = vpop.f32.mrb[0].mxu0 }
 0x136   :  { %v10033_v43 = vadd.f32 %v586_v41, %v10992_v20  ;;  %v657_v46 = vpop.f32.mrb[0].mxu1  ;;  %v588_v47 = vpop.f32.mrb[1].mxu0 }
 0x137   :  { %v10034_v49 = vadd.f32 %v588_v47, %v10994_v21  ;;  %v659_v51 = vpop.f32.mrb[1].mxu1  ;;  %v10049_v2 = vadd.f32 %v657_v46, %v11001_v16 }
 0x138   :  { %v7274_v54 = vmul.f32 -1.442695, %v10033_v43  ;;  %v10050_v60 = vadd.f32 %v659_v51, %v10998_v57 }
 0x139   :  { %v7275_v55 = vmul.f32 -1.442695, %v10034_v49 }
 0x13a   :  { %10171 = vpow2.f32 %v7274_v54  ;;  %v7276_v61 = vmul.f32 -1.442695, %v10050_v60 }
 0x13b   :  { %10173 = vpow2.f32 %v7275_v55 }
 0x13c   :  { %10175 = vpow2.f32 %v7276_v61 }
 0x13d   :  { %10177 = vtanh.f32 %v10049_v2 }
 0x144   :  { %v10172_v3 = vpop.eup %10171 }
 0x145   :  { %v10174_v6 = vpop.eup %10173  ;;  %v669_v7 = vadd.f32 1.0, %v10172_v3 }
 0x146   :  { %v675_v10 = vadd.f32 1.0, %v10174_v6  ;;  %v10176_v19 = vpop.eup %10175 }
 0x147   :  { %10179 = vrcp.f32 %v669_v7  ;;  %v10178_v35 = vpop.eup %10177  ;;  %v682_v49 = vadd.f32 1.0, %v10176_v19 }
 0x148   :  { %10181 = vrcp.f32 %v675_v10 }
 0x149   :  { %10183 = vrcp.f32 %v682_v49 }
 0x151   :  { %v10180_v41 = vpop.eup %10179 }
 0x152   :  { %v10182_v43 = vpop.eup %10181  ;;  %v686_v47 = vmul.f32 %v10180_v41, %v10178_v35 }
 0x153   :  { %v685_v51 = vmul.f32 0.0, %v10182_v43  ;;  %v10184_v62 = vpop.eup %10183 }
 0x155   :  { %v11004_v15 = vadd.f32 %v686_v47, %v685_v51 }
 0x157   :  { %13308 = vst [vmem:[#allocation64_spill] sm:$0xff] %v11004_v15  ;;  %10185 = vtanh.f32 %v11004_v15 }
 0x161   :  { %v10186_v46 = vpop.eup %10185 }
 0x162   :  { %v11007_v54 = vmul.f32 %v10186_v46, %v10184_v62 }
 0x163   :  { %10669 = dma.done.wait [#allocation4], 16384 }
 0x164   :  { %10670 = vsyncadd [#allocation4], 4294950912 }
 0x165   :  { %10671 = dma.done.wait [#allocation4 + $0x1], 16384 }
 0x166   :  { %10672 = vsyncadd [#allocation4 + $0x1], 4294950912  ;;  %1016 = vmatprep.mubr.f32.mxu0 %v12946_v0  ;;  %1087 = vmatprep.mubr.f32.mxu1 %v12946_v0  ;;  %v697_v55 = vld [vmem:[#allocation2 + $0x8] sm:$0xff]  ;;  %v699_v61 = vld [vmem:[#allocation2 + $0x18] sm:$0xff]  ;;  %vm10683_vm1 = vmmov 0   ;;  %s10684_s1 = smov [#allocation10]  }
 0x167   :  { %v701_v60 = vld [vmem:[#allocation2 + $0x28] sm:$0xff]  ;;  %v703_v3 = vld [vmem:[#allocation2 + $0x38] sm:$0xff]  ;;  %v696_v6 = vld [vmem:[#allocation2] sm:$0xff]  ;;  %s7235_s14 = sshll.u32 %s10684_s1, 4  ;;  %vm7227_vm2 = vcmask 80896   ;;  %s7236_s14 = int_to_ptr.vmem [resolvable:$true] %s7235_s14 }
 0x168   :  { %v11011_v2 = vpack.c.bf16 %v701_v60, %v697_v55  ;;  %v700_v7 = vld [vmem:[#allocation2 + $0x20] sm:$0xff]  ;;  %v11013_v10 = vpack.c.bf16 %v703_v3, %v699_v61  ;;  %v698_v35 = vld [vmem:[#allocation2 + $0x10] sm:$0xff]  ;;  %v705_v43 = vld [vmem:[#allocation2 + $0x48] sm:$0xff]  ;;  %s10643_s2 = scalar_lea.vmem %s7236_s14, 128  ;;  %p10648_p5 = scmp.lt.s32.totalorder %s7236_s14, %s7236_s14 }
 0x169   :  { %v11015_v19 = vpack.c.bf16 %v700_v7, %v696_v6  ;;  %v702_v41 = vld [vmem:[#allocation2 + $0x30] sm:$0xff]  ;;  %v709_v49 = vld [vmem:[#allocation2 + $0x68] sm:$0xff]  ;;  %v707_v51 = vld [vmem:[#allocation2 + $0x58] sm:$0xff]  ;;  %p10644_p4 = scmp.ne.s32.totalorder %s7236_s14, %s10643_s2  ;;  %p10649_p6 = scmp.lt.s32.totalorder %s10643_s2, %s10643_s2 }
 0x16a   :  { %13309 = vst [vmem:[#allocation65_spill] sm:$0xff] %v11011_v2  ;;  %13310 = vst [vmem:[#allocation66_spill] sm:$0xff] %v11013_v10  ;;  %7514 = vmatprep.subr.bf16.mxu0 %v11011_v2  ;;  %v11018_v47 = vpack.c.bf16 %v702_v41, %v698_v35  ;;  %v711_v62 = vld [vmem:[#allocation2 + $0x78] sm:$0xff]  ;;  %7546 = vmatprep.subr.bf16.mxu1 %v11013_v10  ;;  %v11022_v46 = vpack.c.bf16 %v709_v49, %v705_v43  ;;  %v704_v60 = vld [vmem:[#allocation2 + $0x40] sm:$0xff] }
 0x16b   :  { %13311 = vst [vmem:[#allocation67_spill] sm:$0xff] %v11015_v19  ;;  %7516 = vmatpush1.bf16.msra.mxu0 %v11015_v19  ;;  %v11024_v55 = vpack.c.bf16 %v711_v62, %v707_v51  ;;  %v708_v61 = vld [vmem:[#allocation2 + $0x60] sm:$0xff]  ;;  %v706_v3 = vld [vmem:[#allocation2 + $0x50] sm:$0xff]  ;;  %v713_v35 = vld [vmem:[#allocation2 + $0x88] sm:$0xff]  ;;  %p10650_p7 = por %p10649_p6, %p10648_p5 }
 0x16c   :  { %13312 = vst [vmem:[#allocation68_spill] sm:$0xff] %v11018_v47  ;;  %13313 = vst [vmem:[#allocation69_spill] sm:$0xff] %v11022_v46  ;;  %7548 = vmatpush1.bf16.msra.mxu1 %v11018_v47  ;;  %v11027_v6 = vpack.c.bf16 %v708_v61, %v704_v60  ;;  %v710_v7 = vld [vmem:[#allocation2 + $0x70] sm:$0xff]  ;;  %v717_v41 = vld [vmem:[#allocation2 + $0xa8] sm:$0xff]  ;;  %7518 = vmatprep.subr.bf16.mxu0 %v11022_v46 }
 0x16d   :  { %13314 = vst [vmem:[#allocation70_spill] sm:$0xff] %v11024_v55  ;;  %7550 = vmatprep.subr.bf16.mxu1 %v11024_v55  ;;  %v11031_v0 = vpack.c.bf16 %v710_v7, %v706_v3  ;;  %v11033_v43 = vpack.c.bf16 %v717_v41, %v713_v35  ;;  %v715_v49 = vld [vmem:[#allocation2 + $0x98] sm:$0xff]  ;;  %v712_v62 = vld [vmem:[#allocation2 + $0x80] sm:$0xff]  ;;  %v714_v16 = vld [vmem:[#allocation2 + $0x90] sm:$0xff]  ;;  %p10651_p8 = pnand %p10650_p7, %p10644_p4 }
 0x16e   :  { %13315 = vst [vmem:[#allocation71_spill] sm:$0xff] %v11027_v6  ;;  %v719_v51 = vld [vmem:[#allocation2 + $0xb8] sm:$0xff]  ;;  %v716_v15 = vld [vmem:[#allocation2 + $0xa0] sm:$0xff]  ;;  %v718_v60 = vld [vmem:[#allocation2 + $0xb0] sm:$0xff] }
 0x16f   :  { %13316 = vst [vmem:[#allocation72_spill] sm:$0xff] %v11031_v0  ;;  %13317 = vst [vmem:[#allocation73_spill] sm:$0xff] %v11033_v43  ;;  %v11035_v38 = vpack.c.bf16 %v719_v51, %v715_v49  ;;  %7520 = vmatpush1.bf16.msra.mxu0 %v11027_v6  ;;  %v11038_v61 = vpack.c.bf16 %v716_v15, %v712_v62  ;;  %v721_v57 = vld [vmem:[#allocation2 + $0xc8] sm:$0xff]  ;;  %v723_v20 = vld [vmem:[#allocation2 + $0xd8] sm:$0xff]  ;;  %v11042_v3 = vpack.c.bf16 %v718_v60, %v714_v16 }
 0x170   :  { %v725_v21 = vld [vmem:[#allocation2 + $0xe8] sm:$0xff]  ;;  %7552 = vmatpush1.bf16.msra.mxu1 %v11031_v0  ;;  %7522 = vmatprep.subr.bf16.mxu0 %v11033_v43  ;;  %v727_v35 = vld [vmem:[#allocation2 + $0xf8] sm:$0xff]  ;;  %v720_v41 = vld [vmem:[#allocation2 + $0xc0] sm:$0xff] }
 0x171   :  { %13318 = vst [vmem:[#allocation74_spill] sm:$0xff] %v11035_v38  ;;  %13319 = vst [vmem:[#allocation75_spill] sm:$0xff] %v11038_v61  ;;  %v11044_v7 = vpack.c.bf16 %v725_v21, %v721_v57  ;;  %v724_v49 = vld [vmem:[#allocation2 + $0xe0] sm:$0xff]  ;;  %7554 = vmatprep.subr.bf16.mxu1 %v11035_v38  ;;  %v11047_v51 = vpack.c.bf16 %v727_v35, %v723_v20  ;;  %v722_v15 = vld [vmem:[#allocation2 + $0xd0] sm:$0xff] }
 0x172   :  { %13320 = vst [vmem:[#allocation76_spill] sm:$0xff] %v11042_v3  ;;  %v726_v62 = vld [vmem:[#allocation2 + $0xf0] sm:$0xff]  ;;  %v729_v25 = vld [vmem:[#allocation2 + $0x108] sm:$0xff]  ;;  %v731_v28 = vld [vmem:[#allocation2 + $0x118] sm:$0xff]  ;;  %v11050_v43 = vpack.c.bf16 %v724_v49, %v720_v41 }
 0x173   :  { %13321 = vst [vmem:[#allocation77_spill] sm:$0xff] %v11044_v7  ;;  %13322 = vst [vmem:[#allocation78_spill] sm:$0xff] %v11047_v51  ;;  %v733_v33 = vld [vmem:[#allocation2 + $0x128] sm:$0xff]  ;;  %v735_v6 = vld [vmem:[#allocation2 + $0x138] sm:$0xff]  ;;  %7524 = vmatpush1.bf16.msra.mxu0 %v11038_v61  ;;  %v11054_v21 = vpack.c.bf16 %v726_v62, %v722_v15 }
 0x174   :  { %13323 = vst [vmem:[#allocation79_spill] sm:$0xff] %v11050_v43  ;;  %7556 = vmatpush1.bf16.msra.mxu1 %v11042_v3  ;;  %7526 = vmatprep.subr.bf16.mxu0 %v11044_v7  ;;  %v11056_v57 = vpack.c.bf16 %v733_v33, %v729_v25  ;;  %v728_v20 = vld [vmem:[#allocation2 + $0x100] sm:$0xff]  ;;  %v730_v60 = vld [vmem:[#allocation2 + $0x110] sm:$0xff]  ;;  %v11059_v35 = vpack.c.bf16 %v735_v6, %v731_v28  ;;  %v737_v0 = vld [vmem:[#allocation2 + $0x148] sm:$0xff] }
 0x175   :  { %13324 = vst [vmem:[#allocation80_spill] sm:$0xff] %v11054_v21  ;;  %v732_v16 = vld [vmem:[#allocation2 + $0x120] sm:$0xff]  ;;  %7558 = vmatprep.subr.bf16.mxu1 %v11047_v51  ;;  %v734_v38 = vld [vmem:[#allocation2 + $0x130] sm:$0xff]  ;;  %v741_v61 = vld [vmem:[#allocation2 + $0x168] sm:$0xff] }
 0x176   :  { %13325 = vst [vmem:[#allocation81_spill] sm:$0xff] %v11056_v57  ;;  %13326 = vst [vmem:[#allocation82_spill] sm:$0xff] %v11059_v35  ;;  %v739_v41 = vld [vmem:[#allocation2 + $0x158] sm:$0xff]  ;;  %v11062_v3 = vpack.c.bf16 %v732_v16, %v728_v20  ;;  %v11066_v25 = vpack.c.bf16 %v734_v38, %v730_v60  ;;  %v11068_v33 = vpack.c.bf16 %v741_v61, %v737_v0  ;;  %v736_v15 = vld [vmem:[#allocation2 + $0x140] sm:$0xff] }
 0x177   :  { %v743_v49 = vld [vmem:[#allocation2 + $0x178] sm:$0xff]  ;;  %7528 = vmatpush1.bf16.msra.mxu0 %v11050_v43  ;;  %v740_v28 = vld [vmem:[#allocation2 + $0x160] sm:$0xff]  ;;  %v738_v6 = vld [vmem:[#allocation2 + $0x150] sm:$0xff] }
 0x178   :  { %13327 = vst [vmem:[#allocation83_spill] sm:$0xff] %v11062_v3  ;;  %7560 = vmatpush1.bf16.msra.mxu1 %v11054_v21  ;;  %7530 = vmatprep.subr.bf16.mxu0 %v11056_v57  ;;  %13328 = vst [vmem:[#allocation84_spill] sm:$0xff] %v11066_v25  ;;  %v11071_v62 = vpack.c.bf16 %v743_v49, %v739_v41  ;;  %v742_v51 = vld [vmem:[#allocation2 + $0x170] sm:$0xff]  ;;  %v745_v7 = vld [vmem:[#allocation2 + $0x188] sm:$0xff]  ;;  %v11074_v21 = vpack.c.bf16 %v740_v28, %v736_v15 }
 0x179   :  { %13329 = vst [vmem:[#allocation85_spill] sm:$0xff] %v11068_v33  ;;  %7562 = vmatprep.subr.bf16.mxu1 %v11059_v35  ;;  %v749_v43 = vld [vmem:[#allocation2 + $0x1a8] sm:$0xff]  ;;  %v747_v20 = vld [vmem:[#allocation2 + $0x198] sm:$0xff]  ;;  %v11078_v0 = vpack.c.bf16 %v742_v51, %v738_v6  ;;  %v744_v61 = vld [vmem:[#allocation2 + $0x180] sm:$0xff] }
 0x17a   :  { %13330 = vst [vmem:[#allocation86_spill] sm:$0xff] %v11071_v62  ;;  %v751_v16 = vld [vmem:[#allocation2 + $0x1b8] sm:$0xff]  ;;  %13331 = vst [vmem:[#allocation87_spill] sm:$0xff] %v11074_v21  ;;  %v11080_v38 = vpack.c.bf16 %v749_v43, %v745_v7  ;;  %v748_v60 = vld [vmem:[#allocation2 + $0x1a0] sm:$0xff] }
 0x17b   :  { %7532 = vmatpush1.bf16.msra.mxu0 %v11062_v3  ;;  %13332 = vst [vmem:[#allocation88_spill] sm:$0xff] %v11078_v0  ;;  %v746_v41 = vld [vmem:[#allocation2 + $0x190] sm:$0xff]  ;;  %v11083_v49 = vpack.c.bf16 %v751_v16, %v747_v20  ;;  %v753_v57 = vld [vmem:[#allocation2 + $0x1c8] sm:$0xff]  ;;  %v755_v15 = vld [vmem:[#allocation2 + $0x1d8] sm:$0xff] }
 0x17c   :  { %7564 = vmatpush1.bf16.msra.mxu1 %v11066_v25  ;;  %7534 = vmatprep.subr.bf16.mxu0 %v11068_v33  ;;  %13333 = vst [vmem:[#allocation89_spill] sm:$0xff] %v11080_v38  ;;  %v750_v35 = vld [vmem:[#allocation2 + $0x1b0] sm:$0xff]  ;;  %v757_v3 = vld [vmem:[#allocation2 + $0x1e8] sm:$0xff]  ;;  %v759_v28 = vld [vmem:[#allocation2 + $0x1f8] sm:$0xff]  ;;  %v11086_v25 = vpack.c.bf16 %v748_v60, %v744_v61 }
 0x17d   :  { %7566 = vmatprep.subr.bf16.mxu1 %v11071_v62  ;;  %13334 = vst [vmem:[#allocation90_spill] sm:$0xff] %v11083_v49  ;;  %v11090_v43 = vpack.c.bf16 %v750_v35, %v746_v41  ;;  %v11092_v7 = vpack.c.bf16 %v757_v3, %v753_v57  ;;  %v752_v51 = vld [vmem:[#allocation2 + $0x1c0] sm:$0xff]  ;;  %v754_v20 = vld [vmem:[#allocation2 + $0x1d0] sm:$0xff]  ;;  %v11095_v16 = vpack.c.bf16 %v759_v28, %v755_v15  ;;  %v761_v33 = vld [vmem:[#allocation2 + $0x208] sm:$0xff] }
 0x17e   :  { %13335 = vst [vmem:[#allocation91_spill] sm:$0xff] %v11086_v25  ;;  %v756_v6 = vld [vmem:[#allocation2 + $0x1e0] sm:$0xff]  ;;  %v758_v62 = vld [vmem:[#allocation2 + $0x1f0] sm:$0xff]  ;;  %v763_v61 = vld [vmem:[#allocation2 + $0x218] sm:$0xff] }
 0x17f   :  { %7536 = vmatpush1.bf16.msra.mxu0 %v11074_v21  ;;  %13336 = vst [vmem:[#allocation92_spill] sm:$0xff] %v11090_v43  ;;  %13337 = vst [vmem:[#allocation93_spill] sm:$0xff] %v11092_v7  ;;  %v765_v21 = vld [vmem:[#allocation2 + $0x228] sm:$0xff]  ;;  %v767_v60 = vld [vmem:[#allocation2 + $0x238] sm:$0xff]  ;;  %v11102_v3 = vpack.c.bf16 %v758_v62, %v754_v20 }
 0x180   :  { %7568 = vmatpush1.bf16.msra.mxu1 %v11078_v0  ;;  %7538 = vmatprep.subr.bf16.mxu0 %v11080_v38  ;;  %13338 = vst [vmem:[#allocation94_spill] sm:$0xff] %v11095_v16  ;;  %v11098_v0 = vpack.c.bf16 %v756_v6, %v752_v51  ;;  %v11104_v57 = vpack.c.bf16 %v765_v21, %v761_v33  ;;  %v760_v35 = vld [vmem:[#allocation2 + $0x200] sm:$0xff]  ;;  %v762_v15 = vld [vmem:[#allocation2 + $0x210] sm:$0xff]  ;;  %v769_v38 = vld [vmem:[#allocation2 + $0x248] sm:$0xff] }
 0x181   :  { %7570 = vmatprep.subr.bf16.mxu1 %v11083_v49  ;;  %13340 = vst [vmem:[#allocation96_spill] sm:$0xff] %v11102_v3  ;;  %v764_v41 = vld [vmem:[#allocation2 + $0x220] sm:$0xff]  ;;  %v11107_v28 = vpack.c.bf16 %v767_v60, %v763_v61  ;;  %v766_v49 = vld [vmem:[#allocation2 + $0x230] sm:$0xff]  ;;  %v771_v51 = vld [vmem:[#allocation2 + $0x258] sm:$0xff] }
 0x182   :  { %13339 = vst [vmem:[#allocation95_spill] sm:$0xff] %v11098_v0  ;;  %13341 = vst [vmem:[#allocation97_spill] sm:$0xff] %v11104_v57  ;;  %v775_v6 = vld [vmem:[#allocation2 + $0x278] sm:$0xff]  ;;  %v11114_v21 = vpack.c.bf16 %v766_v49, %v762_v15  ;;  %v768_v62 = vld [vmem:[#allocation2 + $0x240] sm:$0xff] }
 0x183   :  { %7540 = vmatpush1.bf16.msra.mxu0 %v11086_v25  ;;  %13342 = vst [vmem:[#allocation98_spill] sm:$0xff] %v11107_v28  ;;  %v773_v25 = vld [vmem:[#allocation2 + $0x268] sm:$0xff]  ;;  %v772_v20 = vld [vmem:[#allocation2 + $0x260] sm:$0xff]  ;;  %v770_v61 = vld [vmem:[#allocation2 + $0x250] sm:$0xff]  ;;  %v11119_v60 = vpack.c.bf16 %v775_v6, %v771_v51 }
 0x184   :  { %7572 = vmatpush1.bf16.msra.mxu1 %v11090_v43  ;;  %7542 = vmatprep.subr.bf16.mxu0 %v11092_v7  ;;  %v11110_v43 = vpack.c.bf16 %v764_v41, %v760_v35  ;;  %13344 = vst [vmem:[#allocation100_spill] sm:$0xff] %v11114_v21  ;;  %v11116_v33 = vpack.c.bf16 %v773_v25, %v769_v38  ;;  %v777_v7 = vld [vmem:[#allocation2 + $0x288] sm:$0xff]  ;;  %v779_v35 = vld [vmem:[#allocation2 + $0x298] sm:$0xff]  ;;  %v776_v15 = vld [vmem:[#allocation2 + $0x280] sm:$0xff] }
 0x185   :  { %7574 = vmatprep.subr.bf16.mxu1 %v11095_v16  ;;  %13346 = vst [vmem:[#allocation102_spill] sm:$0xff] %v11119_v60  ;;  %v774_v16 = vld [vmem:[#allocation2 + $0x270] sm:$0xff]  ;;  %v783_v41 = vld [vmem:[#allocation2 + $0x2b8] sm:$0xff]  ;;  %v11124_v25 = vpack.c.bf16 %v772_v20, %v768_v62  ;;  %v780_v51 = vld [vmem:[#allocation2 + $0x2a0] sm:$0xff]  ;;  %v13351_v62 = vmov 0.0  }
 0x186   :  { %13343 = vst [vmem:[#allocation99_spill] sm:$0xff] %v11110_v43  ;;  %13345 = vst [vmem:[#allocation101_spill] sm:$0xff] %v11116_v33  ;;  %v11128_v38 = vpack.c.bf16 %v774_v16, %v770_v61  ;;  %v778_v6 = vld [vmem:[#allocation2 + $0x290] sm:$0xff]  ;;  %v787_v20 = vld [vmem:[#allocation2 + $0x2d8] sm:$0xff] }
 0x187   :  { %7544 = vmatpush1.bf16.msra.mxu0 %v11098_v0  ;;  %v781_v0 = vld [vmem:[#allocation2 + $0x2a8] sm:$0xff]  ;;  %13347 = vst [vmem:[#allocation103_spill] sm:$0xff] %v11124_v25  ;;  %v784_v61 = vld [vmem:[#allocation2 + $0x2c0] sm:$0xff] }
 0x188   :  { %7576 = vmatpush1.bf16.msra.mxu1 %v11102_v3  ;;  %7578 = vmatprep.subr.bf16.mxu0 %v11104_v57  ;;  %13348 = vst [vmem:[#allocation104_spill] sm:$0xff] %v11128_v38  ;;  %v11130_v49 = vpack.c.bf16 %v781_v0, %v777_v7  ;;  %v782_v57 = vld [vmem:[#allocation2 + $0x2b0] sm:$0xff]  ;;  %v785_v3 = vld [vmem:[#allocation2 + $0x2c8] sm:$0xff]  ;;  %v11138_v0 = vpack.c.bf16 %v780_v51, %v776_v15  ;;  %v795_v15 = vld [vmem:[#allocation2 + $0x318] sm:$0xff] }
 0x189   :  { %7610 = vmatprep.subr.bf16.mxu1 %v11107_v28  ;;  %v11133_v28 = vpack.c.bf16 %v783_v41, %v779_v35  ;;  %v11142_v7 = vpack.c.bf16 %v782_v57, %v778_v6  ;;  %v788_v35 = vld [vmem:[#allocation2 + $0x2e0] sm:$0xff]  ;;  %v786_v41 = vld [vmem:[#allocation2 + $0x2d0] sm:$0xff]  ;;  %v793_v55 = vld [vmem:[#allocation2 + $0x308] sm:$0xff] }
 0x18a   :  { %1017 = vmatmul.mubr.f32.vlgmr.msra.gmra.mrb[16].mxu0 %v11007_v54  ;;  %13349 = vst [vmem:[#allocation105_spill] sm:$0xff] %v11130_v49  ;;  %13352 = vst [vmem:[#allocation107_spill] sm:$0xff] %v11138_v0  ;;  %v799_v51 = vld [vmem:[#allocation2 + $0x338] sm:$0xff]  ;;  %v792_v57 = vld [vmem:[#allocation2 + $0x300] sm:$0xff] }
 0x18b   :  { %1088 = vmatmul.mubr.f32.vlgmr.msra.gmra.mrb[16].mxu1 %v11007_v54  ;;  %7580 = vmatpush1.bf16.msra.mxu0 %v11110_v43  ;;  %13350 = vst [vmem:[#allocation106_spill] sm:$0xff] %v11133_v28  ;;  %v789_v43 = vld [vmem:[#allocation2 + $0x2e8] sm:$0xff]  ;;  %13353 = vst [vmem:[#allocation108_spill] sm:$0xff] %v11142_v7  ;;  %v794_v6 = vld [vmem:[#allocation2 + $0x310] sm:$0xff] }
 0x18c   :  { %7612 = vmatpush1.bf16.msra.mxu1 %v11114_v21  ;;  %7582 = vmatprep.subr.bf16.mxu0 %v11116_v33  ;;  %v791_v21 = vld [vmem:[#allocation2 + $0x2f8] sm:$0xff]  ;;  %v11144_v16 = vpack.c.bf16 %v789_v43, %v785_v3  ;;  %v790_v33 = vld [vmem:[#allocation2 + $0x2f0] sm:$0xff] }
 0x18d   :  { %7614 = vmatprep.subr.bf16.mxu1 %v11119_v60  ;;  %1158 = vmatprep.mubr.f32.mxu0 %v13351_v62  ;;  %v11147_v60 = vpack.c.bf16 %v791_v21, %v787_v20  ;;  %v11154_v43 = vpack.c.bf16 %v790_v33, %v786_v41  ;;  %v796_v21 = vld [vmem:[#allocation2 + $0x320] sm:$0xff]  ;;  %v11159_v20 = vpack.c.bf16 %v799_v51, %v795_v15  ;;  %v802_v15 = vld [vmem:[#allocation2 + $0x350] sm:$0xff] }
 0x18e   :  { %1229 = vmatprep.mubr.f32.mxu1 %v13351_v62  ;;  %13354 = vst [vmem:[#allocation109_spill] sm:$0xff] %v11144_v16  ;;  %v804_v41 = vld [vmem:[#allocation2 + $0x360] sm:$0xff] }
 0x18f   :  { %7584 = vmatpush1.bf16.msra.mxu0 %v11124_v25  ;;  %13355 = vst [vmem:[#allocation110_spill] sm:$0xff] %v11147_v60  ;;  %v797_v25 = vld [vmem:[#allocation2 + $0x328] sm:$0xff]  ;;  %13357 = vst [vmem:[#allocation112_spill] sm:$0xff] %v11154_v43 }
 0x190   :  { %7616 = vmatpush1.bf16.msra.mxu1 %v11128_v38  ;;  %7586 = vmatprep.subr.bf16.mxu0 %v11130_v49  ;;  %v11150_v38 = vpack.c.bf16 %v788_v35, %v784_v61  ;;  %v11156_v3 = vpack.c.bf16 %v797_v25, %v793_v55  ;;  %13359 = vst [vmem:[#allocation114_spill] sm:$0xff] %v11159_v20  ;;  %v801_v49 = vld [vmem:[#allocation2 + $0x348] sm:$0xff]  ;;  %v803_v61 = vld [vmem:[#allocation2 + $0x358] sm:$0xff]  ;;  %v800_v25 = vld [vmem:[#allocation2 + $0x340] sm:$0xff] }
 0x191   :  { %7618 = vmatprep.subr.bf16.mxu1 %v11133_v28  ;;  %v798_v28 = vld [vmem:[#allocation2 + $0x330] sm:$0xff]  ;;  %v807_v35 = vld [vmem:[#allocation2 + $0x378] sm:$0xff] }
 0x192   :  { %13356 = vst [vmem:[#allocation111_spill] sm:$0xff] %v11150_v38  ;;  %13358 = vst [vmem:[#allocation113_spill] sm:$0xff] %v11156_v3  ;;  %v11166_v55 = vpack.c.bf16 %v798_v28, %v794_v6  ;;  %v11171_v51 = vpack.c.bf16 %v807_v35, %v803_v61  ;;  %v812_v6 = vld [vmem:[#allocation2 + $0x3a0] sm:$0xff]  ;;  %v810_v61 = vld [vmem:[#allocation2 + $0x390] sm:$0xff] }
 0x193   :  { %7588 = vmatpush1.bf16.msra.mxu0 %v11138_v0  ;;  %v805_v0 = vld [vmem:[#allocation2 + $0x368] sm:$0xff] }
 0x194   :  { %7620 = vmatpush1.bf16.msra.mxu1 %v11142_v7  ;;  %7590 = vmatprep.subr.bf16.mxu0 %v11144_v16  ;;  %v11162_v7 = vpack.c.bf16 %v796_v21, %v792_v57  ;;  %13361 = vst [vmem:[#allocation116_spill] sm:$0xff] %v11166_v55  ;;  %v11168_v33 = vpack.c.bf16 %v805_v0, %v801_v49  ;;  %13363 = vst [vmem:[#allocation118_spill] sm:$0xff] %v11171_v51  ;;  %v809_v16 = vld [vmem:[#allocation2 + $0x388] sm:$0xff]  ;;  %v811_v57 = vld [vmem:[#allocation2 + $0x398] sm:$0xff] }
 0x195   :  { %7622 = vmatprep.subr.bf16.mxu1 %v11147_v60  ;;  %v806_v60 = vld [vmem:[#allocation2 + $0x370] sm:$0xff]  ;;  %v815_v21 = vld [vmem:[#allocation2 + $0x3b8] sm:$0xff]  ;;  %v808_v0 = vld [vmem:[#allocation2 + $0x380] sm:$0xff] }
 0x196   :  { %13360 = vst [vmem:[#allocation115_spill] sm:$0xff] %v11162_v7  ;;  %13362 = vst [vmem:[#allocation117_spill] sm:$0xff] %v11168_v33  ;;  %v11178_v28 = vpack.c.bf16 %v806_v60, %v802_v15  ;;  %v11183_v35 = vpack.c.bf16 %v815_v21, %v811_v57  ;;  %v820_v15 = vld [vmem:[#allocation2 + $0x3e0] sm:$0xff]  ;;  %v818_v21 = vld [vmem:[#allocation2 + $0x3d0] sm:$0xff] }
 0x197   :  { %7592 = vmatpush1.bf16.msra.mxu0 %v11150_v38  ;;  %v813_v38 = vld [vmem:[#allocation2 + $0x3a8] sm:$0xff] }
 0x198   :  { %7624 = vmatpush1.bf16.msra.mxu1 %v11154_v43  ;;  %7594 = vmatprep.subr.bf16.mxu0 %v11156_v3  ;;  %v11174_v43 = vpack.c.bf16 %v804_v41, %v800_v25  ;;  %13365 = vst [vmem:[#allocation120_spill] sm:$0xff] %v11178_v28  ;;  %v11180_v49 = vpack.c.bf16 %v813_v38, %v809_v16  ;;  %13367 = vst [vmem:[#allocation122_spill] sm:$0xff] %v11183_v35  ;;  %v817_v3 = vld [vmem:[#allocation2 + $0x3c8] sm:$0xff]  ;;  %v819_v25 = vld [vmem:[#allocation2 + $0x3d8] sm:$0xff] }
 0x199   :  { %7626 = vmatprep.subr.bf16.mxu1 %v11159_v20  ;;  %v814_v20 = vld [vmem:[#allocation2 + $0x3b0] sm:$0xff]  ;;  %v823_v41 = vld [vmem:[#allocation2 + $0x3f8] sm:$0xff]  ;;  %v816_v16 = vld [vmem:[#allocation2 + $0x3c0] sm:$0xff] }
 0x19a   :  { %13364 = vst [vmem:[#allocation119_spill] sm:$0xff] %v11174_v43  ;;  %13366 = vst [vmem:[#allocation121_spill] sm:$0xff] %v11180_v49  ;;  %v11190_v60 = vpack.c.bf16 %v814_v20, %v810_v61  ;;  %v11195_v57 = vpack.c.bf16 %v823_v41, %v819_v25  ;;  %v824_v25 = vld [vmem:[#allocation3] sm:$0xff] }
 0x19b   :  { %7596 = vmatpush1.bf16.msra.mxu0 %v11162_v7  ;;  %v821_v7 = vld [vmem:[#allocation2 + $0x3e8] sm:$0xff]  ;;  %v828_v41 = vld [vmem:[#allocation3 + $0x20] sm:$0xff] }
 0x19c   :  { %7628 = vmatpush1.bf16.msra.mxu1 %v11166_v55  ;;  %7598 = vmatprep.subr.bf16.mxu0 %v11168_v33  ;;  %v11186_v55 = vpack.c.bf16 %v812_v6, %v808_v0  ;;  %13369 = vst [vmem:[#allocation124_spill] sm:$0xff] %v11190_v60  ;;  %v11192_v38 = vpack.c.bf16 %v821_v7, %v817_v3  ;;  %13371 = vst [vmem:[#allocation126_spill] sm:$0xff] %v11195_v57  ;;  %v825_v7 = vld [vmem:[#allocation3 + $0x8] sm:$0xff]  ;;  %v827_v6 = vld [vmem:[#allocation3 + $0x18] sm:$0xff] }
 0x19d   :  { %7630 = vmatprep.subr.bf16.mxu1 %v11171_v51  ;;  %v822_v51 = vld [vmem:[#allocation2 + $0x3f0] sm:$0xff]  ;;  %v11198_v0 = vpack.c.bf16 %v820_v15, %v816_v16  ;;  %v829_v3 = vld [vmem:[#allocation3 + $0x28] sm:$0xff]  ;;  %v11215_v15 = vpack.c.bf16 %v828_v41, %v824_v25  ;;  %v836_v25 = vld [vmem:[#allocation3 + $0x60] sm:$0xff] }
 0x19e   :  { %13368 = vst [vmem:[#allocation123_spill] sm:$0xff] %v11186_v55  ;;  %13370 = vst [vmem:[#allocation125_spill] sm:$0xff] %v11192_v38  ;;  %v11202_v20 = vpack.c.bf16 %v822_v51, %v818_v21  ;;  %v11211_v61 = vpack.c.bf16 %v829_v3, %v825_v7  ;;  %v831_v51 = vld [vmem:[#allocation3 + $0x38] sm:$0xff]  ;;  %v826_v21 = vld [vmem:[#allocation3 + $0x10] sm:$0xff] }
 0x19f   :  { %7600 = vmatpush1.bf16.msra.mxu0 %v11174_v43  ;;  %13372 = vst [vmem:[#allocation127_spill] sm:$0xff] %v11198_v0  ;;  %v11213_v16 = vpack.c.bf16 %v831_v51, %v827_v6  ;;  %13376 = vst [vmem:[#allocation131_spill] sm:$0xff] %v11215_v15  ;;  %v837_v7 = vld [vmem:[#allocation3 + $0x68] sm:$0xff]  ;;  %v835_v3 = vld [vmem:[#allocation3 + $0x58] sm:$0xff] }
 0x1a0   :  { %7632 = vmatpush1.bf16.msra.mxu1 %v11178_v28  ;;  %7602 = vmatprep.subr.bf16.mxu0 %v11180_v49  ;;  %13373 = vst [vmem:[#allocation128_spill] sm:$0xff] %v11202_v20  ;;  %13374 = vst [vmem:[#allocation129_spill] sm:$0xff] %v11211_v61  ;;  %v839_v6 = vld [vmem:[#allocation3 + $0x78] sm:$0xff]  ;;  %v832_v51 = vld [vmem:[#allocation3 + $0x40] sm:$0xff] }
 0x1a1   :  { %7634 = vmatprep.subr.bf16.mxu1 %v11183_v35  ;;  %13375 = vst [vmem:[#allocation130_spill] sm:$0xff] %v11213_v16  ;;  %v11225_v41 = vpack.c.bf16 %v839_v6, %v835_v3  ;;  %v847_v3 = vld [vmem:[#allocation3 + $0xb8] sm:$0xff]  ;;  %v840_v6 = vld [vmem:[#allocation3 + $0x80] sm:$0xff]  ;;  %v889_v49 = vld [vmem:[#allocation3 + $0x208] sm:$0xff] }
 0x1a2   :  { %v879_v35 = vld [vmem:[#allocation3 + $0x1b8] sm:$0xff] }
 0x1a3   :  { %7604 = vmatpush1.bf16.msra.mxu0 %v11186_v55  ;;  %13379 = vst [vmem:[#allocation134_spill] sm:$0xff] %v11225_v41  ;;  %v875_v55 = vld [vmem:[#allocation3 + $0x198] sm:$0xff] }
 0x1a4   :  { %7636 = vmatpush1.bf16.msra.mxu1 %v11190_v60  ;;  %7606 = vmatprep.subr.bf16.mxu0 %v11192_v38  ;;  %v11227_v60 = vpack.c.bf16 %v836_v25, %v832_v51  ;;  %v844_v51 = vld [vmem:[#allocation3 + $0xa0] sm:$0xff]  ;;  %v891_v28 = vld [vmem:[#allocation3 + $0x218] sm:$0xff] }
 0x1a5   :  { %7638 = vmatprep.subr.bf16.mxu1 %v11195_v57  ;;  %v833_v57 = vld [vmem:[#allocation3 + $0x48] sm:$0xff] }
 0x1a6   :  { %v11223_v38 = vpack.c.bf16 %v837_v7, %v833_v57  ;;  %13380 = vst [vmem:[#allocation135_spill] sm:$0xff] %v11227_v60  ;;  %v845_v57 = vld [vmem:[#allocation3 + $0xa8] sm:$0xff]  ;;  %v843_v7 = vld [vmem:[#allocation3 + $0x98] sm:$0xff] }
 0x1a7   :  { %7608 = vmatpush1.bf16.msra.mxu0 %v11198_v0  ;;  %v11237_v25 = vpack.c.bf16 %v847_v3, %v843_v7  ;;  %v855_v7 = vld [vmem:[#allocation3 + $0xf8] sm:$0xff]  ;;  %v848_v3 = vld [vmem:[#allocation3 + $0xc0] sm:$0xff] }
 0x1a8   :  { %7640 = vmatpush1.bf16.msra.mxu1 %v11202_v20  ;;  %v830_v20 = vld [vmem:[#allocation3 + $0x30] sm:$0xff]  ;;  %7642 = vmatprep.subr.bf16.mxu0 %v11211_v61  ;;  %13378 = vst [vmem:[#allocation133_spill] sm:$0xff] %v11223_v38  ;;  %v11239_v61 = vpack.c.bf16 %v844_v51, %v840_v6  ;;  %v852_v6 = vld [vmem:[#allocation3 + $0xe0] sm:$0xff] }
 0x1a9   :  { %v11218_v0 = vpack.c.bf16 %v830_v20, %v826_v21  ;;  %7674 = vmatprep.subr.bf16.mxu1 %v11213_v16  ;;  %v834_v20 = vld [vmem:[#allocation3 + $0x50] sm:$0xff]  ;;  %13383 = vst [vmem:[#allocation138_spill] sm:$0xff] %v11237_v25 }
 0x1aa   :  { %1159 = vmatmul.mubr.f32.vlgmr.msra.gmra.mrb[16].mxu0 %v13351_v62  ;;  %v838_v21 = vld [vmem:[#allocation3 + $0x70] sm:$0xff]  ;;  %13384 = vst [vmem:[#allocation139_spill] sm:$0xff] %v11239_v61 }
 0x1ab   :  { %1230 = vmatmul.mubr.f32.vlgmr.msra.gmra.mrb[16].mxu1 %v13351_v62  ;;  %1328 = vmatprep.mubr.f32.mxu0 %v13351_v62  ;;  %13377 = vst [vmem:[#allocation132_spill] sm:$0xff] %v11218_v0  ;;  %v11230_v16 = vpack.c.bf16 %v838_v21, %v834_v20  ;;  %v842_v20 = vld [vmem:[#allocation3 + $0x90] sm:$0xff] }
 0x1ac   :  { %1399 = vmatprep.mubr.f32.mxu1 %v13351_v62  ;;  %7644 = vmatpush1.bf16.msra.mxu0 %v11215_v15  ;;  %v846_v21 = vld [vmem:[#allocation3 + $0xb0] sm:$0xff] }
 0x1ad   :  { %7676 = vmatpush1.bf16.msra.mxu1 %v11218_v0  ;;  %7646 = vmatprep.subr.bf16.mxu0 %v11223_v38  ;;  %13381 = vst [vmem:[#allocation136_spill] sm:$0xff] %v11230_v16  ;;  %v841_v0 = vld [vmem:[#allocation3 + $0x88] sm:$0xff]  ;;  %v11251_v38 = vpack.c.bf16 %v852_v6, %v848_v3  ;;  %v860_v3 = vld [vmem:[#allocation3 + $0x120] sm:$0xff] }
 0x1ae   :  { %7678 = vmatprep.subr.bf16.mxu1 %v11225_v41  ;;  %v11235_v15 = vpack.c.bf16 %v845_v57, %v841_v0  ;;  %v11242_v41 = vpack.c.bf16 %v846_v21, %v842_v20  ;;  %v853_v0 = vld [vmem:[#allocation3 + $0xe8] sm:$0xff]  ;;  %v851_v57 = vld [vmem:[#allocation3 + $0xd8] sm:$0xff]  ;;  %v850_v20 = vld [vmem:[#allocation3 + $0xd0] sm:$0xff] }
 0x1af   :  { %v11249_v51 = vpack.c.bf16 %v855_v7, %v851_v57  ;;  %13388 = vst [vmem:[#allocation143_spill] sm:$0xff] %v11251_v38  ;;  %v854_v21 = vld [vmem:[#allocation3 + $0xf0] sm:$0xff]  ;;  %v863_v57 = vld [vmem:[#allocation3 + $0x138] sm:$0xff]  ;;  %v856_v7 = vld [vmem:[#allocation3 + $0x100] sm:$0xff] }
 0x1b0   :  { %7648 = vmatpush1.bf16.msra.mxu0 %v11227_v60  ;;  %13382 = vst [vmem:[#allocation137_spill] sm:$0xff] %v11235_v15  ;;  %13385 = vst [vmem:[#allocation140_spill] sm:$0xff] %v11242_v41 }
 0x1b1   :  { %7680 = vmatpush1.bf16.msra.mxu1 %v11230_v16  ;;  %7650 = vmatprep.subr.bf16.mxu0 %v11235_v15  ;;  %v849_v16 = vld [vmem:[#allocation3 + $0xc8] sm:$0xff]  ;;  %13387 = vst [vmem:[#allocation142_spill] sm:$0xff] %v11249_v51  ;;  %v11263_v15 = vpack.c.bf16 %v860_v3, %v856_v7  ;;  %v868_v7 = vld [vmem:[#allocation3 + $0x160] sm:$0xff] }
 0x1b2   :  { %7682 = vmatprep.subr.bf16.mxu1 %v11237_v25  ;;  %v11247_v60 = vpack.c.bf16 %v853_v0, %v849_v16  ;;  %v11254_v25 = vpack.c.bf16 %v854_v21, %v850_v20  ;;  %v861_v16 = vld [vmem:[#allocation3 + $0x128] sm:$0xff]  ;;  %v859_v0 = vld [vmem:[#allocation3 + $0x118] sm:$0xff]  ;;  %v858_v20 = vld [vmem:[#allocation3 + $0x110] sm:$0xff] }
 0x1b3   :  { %v11261_v6 = vpack.c.bf16 %v863_v57, %v859_v0  ;;  %13392 = vst [vmem:[#allocation147_spill] sm:$0xff] %v11263_v15  ;;  %v862_v21 = vld [vmem:[#allocation3 + $0x130] sm:$0xff]  ;;  %v871_v0 = vld [vmem:[#allocation3 + $0x178] sm:$0xff]  ;;  %v864_v57 = vld [vmem:[#allocation3 + $0x140] sm:$0xff] }
 0x1b4   :  { %7652 = vmatpush1.bf16.msra.mxu0 %v11239_v61  ;;  %13386 = vst [vmem:[#allocation141_spill] sm:$0xff] %v11247_v60  ;;  %13389 = vst [vmem:[#allocation144_spill] sm:$0xff] %v11254_v25 }
 0x1b5   :  { %7684 = vmatpush1.bf16.msra.mxu1 %v11242_v41  ;;  %7654 = vmatprep.subr.bf16.mxu0 %v11247_v60  ;;  %v857_v41 = vld [vmem:[#allocation3 + $0x108] sm:$0xff]  ;;  %13391 = vst [vmem:[#allocation146_spill] sm:$0xff] %v11261_v6  ;;  %v11275_v60 = vpack.c.bf16 %v868_v7, %v864_v57  ;;  %v874_v57 = vld [vmem:[#allocation3 + $0x190] sm:$0xff] }
 0x1b6   :  { %7686 = vmatprep.subr.bf16.mxu1 %v11249_v51  ;;  %v11259_v61 = vpack.c.bf16 %v861_v16, %v857_v41  ;;  %v11266_v51 = vpack.c.bf16 %v862_v21, %v858_v20  ;;  %v869_v41 = vld [vmem:[#allocation3 + $0x168] sm:$0xff]  ;;  %v867_v16 = vld [vmem:[#allocation3 + $0x158] sm:$0xff]  ;;  %v866_v20 = vld [vmem:[#allocation3 + $0x150] sm:$0xff] }
 0x1b7   :  { %v11273_v3 = vpack.c.bf16 %v871_v0, %v867_v16  ;;  %13396 = vst [vmem:[#allocation151_spill] sm:$0xff] %v11275_v60  ;;  %v870_v21 = vld [vmem:[#allocation3 + $0x170] sm:$0xff]  ;;  %v872_v16 = vld [vmem:[#allocation3 + $0x180] sm:$0xff] }
 0x1b8   :  { %7656 = vmatpush1.bf16.msra.mxu0 %v11251_v38  ;;  %13390 = vst [vmem:[#allocation145_spill] sm:$0xff] %v11259_v61  ;;  %13393 = vst [vmem:[#allocation148_spill] sm:$0xff] %v11266_v51  ;;  %v876_v0 = vld [vmem:[#allocation3 + $0x1a0] sm:$0xff] }
 0x1b9   :  { %7688 = vmatpush1.bf16.msra.mxu1 %v11254_v25  ;;  %7658 = vmatprep.subr.bf16.mxu0 %v11259_v61  ;;  %v865_v25 = vld [vmem:[#allocation3 + $0x148] sm:$0xff]  ;;  %13395 = vst [vmem:[#allocation150_spill] sm:$0xff] %v11273_v3  ;;  %v11287_v7 = vpack.c.bf16 %v876_v0, %v872_v16  ;;  %v886_v16 = vld [vmem:[#allocation3 + $0x1f0] sm:$0xff] }
 0x1ba   :  { %7690 = vmatprep.subr.bf16.mxu1 %v11261_v6  ;;  %v11271_v38 = vpack.c.bf16 %v869_v41, %v865_v25  ;;  %v873_v61 = vld [vmem:[#allocation3 + $0x188] sm:$0xff]  ;;  %v11284_v41 = vpack.c.bf16 %v879_v35, %v875_v55  ;;  %v883_v55 = vld [vmem:[#allocation3 + $0x1d8] sm:$0xff] }
 0x1bb   :  { %v877_v6 = vld [vmem:[#allocation3 + $0x1a8] sm:$0xff]  ;;  %13400 = vst [vmem:[#allocation155_spill] sm:$0xff] %v11287_v7  ;;  %v887_v35 = vld [vmem:[#allocation3 + $0x1f8] sm:$0xff] }
 0x1bc   :  { %7660 = vmatpush1.bf16.msra.mxu0 %v11263_v15  ;;  %13394 = vst [vmem:[#allocation149_spill] sm:$0xff] %v11271_v38  ;;  %v11278_v15 = vpack.c.bf16 %v870_v21, %v866_v20  ;;  %v11282_v25 = vpack.c.bf16 %v877_v6, %v873_v61  ;;  %13399 = vst [vmem:[#allocation154_spill] sm:$0xff] %v11284_v41  ;;  %v878_v20 = vld [vmem:[#allocation3 + $0x1b0] sm:$0xff]  ;;  %v881_v21 = vld [vmem:[#allocation3 + $0x1c8] sm:$0xff] }
 0x1bd   :  { %7692 = vmatpush1.bf16.msra.mxu1 %v11266_v51  ;;  %7662 = vmatprep.subr.bf16.mxu0 %v11271_v38  ;;  %v885_v38 = vld [vmem:[#allocation3 + $0x1e8] sm:$0xff]  ;;  %v880_v6 = vld [vmem:[#allocation3 + $0x1c0] sm:$0xff] }
 0x1be   :  { %13397 = vst [vmem:[#allocation152_spill] sm:$0xff] %v11278_v15  ;;  %7694 = vmatprep.subr.bf16.mxu1 %v11273_v3  ;;  %13398 = vst [vmem:[#allocation153_spill] sm:$0xff] %v11282_v25  ;;  %v11291_v3 = vpack.c.bf16 %v878_v20, %v874_v57  ;;  %v11293_v61 = vpack.c.bf16 %v885_v38, %v881_v21  ;;  %v884_v51 = vld [vmem:[#allocation3 + $0x1e0] sm:$0xff]  ;;  %v895_v20 = vld [vmem:[#allocation3 + $0x238] sm:$0xff] }
 0x1bf   :  { %v11298_v0 = vpack.c.bf16 %v884_v51, %v880_v6  ;;  %v11307_v21 = vpack.c.bf16 %v895_v20, %v891_v28 }
 0x1c0   :  { %7664 = vmatpush1.bf16.msra.mxu0 %v11275_v60  ;;  %13401 = vst [vmem:[#allocation156_spill] sm:$0xff] %v11291_v3  ;;  %13402 = vst [vmem:[#allocation157_spill] sm:$0xff] %v11293_v61  ;;  %v11295_v60 = vpack.c.bf16 %v887_v35, %v883_v55 }
 0x1c1   :  { %7696 = vmatpush1.bf16.msra.mxu1 %v11278_v15  ;;  %7666 = vmatprep.subr.bf16.mxu0 %v11282_v25  ;;  %v882_v15 = vld [vmem:[#allocation3 + $0x1d0] sm:$0xff]  ;;  %13404 = vst [vmem:[#allocation159_spill] sm:$0xff] %v11298_v0  ;;  %v893_v25 = vld [vmem:[#allocation3 + $0x228] sm:$0xff]  ;;  %13407 = vst [vmem:[#allocation162_spill] sm:$0xff] %v11307_v21 }
 0x1c2   :  { %7698 = vmatprep.subr.bf16.mxu1 %v11284_v41  ;;  %13403 = vst [vmem:[#allocation158_spill] sm:$0xff] %v11295_v60  ;;  %v11302_v38 = vpack.c.bf16 %v886_v16, %v882_v15  ;;  %v11304_v57 = vpack.c.bf16 %v893_v25, %v889_v49  ;;  %v911_v41 = vld [vmem:[#allocation3 + $0x2b8] sm:$0xff] }
 0x1c4   :  { %7668 = vmatpush1.bf16.msra.mxu0 %v11287_v7  ;;  %13405 = vst [vmem:[#allocation160_spill] sm:$0xff] %v11302_v38  ;;  %13406 = vst [vmem:[#allocation161_spill] sm:$0xff] %v11304_v57  ;;  %v907_v7 = vld [vmem:[#allocation3 + $0x298] sm:$0xff] }
 0x1c5   :  { %7700 = vmatpush1.bf16.msra.mxu1 %v11291_v3  ;;  %7670 = vmatprep.subr.bf16.mxu0 %v11293_v61  ;;  %v905_v61 = vld [vmem:[#allocation3 + $0x288] sm:$0xff] }
 0x1c6   :  { %7702 = vmatprep.subr.bf16.mxu1 %v11295_v60  ;;  %v909_v3 = vld [vmem:[#allocation3 + $0x2a8] sm:$0xff] }
 0x1c8   :  { %7672 = vmatpush1.bf16.msra.mxu0 %v11298_v0 }
 0x1c9   :  { %7704 = vmatpush1.bf16.msra.mxu1 %v11302_v38  ;;  %7706 = vmatprep.subr.bf16.mxu0 %v11304_v57 }
 0x1ca   :  { %7738 = vmatprep.subr.bf16.mxu1 %v11307_v21 }
 0x27d   :  { %v1160_v51 = vpop.f32.mrb[16].mxu0 }
 0x27e   :  { %v1236_v55 = vadd.f32 %v1160_v51, %v10869_v27  ;;  %v1231_v15 = vpop.f32.mrb[16].mxu1  ;;  %v1162_v35 = vpop.f32.mrb[17].mxu0 }
 0x27f   :  { %v1237_v49 = vadd.f32 %v1162_v35, %v10952_v31  ;;  %v1233_v25 = vpop.f32.mrb[17].mxu1  ;;  %v1238_v38 = vadd.f32 %v1231_v15, %v10946_v24  ;;  %v888_v15 = vld [vmem:[#allocation3 + $0x200] sm:$0xff] }
 0x280   :  { %v7277_v6 = vmul.f32 -1.442695, %v1236_v55  ;;  %v1239_v28 = vadd.f32 %v1233_v25, %v10959_v37  ;;  %v892_v25 = vld [vmem:[#allocation3 + $0x220] sm:$0xff] }
 0x281   :  { %v7278_v16 = vmul.f32 -1.442695, %v1237_v49  ;;  %v11320_v37 = vpack.c.bf16 %v892_v25, %v888_v15  ;;  %v904_v25 = vld [vmem:[#allocation3 + $0x280] sm:$0xff] }
 0x282   :  { %10187 = vpow2.f32 %v7277_v6  ;;  %v7279_v20 = vmul.f32 -1.442695, %v1239_v28  ;;  %v894_v28 = vld [vmem:[#allocation3 + $0x230] sm:$0xff] }
 0x283   :  { %10189 = vpow2.f32 %v7278_v16  ;;  %13409 = vst [vmem:[#allocation164_spill] sm:$0xff] %v11320_v37 }
 0x284   :  { %10191 = vpow2.f32 %v7279_v20  ;;  %v903_v20 = vld [vmem:[#allocation3 + $0x278] sm:$0xff] }
 0x285   :  { %10193 = vtanh.f32 %v1238_v38  ;;  %v897_v38 = vld [vmem:[#allocation3 + $0x248] sm:$0xff] }
 0x28c   :  { %v10188_v57 = vpop.eup %10187 }
 0x28d   :  { %v10190_v0 = vpop.eup %10189  ;;  %v1243_v21 = vadd.f32 1.0, %v10188_v57  ;;  %v890_v57 = vld [vmem:[#allocation3 + $0x210] sm:$0xff] }
 0x28e   :  { %v1249_v51 = vadd.f32 1.0, %v10190_v0  ;;  %v10192_v27 = vpop.eup %10191  ;;  %v901_v0 = vld [vmem:[#allocation3 + $0x268] sm:$0xff] }
 0x28f   :  { %10195 = vrcp.f32 %v1243_v21  ;;  %v10194_v35 = vpop.eup %10193  ;;  %v1256_v6 = vadd.f32 1.0, %v10192_v27  ;;  %v899_v21 = vld [vmem:[#allocation3 + $0x258] sm:$0xff]  ;;  %v896_v27 = vld [vmem:[#allocation3 + $0x240] sm:$0xff] }
 0x290   :  { %10197 = vrcp.f32 %v1249_v51 }
 0x291   :  { %10199 = vrcp.f32 %v1256_v6  ;;  %v11328_v6 = vpack.c.bf16 %v903_v20, %v899_v21  ;;  %v910_v21 = vld [vmem:[#allocation3 + $0x2b0] sm:$0xff]  ;;  %v913_v20 = vld [vmem:[#allocation3 + $0x2c8] sm:$0xff] }
 0x293   :  { %13412 = vst [vmem:[#allocation167_spill] sm:$0xff] %v11328_v6 }
 0x299   :  { %v10196_v31 = vpop.eup %10195 }
 0x29a   :  { %v10198_v55 = vpop.eup %10197  ;;  %v1260_v49 = vmul.f32 %v10196_v31, %v10194_v35  ;;  %v11322_v31 = vpack.c.bf16 %v894_v28, %v890_v57  ;;  %v900_v35 = vld [vmem:[#allocation3 + $0x260] sm:$0xff]  ;;  %v11340_v28 = vpack.c.bf16 %v909_v3, %v905_v61 }
 0x29b   :  { %v1259_v16 = vmul.f32 0.0, %v10198_v55  ;;  %v10200_v51 = vpop.eup %10199  ;;  %v908_v57 = vld [vmem:[#allocation3 + $0x2a0] sm:$0xff] }
 0x29c   :  { %13410 = vst [vmem:[#allocation165_spill] sm:$0xff] %v11322_v31  ;;  %13415 = vst [vmem:[#allocation170_spill] sm:$0xff] %v11340_v28 }
 0x29d   :  { %v11317_v60 = vadd.f32 %v1260_v49, %v1259_v16  ;;  %v11326_v49 = vpack.c.bf16 %v901_v0, %v897_v38  ;;  %v898_v16 = vld [vmem:[#allocation3 + $0x250] sm:$0xff]  ;;  %v11342_v38 = vpack.c.bf16 %v911_v41, %v907_v7  ;;  %v912_v41 = vld [vmem:[#allocation3 + $0x2c0] sm:$0xff] }
 0x29e   :  { %v906_v0 = vld [vmem:[#allocation3 + $0x290] sm:$0xff]  ;;  %v916_v7 = vld [vmem:[#allocation3 + $0x2e0] sm:$0xff] }
 0x29f   :  { %13408 = vst [vmem:[#allocation163_spill] sm:$0xff] %v11317_v60  ;;  %10201 = vtanh.f32 %v11317_v60  ;;  %13411 = vst [vmem:[#allocation166_spill] sm:$0xff] %v11326_v49  ;;  %v902_v60 = vld [vmem:[#allocation3 + $0x270] sm:$0xff]  ;;  %v11350_v3 = vpack.c.bf16 %v910_v21, %v906_v0  ;;  %v920_v0 = vld [vmem:[#allocation3 + $0x300] sm:$0xff] }
 0x2a0   :  { %v11336_v15 = vpack.c.bf16 %v902_v60, %v898_v16  ;;  %13416 = vst [vmem:[#allocation171_spill] sm:$0xff] %v11342_v38  ;;  %v11348_v60 = vpack.c.bf16 %v908_v57, %v904_v25  ;;  %v918_v16 = vld [vmem:[#allocation3 + $0x2f0] sm:$0xff]  ;;  %v11360_v25 = vpack.c.bf16 %v916_v7, %v912_v41  ;;  %v924_v21 = vld [vmem:[#allocation3 + $0x320] sm:$0xff] }
 0x2a1   :  { %13418 = vst [vmem:[#allocation173_spill] sm:$0xff] %v11350_v3  ;;  %v11372_v41 = vpack.c.bf16 %v924_v21, %v920_v0 }
 0x2a2   :  { %13414 = vst [vmem:[#allocation169_spill] sm:$0xff] %v11336_v15  ;;  %13417 = vst [vmem:[#allocation172_spill] sm:$0xff] %v11348_v60 }
 0x2a3   :  { %13421 = vst [vmem:[#allocation176_spill] sm:$0xff] %v11360_v25  ;;  %13425 = vst [vmem:[#allocation180_spill] sm:$0xff] %v11372_v41 }
 0x2a9   :  { %v10202_v24 = vpop.eup %10201 }
 0x2aa   :  { %v11324_v55 = vmul.f32 %v10202_v24, %v10200_v51  ;;  %v11334_v24 = vpack.c.bf16 %v900_v35, %v896_v27  ;;  %v917_v51 = vld [vmem:[#allocation3 + $0x2e8] sm:$0xff]  ;;  %v914_v35 = vld [vmem:[#allocation3 + $0x2d0] sm:$0xff] }
 0x2ab   :  { %v11354_v61 = vpack.c.bf16 %v917_v51, %v913_v20  ;;  %v11362_v57 = vpack.c.bf16 %v918_v16, %v914_v35  ;;  %v922_v20 = vld [vmem:[#allocation3 + $0x310] sm:$0xff]  ;;  %v928_v35 = vld [vmem:[#allocation3 + $0x340] sm:$0xff] }
 0x2ac   :  { %1329 = vmatmul.mubr.f32.vlgmr.msra.gmra.mrb[18].mxu0 %v11324_v55  ;;  %1400 = vmatmul.mubr.f32.vlgmr.msra.gmra.mrb[18].mxu1 %v11324_v55  ;;  %13413 = vst [vmem:[#allocation168_spill] sm:$0xff] %v11334_v24  ;;  %v926_v51 = vld [vmem:[#allocation3 + $0x330] sm:$0xff]  ;;  %v932_v16 = vld [vmem:[#allocation3 + $0x360] sm:$0xff] }
 0x2ad   :  { %7708 = vmatpush1.bf16.msra.mxu0 %v11320_v37  ;;  %7740 = vmatpush1.bf16.msra.mxu1 %v11322_v31  ;;  %v915_v37 = vld [vmem:[#allocation3 + $0x2d8] sm:$0xff]  ;;  %13419 = vst [vmem:[#allocation174_spill] sm:$0xff] %v11354_v61  ;;  %13422 = vst [vmem:[#allocation177_spill] sm:$0xff] %v11362_v57  ;;  %v11374_v7 = vpack.c.bf16 %v926_v51, %v922_v20  ;;  %v11384_v0 = vpack.c.bf16 %v932_v16, %v928_v35  ;;  %v936_v20 = vld [vmem:[#allocation3 + $0x380] sm:$0xff] }
 0x2ae   :  { %7710 = vmatprep.subr.bf16.mxu0 %v11326_v49  ;;  %7742 = vmatprep.subr.bf16.mxu1 %v11328_v6  ;;  %v919_v31 = vld [vmem:[#allocation3 + $0x2f8] sm:$0xff]  ;;  %v921_v6 = vld [vmem:[#allocation3 + $0x308] sm:$0xff]  ;;  %v940_v51 = vld [vmem:[#allocation3 + $0x3a0] sm:$0xff] }
 0x2af   :  { %1470 = vmatprep.mubr.f32.mxu0 %v13351_v62  ;;  %1541 = vmatprep.mubr.f32.mxu1 %v13351_v62  ;;  %v11356_v27 = vpack.c.bf16 %v919_v31, %v915_v37  ;;  %v923_v49 = vld [vmem:[#allocation3 + $0x318] sm:$0xff]  ;;  %13426 = vst [vmem:[#allocation181_spill] sm:$0xff] %v11374_v7  ;;  %v11396_v35 = vpack.c.bf16 %v940_v51, %v936_v20 }
 0x2b1   :  { %7712 = vmatpush1.bf16.msra.mxu0 %v11334_v24  ;;  %7744 = vmatpush1.bf16.msra.mxu1 %v11336_v15  ;;  %13420 = vst [vmem:[#allocation175_spill] sm:$0xff] %v11356_v27  ;;  %v925_v24 = vld [vmem:[#allocation3 + $0x328] sm:$0xff]  ;;  %v927_v15 = vld [vmem:[#allocation3 + $0x338] sm:$0xff] }
 0x2b2   :  { %7714 = vmatprep.subr.bf16.mxu0 %v11340_v28  ;;  %7746 = vmatprep.subr.bf16.mxu1 %v11342_v38  ;;  %v11366_v37 = vpack.c.bf16 %v925_v24, %v921_v6  ;;  %v11368_v31 = vpack.c.bf16 %v927_v15, %v923_v49  ;;  %v929_v38 = vld [vmem:[#allocation3 + $0x348] sm:$0xff]  ;;  %v931_v28 = vld [vmem:[#allocation3 + $0x358] sm:$0xff]  ;;  %v930_v24 = vld [vmem:[#allocation3 + $0x350] sm:$0xff] }
 0x2b3   :  { %v934_v15 = vld [vmem:[#allocation3 + $0x370] sm:$0xff] }
 0x2b4   :  { %13423 = vst [vmem:[#allocation178_spill] sm:$0xff] %v11366_v37  ;;  %13424 = vst [vmem:[#allocation179_spill] sm:$0xff] %v11368_v31  ;;  %v11386_v21 = vpack.c.bf16 %v934_v15, %v930_v24  ;;  %v944_v24 = vld [vmem:[#allocation3 + $0x3c0] sm:$0xff]  ;;  %v950_v15 = vld [vmem:[#allocation3 + $0x3f0] sm:$0xff] }
 0x2b5   :  { %7716 = vmatpush1.bf16.msra.mxu0 %v11348_v60  ;;  %7748 = vmatpush1.bf16.msra.mxu1 %v11350_v3  ;;  %v933_v60 = vld [vmem:[#allocation3 + $0x368] sm:$0xff]  ;;  %v935_v3 = vld [vmem:[#allocation3 + $0x378] sm:$0xff] }
 0x2b6   :  { %7718 = vmatprep.subr.bf16.mxu0 %v11354_v61  ;;  %7750 = vmatprep.subr.bf16.mxu1 %v11356_v27  ;;  %v11378_v49 = vpack.c.bf16 %v933_v60, %v929_v38  ;;  %v11380_v6 = vpack.c.bf16 %v935_v3, %v931_v28  ;;  %v937_v27 = vld [vmem:[#allocation3 + $0x388] sm:$0xff]  ;;  %v939_v61 = vld [vmem:[#allocation3 + $0x398] sm:$0xff]  ;;  %v938_v60 = vld [vmem:[#allocation3 + $0x390] sm:$0xff] }
 0x2b7   :  { %v942_v3 = vld [vmem:[#allocation3 + $0x3b0] sm:$0xff] }
 0x2b8   :  { %13427 = vst [vmem:[#allocation182_spill] sm:$0xff] %v11378_v49  ;;  %v11398_v16 = vpack.c.bf16 %v942_v3, %v938_v60  ;;  %v13432_v60 = vld [vmem:[#allocation74_spill] sm:$0xff]  ;;  %v13434_v3 = vld [vmem:[#allocation76_spill] sm:$0xff] }
 0x2b9   :  { %7720 = vmatpush1.bf16.msra.mxu0 %v11360_v25  ;;  %7752 = vmatpush1.bf16.msra.mxu1 %v11362_v57  ;;  %v941_v25 = vld [vmem:[#allocation3 + $0x3a8] sm:$0xff]  ;;  %v943_v57 = vld [vmem:[#allocation3 + $0x3b8] sm:$0xff] }
 0x2ba   :  { %7722 = vmatprep.subr.bf16.mxu0 %v11366_v37  ;;  %7754 = vmatprep.subr.bf16.mxu1 %v11368_v31  ;;  %v11390_v28 = vpack.c.bf16 %v941_v25, %v937_v27  ;;  %v11392_v38 = vpack.c.bf16 %v943_v57, %v939_v61  ;;  %v945_v31 = vld [vmem:[#allocation3 + $0x3c8] sm:$0xff]  ;;  %v947_v37 = vld [vmem:[#allocation3 + $0x3d8] sm:$0xff]  ;;  %v948_v25 = vld [vmem:[#allocation3 + $0x3e0] sm:$0xff] }
 0x2bb   :  { %v946_v57 = vld [vmem:[#allocation3 + $0x3d0] sm:$0xff]  ;;  %v11408_v20 = vpack.c.bf16 %v948_v25, %v944_v24  ;;  %v13435_v24 = vld [vmem:[#allocation77_spill] sm:$0xff]  ;;  %v13436_v25 = vld [vmem:[#allocation78_spill] sm:$0xff] }
 0x2bc   :  { %v11410_v51 = vpack.c.bf16 %v950_v15, %v946_v57  ;;  %v13437_v57 = vld [vmem:[#allocation79_spill] sm:$0xff]  ;;  %v13438_v15 = vld [vmem:[#allocation80_spill] sm:$0xff] }
 0x2bd   :  { %7724 = vmatpush1.bf16.msra.mxu0 %v11372_v41  ;;  %7756 = vmatpush1.bf16.msra.mxu1 %v11374_v7  ;;  %v949_v41 = vld [vmem:[#allocation3 + $0x3e8] sm:$0xff]  ;;  %v951_v7 = vld [vmem:[#allocation3 + $0x3f8] sm:$0xff] }
 0x2be   :  { %7726 = vmatprep.subr.bf16.mxu0 %v11378_v49  ;;  %7758 = vmatprep.subr.bf16.mxu1 %v11380_v6  ;;  %v11402_v61 = vpack.c.bf16 %v949_v41, %v945_v31  ;;  %v11404_v27 = vpack.c.bf16 %v951_v7, %v947_v37  ;;  %v13428_v37 = vld [vmem:[#allocation70_spill] sm:$0xff]  ;;  %v13429_v31 = vld [vmem:[#allocation71_spill] sm:$0xff]  ;;  %v13430_v41 = vld [vmem:[#allocation72_spill] sm:$0xff] }
 0x2bf   :  { %v13431_v7 = vld [vmem:[#allocation73_spill] sm:$0xff] }
 0x2c1   :  { %7728 = vmatpush1.bf16.msra.mxu0 %v11384_v0  ;;  %7760 = vmatpush1.bf16.msra.mxu1 %v11386_v21 }
 0x2c2   :  { %7730 = vmatprep.subr.bf16.mxu0 %v11390_v28  ;;  %7762 = vmatprep.subr.bf16.mxu1 %v11392_v38 }
 0x2c5   :  { %7732 = vmatpush1.bf16.msra.mxu0 %v11396_v35  ;;  %7764 = vmatpush1.bf16.msra.mxu1 %v11398_v16 }
 0x2c6   :  { %7734 = vmatprep.subr.bf16.mxu0 %v11402_v61  ;;  %7766 = vmatprep.subr.bf16.mxu1 %v11404_v27 }
 0x2c9   :  { %7736 = vmatpush1.bf16.msra.mxu0 %v11408_v20  ;;  %7768 = vmatpush1.bf16.msra.mxu1 %v11410_v51 }
 0x2ca   :  { %7770 = vmatprep.subr.bf16.mxu0 %v10766_v14  ;;  %7802 = vmatprep.subr.bf16.mxu1 %v10768_v17 }
 0x2cc   :  { %1471 = vmatmul.mubr.f32.vlgmr.msra.gmra.mrb[18].mxu0 %v13351_v62  ;;  %1542 = vmatmul.mubr.f32.vlgmr.msra.gmra.mrb[18].mxu1 %v13351_v62 }
 0x2cd   :  { %7772 = vmatpush1.bf16.msra.mxu0 %v10773_v23  ;;  %7804 = vmatpush1.bf16.msra.mxu1 %v10776_v26 }
 0x2ce   :  { %7774 = vmatprep.subr.bf16.mxu0 %v10779_v29  ;;  %7806 = vmatprep.subr.bf16.mxu1 %v10782_v32 }
 0x2cf   :  { %1640 = vmatprep.mubr.f32.mxu0 %v13351_v62  ;;  %1711 = vmatprep.mubr.f32.mxu1 %v13351_v62 }
 0x2d1   :  { %7776 = vmatpush1.bf16.msra.mxu0 %v10789_v36  ;;  %7808 = vmatpush1.bf16.msra.mxu1 %v10793_v39 }
 0x2d2   :  { %7778 = vmatprep.subr.bf16.mxu0 %v10797_v42  ;;  %7810 = vmatprep.subr.bf16.mxu1 %v10801_v45 }
 0x2d5   :  { %7780 = vmatpush1.bf16.msra.mxu0 %v10808_v50  ;;  %7812 = vmatpush1.bf16.msra.mxu1 %v10812_v53 }
 0x2d6   :  { %7782 = vmatprep.subr.bf16.mxu0 %v10816_v56  ;;  %7814 = vmatprep.subr.bf16.mxu1 %v10820_v59 }
 0x2d9   :  { %7784 = vmatpush1.bf16.msra.mxu0 %v10829_v1  ;;  %7816 = vmatpush1.bf16.msra.mxu1 %v10833_v4 }
 0x2da   :  { %7786 = vmatprep.subr.bf16.mxu0 %v10840_v8  ;;  %7818 = vmatprep.subr.bf16.mxu1 %v10844_v11 }
 0x2dd   :  { %7788 = vmatpush1.bf16.msra.mxu0 %v10851_v18  ;;  %7820 = vmatpush1.bf16.msra.mxu1 %v10865_v22 }
 0x2de   :  { %7790 = vmatprep.subr.bf16.mxu0 %v10877_v30  ;;  %7822 = vmatprep.subr.bf16.mxu1 %v10881_v34 }
 0x2e1   :  { %7792 = vmatpush1.bf16.msra.mxu0 %v10888_v40  ;;  %7824 = vmatpush1.bf16.msra.mxu1 %v10892_v44 }
 0x2e2   :  { %7794 = vmatprep.subr.bf16.mxu0 %v10896_v48  ;;  %7826 = vmatprep.subr.bf16.mxu1 %v10900_v52 }
 0x2e5   :  { %7796 = vmatpush1.bf16.msra.mxu0 %v10907_v58  ;;  %7828 = vmatpush1.bf16.msra.mxu1 %v10911_v63  ;;  %v13463_v63 = vld [vmem:[#allocation63_spill] sm:$0xff] }
 0x2e6   :  { %7798 = vmatprep.subr.bf16.mxu0 %v10915_v5  ;;  %7830 = vmatprep.subr.bf16.mxu1 %v10919_v9 }
 0x2e9   :  { %7800 = vmatpush1.bf16.msra.mxu0 %v10926_v12  ;;  %7832 = vmatpush1.bf16.msra.mxu1 %v10930_v13 }
 0x2ea   :  { %7834 = vmatprep.subr.bf16.mxu0 %v11011_v2  ;;  %7866 = vmatprep.subr.bf16.mxu1 %v11013_v10 }
 0x2ec   :  { %1641 = vmatmul.mubr.f32.vlgmr.msra.gmra.mrb[2].mxu0 %v11007_v54  ;;  %1712 = vmatmul.mubr.f32.vlgmr.msra.gmra.mrb[2].mxu1 %v11007_v54  ;;  %v13433_v54 = vld [vmem:[#allocation75_spill] sm:$0xff] }
 0x2ed   :  { %7836 = vmatpush1.bf16.msra.mxu0 %v11015_v19  ;;  %7868 = vmatpush1.bf16.msra.mxu1 %v11018_v47 }
 0x2ee   :  { %7838 = vmatprep.subr.bf16.mxu0 %v11022_v46  ;;  %7870 = vmatprep.subr.bf16.mxu1 %v13428_v37  ;;  %v13439_v37 = vld [vmem:[#allocation81_spill] sm:$0xff] }
 0x2ef   :  { %1810 = vmatprep.mubr.f32.mxu0 %v13351_v62  ;;  %1881 = vmatprep.mubr.f32.mxu1 %v13351_v62  ;;  %v13457_v46 = vld [vmem:[#allocation41_spill] sm:$0xff] }
 0x2f1   :  { %7840 = vmatpush1.bf16.msra.mxu0 %v13429_v31  ;;  %7872 = vmatpush1.bf16.msra.mxu1 %v13430_v41  ;;  %v13440_v31 = vld [vmem:[#allocation82_spill] sm:$0xff]  ;;  %v13441_v41 = vld [vmem:[#allocation83_spill] sm:$0xff] }
 0x2f2   :  { %7842 = vmatprep.subr.bf16.mxu0 %v13431_v7  ;;  %7874 = vmatprep.subr.bf16.mxu1 %v13432_v60  ;;  %v13442_v7 = vld [vmem:[#allocation84_spill] sm:$0xff]  ;;  %v13443_v60 = vld [vmem:[#allocation85_spill] sm:$0xff] }
 0x2f5   :  { %7844 = vmatpush1.bf16.msra.mxu0 %v13433_v54  ;;  %7876 = vmatpush1.bf16.msra.mxu1 %v13434_v3  ;;  %v13444_v54 = vld [vmem:[#allocation86_spill] sm:$0xff]  ;;  %v13445_v3 = vld [vmem:[#allocation87_spill] sm:$0xff] }
 0x2f6   :  { %7846 = vmatprep.subr.bf16.mxu0 %v13435_v24  ;;  %7878 = vmatprep.subr.bf16.mxu1 %v13436_v25  ;;  %v13446_v24 = vld [vmem:[#allocation88_spill] sm:$0xff]  ;;  %v13447_v25 = vld [vmem:[#allocation89_spill] sm:$0xff] }
 0x2f9   :  { %7848 = vmatpush1.bf16.msra.mxu0 %v13437_v57  ;;  %7880 = vmatpush1.bf16.msra.mxu1 %v13438_v15  ;;  %v13448_v57 = vld [vmem:[#allocation90_spill] sm:$0xff]  ;;  %v13449_v15 = vld [vmem:[#allocation91_spill] sm:$0xff] }
 0x2fa   :  { %7850 = vmatprep.subr.bf16.mxu0 %v13439_v37  ;;  %7882 = vmatprep.subr.bf16.mxu1 %v13440_v31  ;;  %v13450_v37 = vld [vmem:[#allocation92_spill] sm:$0xff]  ;;  %v13451_v31 = vld [vmem:[#allocation93_spill] sm:$0xff] }
 0x2fd   :  { %7852 = vmatpush1.bf16.msra.mxu0 %v13441_v41  ;;  %7884 = vmatpush1.bf16.msra.mxu1 %v13442_v7  ;;  %v13452_v41 = vld [vmem:[#allocation94_spill] sm:$0xff]  ;;  %v13453_v7 = vld [vmem:[#allocation95_spill] sm:$0xff] }
 0x2fe   :  { %7854 = vmatprep.subr.bf16.mxu0 %v13443_v60  ;;  %7886 = vmatprep.subr.bf16.mxu1 %v13444_v54  ;;  %v13454_v60 = vld [vmem:[#allocation96_spill] sm:$0xff]  ;;  %v13455_v54 = vld [vmem:[#allocation97_spill] sm:$0xff] }
 0x301   :  { %7856 = vmatpush1.bf16.msra.mxu0 %v13445_v3  ;;  %7888 = vmatpush1.bf16.msra.mxu1 %v13446_v24  ;;  %v13456_v3 = vld [vmem:[#allocation98_spill] sm:$0xff] }
 0x302   :  { %7858 = vmatprep.subr.bf16.mxu0 %v13447_v25  ;;  %7890 = vmatprep.subr.bf16.mxu1 %v13448_v57 }
 0x305   :  { %7860 = vmatpush1.bf16.msra.mxu0 %v13449_v15  ;;  %7892 = vmatpush1.bf16.msra.mxu1 %v13450_v37  ;;  %v13458_v37 = vld [vmem:[#allocation57_spill] sm:$0xff] }
 0x306   :  { %7862 = vmatprep.subr.bf16.mxu0 %v13451_v31  ;;  %7894 = vmatprep.subr.bf16.mxu1 %v13452_v41 }
 0x309   :  { %7864 = vmatpush1.bf16.msra.mxu0 %v13453_v7  ;;  %7896 = vmatpush1.bf16.msra.mxu1 %v13454_v60  ;;  %v13459_v7 = vld [vmem:[#allocation55_spill] sm:$0xff] }
 0x30a   :  { %7898 = vmatprep.subr.bf16.mxu0 %v13455_v54  ;;  %7930 = vmatprep.subr.bf16.mxu1 %v13456_v3 }
 0x39f   :  { %v1472_v24 = vpop.f32.mrb[18].mxu0  ;;  %v1543_v25 = vpop.f32.mrb[18].mxu1 }
 0x3a0   :  { %v1548_v57 = vadd.f32 %v1472_v24, %v13457_v46  ;;  %v1474_v47 = vpop.f32.mrb[19].mxu0  ;;  %v11491_v15 = vpop.f32.mrb[19].mxu1  ;;  %v1550_v41 = vadd.f32 %v1543_v25, %v13459_v7  ;;  %v13461_v7 = vld [vmem:[#allocation61_spill] sm:$0xff] }
 0x3a1   :  { %v1549_v19 = vadd.f32 %v1474_v47, %v13458_v37 }
 0x3a2   :  { %v7280_v31 = vmul.f32 -1.442695, %v1548_v57 }
 0x3a3   :  { %v7281_v10 = vmul.f32 -1.442695, %v1549_v19 }
 0x3a4   :  { %10203 = vpow2.f32 %v7280_v31  ;;  %v13460_v31 = vld [vmem:[#allocation60_spill] sm:$0xff] }
 0x3a5   :  { %10205 = vpow2.f32 %v7281_v10 }
 0x3a6   :  { %10207 = vtanh.f32 %v1550_v41 }
 0x3ae   :  { %v10204_v60 = vpop.eup %10203 }
 0x3af   :  { %v10206_v2 = vpop.eup %10205  ;;  %v1555_v54 = vadd.f32 1.0, %v10204_v60 }
 0x3b0   :  { %v1561_v3 = vadd.f32 1.0, %v10206_v2  ;;  %v10208_v13 = vpop.eup %10207  ;;  %v13462_v2 = vld [vmem:[#allocation62_spill] sm:$0xff] }
 0x3b1   :  { %10209 = vrcp.f32 %v1555_v54 }
 0x3b2   :  { %10211 = vrcp.f32 %v1561_v3 }
 0x3bb   :  { %v10210_v24 = vpop.eup %10209 }
 0x3bc   :  { %v10212_v46 = vpop.eup %10211  ;;  %v1572_v12 = vmul.f32 %v10210_v24, %v10208_v13 }
 0x3bd   :  { %v1571_v9 = vmul.f32 0.0, %v10212_v46 }
 0x3bf   :  { %v11495_v5 = vadd.f32 %v1572_v12, %v1571_v9  ;;  %v1642_v47 = vpop.f32.mrb[2].mxu0  ;;  %v1713_v19 = vpop.f32.mrb[2].mxu1 }
 0x3c0   :  { %v10035_v10 = vadd.f32 %v1642_v47, %v13460_v31  ;;  %v1644_v57 = vpop.f32.mrb[3].mxu0  ;;  %v1715_v25 = vpop.f32.mrb[3].mxu1  ;;  %v10051_v13 = vadd.f32 %v1713_v19, %v13463_v63 }
 0x3c1   :  { %v10036_v37 = vadd.f32 %v1644_v57, %v13461_v7  ;;  %v10052_v54 = vadd.f32 %v1715_v25, %v13462_v2 }
 0x3c2   :  { %v7283_v60 = vmul.f32 -1.442695, %v10035_v10 }
 0x3c3   :  { %v7284_v41 = vmul.f32 -1.442695, %v10036_v37  ;;  %v7285_v3 = vmul.f32 -1.442695, %v10052_v54 }
 0x3c4   :  { %10213 = vpow2.f32 %v7283_v60 }
 0x3c5   :  { %10215 = vpow2.f32 %v7284_v41  ;;  %v13464_v41 = vld [vmem:[#allocation64_spill] sm:$0xff] }
 0x3c6   :  { %10217 = vpow2.f32 %v7285_v3 }
 0x3c7   :  { %10219 = vtanh.f32 %v10051_v13  ;;  %v13466_v13 = vld [vmem:[#allocation99_spill] sm:$0xff] }
 0x3ce   :  { %v10214_v46 = vpop.eup %10213 }
 0x3cf   :  { %v10216_v9 = vpop.eup %10215  ;;  %v1725_v12 = vadd.f32 1.0, %v10214_v46  ;;  %v13467_v46 = vld [vmem:[#allocation100_spill] sm:$0xff] }
 0x3d0   :  { %v1731_v24 = vadd.f32 1.0, %v10216_v9  ;;  %v10218_v47 = vpop.eup %10217  ;;  %v13469_v9 = vld [vmem:[#allocation102_spill] sm:$0xff] }
 0x3d1   :  { %10221 = vrcp.f32 %v1725_v12  ;;  %v10220_v31 = vpop.eup %10219  ;;  %v1738_v10 = vadd.f32 1.0, %v10218_v47  ;;  %v13471_v12 = vld [vmem:[#allocation104_spill] sm:$0xff]  ;;  %v13473_v47 = vld [vmem:[#allocation106_spill] sm:$0xff] }
 0x3d2   :  { %10223 = vrcp.f32 %v1731_v24  ;;  %v13472_v24 = vld [vmem:[#allocation105_spill] sm:$0xff] }
 0x3d3   :  { %10225 = vrcp.f32 %v1738_v10  ;;  %v13475_v10 = vld [vmem:[#allocation108_spill] sm:$0xff] }
 0x3db   :  { %v10222_v57 = vpop.eup %10221 }
 0x3dc   :  { %v10224_v37 = vpop.eup %10223  ;;  %v1742_v60 = vmul.f32 %v10222_v57, %v10220_v31  ;;  %v13468_v31 = vld [vmem:[#allocation101_spill] sm:$0xff]  ;;  %v13474_v57 = vld [vmem:[#allocation107_spill] sm:$0xff] }
 0x3dd   :  { %v1741_v7 = vmul.f32 %v10224_v37, %v13464_v41  ;;  %v10226_v19 = vpop.eup %10225  ;;  %v13476_v37 = vld [vmem:[#allocation109_spill] sm:$0xff]  ;;  %v13478_v41 = vld [vmem:[#allocation111_spill] sm:$0xff] }
 0x3df   :  { %v11502_v25 = vadd.f32 %v1742_v60, %v1741_v7  ;;  %v13470_v7 = vld [vmem:[#allocation103_spill] sm:$0xff]  ;;  %v13477_v60 = vld [vmem:[#allocation110_spill] sm:$0xff] }
 0x3e1   :  { %13465 = vst [vmem:[#allocation62_spill] sm:$0xff] %v11502_v25  ;;  %10227 = vtanh.f32 %v11502_v25 }
 0x3eb   :  { %v10228_v54 = vpop.eup %10227 }
 0x3ec   :  { %v11505_v3 = vmul.f32 %v10228_v54, %v10226_v19  ;;  %v13479_v19 = vld [vmem:[#allocation112_spill] sm:$0xff]  ;;  %v13480_v54 = vld [vmem:[#allocation113_spill] sm:$0xff] }
 0x3ee   :  { %1811 = vmatmul.mubr.f32.vlgmr.msra.gmra.mrb[20].mxu0 %v11505_v3  ;;  %1882 = vmatmul.mubr.f32.vlgmr.msra.gmra.mrb[20].mxu1 %v11505_v3 }
 0x3ef   :  { %7900 = vmatpush1.bf16.msra.mxu0 %v13466_v13  ;;  %7932 = vmatpush1.bf16.msra.mxu1 %v13467_v46 }
 0x3f0   :  { %7902 = vmatprep.subr.bf16.mxu0 %v13468_v31  ;;  %7934 = vmatprep.subr.bf16.mxu1 %v13469_v9 }
 0x3f1   :  { %1952 = vmatprep.mubr.f32.mxu0 %v13351_v62  ;;  %2023 = vmatprep.mubr.f32.mxu1 %v13351_v62 }
 0x3f3   :  { %7904 = vmatpush1.bf16.msra.mxu0 %v13470_v7  ;;  %7936 = vmatpush1.bf16.msra.mxu1 %v13471_v12  ;;  %v13481_v7 = vld [vmem:[#allocation114_spill] sm:$0xff]  ;;  %v13482_v12 = vld [vmem:[#allocation115_spill] sm:$0xff] }
 0x3f4   :  { %7906 = vmatprep.subr.bf16.mxu0 %v13472_v24  ;;  %7938 = vmatprep.subr.bf16.mxu1 %v13473_v47  ;;  %v13483_v24 = vld [vmem:[#allocation116_spill] sm:$0xff] }
 0x3f5   :  { %v13529_v47 = vld [vmem:[#allocation56_spill] sm:$0xff] }
 0x3f7   :  { %7908 = vmatpush1.bf16.msra.mxu0 %v13474_v57  ;;  %7940 = vmatpush1.bf16.msra.mxu1 %v13475_v10  ;;  %v13484_v57 = vld [vmem:[#allocation118_spill] sm:$0xff] }
 0x3f8   :  { %7910 = vmatprep.subr.bf16.mxu0 %v13476_v37  ;;  %7942 = vmatprep.subr.bf16.mxu1 %v13477_v60  ;;  %v13485_v37 = vld [vmem:[#allocation120_spill] sm:$0xff]  ;;  %v13486_v60 = vld [vmem:[#allocation121_spill] sm:$0xff] }
 0x3fb   :  { %7912 = vmatpush1.bf16.msra.mxu0 %v13478_v41  ;;  %7944 = vmatpush1.bf16.msra.mxu1 %v13479_v19  ;;  %v13487_v41 = vld [vmem:[#allocation122_spill] sm:$0xff]  ;;  %v13488_v19 = vld [vmem:[#allocation123_spill] sm:$0xff] }
 0x3fc   :  { %7914 = vmatprep.subr.bf16.mxu0 %v13480_v54  ;;  %7946 = vmatprep.subr.bf16.mxu1 %v13481_v7  ;;  %v13489_v54 = vld [vmem:[#allocation124_spill] sm:$0xff]  ;;  %v13490_v7 = vld [vmem:[#allocation125_spill] sm:$0xff] }
 0x3ff   :  { %7916 = vmatpush1.bf16.msra.mxu0 %v13482_v12  ;;  %7948 = vmatpush1.bf16.msra.mxu1 %v13483_v24  ;;  %v13491_v12 = vld [vmem:[#allocation126_spill] sm:$0xff]  ;;  %v13492_v24 = vld [vmem:[#allocation127_spill] sm:$0xff] }
 0x400   :  { %7918 = vmatprep.subr.bf16.mxu0 %v11168_v33  ;;  %7950 = vmatprep.subr.bf16.mxu1 %v13484_v57  ;;  %v13493_v33 = vld [vmem:[#allocation128_spill] sm:$0xff]  ;;  %v13494_v57 = vld [vmem:[#allocation129_spill] sm:$0xff] }
 0x403   :  { %7920 = vmatpush1.bf16.msra.mxu0 %v11174_v43  ;;  %7952 = vmatpush1.bf16.msra.mxu1 %v13485_v37  ;;  %v13495_v43 = vld [vmem:[#allocation130_spill] sm:$0xff]  ;;  %v13528_v37 = vld [vmem:[#allocation40_spill] sm:$0xff] }
 0x404   :  { %7922 = vmatprep.subr.bf16.mxu0 %v13486_v60  ;;  %7954 = vmatprep.subr.bf16.mxu1 %v13487_v41  ;;  %v13496_v41 = vld [vmem:[#allocation131_spill] sm:$0xff]  ;;  %v13510_v60 = vld [vmem:[#allocation145_spill] sm:$0xff] }
 0x407   :  { %7924 = vmatpush1.bf16.msra.mxu0 %v13488_v19  ;;  %7956 = vmatpush1.bf16.msra.mxu1 %v13489_v54  ;;  %v13497_v19 = vld [vmem:[#allocation132_spill] sm:$0xff]  ;;  %v13498_v54 = vld [vmem:[#allocation133_spill] sm:$0xff] }
 0x408   :  { %7926 = vmatprep.subr.bf16.mxu0 %v13490_v7  ;;  %7958 = vmatprep.subr.bf16.mxu1 %v13491_v12  ;;  %v13499_v7 = vld [vmem:[#allocation134_spill] sm:$0xff]  ;;  %v13509_v12 = vld [vmem:[#allocation144_spill] sm:$0xff] }
 0x40b   :  { %7928 = vmatpush1.bf16.msra.mxu0 %v13492_v24  ;;  %7960 = vmatpush1.bf16.msra.mxu1 %v13493_v33  ;;  %v13500_v33 = vld [vmem:[#allocation135_spill] sm:$0xff]  ;;  %v13503_v24 = vld [vmem:[#allocation138_spill] sm:$0xff] }
 0x40c   :  { %7962 = vmatprep.subr.bf16.mxu0 %v13494_v57  ;;  %7994 = vmatprep.subr.bf16.mxu1 %v13495_v43  ;;  %v13501_v57 = vld [vmem:[#allocation136_spill] sm:$0xff]  ;;  %v13502_v43 = vld [vmem:[#allocation137_spill] sm:$0xff] }
 0x40e   :  { %1953 = vmatmul.mubr.f32.vlgmr.msra.gmra.mrb[20].mxu0 %v11324_v55  ;;  %2024 = vmatmul.mubr.f32.vlgmr.msra.gmra.mrb[20].mxu1 %v11324_v55  ;;  %v13504_v55 = vld [vmem:[#allocation139_spill] sm:$0xff] }
 0x40f   :  { %7964 = vmatpush1.bf16.msra.mxu0 %v13496_v41  ;;  %7996 = vmatpush1.bf16.msra.mxu1 %v13497_v19  ;;  %v13505_v41 = vld [vmem:[#allocation140_spill] sm:$0xff]  ;;  %v13506_v19 = vld [vmem:[#allocation141_spill] sm:$0xff] }
 0x410   :  { %7966 = vmatprep.subr.bf16.mxu0 %v13498_v54  ;;  %7998 = vmatprep.subr.bf16.mxu1 %v13499_v7  ;;  %v13507_v54 = vld [vmem:[#allocation142_spill] sm:$0xff]  ;;  %v13508_v7 = vld [vmem:[#allocation143_spill] sm:$0xff] }
 0x411   :  { %2122 = vmatprep.mubr.f32.mxu0 %v13351_v62  ;;  %2193 = vmatprep.mubr.f32.mxu1 %v13351_v62 }
 0x413   :  { %7968 = vmatpush1.bf16.msra.mxu0 %v13500_v33  ;;  %8000 = vmatpush1.bf16.msra.mxu1 %v13501_v57  ;;  %v13511_v33 = vld [vmem:[#allocation146_spill] sm:$0xff]  ;;  %v13512_v57 = vld [vmem:[#allocation147_spill] sm:$0xff] }
 0x414   :  { %7970 = vmatprep.subr.bf16.mxu0 %v13502_v43  ;;  %8002 = vmatprep.subr.bf16.mxu1 %v13503_v24  ;;  %v13513_v43 = vld [vmem:[#allocation148_spill] sm:$0xff]  ;;  %v13514_v24 = vld [vmem:[#allocation149_spill] sm:$0xff] }
 0x417   :  { %7972 = vmatpush1.bf16.msra.mxu0 %v13504_v55  ;;  %8004 = vmatpush1.bf16.msra.mxu1 %v13505_v41  ;;  %v13515_v55 = vld [vmem:[#allocation150_spill] sm:$0xff]  ;;  %v13516_v41 = vld [vmem:[#allocation151_spill] sm:$0xff] }
 0x418   :  { %7974 = vmatprep.subr.bf16.mxu0 %v13506_v19  ;;  %8006 = vmatprep.subr.bf16.mxu1 %v13507_v54  ;;  %v13517_v19 = vld [vmem:[#allocation152_spill] sm:$0xff]  ;;  %v13518_v54 = vld [vmem:[#allocation153_spill] sm:$0xff] }
 0x41b   :  { %7976 = vmatpush1.bf16.msra.mxu0 %v13508_v7  ;;  %8008 = vmatpush1.bf16.msra.mxu1 %v13509_v12  ;;  %v13519_v7 = vld [vmem:[#allocation154_spill] sm:$0xff]  ;;  %v13520_v12 = vld [vmem:[#allocation155_spill] sm:$0xff] }
 0x41c   :  { %7978 = vmatprep.subr.bf16.mxu0 %v13510_v60  ;;  %8010 = vmatprep.subr.bf16.mxu1 %v13511_v33  ;;  %v13521_v60 = vld [vmem:[#allocation156_spill] sm:$0xff]  ;;  %v13522_v33 = vld [vmem:[#allocation157_spill] sm:$0xff] }
 0x41f   :  { %7980 = vmatpush1.bf16.msra.mxu0 %v13512_v57  ;;  %8012 = vmatpush1.bf16.msra.mxu1 %v13513_v43  ;;  %v13523_v57 = vld [vmem:[#allocation158_spill] sm:$0xff]  ;;  %v13524_v43 = vld [vmem:[#allocation159_spill] sm:$0xff] }
 0x420   :  { %7982 = vmatprep.subr.bf16.mxu0 %v13514_v24  ;;  %8014 = vmatprep.subr.bf16.mxu1 %v13515_v55  ;;  %v13525_v24 = vld [vmem:[#allocation160_spill] sm:$0xff]  ;;  %v13526_v55 = vld [vmem:[#allocation161_spill] sm:$0xff] }
 0x423   :  { %7984 = vmatpush1.bf16.msra.mxu0 %v13516_v41  ;;  %8016 = vmatpush1.bf16.msra.mxu1 %v13517_v19  ;;  %v13527_v41 = vld [vmem:[#allocation162_spill] sm:$0xff] }
 0x424   :  { %7986 = vmatprep.subr.bf16.mxu0 %v13518_v54  ;;  %8018 = vmatprep.subr.bf16.mxu1 %v13519_v7 }
 0x427   :  { %7988 = vmatpush1.bf16.msra.mxu0 %v13520_v12  ;;  %8020 = vmatpush1.bf16.msra.mxu1 %v13521_v60 }
 0x428   :  { %7990 = vmatprep.subr.bf16.mxu0 %v13522_v33  ;;  %8022 = vmatprep.subr.bf16.mxu1 %v13523_v57  ;;  %v13530_v57 = vld [vmem:[#allocation58_spill] sm:$0xff] }
 0x42b   :  { %7992 = vmatpush1.bf16.msra.mxu0 %v13524_v43  ;;  %8024 = vmatpush1.bf16.msra.mxu1 %v13525_v24  ;;  %v13531_v24 = vld [vmem:[#allocation54_spill] sm:$0xff] }
 0x42c   :  { %8026 = vmatprep.subr.bf16.mxu0 %v13526_v55  ;;  %8058 = vmatprep.subr.bf16.mxu1 %v13527_v41 }
 0x4e1   :  { %v1954_v19 = vpop.f32.mrb[20].mxu0  ;;  %v2025_v54 = vpop.f32.mrb[20].mxu1 }
 0x4e2   :  { %v2030_v7 = vadd.f32 %v1954_v19, %v13528_v37  ;;  %v1956_v10 = vpop.f32.mrb[21].mxu0  ;;  %v2027_v12 = vpop.f32.mrb[21].mxu1  ;;  %v2032_v46 = vadd.f32 %v2025_v54, %v13531_v24  ;;  %v13535_v54 = vld [vmem:[#allocation165_spill] sm:$0xff] }
 0x4e3   :  { %v2031_v60 = vadd.f32 %v1956_v10, %v13529_v47  ;;  %v2033_v43 = vadd.f32 %v2027_v12, %v13530_v57 }
 0x4e4   :  { %v7286_v9 = vmul.f32 -1.442695, %v2030_v7 }
 0x4e5   :  { %v7287_v33 = vmul.f32 -1.442695, %v2031_v60  ;;  %v7288_v31 = vmul.f32 -1.442695, %v2033_v43  ;;  %v13533_v43 = vld [vmem:[#allocation59_spill] sm:$0xff] }
 0x4e6   :  { %10229 = vpow2.f32 %v7286_v9 }
 0x4e7   :  { %10231 = vpow2.f32 %v7287_v33  ;;  %v13532_v33 = vld [vmem:[#allocation163_spill] sm:$0xff] }
 0x4e8   :  { %10233 = vpow2.f32 %v7288_v31  ;;  %v1551_v31 = vadd.f32 %v11491_v15, %v13533_v43  ;;  %v13538_v15 = vld [vmem:[#allocation168_spill] sm:$0xff] }
 0x4e9   :  { %10235 = vtanh.f32 %v2032_v46 }
 0x4f0   :  { %v10230_v55 = vpop.eup %10229 }
 0x4f1   :  { %v10232_v13 = vpop.eup %10231  ;;  %v2037_v41 = vadd.f32 1.0, %v10230_v55  ;;  %v13537_v55 = vld [vmem:[#allocation167_spill] sm:$0xff] }
 0x4f2   :  { %v2043_v25 = vadd.f32 1.0, %v10232_v13  ;;  %v10234_v19 = vpop.eup %10233 }
 0x4f3   :  { %10237 = vrcp.f32 %v2037_v41  ;;  %v10236_v37 = vpop.eup %10235  ;;  %v2050_v9 = vadd.f32 1.0, %v10234_v19  ;;  %v7282_v41 = vmul.f32 -1.442695, %v1551_v31  ;;  %v13539_v19 = vld [vmem:[#allocation169_spill] sm:$0xff]  ;;  %v13545_v31 = vld [vmem:[#allocation175_spill] sm:$0xff] }
 0x4f4   :  { %10239 = vrcp.f32 %v2043_v25 }
 0x4f5   :  { %10241 = vrcp.f32 %v2050_v9  ;;  %v13543_v9 = vld [vmem:[#allocation173_spill] sm:$0xff] }
 0x4fd   :  { %v10238_v10 = vpop.eup %10237 }
 0x4fe   :  { %v10240_v7 = vpop.eup %10239  ;;  %v2054_v60 = vmul.f32 %v10238_v10, %v10236_v37  ;;  %v13534_v37 = vld [vmem:[#allocation164_spill] sm:$0xff]  ;;  %v13540_v10 = vld [vmem:[#allocation170_spill] sm:$0xff] }
 0x4ff   :  { %v2053_v47 = vmul.f32 %v10240_v7, %v13532_v33  ;;  %v10242_v46 = vpop.eup %10241  ;;  %v13541_v7 = vld [vmem:[#allocation171_spill] sm:$0xff]  ;;  %v13544_v33 = vld [vmem:[#allocation174_spill] sm:$0xff] }
 0x501   :  { %v11584_v12 = vadd.f32 %v2054_v60, %v2053_v47  ;;  %v13536_v47 = vld [vmem:[#allocation166_spill] sm:$0xff]  ;;  %v13542_v60 = vld [vmem:[#allocation172_spill] sm:$0xff] }
 0x503   :  { %10243 = vtanh.f32 %v11584_v12 }
 0x504   :  { %10245 = vpow2.f32 %v7282_v41  ;;  %v13547_v41 = vld [vmem:[#allocation177_spill] sm:$0xff] }
 0x505   :  { %10247 = vtanh.f32 %v11495_v5 }
 0x50d   :  { %v10244_v13 = vpop.eup %10243 }
 0x50e   :  { %v11589_v25 = vmul.f32 %v10244_v13, %v10242_v46  ;;  %v10246_v46 = vpop.eup %10245  ;;  %v13546_v13 = vld [vmem:[#allocation176_spill] sm:$0xff] }
 0x510   :  { %2123 = vmatmul.mubr.f32.vlgmr.msra.gmra.mrb[22].mxu0 %v11589_v25  ;;  %2194 = vmatmul.mubr.f32.vlgmr.msra.gmra.mrb[22].mxu1 %v11589_v25 }
 0x511   :  { %8028 = vmatpush1.bf16.msra.mxu0 %v13534_v37  ;;  %8060 = vmatpush1.bf16.msra.mxu1 %v13535_v54 }
 0x512   :  { %8030 = vmatprep.subr.bf16.mxu0 %v13536_v47  ;;  %8062 = vmatprep.subr.bf16.mxu1 %v13537_v55 }
 0x513   :  { %2264 = vmatprep.mubr.f32.mxu0 %v13351_v62  ;;  %2335 = vmatprep.mubr.f32.mxu1 %v13351_v62 }
 0x515   :  { %8032 = vmatpush1.bf16.msra.mxu0 %v13538_v15  ;;  %8064 = vmatpush1.bf16.msra.mxu1 %v13539_v19  ;;  %v13548_v15 = vld [vmem:[#allocation178_spill] sm:$0xff]  ;;  %v13549_v19 = vld [vmem:[#allocation179_spill] sm:$0xff] }
 0x516   :  { %8034 = vmatprep.subr.bf16.mxu0 %v13540_v10  ;;  %8066 = vmatprep.subr.bf16.mxu1 %v13541_v7  ;;  %v1568_v10 = vadd.f32 1.0, %v10246_v46  ;;  %v13550_v7 = vld [vmem:[#allocation180_spill] sm:$0xff]  ;;  %v10248_v46 = vpop.eup %10247 }
 0x518   :  { %10249 = vrcp.f32 %v1568_v10 }
 0x519   :  { %8036 = vmatpush1.bf16.msra.mxu0 %v13542_v60  ;;  %8068 = vmatpush1.bf16.msra.mxu1 %v13543_v9  ;;  %v13551_v60 = vld [vmem:[#allocation181_spill] sm:$0xff] }
 0x51a   :  { %8038 = vmatprep.subr.bf16.mxu0 %v13544_v33  ;;  %8070 = vmatprep.subr.bf16.mxu1 %v13545_v31 }
 0x51d   :  { %8040 = vmatpush1.bf16.msra.mxu0 %v13546_v13  ;;  %8072 = vmatpush1.bf16.msra.mxu1 %v13547_v41 }
 0x51e   :  { %8042 = vmatprep.subr.bf16.mxu0 %v13548_v15  ;;  %8074 = vmatprep.subr.bf16.mxu1 %v13549_v19 }
 0x521   :  { %8044 = vmatpush1.bf16.msra.mxu0 %v13550_v7  ;;  %8076 = vmatpush1.bf16.msra.mxu1 %v13551_v60 }
 0x522   :  { %8046 = vmatprep.subr.bf16.mxu0 %v11378_v49  ;;  %8078 = vmatprep.subr.bf16.mxu1 %v11380_v6  ;;  %v10250_v49 = vpop.eup %10249 }
 0x523   :  { %v1575_v10 = vmul.f32 %v10250_v49, %v10248_v46  ;;  %v13552_v49 = vld [vmem:[#allocation49_spill] sm:$0xff]  ;;  %v13553_v46 = vld [vmem:[#allocation50_spill] sm:$0xff] }
 0x525   :  { %8048 = vmatpush1.bf16.msra.mxu0 %v11384_v0  ;;  %8080 = vmatpush1.bf16.msra.mxu1 %v11386_v21 }
 0x526   :  { %8050 = vmatprep.subr.bf16.mxu0 %v11390_v28  ;;  %8082 = vmatprep.subr.bf16.mxu1 %v11392_v38 }
 0x529   :  { %8052 = vmatpush1.bf16.msra.mxu0 %v11396_v35  ;;  %8084 = vmatpush1.bf16.msra.mxu1 %v11398_v16 }
 0x52a   :  { %8054 = vmatprep.subr.bf16.mxu0 %v11402_v61  ;;  %8086 = vmatprep.subr.bf16.mxu1 %v11404_v27 }
 0x52d   :  { %8056 = vmatpush1.bf16.msra.mxu0 %v11408_v20  ;;  %8088 = vmatpush1.bf16.msra.mxu1 %v11410_v51 }
 0x52e   :  { %8090 = vmatprep.subr.bf16.mxu0 %v10766_v14  ;;  %8122 = vmatprep.subr.bf16.mxu1 %v10768_v17 }
 0x530   :  { %2265 = vmatmul.mubr.f32.vlgmr.msra.gmra.mrb[22].mxu0 %v1575_v10  ;;  %2336 = vmatmul.mubr.f32.vlgmr.msra.gmra.mrb[22].mxu1 %v1575_v10  ;;  %v13554_v10 = vld [vmem:[#allocation51_spill] sm:$0xff] }
 0x531   :  { %8092 = vmatpush1.bf16.msra.mxu0 %v10773_v23  ;;  %8124 = vmatpush1.bf16.msra.mxu1 %v10776_v26 }
 0x532   :  { %8094 = vmatprep.subr.bf16.mxu0 %v10779_v29  ;;  %8126 = vmatprep.subr.bf16.mxu1 %v10782_v32 }
 0x533   :  { %2434 = vmatprep.mubr.f32.mxu0 %v13351_v62  ;;  %2505 = vmatprep.mubr.f32.mxu1 %v13351_v62 }
 0x535   :  { %8096 = vmatpush1.bf16.msra.mxu0 %v10789_v36  ;;  %8128 = vmatpush1.bf16.msra.mxu1 %v10793_v39 }
 0x536   :  { %8098 = vmatprep.subr.bf16.mxu0 %v10797_v42  ;;  %8130 = vmatprep.subr.bf16.mxu1 %v10801_v45 }
 0x539   :  { %8100 = vmatpush1.bf16.msra.mxu0 %v10808_v50  ;;  %8132 = vmatpush1.bf16.msra.mxu1 %v10812_v53 }
 0x53a   :  { %8102 = vmatprep.subr.bf16.mxu0 %v10816_v56  ;;  %8134 = vmatprep.subr.bf16.mxu1 %v10820_v59 }
 0x53d   :  { %8104 = vmatpush1.bf16.msra.mxu0 %v10829_v1  ;;  %8136 = vmatpush1.bf16.msra.mxu1 %v10833_v4 }
 0x53e   :  { %8106 = vmatprep.subr.bf16.mxu0 %v10840_v8  ;;  %8138 = vmatprep.subr.bf16.mxu1 %v10844_v11 }
 0x541   :  { %8108 = vmatpush1.bf16.msra.mxu0 %v10851_v18  ;;  %8140 = vmatpush1.bf16.msra.mxu1 %v10865_v22  ;;  %v13555_v22 = vld [vmem:[#allocation52_spill] sm:$0xff] }
 0x542   :  { %8110 = vmatprep.subr.bf16.mxu0 %v10877_v30  ;;  %8142 = vmatprep.subr.bf16.mxu1 %v10881_v34  ;;  %v13556_v30 = vld [vmem:[#allocation53_spill] sm:$0xff] }
 0x543   :  { %v13557_v34 = vld [vmem:[#allocation65_spill] sm:$0xff] }
 0x545   :  { %8112 = vmatpush1.bf16.msra.mxu0 %v10888_v40  ;;  %8144 = vmatpush1.bf16.msra.mxu1 %v10892_v44  ;;  %v13558_v40 = vld [vmem:[#allocation66_spill] sm:$0xff]  ;;  %v13591_v44 = vld [vmem:[#allocation41_spill] sm:$0xff] }
 0x546   :  { %8114 = vmatprep.subr.bf16.mxu0 %v10896_v48  ;;  %8146 = vmatprep.subr.bf16.mxu1 %v10900_v52  ;;  %v13559_v52 = vld [vmem:[#allocation67_spill] sm:$0xff]  ;;  %v13573_v48 = vld [vmem:[#allocation81_spill] sm:$0xff] }
 0x549   :  { %8116 = vmatpush1.bf16.msra.mxu0 %v10907_v58  ;;  %8148 = vmatpush1.bf16.msra.mxu1 %v13552_v49  ;;  %v13560_v58 = vld [vmem:[#allocation68_spill] sm:$0xff]  ;;  %v13561_v49 = vld [vmem:[#allocation69_spill] sm:$0xff] }
 0x54a   :  { %8118 = vmatprep.subr.bf16.mxu0 %v13553_v46  ;;  %8150 = vmatprep.subr.bf16.mxu1 %v13554_v10  ;;  %v13562_v46 = vld [vmem:[#allocation70_spill] sm:$0xff]  ;;  %v13572_v10 = vld [vmem:[#allocation80_spill] sm:$0xff] }
 0x54d   :  { %8120 = vmatpush1.bf16.msra.mxu0 %v13555_v22  ;;  %8152 = vmatpush1.bf16.msra.mxu1 %v13556_v30  ;;  %v13563_v30 = vld [vmem:[#allocation71_spill] sm:$0xff]  ;;  %v13566_v22 = vld [vmem:[#allocation74_spill] sm:$0xff] }
 0x54e   :  { %8154 = vmatprep.subr.bf16.mxu0 %v13557_v34  ;;  %8186 = vmatprep.subr.bf16.mxu1 %v13558_v40  ;;  %v13564_v34 = vld [vmem:[#allocation72_spill] sm:$0xff]  ;;  %v13565_v40 = vld [vmem:[#allocation73_spill] sm:$0xff] }
 0x550   :  { %2435 = vmatmul.mubr.f32.vlgmr.msra.gmra.mrb[4].mxu0 %v11505_v3  ;;  %2506 = vmatmul.mubr.f32.vlgmr.msra.gmra.mrb[4].mxu1 %v11505_v3  ;;  %v13567_v3 = vld [vmem:[#allocation75_spill] sm:$0xff] }
 0x551   :  { %8156 = vmatpush1.bf16.msra.mxu0 %v13559_v52  ;;  %8188 = vmatpush1.bf16.msra.mxu1 %v13560_v58  ;;  %v13568_v52 = vld [vmem:[#allocation76_spill] sm:$0xff]  ;;  %v13569_v58 = vld [vmem:[#allocation77_spill] sm:$0xff] }
 0x552   :  { %8158 = vmatprep.subr.bf16.mxu0 %v13561_v49  ;;  %8190 = vmatprep.subr.bf16.mxu1 %v13562_v46  ;;  %v13570_v49 = vld [vmem:[#allocation78_spill] sm:$0xff]  ;;  %v13571_v46 = vld [vmem:[#allocation79_spill] sm:$0xff] }
 0x553   :  { %2604 = vmatprep.mubr.f32.mxu0 %v13351_v62  ;;  %2675 = vmatprep.mubr.f32.mxu1 %v13351_v62 }
 0x555   :  { %8160 = vmatpush1.bf16.msra.mxu0 %v13563_v30  ;;  %8192 = vmatpush1.bf16.msra.mxu1 %v13564_v34  ;;  %v13574_v30 = vld [vmem:[#allocation82_spill] sm:$0xff]  ;;  %v13575_v34 = vld [vmem:[#allocation83_spill] sm:$0xff] }
 0x556   :  { %8162 = vmatprep.subr.bf16.mxu0 %v13565_v40  ;;  %8194 = vmatprep.subr.bf16.mxu1 %v13566_v22  ;;  %v13576_v40 = vld [vmem:[#allocation84_spill] sm:$0xff]  ;;  %v13577_v22 = vld [vmem:[#allocation85_spill] sm:$0xff] }
 0x559   :  { %8164 = vmatpush1.bf16.msra.mxu0 %v13567_v3  ;;  %8196 = vmatpush1.bf16.msra.mxu1 %v13568_v52  ;;  %v13578_v3 = vld [vmem:[#allocation86_spill] sm:$0xff]  ;;  %v13579_v52 = vld [vmem:[#allocation87_spill] sm:$0xff] }
 0x55a   :  { %8166 = vmatprep.subr.bf16.mxu0 %v13569_v58  ;;  %8198 = vmatprep.subr.bf16.mxu1 %v13570_v49  ;;  %v13580_v58 = vld [vmem:[#allocation88_spill] sm:$0xff]  ;;  %v13581_v49 = vld [vmem:[#allocation89_spill] sm:$0xff] }
 0x55d   :  { %8168 = vmatpush1.bf16.msra.mxu0 %v13571_v46  ;;  %8200 = vmatpush1.bf16.msra.mxu1 %v13572_v10  ;;  %v13582_v46 = vld [vmem:[#allocation90_spill] sm:$0xff]  ;;  %v13583_v10 = vld [vmem:[#allocation91_spill] sm:$0xff] }
 0x55e   :  { %8170 = vmatprep.subr.bf16.mxu0 %v13573_v48  ;;  %8202 = vmatprep.subr.bf16.mxu1 %v13574_v30  ;;  %v13584_v48 = vld [vmem:[#allocation92_spill] sm:$0xff]  ;;  %v13585_v30 = vld [vmem:[#allocation93_spill] sm:$0xff] }
 0x561   :  { %8172 = vmatpush1.bf16.msra.mxu0 %v13575_v34  ;;  %8204 = vmatpush1.bf16.msra.mxu1 %v13576_v40  ;;  %v13586_v34 = vld [vmem:[#allocation94_spill] sm:$0xff]  ;;  %v13587_v40 = vld [vmem:[#allocation95_spill] sm:$0xff] }
 0x562   :  { %8174 = vmatprep.subr.bf16.mxu0 %v13577_v22  ;;  %8206 = vmatprep.subr.bf16.mxu1 %v13578_v3  ;;  %v13588_v22 = vld [vmem:[#allocation96_spill] sm:$0xff]  ;;  %v13589_v3 = vld [vmem:[#allocation97_spill] sm:$0xff] }
 0x565   :  { %8176 = vmatpush1.bf16.msra.mxu0 %v13579_v52  ;;  %8208 = vmatpush1.bf16.msra.mxu1 %v13580_v58  ;;  %v13590_v52 = vld [vmem:[#allocation98_spill] sm:$0xff] }
 0x566   :  { %8178 = vmatprep.subr.bf16.mxu0 %v13581_v49  ;;  %8210 = vmatprep.subr.bf16.mxu1 %v13582_v46 }
 0x569   :  { %8180 = vmatpush1.bf16.msra.mxu0 %v13583_v10  ;;  %8212 = vmatpush1.bf16.msra.mxu1 %v13584_v48  ;;  %v13592_v48 = vld [vmem:[#allocation57_spill] sm:$0xff] }
 0x56a   :  { %8182 = vmatprep.subr.bf16.mxu0 %v13585_v30  ;;  %8214 = vmatprep.subr.bf16.mxu1 %v13586_v34 }
 0x56d   :  { %8184 = vmatpush1.bf16.msra.mxu0 %v13587_v40  ;;  %8216 = vmatpush1.bf16.msra.mxu1 %v13588_v22  ;;  %v13593_v40 = vld [vmem:[#allocation55_spill] sm:$0xff] }
 0x56e   :  { %8218 = vmatprep.subr.bf16.mxu0 %v13589_v3  ;;  %8250 = vmatprep.subr.bf16.mxu1 %v13590_v52 }
 0x603   :  { %v2266_v58 = vpop.f32.mrb[22].mxu0  ;;  %v2337_v49 = vpop.f32.mrb[22].mxu1 }
 0x604   :  { %v2342_v46 = vadd.f32 %v2266_v58, %v13591_v44  ;;  %v2268_v18 = vpop.f32.mrb[23].mxu0  ;;  %v11699_v10 = vpop.f32.mrb[23].mxu1  ;;  %v2344_v34 = vadd.f32 %v2337_v49, %v13593_v40 }
 0x605   :  { %v2343_v11 = vadd.f32 %v2268_v18, %v13592_v48  ;;  %v13595_v48 = vld [vmem:[#allocation61_spill] sm:$0xff] }
 0x606   :  { %v7289_v30 = vmul.f32 -1.442695, %v2342_v46 }
 0x607   :  { %v7290_v8 = vmul.f32 -1.442695, %v2343_v11 }
 0x608   :  { %10251 = vpow2.f32 %v7289_v30 }
 0x609   :  { %10253 = vpow2.f32 %v7290_v8  ;;  %v13594_v8 = vld [vmem:[#allocation60_spill] sm:$0xff] }
 0x60a   :  { %10255 = vtanh.f32 %v2344_v34 }
 0x612   :  { %v10252_v22 = vpop.eup %10251 }
 0x613   :  { %v10254_v4 = vpop.eup %10253  ;;  %v2349_v3 = vadd.f32 1.0, %v10252_v22 }
 0x614   :  { %v2355_v52 = vadd.f32 1.0, %v10254_v4  ;;  %v10256_v1 = vpop.eup %10255 }
 0x615   :  { %10257 = vrcp.f32 %v2349_v3 }
 0x616   :  { %10259 = vrcp.f32 %v2355_v52 }
 0x61f   :  { %v10258_v58 = vpop.eup %10257 }
 0x620   :  { %v10260_v44 = vpop.eup %10259  ;;  %v2366_v59 = vmul.f32 %v10258_v58, %v10256_v1 }
 0x621   :  { %v2365_v56 = vmul.f32 %v10260_v44, %v11495_v5 }
 0x623   :  { %v11704_v18 = vadd.f32 %v2366_v59, %v2365_v56  ;;  %v2436_v11 = vpop.f32.mrb[4].mxu0  ;;  %v2507_v30 = vpop.f32.mrb[4].mxu1 }
 0x624   :  { %v10037_v46 = vadd.f32 %v2436_v11, %v13594_v8  ;;  %v2438_v49 = vpop.f32.mrb[5].mxu0  ;;  %v2509_v40 = vpop.f32.mrb[5].mxu1  ;;  %v10053_v1 = vadd.f32 %v2507_v30, %v13463_v63 }
 0x625   :  { %v10038_v22 = vadd.f32 %v2438_v49, %v13595_v48  ;;  %v10054_v52 = vadd.f32 %v2509_v40, %v13462_v2 }
 0x626   :  { %v7292_v34 = vmul.f32 -1.442695, %v10037_v46 }
 0x627   :  { %v7293_v4 = vmul.f32 -1.442695, %v10038_v22  ;;  %v7294_v3 = vmul.f32 -1.442695, %v10054_v52 }
 0x628   :  { %10261 = vpow2.f32 %v7292_v34 }
 0x629   :  { %10263 = vpow2.f32 %v7293_v4  ;;  %v13596_v4 = vld [vmem:[#allocation62_spill] sm:$0xff] }
 0x62a   :  { %10265 = vpow2.f32 %v7294_v3 }
 0x62b   :  { %10267 = vtanh.f32 %v10053_v1  ;;  %v13598_v1 = vld [vmem:[#allocation99_spill] sm:$0xff] }
 0x632   :  { %v10262_v44 = vpop.eup %10261 }
 0x633   :  { %v10264_v56 = vpop.eup %10263  ;;  %v2519_v59 = vadd.f32 1.0, %v10262_v44  ;;  %v13599_v44 = vld [vmem:[#allocation100_spill] sm:$0xff] }
 0x634   :  { %v2525_v5 = vadd.f32 1.0, %v10264_v56  ;;  %v10266_v58 = vpop.eup %10265  ;;  %v13600_v56 = vld [vmem:[#allocation101_spill] sm:$0xff] }
 0x635   :  { %10269 = vrcp.f32 %v2519_v59  ;;  %v10268_v11 = vpop.eup %10267  ;;  %v2532_v34 = vadd.f32 1.0, %v10266_v58  ;;  %v13601_v59 = vld [vmem:[#allocation102_spill] sm:$0xff]  ;;  %v13604_v58 = vld [vmem:[#allocation105_spill] sm:$0xff] }
 0x636   :  { %10271 = vrcp.f32 %v2525_v5  ;;  %v13603_v5 = vld [vmem:[#allocation104_spill] sm:$0xff] }
 0x637   :  { %10273 = vrcp.f32 %v2532_v34  ;;  %v13609_v34 = vld [vmem:[#allocation110_spill] sm:$0xff] }
 0x63f   :  { %v10270_v49 = vpop.eup %10269 }
 0x640   :  { %v10272_v46 = vpop.eup %10271  ;;  %v2536_v22 = vmul.f32 %v10270_v49, %v10268_v11  ;;  %v13605_v11 = vld [vmem:[#allocation106_spill] sm:$0xff]  ;;  %v13606_v49 = vld [vmem:[#allocation107_spill] sm:$0xff] }
 0x641   :  { %v2535_v48 = vmul.f32 %v10272_v46, %v13596_v4  ;;  %v10274_v30 = vpop.eup %10273  ;;  %v13607_v46 = vld [vmem:[#allocation108_spill] sm:$0xff]  ;;  %v13610_v4 = vld [vmem:[#allocation111_spill] sm:$0xff] }
 0x643   :  { %v11711_v40 = vadd.f32 %v2536_v22, %v2535_v48  ;;  %v13602_v48 = vld [vmem:[#allocation103_spill] sm:$0xff]  ;;  %v13608_v22 = vld [vmem:[#allocation109_spill] sm:$0xff] }
 0x645   :  { %13597 = vst [vmem:[#allocation63_spill] sm:$0xff] %v11711_v40  ;;  %10275 = vtanh.f32 %v11711_v40 }
 0x64f   :  { %v10276_v52 = vpop.eup %10275 }
 0x650   :  { %v11714_v3 = vmul.f32 %v10276_v52, %v10274_v30  ;;  %v13611_v30 = vld [vmem:[#allocation112_spill] sm:$0xff]  ;;  %v13612_v52 = vld [vmem:[#allocation113_spill] sm:$0xff] }
 0x652   :  { %2605 = vmatmul.mubr.f32.vlgmr.msra.gmra.mrb[24].mxu0 %v11714_v3  ;;  %2676 = vmatmul.mubr.f32.vlgmr.msra.gmra.mrb[24].mxu1 %v11714_v3 }
 0x653   :  { %8220 = vmatpush1.bf16.msra.mxu0 %v13598_v1  ;;  %8252 = vmatpush1.bf16.msra.mxu1 %v13599_v44 }
 0x654   :  { %8222 = vmatprep.subr.bf16.mxu0 %v13600_v56  ;;  %8254 = vmatprep.subr.bf16.mxu1 %v13601_v59  ;;  %v13663_v56 = vld [vmem:[#allocation56_spill] sm:$0xff] }
 0x655   :  { %2746 = vmatprep.mubr.f32.mxu0 %v13351_v62  ;;  %2817 = vmatprep.mubr.f32.mxu1 %v13351_v62 }
 0x657   :  { %8224 = vmatpush1.bf16.msra.mxu0 %v13602_v48  ;;  %8256 = vmatpush1.bf16.msra.mxu1 %v13603_v5  ;;  %v13613_v48 = vld [vmem:[#allocation114_spill] sm:$0xff]  ;;  %v13614_v5 = vld [vmem:[#allocation115_spill] sm:$0xff] }
 0x658   :  { %8226 = vmatprep.subr.bf16.mxu0 %v13604_v58  ;;  %8258 = vmatprep.subr.bf16.mxu1 %v13605_v11  ;;  %v13615_v58 = vld [vmem:[#allocation116_spill] sm:$0xff]  ;;  %v13616_v11 = vld [vmem:[#allocation117_spill] sm:$0xff] }
 0x65b   :  { %8228 = vmatpush1.bf16.msra.mxu0 %v13606_v49  ;;  %8260 = vmatpush1.bf16.msra.mxu1 %v13607_v46  ;;  %v13617_v49 = vld [vmem:[#allocation118_spill] sm:$0xff]  ;;  %v13618_v46 = vld [vmem:[#allocation119_spill] sm:$0xff] }
 0x65c   :  { %8230 = vmatprep.subr.bf16.mxu0 %v13608_v22  ;;  %8262 = vmatprep.subr.bf16.mxu1 %v13609_v34  ;;  %v13619_v22 = vld [vmem:[#allocation120_spill] sm:$0xff]  ;;  %v13620_v34 = vld [vmem:[#allocation121_spill] sm:$0xff] }
 0x65f   :  { %8232 = vmatpush1.bf16.msra.mxu0 %v13610_v4  ;;  %8264 = vmatpush1.bf16.msra.mxu1 %v13611_v30  ;;  %v13621_v4 = vld [vmem:[#allocation122_spill] sm:$0xff]  ;;  %v13622_v30 = vld [vmem:[#allocation123_spill] sm:$0xff] }
 0x660   :  { %8234 = vmatprep.subr.bf16.mxu0 %v13612_v52  ;;  %8266 = vmatprep.subr.bf16.mxu1 %v13613_v48  ;;  %v13623_v52 = vld [vmem:[#allocation124_spill] sm:$0xff]  ;;  %v13624_v48 = vld [vmem:[#allocation125_spill] sm:$0xff] }
 0x663   :  { %8236 = vmatpush1.bf16.msra.mxu0 %v13614_v5  ;;  %8268 = vmatpush1.bf16.msra.mxu1 %v13615_v58  ;;  %v13625_v5 = vld [vmem:[#allocation126_spill] sm:$0xff]  ;;  %v13626_v58 = vld [vmem:[#allocation127_spill] sm:$0xff] }
 0x664   :  { %8238 = vmatprep.subr.bf16.mxu0 %v13616_v11  ;;  %8270 = vmatprep.subr.bf16.mxu1 %v13617_v49  ;;  %v13627_v11 = vld [vmem:[#allocation128_spill] sm:$0xff]  ;;  %v13628_v49 = vld [vmem:[#allocation129_spill] sm:$0xff] }
 0x667   :  { %8240 = vmatpush1.bf16.msra.mxu0 %v13618_v46  ;;  %8272 = vmatpush1.bf16.msra.mxu1 %v13619_v22  ;;  %v13629_v46 = vld [vmem:[#allocation130_spill] sm:$0xff]  ;;  %v13662_v22 = vld [vmem:[#allocation40_spill] sm:$0xff] }
 0x668   :  { %8242 = vmatprep.subr.bf16.mxu0 %v13620_v34  ;;  %8274 = vmatprep.subr.bf16.mxu1 %v13621_v4  ;;  %v13630_v4 = vld [vmem:[#allocation131_spill] sm:$0xff]  ;;  %v13644_v34 = vld [vmem:[#allocation145_spill] sm:$0xff] }
 0x66b   :  { %8244 = vmatpush1.bf16.msra.mxu0 %v13622_v30  ;;  %8276 = vmatpush1.bf16.msra.mxu1 %v13623_v52  ;;  %v13631_v30 = vld [vmem:[#allocation132_spill] sm:$0xff]  ;;  %v13632_v52 = vld [vmem:[#allocation133_spill] sm:$0xff] }
 0x66c   :  { %8246 = vmatprep.subr.bf16.mxu0 %v13624_v48  ;;  %8278 = vmatprep.subr.bf16.mxu1 %v13625_v5  ;;  %v13633_v48 = vld [vmem:[#allocation134_spill] sm:$0xff]  ;;  %v13643_v5 = vld [vmem:[#allocation144_spill] sm:$0xff] }
 0x66f   :  { %8248 = vmatpush1.bf16.msra.mxu0 %v13626_v58  ;;  %8280 = vmatpush1.bf16.msra.mxu1 %v13627_v11  ;;  %v13634_v11 = vld [vmem:[#allocation135_spill] sm:$0xff]  ;;  %v13637_v58 = vld [vmem:[#allocation138_spill] sm:$0xff] }
 0x670   :  { %8282 = vmatprep.subr.bf16.mxu0 %v13628_v49  ;;  %8314 = vmatprep.subr.bf16.mxu1 %v13629_v46  ;;  %v13635_v49 = vld [vmem:[#allocation136_spill] sm:$0xff]  ;;  %v13636_v46 = vld [vmem:[#allocation137_spill] sm:$0xff] }
 0x672   :  { %2747 = vmatmul.mubr.f32.vlgmr.msra.gmra.mrb[24].mxu0 %v11589_v25  ;;  %2818 = vmatmul.mubr.f32.vlgmr.msra.gmra.mrb[24].mxu1 %v11589_v25  ;;  %v13638_v25 = vld [vmem:[#allocation139_spill] sm:$0xff] }
 0x673   :  { %8284 = vmatpush1.bf16.msra.mxu0 %v13630_v4  ;;  %8316 = vmatpush1.bf16.msra.mxu1 %v13631_v30  ;;  %v13639_v4 = vld [vmem:[#allocation140_spill] sm:$0xff]  ;;  %v13640_v30 = vld [vmem:[#allocation141_spill] sm:$0xff] }
 0x674   :  { %8286 = vmatprep.subr.bf16.mxu0 %v13632_v52  ;;  %8318 = vmatprep.subr.bf16.mxu1 %v13633_v48  ;;  %v13641_v52 = vld [vmem:[#allocation142_spill] sm:$0xff]  ;;  %v13642_v48 = vld [vmem:[#allocation143_spill] sm:$0xff] }
 0x675   :  { %2916 = vmatprep.mubr.f32.mxu0 %v13351_v62  ;;  %2987 = vmatprep.mubr.f32.mxu1 %v13351_v62 }
 0x677   :  { %8288 = vmatpush1.bf16.msra.mxu0 %v13634_v11  ;;  %8320 = vmatpush1.bf16.msra.mxu1 %v13635_v49  ;;  %v13645_v11 = vld [vmem:[#allocation146_spill] sm:$0xff]  ;;  %v13646_v49 = vld [vmem:[#allocation147_spill] sm:$0xff] }
 0x678   :  { %8290 = vmatprep.subr.bf16.mxu0 %v13636_v46  ;;  %8322 = vmatprep.subr.bf16.mxu1 %v13637_v58  ;;  %v13647_v46 = vld [vmem:[#allocation148_spill] sm:$0xff]  ;;  %v13648_v58 = vld [vmem:[#allocation149_spill] sm:$0xff] }
 0x67b   :  { %8292 = vmatpush1.bf16.msra.mxu0 %v13638_v25  ;;  %8324 = vmatpush1.bf16.msra.mxu1 %v13639_v4  ;;  %v13649_v25 = vld [vmem:[#allocation150_spill] sm:$0xff]  ;;  %v13650_v4 = vld [vmem:[#allocation151_spill] sm:$0xff] }
 0x67c   :  { %8294 = vmatprep.subr.bf16.mxu0 %v13640_v30  ;;  %8326 = vmatprep.subr.bf16.mxu1 %v13641_v52  ;;  %v13651_v30 = vld [vmem:[#allocation152_spill] sm:$0xff]  ;;  %v13652_v52 = vld [vmem:[#allocation153_spill] sm:$0xff] }
 0x67f   :  { %8296 = vmatpush1.bf16.msra.mxu0 %v13642_v48  ;;  %8328 = vmatpush1.bf16.msra.mxu1 %v13643_v5  ;;  %v13653_v48 = vld [vmem:[#allocation154_spill] sm:$0xff]  ;;  %v13654_v5 = vld [vmem:[#allocation155_spill] sm:$0xff] }
 0x680   :  { %8298 = vmatprep.subr.bf16.mxu0 %v13644_v34  ;;  %8330 = vmatprep.subr.bf16.mxu1 %v13645_v11  ;;  %v13655_v34 = vld [vmem:[#allocation156_spill] sm:$0xff]  ;;  %v13656_v11 = vld [vmem:[#allocation157_spill] sm:$0xff] }
 0x683   :  { %8300 = vmatpush1.bf16.msra.mxu0 %v13646_v49  ;;  %8332 = vmatpush1.bf16.msra.mxu1 %v13647_v46  ;;  %v13657_v49 = vld [vmem:[#allocation158_spill] sm:$0xff]  ;;  %v13658_v46 = vld [vmem:[#allocation159_spill] sm:$0xff] }
 0x684   :  { %8302 = vmatprep.subr.bf16.mxu0 %v13648_v58  ;;  %8334 = vmatprep.subr.bf16.mxu1 %v13649_v25  ;;  %v13659_v58 = vld [vmem:[#allocation160_spill] sm:$0xff]  ;;  %v13660_v25 = vld [vmem:[#allocation161_spill] sm:$0xff] }
 0x687   :  { %8304 = vmatpush1.bf16.msra.mxu0 %v13650_v4  ;;  %8336 = vmatpush1.bf16.msra.mxu1 %v13651_v30  ;;  %v13661_v4 = vld [vmem:[#allocation162_spill] sm:$0xff] }
 0x688   :  { %8306 = vmatprep.subr.bf16.mxu0 %v13652_v52  ;;  %8338 = vmatprep.subr.bf16.mxu1 %v13653_v48 }
 0x68b   :  { %8308 = vmatpush1.bf16.msra.mxu0 %v13654_v5  ;;  %8340 = vmatpush1.bf16.msra.mxu1 %v13655_v34 }
 0x68c   :  { %8310 = vmatprep.subr.bf16.mxu0 %v13656_v11  ;;  %8342 = vmatprep.subr.bf16.mxu1 %v13657_v49 }
 0x68f   :  { %8312 = vmatpush1.bf16.msra.mxu0 %v13658_v46  ;;  %8344 = vmatpush1.bf16.msra.mxu1 %v13659_v58 }
 0x690   :  { %8346 = vmatprep.subr.bf16.mxu0 %v13660_v25  ;;  %8378 = vmatprep.subr.bf16.mxu1 %v13661_v4 }
 0x745   :  { %v2748_v30 = vpop.f32.mrb[24].mxu0  ;;  %v2819_v52 = vpop.f32.mrb[24].mxu1 }
 0x746   :  { %v2824_v48 = vadd.f32 %v2748_v30, %v13662_v22  ;;  %v2750_v59 = vpop.f32.mrb[25].mxu0  ;;  %v2821_v5 = vpop.f32.mrb[25].mxu1  ;;  %v2826_v58 = vadd.f32 %v2819_v52, %v13531_v24  ;;  %v13668_v52 = vld [vmem:[#allocation172_spill] sm:$0xff] }
 0x747   :  { %v2825_v34 = vadd.f32 %v2750_v59, %v13663_v56  ;;  %v2827_v46 = vadd.f32 %v2821_v5, %v13530_v57 }
 0x748   :  { %v7295_v44 = vmul.f32 -1.442695, %v2824_v48 }
 0x749   :  { %v7296_v11 = vmul.f32 -1.442695, %v2825_v34  ;;  %v7297_v49 = vmul.f32 -1.442695, %v2827_v46 }
 0x74a   :  { %10277 = vpow2.f32 %v7295_v44 }
 0x74b   :  { %10279 = vpow2.f32 %v7296_v11 }
 0x74c   :  { %10281 = vpow2.f32 %v7297_v49  ;;  %v2345_v49 = vadd.f32 %v11699_v10, %v13533_v43  ;;  %v13665_v10 = vld [vmem:[#allocation169_spill] sm:$0xff] }
 0x74d   :  { %10283 = vtanh.f32 %v2826_v58 }
 0x74e   :  { %v7291_v46 = vmul.f32 -1.442695, %v2345_v49  ;;  %v13671_v49 = vld [vmem:[#allocation33_spill] sm:$0xff] }
 0x754   :  { %v10278_v25 = vpop.eup %10277 }
 0x755   :  { %v10280_v1 = vpop.eup %10279  ;;  %v2831_v4 = vadd.f32 1.0, %v10278_v25 }
 0x756   :  { %v2837_v40 = vadd.f32 1.0, %v10280_v1  ;;  %v10282_v30 = vpop.eup %10281 }
 0x757   :  { %10285 = vrcp.f32 %v2831_v4  ;;  %v10284_v22 = vpop.eup %10283  ;;  %v2844_v44 = vadd.f32 1.0, %v10282_v30  ;;  %v13667_v4 = vld [vmem:[#allocation171_spill] sm:$0xff] }
 0x758   :  { %10287 = vrcp.f32 %v2837_v40 }
 0x759   :  { %10289 = vrcp.f32 %v2844_v44 }
 0x761   :  { %v10286_v59 = vpop.eup %10285 }
 0x762   :  { %v10288_v48 = vpop.eup %10287  ;;  %v2848_v34 = vmul.f32 %v10286_v59, %v10284_v22  ;;  %v13666_v22 = vld [vmem:[#allocation170_spill] sm:$0xff] }
 0x763   :  { %v2847_v11 = vmul.f32 %v10288_v48, %v11584_v12  ;;  %v10290_v58 = vpop.eup %10289  ;;  %v13664_v12 = vld [vmem:[#allocation168_spill] sm:$0xff]  ;;  %v13669_v59 = vld [vmem:[#allocation182_spill] sm:$0xff] }
 0x765   :  { %v11793_v5 = vadd.f32 %v2848_v34, %v2847_v11  ;;  %v13670_v11 = vld [vmem:[#allocation32_spill] sm:$0xff] }
 0x767   :  { %10291 = vtanh.f32 %v11793_v5 }
 0x768   :  { %10293 = vpow2.f32 %v7291_v46  ;;  %v13674_v46 = vld [vmem:[#allocation36_spill] sm:$0xff] }
 0x769   :  { %10295 = vtanh.f32 %v11704_v18 }
 0x771   :  { %v10292_v1 = vpop.eup %10291 }
 0x772   :  { %v11798_v40 = vmul.f32 %v10292_v1, %v10290_v58  ;;  %v10294_v25 = vpop.eup %10293  ;;  %v13672_v58 = vld [vmem:[#allocation34_spill] sm:$0xff]  ;;  %v13673_v1 = vld [vmem:[#allocation35_spill] sm:$0xff] }
 0x773   :  { %v2362_v30 = vadd.f32 1.0, %v10294_v25  ;;  %v10296_v48 = vpop.eup %10295  ;;  %v13675_v25 = vld [vmem:[#allocation37_spill] sm:$0xff] }
 0x774   :  { %2917 = vmatmul.mubr.f32.vlgmr.msra.gmra.mrb[26].mxu0 %v11798_v40  ;;  %2988 = vmatmul.mubr.f32.vlgmr.msra.gmra.mrb[26].mxu1 %v11798_v40 }
 0x775   :  { %8348 = vmatpush1.bf16.msra.mxu0 %v13534_v37  ;;  %8380 = vmatpush1.bf16.msra.mxu1 %v13535_v54  ;;  %10297 = vrcp.f32 %v2362_v30  ;;  %v13676_v30 = vld [vmem:[#allocation38_spill] sm:$0xff] }
 0x776   :  { %8350 = vmatprep.subr.bf16.mxu0 %v13536_v47  ;;  %8382 = vmatprep.subr.bf16.mxu1 %v13537_v55 }
 0x777   :  { %3058 = vmatprep.mubr.f32.mxu0 %v13351_v62  ;;  %3129 = vmatprep.mubr.f32.mxu1 %v13351_v62 }
 0x779   :  { %8352 = vmatpush1.bf16.msra.mxu0 %v13664_v12  ;;  %8384 = vmatpush1.bf16.msra.mxu1 %v13665_v10 }
 0x77a   :  { %8354 = vmatprep.subr.bf16.mxu0 %v13666_v22  ;;  %8386 = vmatprep.subr.bf16.mxu1 %v13667_v4 }
 0x77d   :  { %8356 = vmatpush1.bf16.msra.mxu0 %v13668_v52  ;;  %8388 = vmatpush1.bf16.msra.mxu1 %v13543_v9 }
 0x77e   :  { %8358 = vmatprep.subr.bf16.mxu0 %v13544_v33  ;;  %8390 = vmatprep.subr.bf16.mxu1 %v13545_v31 }
 0x77f   :  { %v10298_v34 = vpop.eup %10297 }
 0x780   :  { %v2369_v44 = vmul.f32 %v10298_v34, %v10296_v48  ;;  %v13677_v48 = vld [vmem:[#allocation39_spill] sm:$0xff]  ;;  %v13678_v34 = vld [vmem:[#allocation42_spill] sm:$0xff] }
 0x781   :  { %8360 = vmatpush1.bf16.msra.mxu0 %v13546_v13  ;;  %8392 = vmatpush1.bf16.msra.mxu1 %v13547_v41 }
 0x782   :  { %8362 = vmatprep.subr.bf16.mxu0 %v13548_v15  ;;  %8394 = vmatprep.subr.bf16.mxu1 %v13549_v19 }
 0x785   :  { %8364 = vmatpush1.bf16.msra.mxu0 %v13550_v7  ;;  %8396 = vmatpush1.bf16.msra.mxu1 %v13551_v60 }
 0x786   :  { %8366 = vmatprep.subr.bf16.mxu0 %v13669_v59  ;;  %8398 = vmatprep.subr.bf16.mxu1 %v11380_v6 }
 0x789   :  { %8368 = vmatpush1.bf16.msra.mxu0 %v11384_v0  ;;  %8400 = vmatpush1.bf16.msra.mxu1 %v11386_v21 }
 0x78a   :  { %8370 = vmatprep.subr.bf16.mxu0 %v11390_v28  ;;  %8402 = vmatprep.subr.bf16.mxu1 %v11392_v38 }
 0x78d   :  { %8372 = vmatpush1.bf16.msra.mxu0 %v11396_v35  ;;  %8404 = vmatpush1.bf16.msra.mxu1 %v11398_v16 }
 0x78e   :  { %8374 = vmatprep.subr.bf16.mxu0 %v11402_v61  ;;  %8406 = vmatprep.subr.bf16.mxu1 %v11404_v27 }
 0x791   :  { %8376 = vmatpush1.bf16.msra.mxu0 %v11408_v20  ;;  %8408 = vmatpush1.bf16.msra.mxu1 %v11410_v51 }
 0x792   :  { %8410 = vmatprep.subr.bf16.mxu0 %v10766_v14  ;;  %8442 = vmatprep.subr.bf16.mxu1 %v10768_v17 }
 0x794   :  { %3059 = vmatmul.mubr.f32.vlgmr.msra.gmra.mrb[26].mxu0 %v2369_v44  ;;  %3130 = vmatmul.mubr.f32.vlgmr.msra.gmra.mrb[26].mxu1 %v2369_v44  ;;  %v13679_v44 = vld [vmem:[#allocation43_spill] sm:$0xff] }
 0x795   :  { %8412 = vmatpush1.bf16.msra.mxu0 %v10773_v23  ;;  %8444 = vmatpush1.bf16.msra.mxu1 %v10776_v26 }
 0x796   :  { %8414 = vmatprep.subr.bf16.mxu0 %v10779_v29  ;;  %8446 = vmatprep.subr.bf16.mxu1 %v10782_v32 }
 0x797   :  { %3228 = vmatprep.mubr.f32.mxu0 %v13351_v62  ;;  %3299 = vmatprep.mubr.f32.mxu1 %v13351_v62 }
 0x799   :  { %8416 = vmatpush1.bf16.msra.mxu0 %v10789_v36  ;;  %8448 = vmatpush1.bf16.msra.mxu1 %v10793_v39 }
 0x79a   :  { %8418 = vmatprep.subr.bf16.mxu0 %v10797_v42  ;;  %8450 = vmatprep.subr.bf16.mxu1 %v10801_v45 }
 0x79d   :  { %8420 = vmatpush1.bf16.msra.mxu0 %v10808_v50  ;;  %8452 = vmatpush1.bf16.msra.mxu1 %v10812_v53  ;;  %v13680_v53 = vld [vmem:[#allocation44_spill] sm:$0xff] }
 0x79e   :  { %8422 = vmatprep.subr.bf16.mxu0 %v13670_v11  ;;  %8454 = vmatprep.subr.bf16.mxu1 %v13671_v49  ;;  %v13681_v11 = vld [vmem:[#allocation45_spill] sm:$0xff]  ;;  %v13682_v49 = vld [vmem:[#allocation46_spill] sm:$0xff] }
 0x7a1   :  { %8424 = vmatpush1.bf16.msra.mxu0 %v13672_v58  ;;  %8456 = vmatpush1.bf16.msra.mxu1 %v13673_v1  ;;  %v13683_v58 = vld [vmem:[#allocation47_spill] sm:$0xff]  ;;  %v13684_v1 = vld [vmem:[#allocation48_spill] sm:$0xff] }
 0x7a2   :  { %8426 = vmatprep.subr.bf16.mxu0 %v13674_v46  ;;  %8458 = vmatprep.subr.bf16.mxu1 %v13675_v25  ;;  %v13685_v46 = vld [vmem:[#allocation49_spill] sm:$0xff]  ;;  %v13686_v25 = vld [vmem:[#allocation50_spill] sm:$0xff] }
 0x7a5   :  { %8428 = vmatpush1.bf16.msra.mxu0 %v13676_v30  ;;  %8460 = vmatpush1.bf16.msra.mxu1 %v13677_v48  ;;  %v13687_v30 = vld [vmem:[#allocation51_spill] sm:$0xff]  ;;  %v13688_v48 = vld [vmem:[#allocation52_spill] sm:$0xff] }
 0x7a6   :  { %8430 = vmatprep.subr.bf16.mxu0 %v13678_v34  ;;  %8462 = vmatprep.subr.bf16.mxu1 %v13679_v44  ;;  %v13689_v34 = vld [vmem:[#allocation53_spill] sm:$0xff] }
 0x7a7   :  { %v13690_v44 = vld [vmem:[#allocation65_spill] sm:$0xff] }
 0x7a9   :  { %8432 = vmatpush1.bf16.msra.mxu0 %v13680_v53  ;;  %8464 = vmatpush1.bf16.msra.mxu1 %v13681_v11  ;;  %v13691_v53 = vld [vmem:[#allocation66_spill] sm:$0xff]  ;;  %v13724_v11 = vld [vmem:[#allocation41_spill] sm:$0xff] }
 0x7aa   :  { %8434 = vmatprep.subr.bf16.mxu0 %v13682_v49  ;;  %8466 = vmatprep.subr.bf16.mxu1 %v13683_v58  ;;  %v13692_v58 = vld [vmem:[#allocation67_spill] sm:$0xff]  ;;  %v13706_v49 = vld [vmem:[#allocation81_spill] sm:$0xff] }
 0x7ad   :  { %8436 = vmatpush1.bf16.msra.mxu0 %v13684_v1  ;;  %8468 = vmatpush1.bf16.msra.mxu1 %v13685_v46  ;;  %v13693_v1 = vld [vmem:[#allocation68_spill] sm:$0xff]  ;;  %v13694_v46 = vld [vmem:[#allocation69_spill] sm:$0xff] }
 0x7ae   :  { %8438 = vmatprep.subr.bf16.mxu0 %v13686_v25  ;;  %8470 = vmatprep.subr.bf16.mxu1 %v13687_v30  ;;  %v13695_v25 = vld [vmem:[#allocation70_spill] sm:$0xff]  ;;  %v13705_v30 = vld [vmem:[#allocation80_spill] sm:$0xff] }
 0x7b1   :  { %8440 = vmatpush1.bf16.msra.mxu0 %v13688_v48  ;;  %8472 = vmatpush1.bf16.msra.mxu1 %v13689_v34  ;;  %v13696_v34 = vld [vmem:[#allocation71_spill] sm:$0xff]  ;;  %v13699_v48 = vld [vmem:[#allocation74_spill] sm:$0xff] }
 0x7b2   :  { %8474 = vmatprep.subr.bf16.mxu0 %v13690_v44  ;;  %8506 = vmatprep.subr.bf16.mxu1 %v13691_v53  ;;  %v13697_v44 = vld [vmem:[#allocation72_spill] sm:$0xff]  ;;  %v13698_v53 = vld [vmem:[#allocation73_spill] sm:$0xff] }
 0x7b4   :  { %3229 = vmatmul.mubr.f32.vlgmr.msra.gmra.mrb[6].mxu0 %v11714_v3  ;;  %3300 = vmatmul.mubr.f32.vlgmr.msra.gmra.mrb[6].mxu1 %v11714_v3  ;;  %v13700_v3 = vld [vmem:[#allocation75_spill] sm:$0xff] }
 0x7b5   :  { %8476 = vmatpush1.bf16.msra.mxu0 %v13692_v58  ;;  %8508 = vmatpush1.bf16.msra.mxu1 %v13693_v1  ;;  %v13701_v58 = vld [vmem:[#allocation76_spill] sm:$0xff]  ;;  %v13702_v1 = vld [vmem:[#allocation77_spill] sm:$0xff] }
 0x7b6   :  { %8478 = vmatprep.subr.bf16.mxu0 %v13694_v46  ;;  %8510 = vmatprep.subr.bf16.mxu1 %v13695_v25  ;;  %v13703_v46 = vld [vmem:[#allocation78_spill] sm:$0xff]  ;;  %v13704_v25 = vld [vmem:[#allocation79_spill] sm:$0xff] }
 0x7b7   :  { %3398 = vmatprep.mubr.f32.mxu0 %v13351_v62  ;;  %3469 = vmatprep.mubr.f32.mxu1 %v13351_v62 }
 0x7b9   :  { %8480 = vmatpush1.bf16.msra.mxu0 %v13696_v34  ;;  %8512 = vmatpush1.bf16.msra.mxu1 %v13697_v44  ;;  %v13707_v34 = vld [vmem:[#allocation82_spill] sm:$0xff]  ;;  %v13708_v44 = vld [vmem:[#allocation83_spill] sm:$0xff] }
 0x7ba   :  { %8482 = vmatprep.subr.bf16.mxu0 %v13698_v53  ;;  %8514 = vmatprep.subr.bf16.mxu1 %v13699_v48  ;;  %v13709_v53 = vld [vmem:[#allocation84_spill] sm:$0xff]  ;;  %v13710_v48 = vld [vmem:[#allocation85_spill] sm:$0xff] }
 0x7bd   :  { %8484 = vmatpush1.bf16.msra.mxu0 %v13700_v3  ;;  %8516 = vmatpush1.bf16.msra.mxu1 %v13701_v58  ;;  %v13711_v3 = vld [vmem:[#allocation86_spill] sm:$0xff]  ;;  %v13712_v58 = vld [vmem:[#allocation87_spill] sm:$0xff] }
 0x7be   :  { %8486 = vmatprep.subr.bf16.mxu0 %v13702_v1  ;;  %8518 = vmatprep.subr.bf16.mxu1 %v13703_v46  ;;  %v13713_v1 = vld [vmem:[#allocation88_spill] sm:$0xff]  ;;  %v13714_v46 = vld [vmem:[#allocation89_spill] sm:$0xff] }
 0x7c1   :  { %8488 = vmatpush1.bf16.msra.mxu0 %v13704_v25  ;;  %8520 = vmatpush1.bf16.msra.mxu1 %v13705_v30  ;;  %v13715_v25 = vld [vmem:[#allocation90_spill] sm:$0xff]  ;;  %v13716_v30 = vld [vmem:[#allocation91_spill] sm:$0xff] }
 0x7c2   :  { %8490 = vmatprep.subr.bf16.mxu0 %v13706_v49  ;;  %8522 = vmatprep.subr.bf16.mxu1 %v13707_v34  ;;  %v13717_v49 = vld [vmem:[#allocation92_spill] sm:$0xff]  ;;  %v13718_v34 = vld [vmem:[#allocation93_spill] sm:$0xff] }
 0x7c5   :  { %8492 = vmatpush1.bf16.msra.mxu0 %v13708_v44  ;;  %8524 = vmatpush1.bf16.msra.mxu1 %v13709_v53  ;;  %v13719_v44 = vld [vmem:[#allocation94_spill] sm:$0xff]  ;;  %v13720_v53 = vld [vmem:[#allocation95_spill] sm:$0xff] }
 0x7c6   :  { %8494 = vmatprep.subr.bf16.mxu0 %v13710_v48  ;;  %8526 = vmatprep.subr.bf16.mxu1 %v13711_v3  ;;  %v13721_v48 = vld [vmem:[#allocation96_spill] sm:$0xff]  ;;  %v13722_v3 = vld [vmem:[#allocation97_spill] sm:$0xff] }
 0x7c9   :  { %8496 = vmatpush1.bf16.msra.mxu0 %v13712_v58  ;;  %8528 = vmatpush1.bf16.msra.mxu1 %v13713_v1  ;;  %v13723_v58 = vld [vmem:[#allocation98_spill] sm:$0xff] }
 0x7ca   :  { %8498 = vmatprep.subr.bf16.mxu0 %v13714_v46  ;;  %8530 = vmatprep.subr.bf16.mxu1 %v13715_v25 }
 0x7cd   :  { %8500 = vmatpush1.bf16.msra.mxu0 %v13716_v30  ;;  %8532 = vmatpush1.bf16.msra.mxu1 %v13717_v49  ;;  %v13725_v49 = vld [vmem:[#allocation57_spill] sm:$0xff] }
 0x7ce   :  { %8502 = vmatprep.subr.bf16.mxu0 %v13718_v34  ;;  %8534 = vmatprep.subr.bf16.mxu1 %v13719_v44 }
 0x7d1   :  { %8504 = vmatpush1.bf16.msra.mxu0 %v13720_v53  ;;  %8536 = vmatpush1.bf16.msra.mxu1 %v13721_v48  ;;  %v13726_v53 = vld [vmem:[#allocation55_spill] sm:$0xff] }
 0x7d2   :  { %8538 = vmatprep.subr.bf16.mxu0 %v13722_v3  ;;  %8570 = vmatprep.subr.bf16.mxu1 %v13723_v58 }
 0x867   :  { %v3060_v1 = vpop.f32.mrb[26].mxu0  ;;  %v3131_v46 = vpop.f32.mrb[26].mxu1 }
 0x868   :  { %v3136_v25 = vadd.f32 %v3060_v1, %v13724_v11  ;;  %v3062_v50 = vpop.f32.mrb[27].mxu0  ;;  %v11908_v30 = vpop.f32.mrb[27].mxu1  ;;  %v3138_v44 = vadd.f32 %v3131_v46, %v13726_v53  ;;  %v13727_v53 = vld [vmem:[#allocation61_spill] sm:$0xff] }
 0x869   :  { %v3137_v45 = vadd.f32 %v3062_v50, %v13725_v49 }
 0x86a   :  { %v7298_v34 = vmul.f32 -1.442695, %v3136_v25 }
 0x86b   :  { %v7299_v42 = vmul.f32 -1.442695, %v3137_v45 }
 0x86c   :  { %10299 = vpow2.f32 %v7298_v34 }
 0x86d   :  { %10301 = vpow2.f32 %v7299_v42 }
 0x86e   :  { %10303 = vtanh.f32 %v3138_v44 }
 0x876   :  { %v10300_v48 = vpop.eup %10299 }
 0x877   :  { %v10302_v39 = vpop.eup %10301  ;;  %v3143_v3 = vadd.f32 1.0, %v10300_v48 }
 0x878   :  { %v3149_v58 = vadd.f32 1.0, %v10302_v39  ;;  %v10304_v36 = vpop.eup %10303 }
 0x879   :  { %10305 = vrcp.f32 %v3143_v3 }
 0x87a   :  { %10307 = vrcp.f32 %v3149_v58 }
 0x883   :  { %v10306_v1 = vpop.eup %10305 }
 0x884   :  { %v10308_v11 = vpop.eup %10307  ;;  %v3160_v32 = vmul.f32 %v10306_v1, %v10304_v36 }
 0x885   :  { %v3159_v29 = vmul.f32 %v10308_v11, %v11704_v18 }
 0x887   :  { %v11913_v50 = vadd.f32 %v3160_v32, %v3159_v29  ;;  %v3230_v45 = vpop.f32.mrb[6].mxu0  ;;  %v3301_v25 = vpop.f32.mrb[6].mxu1 }
 0x888   :  { %v10039_v42 = vadd.f32 %v3230_v45, %v13594_v8  ;;  %v3232_v46 = vpop.f32.mrb[7].mxu0  ;;  %v3303_v34 = vpop.f32.mrb[7].mxu1  ;;  %v10055_v36 = vadd.f32 %v3301_v25, %v13463_v63 }
 0x889   :  { %v10040_v48 = vadd.f32 %v3232_v46, %v13727_v53  ;;  %v10056_v58 = vadd.f32 %v3303_v34, %v13462_v2 }
 0x88a   :  { %v7301_v44 = vmul.f32 -1.442695, %v10039_v42 }
 0x88b   :  { %v7302_v39 = vmul.f32 -1.442695, %v10040_v48  ;;  %v7303_v3 = vmul.f32 -1.442695, %v10056_v58 }
 0x88c   :  { %10309 = vpow2.f32 %v7301_v44 }
 0x88d   :  { %10311 = vpow2.f32 %v7302_v39  ;;  %v13728_v39 = vld [vmem:[#allocation63_spill] sm:$0xff] }
 0x88e   :  { %10313 = vpow2.f32 %v7303_v3 }
 0x88f   :  { %10315 = vtanh.f32 %v10055_v36  ;;  %v13729_v36 = vld [vmem:[#allocation99_spill] sm:$0xff] }
 0x896   :  { %v10310_v18 = vpop.eup %10309 }
 0x897   :  { %v10312_v29 = vpop.eup %10311  ;;  %v3313_v32 = vadd.f32 1.0, %v10310_v18  ;;  %v13730_v18 = vld [vmem:[#allocation100_spill] sm:$0xff] }
 0x898   :  { %v3319_v11 = vadd.f32 1.0, %v10312_v29  ;;  %v10314_v1 = vpop.eup %10313  ;;  %v13731_v29 = vld [vmem:[#allocation101_spill] sm:$0xff] }
 0x899   :  { %10317 = vrcp.f32 %v3313_v32  ;;  %v10316_v45 = vpop.eup %10315  ;;  %v3326_v44 = vadd.f32 1.0, %v10314_v1  ;;  %v13732_v32 = vld [vmem:[#allocation102_spill] sm:$0xff]  ;;  %v13735_v1 = vld [vmem:[#allocation105_spill] sm:$0xff] }
 0x89a   :  { %10319 = vrcp.f32 %v3319_v11  ;;  %v13734_v11 = vld [vmem:[#allocation104_spill] sm:$0xff] }
 0x89b   :  { %10321 = vrcp.f32 %v3326_v44  ;;  %v13740_v44 = vld [vmem:[#allocation110_spill] sm:$0xff] }
 0x8a3   :  { %v10318_v46 = vpop.eup %10317 }
 0x8a4   :  { %v10320_v42 = vpop.eup %10319  ;;  %v3330_v48 = vmul.f32 %v10318_v46, %v10316_v45  ;;  %v13736_v45 = vld [vmem:[#allocation106_spill] sm:$0xff]  ;;  %v13737_v46 = vld [vmem:[#allocation107_spill] sm:$0xff] }
 0x8a5   :  { %v3329_v53 = vmul.f32 %v10320_v42, %v13728_v39  ;;  %v10322_v25 = vpop.eup %10321  ;;  %v13738_v42 = vld [vmem:[#allocation108_spill] sm:$0xff]  ;;  %v13741_v39 = vld [vmem:[#allocation111_spill] sm:$0xff] }
 0x8a7   :  { %v11920_v34 = vadd.f32 %v3330_v48, %v3329_v53  ;;  %v13733_v53 = vld [vmem:[#allocation103_spill] sm:$0xff]  ;;  %v13739_v48 = vld [vmem:[#allocation109_spill] sm:$0xff] }
 0x8a9   :  { %10323 = vtanh.f32 %v11920_v34 }
 0x8b3   :  { %v10324_v58 = vpop.eup %10323 }
 0x8b4   :  { %v11923_v3 = vmul.f32 %v10324_v58, %v10322_v25  ;;  %v13742_v25 = vld [vmem:[#allocation112_spill] sm:$0xff]  ;;  %v13743_v58 = vld [vmem:[#allocation113_spill] sm:$0xff] }
 0x8b6   :  { %3399 = vmatmul.mubr.f32.vlgmr.msra.gmra.mrb[28].mxu0 %v11923_v3  ;;  %3470 = vmatmul.mubr.f32.vlgmr.msra.gmra.mrb[28].mxu1 %v11923_v3 }
 0x8b7   :  { %8540 = vmatpush1.bf16.msra.mxu0 %v13729_v36  ;;  %8572 = vmatpush1.bf16.msra.mxu1 %v13730_v18 }
 0x8b8   :  { %8542 = vmatprep.subr.bf16.mxu0 %v13731_v29  ;;  %8574 = vmatprep.subr.bf16.mxu1 %v13732_v32 }
 0x8b9   :  { %3540 = vmatprep.mubr.f32.mxu0 %v13351_v62  ;;  %3611 = vmatprep.mubr.f32.mxu1 %v13351_v62 }
 0x8bb   :  { %8544 = vmatpush1.bf16.msra.mxu0 %v13733_v53  ;;  %8576 = vmatpush1.bf16.msra.mxu1 %v13734_v11  ;;  %v13744_v53 = vld [vmem:[#allocation114_spill] sm:$0xff]  ;;  %v13745_v11 = vld [vmem:[#allocation115_spill] sm:$0xff] }
 0x8bc   :  { %8546 = vmatprep.subr.bf16.mxu0 %v13735_v1  ;;  %8578 = vmatprep.subr.bf16.mxu1 %v13736_v45  ;;  %v13746_v1 = vld [vmem:[#allocation116_spill] sm:$0xff]  ;;  %v13747_v45 = vld [vmem:[#allocation117_spill] sm:$0xff] }
 0x8bf   :  { %8548 = vmatpush1.bf16.msra.mxu0 %v13737_v46  ;;  %8580 = vmatpush1.bf16.msra.mxu1 %v13738_v42  ;;  %v13748_v46 = vld [vmem:[#allocation118_spill] sm:$0xff]  ;;  %v13749_v42 = vld [vmem:[#allocation119_spill] sm:$0xff] }
 0x8c0   :  { %8550 = vmatprep.subr.bf16.mxu0 %v13739_v48  ;;  %8582 = vmatprep.subr.bf16.mxu1 %v13740_v44  ;;  %v13750_v48 = vld [vmem:[#allocation120_spill] sm:$0xff]  ;;  %v13751_v44 = vld [vmem:[#allocation121_spill] sm:$0xff] }
 0x8c3   :  { %8552 = vmatpush1.bf16.msra.mxu0 %v13741_v39  ;;  %8584 = vmatpush1.bf16.msra.mxu1 %v13742_v25  ;;  %v13752_v39 = vld [vmem:[#allocation122_spill] sm:$0xff]  ;;  %v13753_v25 = vld [vmem:[#allocation123_spill] sm:$0xff] }
 0x8c4   :  { %8554 = vmatprep.subr.bf16.mxu0 %v13743_v58  ;;  %8586 = vmatprep.subr.bf16.mxu1 %v13744_v53  ;;  %v13754_v58 = vld [vmem:[#allocation124_spill] sm:$0xff]  ;;  %v13755_v53 = vld [vmem:[#allocation125_spill] sm:$0xff] }
 0x8c7   :  { %8556 = vmatpush1.bf16.msra.mxu0 %v13745_v11  ;;  %8588 = vmatpush1.bf16.msra.mxu1 %v13746_v1  ;;  %v13756_v11 = vld [vmem:[#allocation126_spill] sm:$0xff]  ;;  %v13757_v1 = vld [vmem:[#allocation127_spill] sm:$0xff] }
 0x8c8   :  { %8558 = vmatprep.subr.bf16.mxu0 %v13747_v45  ;;  %8590 = vmatprep.subr.bf16.mxu1 %v13748_v46  ;;  %v13758_v45 = vld [vmem:[#allocation128_spill] sm:$0xff]  ;;  %v13759_v46 = vld [vmem:[#allocation129_spill] sm:$0xff] }
 0x8cb   :  { %8560 = vmatpush1.bf16.msra.mxu0 %v13749_v42  ;;  %8592 = vmatpush1.bf16.msra.mxu1 %v13750_v48  ;;  %v13760_v42 = vld [vmem:[#allocation130_spill] sm:$0xff]  ;;  %v13793_v48 = vld [vmem:[#allocation40_spill] sm:$0xff] }
 0x8cc   :  { %8562 = vmatprep.subr.bf16.mxu0 %v13751_v44  ;;  %8594 = vmatprep.subr.bf16.mxu1 %v13752_v39  ;;  %v13761_v39 = vld [vmem:[#allocation131_spill] sm:$0xff]  ;;  %v13775_v44 = vld [vmem:[#allocation145_spill] sm:$0xff] }
 0x8cf   :  { %8564 = vmatpush1.bf16.msra.mxu0 %v13753_v25  ;;  %8596 = vmatpush1.bf16.msra.mxu1 %v13754_v58  ;;  %v13762_v25 = vld [vmem:[#allocation132_spill] sm:$0xff]  ;;  %v13763_v58 = vld [vmem:[#allocation133_spill] sm:$0xff] }
 0x8d0   :  { %8566 = vmatprep.subr.bf16.mxu0 %v13755_v53  ;;  %8598 = vmatprep.subr.bf16.mxu1 %v13756_v11  ;;  %v13764_v53 = vld [vmem:[#allocation134_spill] sm:$0xff]  ;;  %v13774_v11 = vld [vmem:[#allocation144_spill] sm:$0xff] }
 0x8d3   :  { %8568 = vmatpush1.bf16.msra.mxu0 %v13757_v1  ;;  %8600 = vmatpush1.bf16.msra.mxu1 %v13758_v45  ;;  %v13765_v45 = vld [vmem:[#allocation135_spill] sm:$0xff]  ;;  %v13768_v1 = vld [vmem:[#allocation138_spill] sm:$0xff] }
 0x8d4   :  { %8602 = vmatprep.subr.bf16.mxu0 %v13759_v46  ;;  %8634 = vmatprep.subr.bf16.mxu1 %v13760_v42  ;;  %v13766_v46 = vld [vmem:[#allocation136_spill] sm:$0xff]  ;;  %v13767_v42 = vld [vmem:[#allocation137_spill] sm:$0xff] }
 0x8d6   :  { %3541 = vmatmul.mubr.f32.vlgmr.msra.gmra.mrb[28].mxu0 %v11798_v40  ;;  %3612 = vmatmul.mubr.f32.vlgmr.msra.gmra.mrb[28].mxu1 %v11798_v40  ;;  %v13769_v40 = vld [vmem:[#allocation139_spill] sm:$0xff] }
 0x8d7   :  { %8604 = vmatpush1.bf16.msra.mxu0 %v13761_v39  ;;  %8636 = vmatpush1.bf16.msra.mxu1 %v13762_v25  ;;  %v13770_v39 = vld [vmem:[#allocation140_spill] sm:$0xff]  ;;  %v13771_v25 = vld [vmem:[#allocation141_spill] sm:$0xff] }
 0x8d8   :  { %8606 = vmatprep.subr.bf16.mxu0 %v13763_v58  ;;  %8638 = vmatprep.subr.bf16.mxu1 %v13764_v53  ;;  %v13772_v58 = vld [vmem:[#allocation142_spill] sm:$0xff]  ;;  %v13773_v53 = vld [vmem:[#allocation143_spill] sm:$0xff] }
 0x8d9   :  { %3710 = vmatprep.mubr.f32.mxu0 %v13351_v62  ;;  %3781 = vmatprep.mubr.f32.mxu1 %v13351_v62 }
 0x8db   :  { %8608 = vmatpush1.bf16.msra.mxu0 %v13765_v45  ;;  %8640 = vmatpush1.bf16.msra.mxu1 %v13766_v46  ;;  %v13776_v45 = vld [vmem:[#allocation146_spill] sm:$0xff]  ;;  %v13777_v46 = vld [vmem:[#allocation147_spill] sm:$0xff] }
 0x8dc   :  { %8610 = vmatprep.subr.bf16.mxu0 %v13767_v42  ;;  %8642 = vmatprep.subr.bf16.mxu1 %v13768_v1  ;;  %v13778_v42 = vld [vmem:[#allocation148_spill] sm:$0xff]  ;;  %v13779_v1 = vld [vmem:[#allocation149_spill] sm:$0xff] }
 0x8df   :  { %8612 = vmatpush1.bf16.msra.mxu0 %v13769_v40  ;;  %8644 = vmatpush1.bf16.msra.mxu1 %v13770_v39  ;;  %v13780_v40 = vld [vmem:[#allocation150_spill] sm:$0xff]  ;;  %v13781_v39 = vld [vmem:[#allocation151_spill] sm:$0xff] }
 0x8e0   :  { %8614 = vmatprep.subr.bf16.mxu0 %v13771_v25  ;;  %8646 = vmatprep.subr.bf16.mxu1 %v13772_v58  ;;  %v13782_v25 = vld [vmem:[#allocation152_spill] sm:$0xff]  ;;  %v13783_v58 = vld [vmem:[#allocation153_spill] sm:$0xff] }
 0x8e3   :  { %8616 = vmatpush1.bf16.msra.mxu0 %v13773_v53  ;;  %8648 = vmatpush1.bf16.msra.mxu1 %v13774_v11  ;;  %v13784_v53 = vld [vmem:[#allocation154_spill] sm:$0xff]  ;;  %v13785_v11 = vld [vmem:[#allocation155_spill] sm:$0xff] }
 0x8e4   :  { %8618 = vmatprep.subr.bf16.mxu0 %v13775_v44  ;;  %8650 = vmatprep.subr.bf16.mxu1 %v13776_v45  ;;  %v13786_v44 = vld [vmem:[#allocation156_spill] sm:$0xff]  ;;  %v13787_v45 = vld [vmem:[#allocation157_spill] sm:$0xff] }
 0x8e7   :  { %8620 = vmatpush1.bf16.msra.mxu0 %v13777_v46  ;;  %8652 = vmatpush1.bf16.msra.mxu1 %v13778_v42  ;;  %v13788_v46 = vld [vmem:[#allocation158_spill] sm:$0xff]  ;;  %v13789_v42 = vld [vmem:[#allocation159_spill] sm:$0xff] }
 0x8e8   :  { %8622 = vmatprep.subr.bf16.mxu0 %v13779_v1  ;;  %8654 = vmatprep.subr.bf16.mxu1 %v13780_v40  ;;  %v13790_v1 = vld [vmem:[#allocation160_spill] sm:$0xff]  ;;  %v13791_v40 = vld [vmem:[#allocation161_spill] sm:$0xff] }
 0x8eb   :  { %8624 = vmatpush1.bf16.msra.mxu0 %v13781_v39  ;;  %8656 = vmatpush1.bf16.msra.mxu1 %v13782_v25  ;;  %v13792_v39 = vld [vmem:[#allocation162_spill] sm:$0xff] }
 0x8ec   :  { %8626 = vmatprep.subr.bf16.mxu0 %v13783_v58  ;;  %8658 = vmatprep.subr.bf16.mxu1 %v13784_v53 }
 0x8ef   :  { %8628 = vmatpush1.bf16.msra.mxu0 %v13785_v11  ;;  %8660 = vmatpush1.bf16.msra.mxu1 %v13786_v44 }
 0x8f0   :  { %8630 = vmatprep.subr.bf16.mxu0 %v13787_v45  ;;  %8662 = vmatprep.subr.bf16.mxu1 %v13788_v46 }
 0x8f3   :  { %8632 = vmatpush1.bf16.msra.mxu0 %v13789_v42  ;;  %8664 = vmatpush1.bf16.msra.mxu1 %v13790_v1 }
 0x8f4   :  { %8666 = vmatprep.subr.bf16.mxu0 %v13791_v40  ;;  %8698 = vmatprep.subr.bf16.mxu1 %v13792_v39 }
 0x9a9   :  { %v3542_v25 = vpop.f32.mrb[28].mxu0  ;;  %v3613_v58 = vpop.f32.mrb[28].mxu1 }
 0x9aa   :  { %v3618_v53 = vadd.f32 %v3542_v25, %v13793_v48  ;;  %v3544_v32 = vpop.f32.mrb[29].mxu0  ;;  %v3615_v11 = vpop.f32.mrb[29].mxu1  ;;  %v3620_v1 = vadd.f32 %v3613_v58, %v13531_v24 }
 0x9ab   :  { %v3619_v44 = vadd.f32 %v3544_v32, %v13663_v56  ;;  %v3621_v42 = vadd.f32 %v3615_v11, %v13530_v57 }
 0x9ac   :  { %v7304_v29 = vmul.f32 -1.442695, %v3618_v53 }
 0x9ad   :  { %v7305_v45 = vmul.f32 -1.442695, %v3619_v44  ;;  %v7306_v46 = vmul.f32 -1.442695, %v3621_v42 }
 0x9ae   :  { %10325 = vpow2.f32 %v7304_v29 }
 0x9af   :  { %10327 = vpow2.f32 %v7305_v45 }
 0x9b0   :  { %10329 = vpow2.f32 %v7306_v46  ;;  %v3139_v46 = vadd.f32 %v11908_v30, %v13533_v43 }
 0x9b1   :  { %10331 = vtanh.f32 %v3620_v1 }
 0x9b2   :  { %v7300_v42 = vmul.f32 -1.442695, %v3139_v46  ;;  %v13801_v46 = vld [vmem:[#allocation31_spill] sm:$0xff] }
 0x9b8   :  { %v10326_v40 = vpop.eup %10325 }
 0x9b9   :  { %v10328_v18 = vpop.eup %10327  ;;  %v3625_v39 = vadd.f32 1.0, %v10326_v40  ;;  %v13794_v40 = vld [vmem:[#allocation24_spill] sm:$0xff] }
 0x9ba   :  { %v3631_v36 = vadd.f32 1.0, %v10328_v18  ;;  %v10330_v25 = vpop.eup %10329 }
 0x9bb   :  { %10333 = vrcp.f32 %v3625_v39  ;;  %v10332_v48 = vpop.eup %10331  ;;  %v3638_v29 = vadd.f32 1.0, %v10330_v25  ;;  %v13795_v25 = vld [vmem:[#allocation25_spill] sm:$0xff] }
 0x9bc   :  { %10335 = vrcp.f32 %v3631_v36 }
 0x9bd   :  { %10337 = vrcp.f32 %v3638_v29  ;;  %v13799_v29 = vld [vmem:[#allocation29_spill] sm:$0xff] }
 0x9c5   :  { %v10334_v32 = vpop.eup %10333 }
 0x9c6   :  { %v10336_v53 = vpop.eup %10335  ;;  %v3642_v44 = vmul.f32 %v10334_v32, %v10332_v48  ;;  %v13796_v32 = vld [vmem:[#allocation26_spill] sm:$0xff] }
 0x9c7   :  { %v3641_v45 = vmul.f32 %v10336_v53, %v11793_v5  ;;  %v10338_v1 = vpop.eup %10337  ;;  %v13797_v53 = vld [vmem:[#allocation27_spill] sm:$0xff] }
 0x9c9   :  { %v12002_v11 = vadd.f32 %v3642_v44, %v3641_v45  ;;  %v13798_v44 = vld [vmem:[#allocation28_spill] sm:$0xff]  ;;  %v13800_v45 = vld [vmem:[#allocation30_spill] sm:$0xff] }
 0x9cb   :  { %10339 = vtanh.f32 %v12002_v11 }
 0x9cc   :  { %10341 = vpow2.f32 %v7300_v42  ;;  %v13804_v42 = vld [vmem:[#allocation34_spill] sm:$0xff] }
 0x9cd   :  { %10343 = vtanh.f32 %v11913_v50 }
 0x9d5   :  { %v10340_v18 = vpop.eup %10339 }
 0x9d6   :  { %v12007_v36 = vmul.f32 %v10340_v18, %v10338_v1  ;;  %v10342_v5 = vpop.eup %10341  ;;  %v13802_v1 = vld [vmem:[#allocation32_spill] sm:$0xff]  ;;  %v13803_v18 = vld [vmem:[#allocation33_spill] sm:$0xff] }
 0x9d7   :  { %v3156_v30 = vadd.f32 1.0, %v10342_v5  ;;  %v10344_v48 = vpop.eup %10343  ;;  %v13805_v5 = vld [vmem:[#allocation35_spill] sm:$0xff] }
 0x9d8   :  { %3711 = vmatmul.mubr.f32.vlgmr.msra.gmra.mrb[30].mxu0 %v12007_v36  ;;  %3782 = vmatmul.mubr.f32.vlgmr.msra.gmra.mrb[30].mxu1 %v12007_v36 }
 0x9d9   :  { %8668 = vmatpush1.bf16.msra.mxu0 %v13534_v37  ;;  %8700 = vmatpush1.bf16.msra.mxu1 %v13535_v54  ;;  %10345 = vrcp.f32 %v3156_v30  ;;  %v13806_v30 = vld [vmem:[#allocation36_spill] sm:$0xff] }
 0x9da   :  { %8670 = vmatprep.subr.bf16.mxu0 %v13536_v47  ;;  %8702 = vmatprep.subr.bf16.mxu1 %v13537_v55 }
 0x9db   :  { %3852 = vmatprep.mubr.f32.mxu0 %v13351_v62  ;;  %3923 = vmatprep.mubr.f32.mxu1 %v13351_v62 }
 0x9dd   :  { %8672 = vmatpush1.bf16.msra.mxu0 %v13664_v12  ;;  %8704 = vmatpush1.bf16.msra.mxu1 %v13665_v10 }
 0x9de   :  { %8674 = vmatprep.subr.bf16.mxu0 %v13666_v22  ;;  %8706 = vmatprep.subr.bf16.mxu1 %v13667_v4 }
 0x9e1   :  { %8676 = vmatpush1.bf16.msra.mxu0 %v13668_v52  ;;  %8708 = vmatpush1.bf16.msra.mxu1 %v13543_v9 }
 0x9e2   :  { %8678 = vmatprep.subr.bf16.mxu0 %v13544_v33  ;;  %8710 = vmatprep.subr.bf16.mxu1 %v13545_v31 }
 0x9e3   :  { %v10346_v39 = vpop.eup %10345 }
 0x9e4   :  { %v3163_v58 = vmul.f32 %v10346_v39, %v10344_v48  ;;  %v13807_v48 = vld [vmem:[#allocation37_spill] sm:$0xff]  ;;  %v13808_v39 = vld [vmem:[#allocation38_spill] sm:$0xff] }
 0x9e5   :  { %8680 = vmatpush1.bf16.msra.mxu0 %v13546_v13  ;;  %8712 = vmatpush1.bf16.msra.mxu1 %v13547_v41 }
 0x9e6   :  { %8682 = vmatprep.subr.bf16.mxu0 %v13548_v15  ;;  %8714 = vmatprep.subr.bf16.mxu1 %v13549_v19 }
 0x9e9   :  { %8684 = vmatpush1.bf16.msra.mxu0 %v13550_v7  ;;  %8716 = vmatpush1.bf16.msra.mxu1 %v13551_v60 }
 0x9ea   :  { %8686 = vmatprep.subr.bf16.mxu0 %v13669_v59  ;;  %8718 = vmatprep.subr.bf16.mxu1 %v11380_v6 }
 0x9ed   :  { %8688 = vmatpush1.bf16.msra.mxu0 %v11384_v0  ;;  %8720 = vmatpush1.bf16.msra.mxu1 %v11386_v21 }
 0x9ee   :  { %8690 = vmatprep.subr.bf16.mxu0 %v11390_v28  ;;  %8722 = vmatprep.subr.bf16.mxu1 %v11392_v38 }
 0x9f1   :  { %8692 = vmatpush1.bf16.msra.mxu0 %v11396_v35  ;;  %8724 = vmatpush1.bf16.msra.mxu1 %v11398_v16 }
 0x9f2   :  { %8694 = vmatprep.subr.bf16.mxu0 %v11402_v61  ;;  %8726 = vmatprep.subr.bf16.mxu1 %v11404_v27 }
 0x9f5   :  { %8696 = vmatpush1.bf16.msra.mxu0 %v11408_v20  ;;  %8728 = vmatpush1.bf16.msra.mxu1 %v11410_v51 }
 0x9f6   :  { %8730 = vmatprep.subr.bf16.mxu0 %v10766_v14  ;;  %8762 = vmatprep.subr.bf16.mxu1 %v10768_v17 }
 0x9f8   :  { %3853 = vmatmul.mubr.f32.vlgmr.msra.gmra.mrb[30].mxu0 %v3163_v58  ;;  %3924 = vmatmul.mubr.f32.vlgmr.msra.gmra.mrb[30].mxu1 %v3163_v58  ;;  %v13809_v58 = vld [vmem:[#allocation39_spill] sm:$0xff] }
 0x9f9   :  { %8732 = vmatpush1.bf16.msra.mxu0 %v10773_v23  ;;  %8764 = vmatpush1.bf16.msra.mxu1 %v10776_v26 }
 0x9fa   :  { %8734 = vmatprep.subr.bf16.mxu0 %v13794_v40  ;;  %8766 = vmatprep.subr.bf16.mxu1 %v13795_v25 }
 0x9fb   :  { %4022 = vmatprep.mubr.f32.mxu0 %v13351_v62  ;;  %4093 = vmatprep.mubr.f32.mxu1 %v13351_v62 }
 0x9fd   :  { %8736 = vmatpush1.bf16.msra.mxu0 %v13796_v32  ;;  %8768 = vmatpush1.bf16.msra.mxu1 %v13797_v53 }
 0x9fe   :  { %8738 = vmatprep.subr.bf16.mxu0 %v13798_v44  ;;  %8770 = vmatprep.subr.bf16.mxu1 %v13799_v29  ;;  %v13810_v29 = vld [vmem:[#allocation42_spill] sm:$0xff] }
 0xa01   :  { %8740 = vmatpush1.bf16.msra.mxu0 %v13800_v45  ;;  %8772 = vmatpush1.bf16.msra.mxu1 %v13801_v46  ;;  %v13811_v45 = vld [vmem:[#allocation43_spill] sm:$0xff]  ;;  %v13812_v46 = vld [vmem:[#allocation44_spill] sm:$0xff] }
 0xa02   :  { %8742 = vmatprep.subr.bf16.mxu0 %v13802_v1  ;;  %8774 = vmatprep.subr.bf16.mxu1 %v13803_v18  ;;  %v13813_v1 = vld [vmem:[#allocation45_spill] sm:$0xff]  ;;  %v13814_v18 = vld [vmem:[#allocation46_spill] sm:$0xff] }
 0xa05   :  { %8744 = vmatpush1.bf16.msra.mxu0 %v13804_v42  ;;  %8776 = vmatpush1.bf16.msra.mxu1 %v13805_v5  ;;  %v13815_v42 = vld [vmem:[#allocation47_spill] sm:$0xff]  ;;  %v13816_v5 = vld [vmem:[#allocation48_spill] sm:$0xff] }
 0xa06   :  { %8746 = vmatprep.subr.bf16.mxu0 %v13806_v30  ;;  %8778 = vmatprep.subr.bf16.mxu1 %v13807_v48  ;;  %v13817_v30 = vld [vmem:[#allocation49_spill] sm:$0xff]  ;;  %v13818_v48 = vld [vmem:[#allocation50_spill] sm:$0xff] }
 0xa09   :  { %8748 = vmatpush1.bf16.msra.mxu0 %v13808_v39  ;;  %8780 = vmatpush1.bf16.msra.mxu1 %v13809_v58  ;;  %v13819_v39 = vld [vmem:[#allocation51_spill] sm:$0xff]  ;;  %v13820_v58 = vld [vmem:[#allocation52_spill] sm:$0xff] }
 0xa0a   :  { %8750 = vmatprep.subr.bf16.mxu0 %v13810_v29  ;;  %8782 = vmatprep.subr.bf16.mxu1 %v13811_v45  ;;  %v13821_v29 = vld [vmem:[#allocation53_spill] sm:$0xff] }
 0xa0b   :  { %v13822_v45 = vld [vmem:[#allocation65_spill] sm:$0xff] }
 0xa0d   :  { %8752 = vmatpush1.bf16.msra.mxu0 %v13812_v46  ;;  %8784 = vmatpush1.bf16.msra.mxu1 %v13813_v1  ;;  %v13823_v46 = vld [vmem:[#allocation66_spill] sm:$0xff]  ;;  %v13856_v1 = vld [vmem:[#allocation41_spill] sm:$0xff] }
 0xa0e   :  { %8754 = vmatprep.subr.bf16.mxu0 %v13814_v18  ;;  %8786 = vmatprep.subr.bf16.mxu1 %v13815_v42  ;;  %v13824_v42 = vld [vmem:[#allocation67_spill] sm:$0xff]  ;;  %v13838_v18 = vld [vmem:[#allocation81_spill] sm:$0xff] }
 0xa11   :  { %8756 = vmatpush1.bf16.msra.mxu0 %v13816_v5  ;;  %8788 = vmatpush1.bf16.msra.mxu1 %v13817_v30  ;;  %v13825_v5 = vld [vmem:[#allocation68_spill] sm:$0xff]  ;;  %v13826_v30 = vld [vmem:[#allocation69_spill] sm:$0xff] }
 0xa12   :  { %8758 = vmatprep.subr.bf16.mxu0 %v13818_v48  ;;  %8790 = vmatprep.subr.bf16.mxu1 %v13819_v39  ;;  %v13827_v48 = vld [vmem:[#allocation70_spill] sm:$0xff]  ;;  %v13837_v39 = vld [vmem:[#allocation80_spill] sm:$0xff] }
 0xa15   :  { %8760 = vmatpush1.bf16.msra.mxu0 %v13820_v58  ;;  %8792 = vmatpush1.bf16.msra.mxu1 %v13821_v29  ;;  %v13828_v29 = vld [vmem:[#allocation71_spill] sm:$0xff]  ;;  %v13831_v58 = vld [vmem:[#allocation74_spill] sm:$0xff] }
 0xa16   :  { %8794 = vmatprep.subr.bf16.mxu0 %v13822_v45  ;;  %8826 = vmatprep.subr.bf16.mxu1 %v13823_v46  ;;  %v13829_v45 = vld [vmem:[#allocation72_spill] sm:$0xff]  ;;  %v13830_v46 = vld [vmem:[#allocation73_spill] sm:$0xff] }
 0xa18   :  { %4023 = vmatmul.mubr.f32.vlgmr.msra.gmra.mrb[8].mxu0 %v11923_v3  ;;  %4094 = vmatmul.mubr.f32.vlgmr.msra.gmra.mrb[8].mxu1 %v11923_v3  ;;  %v13832_v3 = vld [vmem:[#allocation75_spill] sm:$0xff] }
 0xa19   :  { %8796 = vmatpush1.bf16.msra.mxu0 %v13824_v42  ;;  %8828 = vmatpush1.bf16.msra.mxu1 %v13825_v5  ;;  %v13833_v42 = vld [vmem:[#allocation76_spill] sm:$0xff]  ;;  %v13834_v5 = vld [vmem:[#allocation77_spill] sm:$0xff] }
 0xa1a   :  { %8798 = vmatprep.subr.bf16.mxu0 %v13826_v30  ;;  %8830 = vmatprep.subr.bf16.mxu1 %v13827_v48  ;;  %v13835_v30 = vld [vmem:[#allocation78_spill] sm:$0xff]  ;;  %v13836_v48 = vld [vmem:[#allocation79_spill] sm:$0xff] }
 0xa1b   :  { %4192 = vmatprep.mubr.f32.mxu0 %v13351_v62  ;;  %4263 = vmatprep.mubr.f32.mxu1 %v13351_v62 }
 0xa1d   :  { %8800 = vmatpush1.bf16.msra.mxu0 %v13828_v29  ;;  %8832 = vmatpush1.bf16.msra.mxu1 %v13829_v45  ;;  %v13839_v29 = vld [vmem:[#allocation82_spill] sm:$0xff]  ;;  %v13840_v45 = vld [vmem:[#allocation83_spill] sm:$0xff] }
 0xa1e   :  { %8802 = vmatprep.subr.bf16.mxu0 %v13830_v46  ;;  %8834 = vmatprep.subr.bf16.mxu1 %v13831_v58  ;;  %v13841_v46 = vld [vmem:[#allocation84_spill] sm:$0xff]  ;;  %v13842_v58 = vld [vmem:[#allocation85_spill] sm:$0xff] }
 0xa21   :  { %8804 = vmatpush1.bf16.msra.mxu0 %v13832_v3  ;;  %8836 = vmatpush1.bf16.msra.mxu1 %v13833_v42  ;;  %v13843_v3 = vld [vmem:[#allocation86_spill] sm:$0xff]  ;;  %v13844_v42 = vld [vmem:[#allocation87_spill] sm:$0xff] }
 0xa22   :  { %8806 = vmatprep.subr.bf16.mxu0 %v13834_v5  ;;  %8838 = vmatprep.subr.bf16.mxu1 %v13835_v30  ;;  %v13845_v5 = vld [vmem:[#allocation88_spill] sm:$0xff]  ;;  %v13846_v30 = vld [vmem:[#allocation89_spill] sm:$0xff] }
 0xa25   :  { %8808 = vmatpush1.bf16.msra.mxu0 %v13836_v48  ;;  %8840 = vmatpush1.bf16.msra.mxu1 %v13837_v39  ;;  %v13847_v48 = vld [vmem:[#allocation90_spill] sm:$0xff]  ;;  %v13848_v39 = vld [vmem:[#allocation91_spill] sm:$0xff] }
 0xa26   :  { %8810 = vmatprep.subr.bf16.mxu0 %v13838_v18  ;;  %8842 = vmatprep.subr.bf16.mxu1 %v13839_v29  ;;  %v13849_v18 = vld [vmem:[#allocation92_spill] sm:$0xff]  ;;  %v13850_v29 = vld [vmem:[#allocation93_spill] sm:$0xff] }
 0xa29   :  { %8812 = vmatpush1.bf16.msra.mxu0 %v13840_v45  ;;  %8844 = vmatpush1.bf16.msra.mxu1 %v13841_v46  ;;  %v13851_v45 = vld [vmem:[#allocation94_spill] sm:$0xff]  ;;  %v13852_v46 = vld [vmem:[#allocation95_spill] sm:$0xff] }
 0xa2a   :  { %8814 = vmatprep.subr.bf16.mxu0 %v13842_v58  ;;  %8846 = vmatprep.subr.bf16.mxu1 %v13843_v3  ;;  %v13853_v58 = vld [vmem:[#allocation96_spill] sm:$0xff]  ;;  %v13854_v3 = vld [vmem:[#allocation97_spill] sm:$0xff] }
 0xa2d   :  { %8816 = vmatpush1.bf16.msra.mxu0 %v13844_v42  ;;  %8848 = vmatpush1.bf16.msra.mxu1 %v13845_v5  ;;  %v13855_v42 = vld [vmem:[#allocation98_spill] sm:$0xff] }
 0xa2e   :  { %8818 = vmatprep.subr.bf16.mxu0 %v13846_v30  ;;  %8850 = vmatprep.subr.bf16.mxu1 %v13847_v48 }
 0xa31   :  { %8820 = vmatpush1.bf16.msra.mxu0 %v13848_v39  ;;  %8852 = vmatpush1.bf16.msra.mxu1 %v13849_v18 }
 0xa32   :  { %8822 = vmatprep.subr.bf16.mxu0 %v13850_v29  ;;  %8854 = vmatprep.subr.bf16.mxu1 %v13851_v45 }
 0xa35   :  { %8824 = vmatpush1.bf16.msra.mxu0 %v13852_v46  ;;  %8856 = vmatpush1.bf16.msra.mxu1 %v13853_v58  ;;  %v13857_v46 = vld [vmem:[#allocation55_spill] sm:$0xff] }
 0xa36   :  { %8858 = vmatprep.subr.bf16.mxu0 %v13854_v3  ;;  %8890 = vmatprep.subr.bf16.mxu1 %v13855_v42 }
 0xacb   :  { %v3854_v5 = vpop.f32.mrb[30].mxu0  ;;  %v3925_v30 = vpop.f32.mrb[30].mxu1 }
 0xacc   :  { %v3930_v48 = vadd.f32 %v3854_v5, %v13856_v1  ;;  %v3856_v44 = vpop.f32.mrb[31].mxu0  ;;  %v12117_v39 = vpop.f32.mrb[31].mxu1  ;;  %v3932_v45 = vadd.f32 %v3925_v30, %v13857_v46  ;;  %v13858_v46 = vld [vmem:[#allocation61_spill] sm:$0xff] }
 0xacd   :  { %v3931_v18 = vadd.f32 %v3856_v44, %v13725_v49 }
 0xace   :  { %v7307_v29 = vmul.f32 -1.442695, %v3930_v48 }
 0xacf   :  { %v7308_v53 = vmul.f32 -1.442695, %v3931_v18 }
 0xad0   :  { %10347 = vpow2.f32 %v7307_v29 }
 0xad1   :  { %10349 = vpow2.f32 %v7308_v53 }
 0xad2   :  { %10351 = vtanh.f32 %v3932_v45 }
 0xada   :  { %v10348_v58 = vpop.eup %10347 }
 0xadb   :  { %v10350_v32 = vpop.eup %10349  ;;  %v3937_v3 = vadd.f32 1.0, %v10348_v58 }
 0xadc   :  { %v3943_v42 = vadd.f32 1.0, %v10350_v32  ;;  %v10352_v25 = vpop.eup %10351 }
 0xadd   :  { %10353 = vrcp.f32 %v3937_v3 }
 0xade   :  { %10355 = vrcp.f32 %v3943_v42 }
 0xae7   :  { %v10354_v5 = vpop.eup %10353 }
 0xae8   :  { %v10356_v1 = vpop.eup %10355  ;;  %v3954_v40 = vmul.f32 %v10354_v5, %v10352_v25 }
 0xae9   :  { %v3953_v26 = vmul.f32 %v10356_v1, %v11913_v50 }
 0xaeb   :  { %v12122_v44 = vadd.f32 %v3954_v40, %v3953_v26  ;;  %v4024_v18 = vpop.f32.mrb[8].mxu0  ;;  %v4095_v29 = vpop.f32.mrb[8].mxu1 }
 0xaec   :  { %v10041_v53 = vadd.f32 %v4024_v18, %v13594_v8  ;;  %v4026_v30 = vpop.f32.mrb[9].mxu0  ;;  %v4097_v48 = vpop.f32.mrb[9].mxu1  ;;  %v10057_v25 = vadd.f32 %v4095_v29, %v13463_v63 }
 0xaed   :  { %v10042_v58 = vadd.f32 %v4026_v30, %v13858_v46  ;;  %v10058_v42 = vadd.f32 %v4097_v48, %v13462_v2 }
 0xaee   :  { %v7310_v45 = vmul.f32 -1.442695, %v10041_v53 }
 0xaef   :  { %v7311_v32 = vmul.f32 -1.442695, %v10042_v58  ;;  %v7312_v3 = vmul.f32 -1.442695, %v10058_v42 }
 0xaf0   :  { %10357 = vpow2.f32 %v7310_v45 }
 0xaf1   :  { %10359 = vpow2.f32 %v7311_v32 }
 0xaf2   :  { %10361 = vpow2.f32 %v7312_v3 }
 0xaf3   :  { %10363 = vtanh.f32 %v10057_v25  ;;  %v13859_v25 = vld [vmem:[#allocation99_spill] sm:$0xff] }
 0xafa   :  { %v10358_v50 = vpop.eup %10357 }
 0xafb   :  { %v10360_v26 = vpop.eup %10359  ;;  %v4107_v40 = vadd.f32 1.0, %v10358_v50  ;;  %v13860_v50 = vld [vmem:[#allocation100_spill] sm:$0xff] }
 0xafc   :  { %v4113_v1 = vadd.f32 1.0, %v10360_v26  ;;  %v10362_v5 = vpop.eup %10361  ;;  %v13861_v26 = vld [vmem:[#allocation101_spill] sm:$0xff] }
 0xafd   :  { %10365 = vrcp.f32 %v4107_v40  ;;  %v10364_v18 = vpop.eup %10363  ;;  %v4120_v45 = vadd.f32 1.0, %v10362_v5  ;;  %v13863_v40 = vld [vmem:[#allocation103_spill] sm:$0xff]  ;;  %v13865_v5 = vld [vmem:[#allocation105_spill] sm:$0xff] }
 0xafe   :  { %10367 = vrcp.f32 %v4113_v1  ;;  %v13864_v1 = vld [vmem:[#allocation104_spill] sm:$0xff] }
 0xaff   :  { %10369 = vrcp.f32 %v4120_v45  ;;  %v13870_v45 = vld [vmem:[#allocation110_spill] sm:$0xff] }
 0xb07   :  { %v10366_v30 = vpop.eup %10365 }
 0xb08   :  { %v10368_v53 = vpop.eup %10367  ;;  %v4124_v58 = vmul.f32 %v10366_v30, %v10364_v18  ;;  %v13866_v18 = vld [vmem:[#allocation106_spill] sm:$0xff]  ;;  %v13867_v30 = vld [vmem:[#allocation107_spill] sm:$0xff] }
 0xb09   :  { %v4123_v32 = vmul.f32 %v10368_v53, %v11920_v34  ;;  %v10370_v29 = vpop.eup %10369  ;;  %v13862_v34 = vld [vmem:[#allocation102_spill] sm:$0xff]  ;;  %v13868_v53 = vld [vmem:[#allocation108_spill] sm:$0xff] }
 0xb0b   :  { %v12129_v48 = vadd.f32 %v4124_v58, %v4123_v32  ;;  %v13869_v58 = vld [vmem:[#allocation109_spill] sm:$0xff]  ;;  %v13871_v32 = vld [vmem:[#allocation111_spill] sm:$0xff] }
 0xb0d   :  { %10371 = vtanh.f32 %v12129_v48 }
 0xb17   :  { %v10372_v42 = vpop.eup %10371 }
 0xb18   :  { %v12132_v3 = vmul.f32 %v10372_v42, %v10370_v29  ;;  %v13872_v29 = vld [vmem:[#allocation112_spill] sm:$0xff]  ;;  %v13873_v42 = vld [vmem:[#allocation113_spill] sm:$0xff] }
 0xb1a   :  { %4193 = vmatmul.mubr.f32.vlgmr.msra.gmra.mrb[32].mxu0 %v12132_v3  ;;  %4264 = vmatmul.mubr.f32.vlgmr.msra.gmra.mrb[32].mxu1 %v12132_v3 }
 0xb1b   :  { %8860 = vmatpush1.bf16.msra.mxu0 %v13859_v25  ;;  %8892 = vmatpush1.bf16.msra.mxu1 %v13860_v50 }
 0xb1c   :  { %8862 = vmatprep.subr.bf16.mxu0 %v13861_v26  ;;  %8894 = vmatprep.subr.bf16.mxu1 %v13862_v34 }
 0xb1d   :  { %4334 = vmatprep.mubr.f32.mxu0 %v13351_v62  ;;  %4405 = vmatprep.mubr.f32.mxu1 %v13351_v62 }
 0xb1f   :  { %8864 = vmatpush1.bf16.msra.mxu0 %v13863_v40  ;;  %8896 = vmatpush1.bf16.msra.mxu1 %v13864_v1  ;;  %v13874_v40 = vld [vmem:[#allocation114_spill] sm:$0xff]  ;;  %v13875_v1 = vld [vmem:[#allocation115_spill] sm:$0xff] }
 0xb20   :  { %8866 = vmatprep.subr.bf16.mxu0 %v13865_v5  ;;  %8898 = vmatprep.subr.bf16.mxu1 %v13866_v18  ;;  %v13876_v5 = vld [vmem:[#allocation116_spill] sm:$0xff]  ;;  %v13877_v18 = vld [vmem:[#allocation117_spill] sm:$0xff] }
 0xb23   :  { %8868 = vmatpush1.bf16.msra.mxu0 %v13867_v30  ;;  %8900 = vmatpush1.bf16.msra.mxu1 %v13868_v53  ;;  %v13878_v30 = vld [vmem:[#allocation118_spill] sm:$0xff]  ;;  %v13879_v53 = vld [vmem:[#allocation119_spill] sm:$0xff] }
 0xb24   :  { %8870 = vmatprep.subr.bf16.mxu0 %v13869_v58  ;;  %8902 = vmatprep.subr.bf16.mxu1 %v13870_v45  ;;  %v13880_v58 = vld [vmem:[#allocation120_spill] sm:$0xff]  ;;  %v13881_v45 = vld [vmem:[#allocation121_spill] sm:$0xff] }
 0xb27   :  { %8872 = vmatpush1.bf16.msra.mxu0 %v13871_v32  ;;  %8904 = vmatpush1.bf16.msra.mxu1 %v13872_v29  ;;  %v13882_v32 = vld [vmem:[#allocation122_spill] sm:$0xff]  ;;  %v13883_v29 = vld [vmem:[#allocation123_spill] sm:$0xff] }
 0xb28   :  { %8874 = vmatprep.subr.bf16.mxu0 %v13873_v42  ;;  %8906 = vmatprep.subr.bf16.mxu1 %v13874_v40  ;;  %v13884_v42 = vld [vmem:[#allocation124_spill] sm:$0xff]  ;;  %v13885_v40 = vld [vmem:[#allocation125_spill] sm:$0xff] }
 0xb2b   :  { %8876 = vmatpush1.bf16.msra.mxu0 %v13875_v1  ;;  %8908 = vmatpush1.bf16.msra.mxu1 %v13876_v5  ;;  %v13886_v1 = vld [vmem:[#allocation126_spill] sm:$0xff]  ;;  %v13887_v5 = vld [vmem:[#allocation127_spill] sm:$0xff] }
 0xb2c   :  { %8878 = vmatprep.subr.bf16.mxu0 %v13877_v18  ;;  %8910 = vmatprep.subr.bf16.mxu1 %v13878_v30  ;;  %v13888_v18 = vld [vmem:[#allocation128_spill] sm:$0xff]  ;;  %v13889_v30 = vld [vmem:[#allocation129_spill] sm:$0xff] }
 0xb2f   :  { %8880 = vmatpush1.bf16.msra.mxu0 %v13879_v53  ;;  %8912 = vmatpush1.bf16.msra.mxu1 %v13880_v58  ;;  %v13890_v53 = vld [vmem:[#allocation130_spill] sm:$0xff]  ;;  %v13923_v58 = vld [vmem:[#allocation40_spill] sm:$0xff] }
 0xb30   :  { %8882 = vmatprep.subr.bf16.mxu0 %v13881_v45  ;;  %8914 = vmatprep.subr.bf16.mxu1 %v13882_v32  ;;  %v13891_v32 = vld [vmem:[#allocation131_spill] sm:$0xff]  ;;  %v13905_v45 = vld [vmem:[#allocation145_spill] sm:$0xff] }
 0xb33   :  { %8884 = vmatpush1.bf16.msra.mxu0 %v13883_v29  ;;  %8916 = vmatpush1.bf16.msra.mxu1 %v13884_v42  ;;  %v13892_v29 = vld [vmem:[#allocation132_spill] sm:$0xff]  ;;  %v13893_v42 = vld [vmem:[#allocation133_spill] sm:$0xff] }
 0xb34   :  { %8886 = vmatprep.subr.bf16.mxu0 %v13885_v40  ;;  %8918 = vmatprep.subr.bf16.mxu1 %v13886_v1  ;;  %v13894_v40 = vld [vmem:[#allocation134_spill] sm:$0xff]  ;;  %v13904_v1 = vld [vmem:[#allocation144_spill] sm:$0xff] }
 0xb37   :  { %8888 = vmatpush1.bf16.msra.mxu0 %v13887_v5  ;;  %8920 = vmatpush1.bf16.msra.mxu1 %v13888_v18  ;;  %v13895_v18 = vld [vmem:[#allocation135_spill] sm:$0xff]  ;;  %v13898_v5 = vld [vmem:[#allocation138_spill] sm:$0xff] }
 0xb38   :  { %8922 = vmatprep.subr.bf16.mxu0 %v13889_v30  ;;  %8954 = vmatprep.subr.bf16.mxu1 %v13890_v53  ;;  %v13896_v30 = vld [vmem:[#allocation136_spill] sm:$0xff]  ;;  %v13897_v53 = vld [vmem:[#allocation137_spill] sm:$0xff] }
 0xb3a   :  { %4335 = vmatmul.mubr.f32.vlgmr.msra.gmra.mrb[32].mxu0 %v12007_v36  ;;  %4406 = vmatmul.mubr.f32.vlgmr.msra.gmra.mrb[32].mxu1 %v12007_v36  ;;  %v13899_v36 = vld [vmem:[#allocation139_spill] sm:$0xff] }
 0xb3b   :  { %8924 = vmatpush1.bf16.msra.mxu0 %v13891_v32  ;;  %8956 = vmatpush1.bf16.msra.mxu1 %v13892_v29  ;;  %v13900_v32 = vld [vmem:[#allocation140_spill] sm:$0xff]  ;;  %v13901_v29 = vld [vmem:[#allocation141_spill] sm:$0xff] }
 0xb3c   :  { %8926 = vmatprep.subr.bf16.mxu0 %v13893_v42  ;;  %8958 = vmatprep.subr.bf16.mxu1 %v13894_v40  ;;  %v13902_v42 = vld [vmem:[#allocation142_spill] sm:$0xff]  ;;  %v13903_v40 = vld [vmem:[#allocation143_spill] sm:$0xff] }
 0xb3d   :  { %4504 = vmatprep.mubr.f32.mxu0 %v13351_v62  ;;  %4575 = vmatprep.mubr.f32.mxu1 %v13351_v62 }
 0xb3f   :  { %8928 = vmatpush1.bf16.msra.mxu0 %v13895_v18  ;;  %8960 = vmatpush1.bf16.msra.mxu1 %v13896_v30  ;;  %v13906_v18 = vld [vmem:[#allocation146_spill] sm:$0xff]  ;;  %v13907_v30 = vld [vmem:[#allocation147_spill] sm:$0xff] }
 0xb40   :  { %8930 = vmatprep.subr.bf16.mxu0 %v13897_v53  ;;  %8962 = vmatprep.subr.bf16.mxu1 %v13898_v5  ;;  %v13908_v53 = vld [vmem:[#allocation148_spill] sm:$0xff]  ;;  %v13909_v5 = vld [vmem:[#allocation149_spill] sm:$0xff] }
 0xb43   :  { %8932 = vmatpush1.bf16.msra.mxu0 %v13899_v36  ;;  %8964 = vmatpush1.bf16.msra.mxu1 %v13900_v32  ;;  %v13910_v36 = vld [vmem:[#allocation150_spill] sm:$0xff]  ;;  %v13911_v32 = vld [vmem:[#allocation151_spill] sm:$0xff] }
 0xb44   :  { %8934 = vmatprep.subr.bf16.mxu0 %v13901_v29  ;;  %8966 = vmatprep.subr.bf16.mxu1 %v13902_v42  ;;  %v13912_v29 = vld [vmem:[#allocation152_spill] sm:$0xff]  ;;  %v13913_v42 = vld [vmem:[#allocation153_spill] sm:$0xff] }
 0xb47   :  { %8936 = vmatpush1.bf16.msra.mxu0 %v13903_v40  ;;  %8968 = vmatpush1.bf16.msra.mxu1 %v13904_v1  ;;  %v13914_v40 = vld [vmem:[#allocation154_spill] sm:$0xff]  ;;  %v13915_v1 = vld [vmem:[#allocation155_spill] sm:$0xff] }
 0xb48   :  { %8938 = vmatprep.subr.bf16.mxu0 %v13905_v45  ;;  %8970 = vmatprep.subr.bf16.mxu1 %v13906_v18  ;;  %v13916_v45 = vld [vmem:[#allocation156_spill] sm:$0xff]  ;;  %v13917_v18 = vld [vmem:[#allocation157_spill] sm:$0xff] }
 0xb4b   :  { %8940 = vmatpush1.bf16.msra.mxu0 %v13907_v30  ;;  %8972 = vmatpush1.bf16.msra.mxu1 %v13908_v53  ;;  %v13918_v30 = vld [vmem:[#allocation158_spill] sm:$0xff]  ;;  %v13919_v53 = vld [vmem:[#allocation159_spill] sm:$0xff] }
 0xb4c   :  { %8942 = vmatprep.subr.bf16.mxu0 %v13909_v5  ;;  %8974 = vmatprep.subr.bf16.mxu1 %v13910_v36  ;;  %v13920_v5 = vld [vmem:[#allocation160_spill] sm:$0xff]  ;;  %v13921_v36 = vld [vmem:[#allocation161_spill] sm:$0xff] }
 0xb4f   :  { %8944 = vmatpush1.bf16.msra.mxu0 %v13911_v32  ;;  %8976 = vmatpush1.bf16.msra.mxu1 %v13912_v29  ;;  %v13922_v32 = vld [vmem:[#allocation162_spill] sm:$0xff] }
 0xb50   :  { %8946 = vmatprep.subr.bf16.mxu0 %v13913_v42  ;;  %8978 = vmatprep.subr.bf16.mxu1 %v13914_v40 }
 0xb53   :  { %8948 = vmatpush1.bf16.msra.mxu0 %v13915_v1  ;;  %8980 = vmatpush1.bf16.msra.mxu1 %v13916_v45 }
 0xb54   :  { %8950 = vmatprep.subr.bf16.mxu0 %v13917_v18  ;;  %8982 = vmatprep.subr.bf16.mxu1 %v13918_v30 }
 0xb57   :  { %8952 = vmatpush1.bf16.msra.mxu0 %v13919_v53  ;;  %8984 = vmatpush1.bf16.msra.mxu1 %v13920_v5 }
 0xb58   :  { %8986 = vmatprep.subr.bf16.mxu0 %v13921_v36  ;;  %9018 = vmatprep.subr.bf16.mxu1 %v13922_v32 }
 0xc0d   :  { %v4336_v29 = vpop.f32.mrb[32].mxu0  ;;  %v4407_v42 = vpop.f32.mrb[32].mxu1 }
 0xc0e   :  { %v4412_v40 = vadd.f32 %v4336_v29, %v13923_v58  ;;  %v4338_v34 = vpop.f32.mrb[33].mxu0  ;;  %v4409_v1 = vpop.f32.mrb[33].mxu1  ;;  %v4414_v5 = vadd.f32 %v4407_v42, %v13531_v24 }
 0xc0f   :  { %v4413_v45 = vadd.f32 %v4338_v34, %v13663_v56  ;;  %v4415_v53 = vadd.f32 %v4409_v1, %v13530_v57 }
 0xc10   :  { %v7313_v26 = vmul.f32 -1.442695, %v4412_v40 }
 0xc11   :  { %v7314_v18 = vmul.f32 -1.442695, %v4413_v45  ;;  %v7315_v30 = vmul.f32 -1.442695, %v4415_v53 }
 0xc12   :  { %10373 = vpow2.f32 %v7313_v26 }
 0xc13   :  { %10375 = vpow2.f32 %v7314_v18 }
 0xc14   :  { %10377 = vpow2.f32 %v7315_v30  ;;  %v3933_v30 = vadd.f32 %v12117_v39, %v13533_v43 }
 0xc15   :  { %10379 = vtanh.f32 %v4414_v5 }
 0xc16   :  { %v7309_v53 = vmul.f32 -1.442695, %v3933_v30  ;;  %v13931_v30 = vld [vmem:[#allocation30_spill] sm:$0xff] }
 0xc1c   :  { %v10374_v36 = vpop.eup %10373 }
 0xc1d   :  { %v10376_v50 = vpop.eup %10375  ;;  %v4419_v32 = vadd.f32 1.0, %v10374_v36  ;;  %v13924_v36 = vld [vmem:[#allocation23_spill] sm:$0xff] }
 0xc1e   :  { %v4425_v25 = vadd.f32 1.0, %v10376_v50  ;;  %v10378_v29 = vpop.eup %10377 }
 0xc1f   :  { %10381 = vrcp.f32 %v4419_v32  ;;  %v10380_v58 = vpop.eup %10379  ;;  %v4432_v26 = vadd.f32 1.0, %v10378_v29  ;;  %v13925_v29 = vld [vmem:[#allocation24_spill] sm:$0xff] }
 0xc20   :  { %10383 = vrcp.f32 %v4425_v25 }
 0xc21   :  { %10385 = vrcp.f32 %v4432_v26  ;;  %v13929_v26 = vld [vmem:[#allocation28_spill] sm:$0xff] }
 0xc29   :  { %v10382_v34 = vpop.eup %10381 }
 0xc2a   :  { %v10384_v40 = vpop.eup %10383  ;;  %v4436_v45 = vmul.f32 %v10382_v34, %v10380_v58  ;;  %v13926_v34 = vld [vmem:[#allocation25_spill] sm:$0xff] }
 0xc2b   :  { %v4435_v18 = vmul.f32 %v10384_v40, %v12002_v11  ;;  %v10386_v5 = vpop.eup %10385  ;;  %v13927_v40 = vld [vmem:[#allocation26_spill] sm:$0xff] }
 0xc2d   :  { %v12211_v1 = vadd.f32 %v4436_v45, %v4435_v18  ;;  %v13928_v45 = vld [vmem:[#allocation27_spill] sm:$0xff]  ;;  %v13930_v18 = vld [vmem:[#allocation29_spill] sm:$0xff] }
 0xc2f   :  { %10387 = vtanh.f32 %v12211_v1 }
 0xc30   :  { %10389 = vpow2.f32 %v7309_v53  ;;  %v13934_v53 = vld [vmem:[#allocation33_spill] sm:$0xff] }
 0xc31   :  { %10391 = vtanh.f32 %v12122_v44 }
 0xc39   :  { %v10388_v50 = vpop.eup %10387 }
 0xc3a   :  { %v12216_v25 = vmul.f32 %v10388_v50, %v10386_v5  ;;  %v10390_v11 = vpop.eup %10389  ;;  %v13932_v5 = vld [vmem:[#allocation31_spill] sm:$0xff]  ;;  %v13933_v50 = vld [vmem:[#allocation32_spill] sm:$0xff] }
 0xc3b   :  { %v3950_v39 = vadd.f32 1.0, %v10390_v11  ;;  %v10392_v58 = vpop.eup %10391  ;;  %v13935_v11 = vld [vmem:[#allocation34_spill] sm:$0xff] }
 0xc3c   :  { %4505 = vmatmul.mubr.f32.vlgmr.msra.gmra.mrb[34].mxu0 %v12216_v25  ;;  %4576 = vmatmul.mubr.f32.vlgmr.msra.gmra.mrb[34].mxu1 %v12216_v25 }
 0xc3d   :  { %8988 = vmatpush1.bf16.msra.mxu0 %v13534_v37  ;;  %9020 = vmatpush1.bf16.msra.mxu1 %v13535_v54  ;;  %10393 = vrcp.f32 %v3950_v39  ;;  %v13936_v39 = vld [vmem:[#allocation35_spill] sm:$0xff] }
 0xc3e   :  { %8990 = vmatprep.subr.bf16.mxu0 %v13536_v47  ;;  %9022 = vmatprep.subr.bf16.mxu1 %v13537_v55 }
 0xc3f   :  { %4646 = vmatprep.mubr.f32.mxu0 %v13351_v62  ;;  %4717 = vmatprep.mubr.f32.mxu1 %v13351_v62 }
 0xc41   :  { %8992 = vmatpush1.bf16.msra.mxu0 %v13664_v12  ;;  %9024 = vmatpush1.bf16.msra.mxu1 %v13665_v10 }
 0xc42   :  { %8994 = vmatprep.subr.bf16.mxu0 %v13666_v22  ;;  %9026 = vmatprep.subr.bf16.mxu1 %v13667_v4 }
 0xc45   :  { %8996 = vmatpush1.bf16.msra.mxu0 %v13668_v52  ;;  %9028 = vmatpush1.bf16.msra.mxu1 %v13543_v9 }
 0xc46   :  { %8998 = vmatprep.subr.bf16.mxu0 %v13544_v33  ;;  %9030 = vmatprep.subr.bf16.mxu1 %v13545_v31 }
 0xc47   :  { %v10394_v32 = vpop.eup %10393 }
 0xc48   :  { %v3957_v42 = vmul.f32 %v10394_v32, %v10392_v58  ;;  %v13937_v58 = vld [vmem:[#allocation36_spill] sm:$0xff]  ;;  %v13938_v32 = vld [vmem:[#allocation37_spill] sm:$0xff] }
 0xc49   :  { %9000 = vmatpush1.bf16.msra.mxu0 %v13546_v13  ;;  %9032 = vmatpush1.bf16.msra.mxu1 %v13547_v41 }
 0xc4a   :  { %9002 = vmatprep.subr.bf16.mxu0 %v13548_v15  ;;  %9034 = vmatprep.subr.bf16.mxu1 %v13549_v19 }
 0xc4d   :  { %9004 = vmatpush1.bf16.msra.mxu0 %v13550_v7  ;;  %9036 = vmatpush1.bf16.msra.mxu1 %v13551_v60 }
 0xc4e   :  { %9006 = vmatprep.subr.bf16.mxu0 %v13669_v59  ;;  %9038 = vmatprep.subr.bf16.mxu1 %v11380_v6 }
 0xc51   :  { %9008 = vmatpush1.bf16.msra.mxu0 %v11384_v0  ;;  %9040 = vmatpush1.bf16.msra.mxu1 %v11386_v21 }
 0xc52   :  { %9010 = vmatprep.subr.bf16.mxu0 %v11390_v28  ;;  %9042 = vmatprep.subr.bf16.mxu1 %v11392_v38 }
 0xc55   :  { %9012 = vmatpush1.bf16.msra.mxu0 %v11396_v35  ;;  %9044 = vmatpush1.bf16.msra.mxu1 %v11398_v16 }
 0xc56   :  { %9014 = vmatprep.subr.bf16.mxu0 %v11402_v61  ;;  %9046 = vmatprep.subr.bf16.mxu1 %v11404_v27 }
 0xc59   :  { %9016 = vmatpush1.bf16.msra.mxu0 %v11408_v20  ;;  %9048 = vmatpush1.bf16.msra.mxu1 %v11410_v51 }
 0xc5a   :  { %9050 = vmatprep.subr.bf16.mxu0 %v10766_v14  ;;  %9082 = vmatprep.subr.bf16.mxu1 %v10768_v17 }
 0xc5c   :  { %4647 = vmatmul.mubr.f32.vlgmr.msra.gmra.mrb[34].mxu0 %v3957_v42  ;;  %4718 = vmatmul.mubr.f32.vlgmr.msra.gmra.mrb[34].mxu1 %v3957_v42  ;;  %v13939_v42 = vld [vmem:[#allocation38_spill] sm:$0xff] }
 0xc5d   :  { %9052 = vmatpush1.bf16.msra.mxu0 %v10773_v23  ;;  %9084 = vmatpush1.bf16.msra.mxu1 %v13924_v36 }
 0xc5e   :  { %9054 = vmatprep.subr.bf16.mxu0 %v13925_v29  ;;  %9086 = vmatprep.subr.bf16.mxu1 %v13926_v34 }
 0xc5f   :  { %4816 = vmatprep.mubr.f32.mxu0 %v13351_v62  ;;  %4887 = vmatprep.mubr.f32.mxu1 %v13351_v62 }
 0xc61   :  { %9056 = vmatpush1.bf16.msra.mxu0 %v13927_v40  ;;  %9088 = vmatpush1.bf16.msra.mxu1 %v13928_v45 }
 0xc62   :  { %9058 = vmatprep.subr.bf16.mxu0 %v13929_v26  ;;  %9090 = vmatprep.subr.bf16.mxu1 %v13930_v18  ;;  %v13940_v26 = vld [vmem:[#allocation39_spill] sm:$0xff]  ;;  %v13941_v18 = vld [vmem:[#allocation42_spill] sm:$0xff] }
 0xc65   :  { %9060 = vmatpush1.bf16.msra.mxu0 %v13931_v30  ;;  %9092 = vmatpush1.bf16.msra.mxu1 %v13932_v5  ;;  %v13942_v30 = vld [vmem:[#allocation43_spill] sm:$0xff]  ;;  %v13943_v5 = vld [vmem:[#allocation44_spill] sm:$0xff] }
 0xc66   :  { %9062 = vmatprep.subr.bf16.mxu0 %v13933_v50  ;;  %9094 = vmatprep.subr.bf16.mxu1 %v13934_v53  ;;  %v13944_v50 = vld [vmem:[#allocation45_spill] sm:$0xff]  ;;  %v13945_v53 = vld [vmem:[#allocation46_spill] sm:$0xff] }
 0xc69   :  { %9064 = vmatpush1.bf16.msra.mxu0 %v13935_v11  ;;  %9096 = vmatpush1.bf16.msra.mxu1 %v13936_v39  ;;  %v13946_v11 = vld [vmem:[#allocation47_spill] sm:$0xff]  ;;  %v13947_v39 = vld [vmem:[#allocation48_spill] sm:$0xff] }
 0xc6a   :  { %9066 = vmatprep.subr.bf16.mxu0 %v13937_v58  ;;  %9098 = vmatprep.subr.bf16.mxu1 %v13938_v32  ;;  %v13948_v58 = vld [vmem:[#allocation49_spill] sm:$0xff]  ;;  %v13949_v32 = vld [vmem:[#allocation50_spill] sm:$0xff] }
 0xc6d   :  { %9068 = vmatpush1.bf16.msra.mxu0 %v13939_v42  ;;  %9100 = vmatpush1.bf16.msra.mxu1 %v13940_v26  ;;  %v13950_v42 = vld [vmem:[#allocation51_spill] sm:$0xff]  ;;  %v13951_v26 = vld [vmem:[#allocation52_spill] sm:$0xff] }
 0xc6e   :  { %9070 = vmatprep.subr.bf16.mxu0 %v13941_v18  ;;  %9102 = vmatprep.subr.bf16.mxu1 %v13942_v30  ;;  %v13952_v18 = vld [vmem:[#allocation53_spill] sm:$0xff] }
 0xc6f   :  { %v13953_v30 = vld [vmem:[#allocation65_spill] sm:$0xff] }
 0xc71   :  { %9072 = vmatpush1.bf16.msra.mxu0 %v13943_v5  ;;  %9104 = vmatpush1.bf16.msra.mxu1 %v13944_v50  ;;  %v13954_v5 = vld [vmem:[#allocation66_spill] sm:$0xff]  ;;  %v13987_v50 = vld [vmem:[#allocation41_spill] sm:$0xff] }
 0xc72   :  { %9074 = vmatprep.subr.bf16.mxu0 %v13945_v53  ;;  %9106 = vmatprep.subr.bf16.mxu1 %v13946_v11  ;;  %v13955_v11 = vld [vmem:[#allocation67_spill] sm:$0xff]  ;;  %v13969_v53 = vld [vmem:[#allocation81_spill] sm:$0xff] }
 0xc75   :  { %9076 = vmatpush1.bf16.msra.mxu0 %v13947_v39  ;;  %9108 = vmatpush1.bf16.msra.mxu1 %v13948_v58  ;;  %v13956_v39 = vld [vmem:[#allocation68_spill] sm:$0xff]  ;;  %v13957_v58 = vld [vmem:[#allocation69_spill] sm:$0xff] }
 0xc76   :  { %9078 = vmatprep.subr.bf16.mxu0 %v13949_v32  ;;  %9110 = vmatprep.subr.bf16.mxu1 %v13950_v42  ;;  %v13958_v32 = vld [vmem:[#allocation70_spill] sm:$0xff]  ;;  %v13968_v42 = vld [vmem:[#allocation80_spill] sm:$0xff] }
 0xc79   :  { %9080 = vmatpush1.bf16.msra.mxu0 %v13951_v26  ;;  %9112 = vmatpush1.bf16.msra.mxu1 %v13952_v18  ;;  %v13959_v18 = vld [vmem:[#allocation71_spill] sm:$0xff]  ;;  %v13962_v26 = vld [vmem:[#allocation74_spill] sm:$0xff] }
 0xc7a   :  { %9114 = vmatprep.subr.bf16.mxu0 %v13953_v30  ;;  %9146 = vmatprep.subr.bf16.mxu1 %v13954_v5  ;;  %v13960_v30 = vld [vmem:[#allocation72_spill] sm:$0xff]  ;;  %v13961_v5 = vld [vmem:[#allocation73_spill] sm:$0xff] }
 0xc7c   :  { %4817 = vmatmul.mubr.f32.vlgmr.msra.gmra.mrb[10].mxu0 %v12132_v3  ;;  %4888 = vmatmul.mubr.f32.vlgmr.msra.gmra.mrb[10].mxu1 %v12132_v3  ;;  %v13963_v3 = vld [vmem:[#allocation75_spill] sm:$0xff] }
 0xc7d   :  { %9116 = vmatpush1.bf16.msra.mxu0 %v13955_v11  ;;  %9148 = vmatpush1.bf16.msra.mxu1 %v13956_v39  ;;  %v13964_v11 = vld [vmem:[#allocation76_spill] sm:$0xff]  ;;  %v13965_v39 = vld [vmem:[#allocation77_spill] sm:$0xff] }
 0xc7e   :  { %9118 = vmatprep.subr.bf16.mxu0 %v13957_v58  ;;  %9150 = vmatprep.subr.bf16.mxu1 %v13958_v32  ;;  %v13966_v58 = vld [vmem:[#allocation78_spill] sm:$0xff]  ;;  %v13967_v32 = vld [vmem:[#allocation79_spill] sm:$0xff] }
 0xc7f   :  { %4986 = vmatprep.mubr.f32.mxu0 %v13351_v62  ;;  %5057 = vmatprep.mubr.f32.mxu1 %v13351_v62 }
 0xc81   :  { %9120 = vmatpush1.bf16.msra.mxu0 %v13959_v18  ;;  %9152 = vmatpush1.bf16.msra.mxu1 %v13960_v30  ;;  %v13970_v18 = vld [vmem:[#allocation82_spill] sm:$0xff]  ;;  %v13971_v30 = vld [vmem:[#allocation83_spill] sm:$0xff] }
 0xc82   :  { %9122 = vmatprep.subr.bf16.mxu0 %v13961_v5  ;;  %9154 = vmatprep.subr.bf16.mxu1 %v13962_v26  ;;  %v13972_v5 = vld [vmem:[#allocation84_spill] sm:$0xff]  ;;  %v13973_v26 = vld [vmem:[#allocation85_spill] sm:$0xff] }
 0xc85   :  { %9124 = vmatpush1.bf16.msra.mxu0 %v13963_v3  ;;  %9156 = vmatpush1.bf16.msra.mxu1 %v13964_v11  ;;  %v13974_v3 = vld [vmem:[#allocation86_spill] sm:$0xff]  ;;  %v13975_v11 = vld [vmem:[#allocation87_spill] sm:$0xff] }
 0xc86   :  { %9126 = vmatprep.subr.bf16.mxu0 %v13965_v39  ;;  %9158 = vmatprep.subr.bf16.mxu1 %v13966_v58  ;;  %v13976_v39 = vld [vmem:[#allocation88_spill] sm:$0xff]  ;;  %v13977_v58 = vld [vmem:[#allocation89_spill] sm:$0xff] }
 0xc89   :  { %9128 = vmatpush1.bf16.msra.mxu0 %v13967_v32  ;;  %9160 = vmatpush1.bf16.msra.mxu1 %v13968_v42  ;;  %v13978_v32 = vld [vmem:[#allocation90_spill] sm:$0xff]  ;;  %v13979_v42 = vld [vmem:[#allocation91_spill] sm:$0xff] }
 0xc8a   :  { %9130 = vmatprep.subr.bf16.mxu0 %v13969_v53  ;;  %9162 = vmatprep.subr.bf16.mxu1 %v13970_v18  ;;  %v13980_v53 = vld [vmem:[#allocation92_spill] sm:$0xff]  ;;  %v13981_v18 = vld [vmem:[#allocation93_spill] sm:$0xff] }
 0xc8d   :  { %9132 = vmatpush1.bf16.msra.mxu0 %v13971_v30  ;;  %9164 = vmatpush1.bf16.msra.mxu1 %v13972_v5  ;;  %v13982_v30 = vld [vmem:[#allocation94_spill] sm:$0xff]  ;;  %v13983_v5 = vld [vmem:[#allocation95_spill] sm:$0xff] }
 0xc8e   :  { %9134 = vmatprep.subr.bf16.mxu0 %v13973_v26  ;;  %9166 = vmatprep.subr.bf16.mxu1 %v13974_v3  ;;  %v13984_v26 = vld [vmem:[#allocation96_spill] sm:$0xff]  ;;  %v13985_v3 = vld [vmem:[#allocation97_spill] sm:$0xff] }
 0xc91   :  { %9136 = vmatpush1.bf16.msra.mxu0 %v13975_v11  ;;  %9168 = vmatpush1.bf16.msra.mxu1 %v13976_v39  ;;  %v13986_v11 = vld [vmem:[#allocation98_spill] sm:$0xff] }
 0xc92   :  { %9138 = vmatprep.subr.bf16.mxu0 %v13977_v58  ;;  %9170 = vmatprep.subr.bf16.mxu1 %v13978_v32 }
 0xc95   :  { %9140 = vmatpush1.bf16.msra.mxu0 %v13979_v42  ;;  %9172 = vmatpush1.bf16.msra.mxu1 %v13980_v53 }
 0xc96   :  { %9142 = vmatprep.subr.bf16.mxu0 %v13981_v18  ;;  %9174 = vmatprep.subr.bf16.mxu1 %v13982_v30 }
 0xc99   :  { %9144 = vmatpush1.bf16.msra.mxu0 %v13983_v5  ;;  %9176 = vmatpush1.bf16.msra.mxu1 %v13984_v26  ;;  %v13988_v5 = vld [vmem:[#allocation55_spill] sm:$0xff] }
 0xc9a   :  { %9178 = vmatprep.subr.bf16.mxu0 %v13985_v3  ;;  %9210 = vmatprep.subr.bf16.mxu1 %v13986_v11 }
 0xd2f   :  { %v4648_v39 = vpop.f32.mrb[34].mxu0  ;;  %v4719_v58 = vpop.f32.mrb[34].mxu1 }
 0xd30   :  { %v4724_v32 = vadd.f32 %v4648_v39, %v13987_v50  ;;  %v4650_v45 = vpop.f32.mrb[35].mxu0  ;;  %v12326_v42 = vpop.f32.mrb[35].mxu1  ;;  %v4726_v30 = vadd.f32 %v4719_v58, %v13988_v5 }
 0xd31   :  { %v4725_v53 = vadd.f32 %v4650_v45, %v13725_v49 }
 0xd32   :  { %v7316_v18 = vmul.f32 -1.442695, %v4724_v32 }
 0xd33   :  { %v7317_v40 = vmul.f32 -1.442695, %v4725_v53 }
 0xd34   :  { %10395 = vpow2.f32 %v7316_v18 }
 0xd35   :  { %10397 = vpow2.f32 %v7317_v40 }
 0xd36   :  { %10399 = vtanh.f32 %v4726_v30 }
 0xd3e   :  { %v10396_v26 = vpop.eup %10395 }
 0xd3f   :  { %v10398_v34 = vpop.eup %10397  ;;  %v4731_v3 = vadd.f32 1.0, %v10396_v26 }
 0xd40   :  { %v4737_v11 = vadd.f32 1.0, %v10398_v34  ;;  %v10400_v29 = vpop.eup %10399 }
 0xd41   :  { %10401 = vrcp.f32 %v4731_v3 }
 0xd42   :  { %10403 = vrcp.f32 %v4737_v11 }
 0xd4b   :  { %v10402_v39 = vpop.eup %10401 }
 0xd4c   :  { %v10404_v50 = vpop.eup %10403  ;;  %v4748_v36 = vmul.f32 %v10402_v39, %v10400_v29 }
 0xd4d   :  { %v4747_v23 = vmul.f32 %v10404_v50, %v12122_v44 }
 0xd4f   :  { %v12331_v45 = vadd.f32 %v4748_v36, %v4747_v23  ;;  %v4818_v53 = vpop.f32.mrb[10].mxu0  ;;  %v4889_v18 = vpop.f32.mrb[10].mxu1 }
 0xd50   :  { %v10043_v40 = vadd.f32 %v4818_v53, %v13594_v8  ;;  %v4820_v58 = vpop.f32.mrb[11].mxu0  ;;  %v4891_v32 = vpop.f32.mrb[11].mxu1  ;;  %v10059_v29 = vadd.f32 %v4889_v18, %v13463_v63 }
 0xd51   :  { %v10044_v26 = vadd.f32 %v4820_v58, %v13858_v46  ;;  %v10060_v11 = vadd.f32 %v4891_v32, %v13462_v2 }
 0xd52   :  { %v7319_v30 = vmul.f32 -1.442695, %v10043_v40 }
 0xd53   :  { %v7320_v34 = vmul.f32 -1.442695, %v10044_v26  ;;  %v7321_v3 = vmul.f32 -1.442695, %v10060_v11 }
 0xd54   :  { %10405 = vpow2.f32 %v7319_v30 }
 0xd55   :  { %10407 = vpow2.f32 %v7320_v34 }
 0xd56   :  { %10409 = vpow2.f32 %v7321_v3 }
 0xd57   :  { %10411 = vtanh.f32 %v10059_v29  ;;  %v13989_v29 = vld [vmem:[#allocation99_spill] sm:$0xff] }
 0xd5e   :  { %v10406_v44 = vpop.eup %10405 }
 0xd5f   :  { %v10408_v23 = vpop.eup %10407  ;;  %v4901_v36 = vadd.f32 1.0, %v10406_v44  ;;  %v13990_v44 = vld [vmem:[#allocation100_spill] sm:$0xff] }
 0xd60   :  { %v4907_v50 = vadd.f32 1.0, %v10408_v23  ;;  %v10410_v39 = vpop.eup %10409  ;;  %v13991_v23 = vld [vmem:[#allocation101_spill] sm:$0xff] }
 0xd61   :  { %10413 = vrcp.f32 %v4901_v36  ;;  %v10412_v53 = vpop.eup %10411  ;;  %v4914_v30 = vadd.f32 1.0, %v10410_v39  ;;  %v13993_v36 = vld [vmem:[#allocation103_spill] sm:$0xff]  ;;  %v13995_v39 = vld [vmem:[#allocation105_spill] sm:$0xff] }
 0xd62   :  { %10415 = vrcp.f32 %v4907_v50  ;;  %v13994_v50 = vld [vmem:[#allocation104_spill] sm:$0xff] }
 0xd63   :  { %10417 = vrcp.f32 %v4914_v30  ;;  %v14000_v30 = vld [vmem:[#allocation110_spill] sm:$0xff] }
 0xd6b   :  { %v10414_v58 = vpop.eup %10413 }
 0xd6c   :  { %v10416_v40 = vpop.eup %10415  ;;  %v4918_v26 = vmul.f32 %v10414_v58, %v10412_v53  ;;  %v13996_v53 = vld [vmem:[#allocation106_spill] sm:$0xff]  ;;  %v13997_v58 = vld [vmem:[#allocation107_spill] sm:$0xff] }
 0xd6d   :  { %v4917_v34 = vmul.f32 %v10416_v40, %v12129_v48  ;;  %v10418_v18 = vpop.eup %10417  ;;  %v13992_v48 = vld [vmem:[#allocation102_spill] sm:$0xff]  ;;  %v13998_v40 = vld [vmem:[#allocation108_spill] sm:$0xff] }
 0xd6f   :  { %v12338_v32 = vadd.f32 %v4918_v26, %v4917_v34  ;;  %v13999_v26 = vld [vmem:[#allocation109_spill] sm:$0xff]  ;;  %v14001_v34 = vld [vmem:[#allocation111_spill] sm:$0xff] }
 0xd71   :  { %10419 = vtanh.f32 %v12338_v32 }
 0xd7b   :  { %v10420_v11 = vpop.eup %10419 }
 0xd7c   :  { %v12341_v3 = vmul.f32 %v10420_v11, %v10418_v18  ;;  %v14002_v18 = vld [vmem:[#allocation112_spill] sm:$0xff]  ;;  %v14003_v11 = vld [vmem:[#allocation113_spill] sm:$0xff] }
 0xd7e   :  { %4987 = vmatmul.mubr.f32.vlgmr.msra.gmra.mrb[36].mxu0 %v12341_v3  ;;  %5058 = vmatmul.mubr.f32.vlgmr.msra.gmra.mrb[36].mxu1 %v12341_v3 }
 0xd7f   :  { %9180 = vmatpush1.bf16.msra.mxu0 %v13989_v29  ;;  %9212 = vmatpush1.bf16.msra.mxu1 %v13990_v44 }
 0xd80   :  { %9182 = vmatprep.subr.bf16.mxu0 %v13991_v23  ;;  %9214 = vmatprep.subr.bf16.mxu1 %v13992_v48 }
 0xd81   :  { %5128 = vmatprep.mubr.f32.mxu0 %v13351_v62  ;;  %5199 = vmatprep.mubr.f32.mxu1 %v13351_v62 }
 0xd83   :  { %9184 = vmatpush1.bf16.msra.mxu0 %v13993_v36  ;;  %9216 = vmatpush1.bf16.msra.mxu1 %v13994_v50  ;;  %v14004_v36 = vld [vmem:[#allocation114_spill] sm:$0xff]  ;;  %v14005_v50 = vld [vmem:[#allocation115_spill] sm:$0xff] }
 0xd84   :  { %9186 = vmatprep.subr.bf16.mxu0 %v13995_v39  ;;  %9218 = vmatprep.subr.bf16.mxu1 %v13996_v53  ;;  %v14006_v39 = vld [vmem:[#allocation116_spill] sm:$0xff]  ;;  %v14007_v53 = vld [vmem:[#allocation117_spill] sm:$0xff] }
 0xd87   :  { %9188 = vmatpush1.bf16.msra.mxu0 %v13997_v58  ;;  %9220 = vmatpush1.bf16.msra.mxu1 %v13998_v40  ;;  %v14008_v58 = vld [vmem:[#allocation118_spill] sm:$0xff]  ;;  %v14009_v40 = vld [vmem:[#allocation119_spill] sm:$0xff] }
 0xd88   :  { %9190 = vmatprep.subr.bf16.mxu0 %v13999_v26  ;;  %9222 = vmatprep.subr.bf16.mxu1 %v14000_v30  ;;  %v14010_v26 = vld [vmem:[#allocation120_spill] sm:$0xff]  ;;  %v14011_v30 = vld [vmem:[#allocation121_spill] sm:$0xff] }
 0xd8b   :  { %9192 = vmatpush1.bf16.msra.mxu0 %v14001_v34  ;;  %9224 = vmatpush1.bf16.msra.mxu1 %v14002_v18  ;;  %v14012_v34 = vld [vmem:[#allocation122_spill] sm:$0xff]  ;;  %v14013_v18 = vld [vmem:[#allocation123_spill] sm:$0xff] }
 0xd8c   :  { %9194 = vmatprep.subr.bf16.mxu0 %v14003_v11  ;;  %9226 = vmatprep.subr.bf16.mxu1 %v14004_v36  ;;  %v14014_v11 = vld [vmem:[#allocation124_spill] sm:$0xff]  ;;  %v14015_v36 = vld [vmem:[#allocation125_spill] sm:$0xff] }
 0xd8f   :  { %9196 = vmatpush1.bf16.msra.mxu0 %v14005_v50  ;;  %9228 = vmatpush1.bf16.msra.mxu1 %v14006_v39  ;;  %v14016_v50 = vld [vmem:[#allocation126_spill] sm:$0xff]  ;;  %v14017_v39 = vld [vmem:[#allocation127_spill] sm:$0xff] }
 0xd90   :  { %9198 = vmatprep.subr.bf16.mxu0 %v14007_v53  ;;  %9230 = vmatprep.subr.bf16.mxu1 %v14008_v58  ;;  %v14018_v53 = vld [vmem:[#allocation128_spill] sm:$0xff]  ;;  %v14019_v58 = vld [vmem:[#allocation129_spill] sm:$0xff] }
 0xd93   :  { %9200 = vmatpush1.bf16.msra.mxu0 %v14009_v40  ;;  %9232 = vmatpush1.bf16.msra.mxu1 %v14010_v26  ;;  %v14020_v40 = vld [vmem:[#allocation130_spill] sm:$0xff]  ;;  %v14053_v26 = vld [vmem:[#allocation40_spill] sm:$0xff] }
 0xd94   :  { %9202 = vmatprep.subr.bf16.mxu0 %v14011_v30  ;;  %9234 = vmatprep.subr.bf16.mxu1 %v14012_v34  ;;  %v14021_v34 = vld [vmem:[#allocation131_spill] sm:$0xff]  ;;  %v14035_v30 = vld [vmem:[#allocation145_spill] sm:$0xff] }
 0xd97   :  { %9204 = vmatpush1.bf16.msra.mxu0 %v14013_v18  ;;  %9236 = vmatpush1.bf16.msra.mxu1 %v14014_v11  ;;  %v14022_v18 = vld [vmem:[#allocation132_spill] sm:$0xff]  ;;  %v14023_v11 = vld [vmem:[#allocation133_spill] sm:$0xff] }
 0xd98   :  { %9206 = vmatprep.subr.bf16.mxu0 %v14015_v36  ;;  %9238 = vmatprep.subr.bf16.mxu1 %v14016_v50  ;;  %v14024_v36 = vld [vmem:[#allocation134_spill] sm:$0xff]  ;;  %v14034_v50 = vld [vmem:[#allocation144_spill] sm:$0xff] }
 0xd9b   :  { %9208 = vmatpush1.bf16.msra.mxu0 %v14017_v39  ;;  %9240 = vmatpush1.bf16.msra.mxu1 %v14018_v53  ;;  %v14025_v53 = vld [vmem:[#allocation135_spill] sm:$0xff]  ;;  %v14028_v39 = vld [vmem:[#allocation138_spill] sm:$0xff] }
 0xd9c   :  { %9242 = vmatprep.subr.bf16.mxu0 %v14019_v58  ;;  %9274 = vmatprep.subr.bf16.mxu1 %v14020_v40  ;;  %v14026_v58 = vld [vmem:[#allocation136_spill] sm:$0xff]  ;;  %v14027_v40 = vld [vmem:[#allocation137_spill] sm:$0xff] }
 0xd9e   :  { %5129 = vmatmul.mubr.f32.vlgmr.msra.gmra.mrb[36].mxu0 %v12216_v25  ;;  %5200 = vmatmul.mubr.f32.vlgmr.msra.gmra.mrb[36].mxu1 %v12216_v25  ;;  %v14029_v25 = vld [vmem:[#allocation139_spill] sm:$0xff] }
 0xd9f   :  { %9244 = vmatpush1.bf16.msra.mxu0 %v14021_v34  ;;  %9276 = vmatpush1.bf16.msra.mxu1 %v14022_v18  ;;  %v14030_v34 = vld [vmem:[#allocation140_spill] sm:$0xff]  ;;  %v14031_v18 = vld [vmem:[#allocation141_spill] sm:$0xff] }
 0xda0   :  { %9246 = vmatprep.subr.bf16.mxu0 %v14023_v11  ;;  %9278 = vmatprep.subr.bf16.mxu1 %v14024_v36  ;;  %v14032_v11 = vld [vmem:[#allocation142_spill] sm:$0xff]  ;;  %v14033_v36 = vld [vmem:[#allocation143_spill] sm:$0xff] }
 0xda1   :  { %5298 = vmatprep.mubr.f32.mxu0 %v13351_v62  ;;  %5369 = vmatprep.mubr.f32.mxu1 %v13351_v62 }
 0xda3   :  { %9248 = vmatpush1.bf16.msra.mxu0 %v14025_v53  ;;  %9280 = vmatpush1.bf16.msra.mxu1 %v14026_v58  ;;  %v14036_v53 = vld [vmem:[#allocation146_spill] sm:$0xff]  ;;  %v14037_v58 = vld [vmem:[#allocation147_spill] sm:$0xff] }
 0xda4   :  { %9250 = vmatprep.subr.bf16.mxu0 %v14027_v40  ;;  %9282 = vmatprep.subr.bf16.mxu1 %v14028_v39  ;;  %v14038_v40 = vld [vmem:[#allocation148_spill] sm:$0xff]  ;;  %v14039_v39 = vld [vmem:[#allocation149_spill] sm:$0xff] }
 0xda7   :  { %9252 = vmatpush1.bf16.msra.mxu0 %v14029_v25  ;;  %9284 = vmatpush1.bf16.msra.mxu1 %v14030_v34  ;;  %v14040_v25 = vld [vmem:[#allocation150_spill] sm:$0xff]  ;;  %v14041_v34 = vld [vmem:[#allocation151_spill] sm:$0xff] }
 0xda8   :  { %9254 = vmatprep.subr.bf16.mxu0 %v14031_v18  ;;  %9286 = vmatprep.subr.bf16.mxu1 %v14032_v11  ;;  %v14042_v18 = vld [vmem:[#allocation152_spill] sm:$0xff]  ;;  %v14043_v11 = vld [vmem:[#allocation153_spill] sm:$0xff] }
 0xdab   :  { %9256 = vmatpush1.bf16.msra.mxu0 %v14033_v36  ;;  %9288 = vmatpush1.bf16.msra.mxu1 %v14034_v50  ;;  %v14044_v36 = vld [vmem:[#allocation154_spill] sm:$0xff]  ;;  %v14045_v50 = vld [vmem:[#allocation155_spill] sm:$0xff] }
 0xdac   :  { %9258 = vmatprep.subr.bf16.mxu0 %v14035_v30  ;;  %9290 = vmatprep.subr.bf16.mxu1 %v14036_v53  ;;  %v14046_v30 = vld [vmem:[#allocation156_spill] sm:$0xff]  ;;  %v14047_v53 = vld [vmem:[#allocation157_spill] sm:$0xff] }
 0xdaf   :  { %9260 = vmatpush1.bf16.msra.mxu0 %v14037_v58  ;;  %9292 = vmatpush1.bf16.msra.mxu1 %v14038_v40  ;;  %v14048_v58 = vld [vmem:[#allocation158_spill] sm:$0xff]  ;;  %v14049_v40 = vld [vmem:[#allocation159_spill] sm:$0xff] }
 0xdb0   :  { %9262 = vmatprep.subr.bf16.mxu0 %v14039_v39  ;;  %9294 = vmatprep.subr.bf16.mxu1 %v14040_v25  ;;  %v14050_v39 = vld [vmem:[#allocation160_spill] sm:$0xff]  ;;  %v14051_v25 = vld [vmem:[#allocation161_spill] sm:$0xff] }
 0xdb3   :  { %9264 = vmatpush1.bf16.msra.mxu0 %v14041_v34  ;;  %9296 = vmatpush1.bf16.msra.mxu1 %v14042_v18  ;;  %v14052_v34 = vld [vmem:[#allocation162_spill] sm:$0xff] }
 0xdb4   :  { %9266 = vmatprep.subr.bf16.mxu0 %v14043_v11  ;;  %9298 = vmatprep.subr.bf16.mxu1 %v14044_v36 }
 0xdb7   :  { %9268 = vmatpush1.bf16.msra.mxu0 %v14045_v50  ;;  %9300 = vmatpush1.bf16.msra.mxu1 %v14046_v30 }
 0xdb8   :  { %9270 = vmatprep.subr.bf16.mxu0 %v14047_v53  ;;  %9302 = vmatprep.subr.bf16.mxu1 %v14048_v58 }
 0xdbb   :  { %9272 = vmatpush1.bf16.msra.mxu0 %v14049_v40  ;;  %9304 = vmatpush1.bf16.msra.mxu1 %v14050_v39 }
 0xdbc   :  { %9306 = vmatprep.subr.bf16.mxu0 %v14051_v25  ;;  %9338 = vmatprep.subr.bf16.mxu1 %v14052_v34 }
 0xe71   :  { %v5130_v18 = vpop.f32.mrb[36].mxu0  ;;  %v5201_v11 = vpop.f32.mrb[36].mxu1 }
 0xe72   :  { %v5206_v36 = vadd.f32 %v5130_v18, %v14053_v26  ;;  %v5132_v48 = vpop.f32.mrb[37].mxu0  ;;  %v5203_v50 = vpop.f32.mrb[37].mxu1  ;;  %v5208_v39 = vadd.f32 %v5201_v11, %v13531_v24 }
 0xe73   :  { %v5207_v30 = vadd.f32 %v5132_v48, %v13663_v56  ;;  %v5209_v40 = vadd.f32 %v5203_v50, %v13530_v57 }
 0xe74   :  { %v7322_v23 = vmul.f32 -1.442695, %v5206_v36 }
 0xe75   :  { %v7323_v53 = vmul.f32 -1.442695, %v5207_v30  ;;  %v7324_v58 = vmul.f32 -1.442695, %v5209_v40 }
 0xe76   :  { %10421 = vpow2.f32 %v7322_v23 }
 0xe77   :  { %10423 = vpow2.f32 %v7323_v53 }
 0xe78   :  { %10425 = vpow2.f32 %v7324_v58  ;;  %v4727_v58 = vadd.f32 %v12326_v42, %v13533_v43 }
 0xe79   :  { %10427 = vtanh.f32 %v5208_v39 }
 0xe7a   :  { %v7318_v40 = vmul.f32 -1.442695, %v4727_v58  ;;  %v14061_v58 = vld [vmem:[#allocation29_spill] sm:$0xff] }
 0xe80   :  { %v10422_v25 = vpop.eup %10421 }
 0xe81   :  { %v10424_v44 = vpop.eup %10423  ;;  %v5213_v34 = vadd.f32 1.0, %v10422_v25  ;;  %v14054_v25 = vld [vmem:[#allocation22_spill] sm:$0xff] }
 0xe82   :  { %v5219_v29 = vadd.f32 1.0, %v10424_v44  ;;  %v10426_v18 = vpop.eup %10425 }
 0xe83   :  { %10429 = vrcp.f32 %v5213_v34  ;;  %v10428_v26 = vpop.eup %10427  ;;  %v5226_v23 = vadd.f32 1.0, %v10426_v18  ;;  %v14055_v18 = vld [vmem:[#allocation23_spill] sm:$0xff] }
 0xe84   :  { %10431 = vrcp.f32 %v5219_v29 }
 0xe85   :  { %10433 = vrcp.f32 %v5226_v23  ;;  %v14059_v23 = vld [vmem:[#allocation27_spill] sm:$0xff] }
 0xe8d   :  { %v10430_v48 = vpop.eup %10429 }
 0xe8e   :  { %v10432_v36 = vpop.eup %10431  ;;  %v5230_v30 = vmul.f32 %v10430_v48, %v10428_v26  ;;  %v14056_v48 = vld [vmem:[#allocation24_spill] sm:$0xff] }
 0xe8f   :  { %v5229_v53 = vmul.f32 %v10432_v36, %v12211_v1  ;;  %v10434_v39 = vpop.eup %10433  ;;  %v14057_v36 = vld [vmem:[#allocation25_spill] sm:$0xff] }
 0xe91   :  { %v12420_v50 = vadd.f32 %v5230_v30, %v5229_v53  ;;  %v14058_v30 = vld [vmem:[#allocation26_spill] sm:$0xff]  ;;  %v14060_v53 = vld [vmem:[#allocation28_spill] sm:$0xff] }
 0xe93   :  { %10435 = vtanh.f32 %v12420_v50 }
 0xe94   :  { %10437 = vpow2.f32 %v7318_v40  ;;  %v14064_v40 = vld [vmem:[#allocation32_spill] sm:$0xff] }
 0xe95   :  { %10439 = vtanh.f32 %v12331_v45 }
 0xe9d   :  { %v10436_v44 = vpop.eup %10435 }
 0xe9e   :  { %v12425_v29 = vmul.f32 %v10436_v44, %v10434_v39  ;;  %v10438_v1 = vpop.eup %10437  ;;  %v14062_v39 = vld [vmem:[#allocation30_spill] sm:$0xff]  ;;  %v14063_v44 = vld [vmem:[#allocation31_spill] sm:$0xff] }
 0xe9f   :  { %v4744_v42 = vadd.f32 1.0, %v10438_v1  ;;  %v10440_v26 = vpop.eup %10439  ;;  %v14065_v1 = vld [vmem:[#allocation33_spill] sm:$0xff] }
 0xea0   :  { %5299 = vmatmul.mubr.f32.vlgmr.msra.gmra.mrb[38].mxu0 %v12425_v29  ;;  %5370 = vmatmul.mubr.f32.vlgmr.msra.gmra.mrb[38].mxu1 %v12425_v29 }
 0xea1   :  { %9308 = vmatpush1.bf16.msra.mxu0 %v13534_v37  ;;  %9340 = vmatpush1.bf16.msra.mxu1 %v13535_v54  ;;  %10441 = vrcp.f32 %v4744_v42  ;;  %v14066_v42 = vld [vmem:[#allocation34_spill] sm:$0xff] }
 0xea2   :  { %9310 = vmatprep.subr.bf16.mxu0 %v13536_v47  ;;  %9342 = vmatprep.subr.bf16.mxu1 %v13537_v55 }
 0xea3   :  { %5440 = vmatprep.mubr.f32.mxu0 %v13351_v62  ;;  %5511 = vmatprep.mubr.f32.mxu1 %v13351_v62 }
 0xea5   :  { %9312 = vmatpush1.bf16.msra.mxu0 %v13664_v12  ;;  %9344 = vmatpush1.bf16.msra.mxu1 %v13665_v10 }
 0xea6   :  { %9314 = vmatprep.subr.bf16.mxu0 %v13666_v22  ;;  %9346 = vmatprep.subr.bf16.mxu1 %v13667_v4 }
 0xea9   :  { %9316 = vmatpush1.bf16.msra.mxu0 %v13668_v52  ;;  %9348 = vmatpush1.bf16.msra.mxu1 %v13543_v9 }
 0xeaa   :  { %9318 = vmatprep.subr.bf16.mxu0 %v13544_v33  ;;  %9350 = vmatprep.subr.bf16.mxu1 %v13545_v31 }
 0xeab   :  { %v10442_v34 = vpop.eup %10441 }
 0xeac   :  { %v4751_v11 = vmul.f32 %v10442_v34, %v10440_v26  ;;  %v14067_v26 = vld [vmem:[#allocation35_spill] sm:$0xff]  ;;  %v14068_v34 = vld [vmem:[#allocation36_spill] sm:$0xff] }
 0xead   :  { %9320 = vmatpush1.bf16.msra.mxu0 %v13546_v13  ;;  %9352 = vmatpush1.bf16.msra.mxu1 %v13547_v41 }
 0xeae   :  { %9322 = vmatprep.subr.bf16.mxu0 %v13548_v15  ;;  %9354 = vmatprep.subr.bf16.mxu1 %v13549_v19 }
 0xeb1   :  { %9324 = vmatpush1.bf16.msra.mxu0 %v13550_v7  ;;  %9356 = vmatpush1.bf16.msra.mxu1 %v13551_v60 }
 0xeb2   :  { %9326 = vmatprep.subr.bf16.mxu0 %v13669_v59  ;;  %9358 = vmatprep.subr.bf16.mxu1 %v11380_v6 }
 0xeb5   :  { %9328 = vmatpush1.bf16.msra.mxu0 %v11384_v0  ;;  %9360 = vmatpush1.bf16.msra.mxu1 %v11386_v21 }
 0xeb6   :  { %9330 = vmatprep.subr.bf16.mxu0 %v11390_v28  ;;  %9362 = vmatprep.subr.bf16.mxu1 %v11392_v38 }
 0xeb9   :  { %9332 = vmatpush1.bf16.msra.mxu0 %v11396_v35  ;;  %9364 = vmatpush1.bf16.msra.mxu1 %v11398_v16 }
 0xeba   :  { %9334 = vmatprep.subr.bf16.mxu0 %v11402_v61  ;;  %9366 = vmatprep.subr.bf16.mxu1 %v11404_v27 }
 0xebd   :  { %9336 = vmatpush1.bf16.msra.mxu0 %v11408_v20  ;;  %9368 = vmatpush1.bf16.msra.mxu1 %v11410_v51 }
 0xebe   :  { %9370 = vmatprep.subr.bf16.mxu0 %v10766_v14  ;;  %9402 = vmatprep.subr.bf16.mxu1 %v10768_v17 }
 0xec0   :  { %5441 = vmatmul.mubr.f32.vlgmr.msra.gmra.mrb[38].mxu0 %v4751_v11  ;;  %5512 = vmatmul.mubr.f32.vlgmr.msra.gmra.mrb[38].mxu1 %v4751_v11  ;;  %v14069_v11 = vld [vmem:[#allocation37_spill] sm:$0xff] }
 0xec1   :  { %9372 = vmatpush1.bf16.msra.mxu0 %v14054_v25  ;;  %9404 = vmatpush1.bf16.msra.mxu1 %v14055_v18 }
 0xec2   :  { %9374 = vmatprep.subr.bf16.mxu0 %v14056_v48  ;;  %9406 = vmatprep.subr.bf16.mxu1 %v14057_v36 }
 0xec3   :  { %5610 = vmatprep.mubr.f32.mxu0 %v13351_v62  ;;  %5681 = vmatprep.mubr.f32.mxu1 %v13351_v62 }
 0xec5   :  { %9376 = vmatpush1.bf16.msra.mxu0 %v14058_v30  ;;  %9408 = vmatpush1.bf16.msra.mxu1 %v14059_v23  ;;  %v14070_v23 = vld [vmem:[#allocation38_spill] sm:$0xff] }
 0xec6   :  { %9378 = vmatprep.subr.bf16.mxu0 %v14060_v53  ;;  %9410 = vmatprep.subr.bf16.mxu1 %v14061_v58  ;;  %v14071_v53 = vld [vmem:[#allocation39_spill] sm:$0xff]  ;;  %v14072_v58 = vld [vmem:[#allocation42_spill] sm:$0xff] }
 0xec9   :  { %9380 = vmatpush1.bf16.msra.mxu0 %v14062_v39  ;;  %9412 = vmatpush1.bf16.msra.mxu1 %v14063_v44  ;;  %v14073_v39 = vld [vmem:[#allocation43_spill] sm:$0xff]  ;;  %v14074_v44 = vld [vmem:[#allocation44_spill] sm:$0xff] }
 0xeca   :  { %9382 = vmatprep.subr.bf16.mxu0 %v14064_v40  ;;  %9414 = vmatprep.subr.bf16.mxu1 %v14065_v1  ;;  %v14075_v40 = vld [vmem:[#allocation45_spill] sm:$0xff]  ;;  %v14076_v1 = vld [vmem:[#allocation46_spill] sm:$0xff] }
 0xecd   :  { %9384 = vmatpush1.bf16.msra.mxu0 %v14066_v42  ;;  %9416 = vmatpush1.bf16.msra.mxu1 %v14067_v26  ;;  %v14077_v42 = vld [vmem:[#allocation47_spill] sm:$0xff]  ;;  %v14078_v26 = vld [vmem:[#allocation48_spill] sm:$0xff] }
 0xece   :  { %9386 = vmatprep.subr.bf16.mxu0 %v14068_v34  ;;  %9418 = vmatprep.subr.bf16.mxu1 %v14069_v11  ;;  %v14079_v34 = vld [vmem:[#allocation49_spill] sm:$0xff]  ;;  %v14080_v11 = vld [vmem:[#allocation50_spill] sm:$0xff] }
 0xed1   :  { %9388 = vmatpush1.bf16.msra.mxu0 %v14070_v23  ;;  %9420 = vmatpush1.bf16.msra.mxu1 %v14071_v53  ;;  %v14081_v23 = vld [vmem:[#allocation51_spill] sm:$0xff]  ;;  %v14082_v53 = vld [vmem:[#allocation52_spill] sm:$0xff] }
 0xed2   :  { %9390 = vmatprep.subr.bf16.mxu0 %v14072_v58  ;;  %9422 = vmatprep.subr.bf16.mxu1 %v14073_v39  ;;  %v14083_v58 = vld [vmem:[#allocation53_spill] sm:$0xff] }
 0xed3   :  { %v14084_v39 = vld [vmem:[#allocation65_spill] sm:$0xff] }
 0xed5   :  { %9392 = vmatpush1.bf16.msra.mxu0 %v14074_v44  ;;  %9424 = vmatpush1.bf16.msra.mxu1 %v14075_v40  ;;  %v14085_v44 = vld [vmem:[#allocation66_spill] sm:$0xff]  ;;  %v14118_v40 = vld [vmem:[#allocation41_spill] sm:$0xff] }
 0xed6   :  { %9394 = vmatprep.subr.bf16.mxu0 %v14076_v1  ;;  %9426 = vmatprep.subr.bf16.mxu1 %v14077_v42  ;;  %v14086_v42 = vld [vmem:[#allocation67_spill] sm:$0xff]  ;;  %v14100_v1 = vld [vmem:[#allocation81_spill] sm:$0xff] }
 0xed9   :  { %9396 = vmatpush1.bf16.msra.mxu0 %v14078_v26  ;;  %9428 = vmatpush1.bf16.msra.mxu1 %v14079_v34  ;;  %v14087_v26 = vld [vmem:[#allocation68_spill] sm:$0xff]  ;;  %v14088_v34 = vld [vmem:[#allocation69_spill] sm:$0xff] }
 0xeda   :  { %9398 = vmatprep.subr.bf16.mxu0 %v14080_v11  ;;  %9430 = vmatprep.subr.bf16.mxu1 %v14081_v23  ;;  %v14089_v11 = vld [vmem:[#allocation70_spill] sm:$0xff]  ;;  %v14099_v23 = vld [vmem:[#allocation80_spill] sm:$0xff] }
 0xedd   :  { %9400 = vmatpush1.bf16.msra.mxu0 %v14082_v53  ;;  %9432 = vmatpush1.bf16.msra.mxu1 %v14083_v58  ;;  %v14090_v58 = vld [vmem:[#allocation71_spill] sm:$0xff]  ;;  %v14093_v53 = vld [vmem:[#allocation74_spill] sm:$0xff] }
 0xede   :  { %9434 = vmatprep.subr.bf16.mxu0 %v14084_v39  ;;  %9466 = vmatprep.subr.bf16.mxu1 %v14085_v44  ;;  %v14091_v39 = vld [vmem:[#allocation72_spill] sm:$0xff]  ;;  %v14092_v44 = vld [vmem:[#allocation73_spill] sm:$0xff] }
 0xee0   :  { %5611 = vmatmul.mubr.f32.vlgmr.msra.gmra.mrb[12].mxu0 %v12341_v3  ;;  %5682 = vmatmul.mubr.f32.vlgmr.msra.gmra.mrb[12].mxu1 %v12341_v3  ;;  %v14094_v3 = vld [vmem:[#allocation75_spill] sm:$0xff] }
 0xee1   :  { %9436 = vmatpush1.bf16.msra.mxu0 %v14086_v42  ;;  %9468 = vmatpush1.bf16.msra.mxu1 %v14087_v26  ;;  %v14095_v42 = vld [vmem:[#allocation76_spill] sm:$0xff]  ;;  %v14096_v26 = vld [vmem:[#allocation77_spill] sm:$0xff] }
 0xee2   :  { %9438 = vmatprep.subr.bf16.mxu0 %v14088_v34  ;;  %9470 = vmatprep.subr.bf16.mxu1 %v14089_v11  ;;  %v14097_v34 = vld [vmem:[#allocation78_spill] sm:$0xff]  ;;  %v14098_v11 = vld [vmem:[#allocation79_spill] sm:$0xff] }
 0xee3   :  { %5780 = vmatprep.mubr.f32.mxu0 %v13351_v62  ;;  %5851 = vmatprep.mubr.f32.mxu1 %v13351_v62 }
 0xee5   :  { %9440 = vmatpush1.bf16.msra.mxu0 %v14090_v58  ;;  %9472 = vmatpush1.bf16.msra.mxu1 %v14091_v39  ;;  %v14101_v58 = vld [vmem:[#allocation82_spill] sm:$0xff]  ;;  %v14102_v39 = vld [vmem:[#allocation83_spill] sm:$0xff] }
 0xee6   :  { %9442 = vmatprep.subr.bf16.mxu0 %v14092_v44  ;;  %9474 = vmatprep.subr.bf16.mxu1 %v14093_v53  ;;  %v14103_v44 = vld [vmem:[#allocation84_spill] sm:$0xff]  ;;  %v14104_v53 = vld [vmem:[#allocation85_spill] sm:$0xff] }
 0xee9   :  { %9444 = vmatpush1.bf16.msra.mxu0 %v14094_v3  ;;  %9476 = vmatpush1.bf16.msra.mxu1 %v14095_v42  ;;  %v14105_v3 = vld [vmem:[#allocation86_spill] sm:$0xff]  ;;  %v14106_v42 = vld [vmem:[#allocation87_spill] sm:$0xff] }
 0xeea   :  { %9446 = vmatprep.subr.bf16.mxu0 %v14096_v26  ;;  %9478 = vmatprep.subr.bf16.mxu1 %v14097_v34  ;;  %v14107_v26 = vld [vmem:[#allocation88_spill] sm:$0xff]  ;;  %v14108_v34 = vld [vmem:[#allocation89_spill] sm:$0xff] }
 0xeed   :  { %9448 = vmatpush1.bf16.msra.mxu0 %v14098_v11  ;;  %9480 = vmatpush1.bf16.msra.mxu1 %v14099_v23  ;;  %v14109_v11 = vld [vmem:[#allocation90_spill] sm:$0xff]  ;;  %v14110_v23 = vld [vmem:[#allocation91_spill] sm:$0xff] }
 0xeee   :  { %9450 = vmatprep.subr.bf16.mxu0 %v14100_v1  ;;  %9482 = vmatprep.subr.bf16.mxu1 %v14101_v58  ;;  %v14111_v1 = vld [vmem:[#allocation92_spill] sm:$0xff]  ;;  %v14112_v58 = vld [vmem:[#allocation93_spill] sm:$0xff] }
 0xef1   :  { %9452 = vmatpush1.bf16.msra.mxu0 %v14102_v39  ;;  %9484 = vmatpush1.bf16.msra.mxu1 %v14103_v44  ;;  %v14113_v39 = vld [vmem:[#allocation94_spill] sm:$0xff]  ;;  %v14114_v44 = vld [vmem:[#allocation95_spill] sm:$0xff] }
 0xef2   :  { %9454 = vmatprep.subr.bf16.mxu0 %v14104_v53  ;;  %9486 = vmatprep.subr.bf16.mxu1 %v14105_v3  ;;  %v14115_v53 = vld [vmem:[#allocation96_spill] sm:$0xff]  ;;  %v14116_v3 = vld [vmem:[#allocation97_spill] sm:$0xff] }
 0xef5   :  { %9456 = vmatpush1.bf16.msra.mxu0 %v14106_v42  ;;  %9488 = vmatpush1.bf16.msra.mxu1 %v14107_v26  ;;  %v14117_v42 = vld [vmem:[#allocation98_spill] sm:$0xff] }
 0xef6   :  { %9458 = vmatprep.subr.bf16.mxu0 %v14108_v34  ;;  %9490 = vmatprep.subr.bf16.mxu1 %v14109_v11 }
 0xef9   :  { %9460 = vmatpush1.bf16.msra.mxu0 %v14110_v23  ;;  %9492 = vmatpush1.bf16.msra.mxu1 %v14111_v1 }
 0xefa   :  { %9462 = vmatprep.subr.bf16.mxu0 %v14112_v58  ;;  %9494 = vmatprep.subr.bf16.mxu1 %v14113_v39 }
 0xefd   :  { %9464 = vmatpush1.bf16.msra.mxu0 %v14114_v44  ;;  %9496 = vmatpush1.bf16.msra.mxu1 %v14115_v53 }
 0xefe   :  { %9498 = vmatprep.subr.bf16.mxu0 %v14116_v3  ;;  %9530 = vmatprep.subr.bf16.mxu1 %v14117_v42 }
 0xf93   :  { %v5442_v26 = vpop.f32.mrb[38].mxu0  ;;  %v5513_v34 = vpop.f32.mrb[38].mxu1 }
 0xf94   :  { %v5518_v11 = vadd.f32 %v5442_v26, %v14118_v40  ;;  %v5444_v30 = vpop.f32.mrb[39].mxu0  ;;  %v12535_v23 = vpop.f32.mrb[39].mxu1  ;;  %v5520_v44 = vadd.f32 %v5513_v34, %v13988_v5 }
 0xf95   :  { %v5519_v1 = vadd.f32 %v5444_v30, %v13725_v49 }
 0xf96   :  { %v7325_v58 = vmul.f32 -1.442695, %v5518_v11 }
 0xf97   :  { %v7326_v36 = vmul.f32 -1.442695, %v5519_v1 }
 0xf98   :  { %10443 = vpow2.f32 %v7325_v58 }
 0xf99   :  { %10445 = vpow2.f32 %v7326_v36 }
 0xf9a   :  { %10447 = vtanh.f32 %v5520_v44 }
 0xfa2   :  { %v10444_v53 = vpop.eup %10443 }
 0xfa3   :  { %v10446_v39 = vpop.eup %10445  ;;  %v5525_v3 = vadd.f32 1.0, %v10444_v53 }
 0xfa4   :  { %v5531_v42 = vadd.f32 1.0, %v10446_v39  ;;  %v10448_v48 = vpop.eup %10447 }
 0xfa5   :  { %10449 = vrcp.f32 %v5525_v3 }
 0xfa6   :  { %10451 = vrcp.f32 %v5531_v42 }
 0xfaf   :  { %v10450_v26 = vpop.eup %10449 }
 0xfb0   :  { %v10452_v40 = vpop.eup %10451  ;;  %v5542_v18 = vmul.f32 %v10450_v26, %v10448_v48 }
 0xfb1   :  { %v5541_v25 = vmul.f32 %v10452_v40, %v12331_v45 }
 0xfb3   :  { %v12540_v30 = vadd.f32 %v5542_v18, %v5541_v25  ;;  %v5612_v1 = vpop.f32.mrb[12].mxu0  ;;  %v5683_v58 = vpop.f32.mrb[12].mxu1 }
 0xfb4   :  { %v10045_v36 = vadd.f32 %v5612_v1, %v13594_v8  ;;  %v5614_v34 = vpop.f32.mrb[13].mxu0  ;;  %v5685_v11 = vpop.f32.mrb[13].mxu1  ;;  %v10061_v48 = vadd.f32 %v5683_v58, %v13463_v63 }
 0xfb5   :  { %v10046_v53 = vadd.f32 %v5614_v34, %v13858_v46  ;;  %v10062_v42 = vadd.f32 %v5685_v11, %v13462_v2 }
 0xfb6   :  { %v7328_v44 = vmul.f32 -1.442695, %v10045_v36 }
 0xfb7   :  { %v7329_v39 = vmul.f32 -1.442695, %v10046_v53  ;;  %v7330_v3 = vmul.f32 -1.442695, %v10062_v42 }
 0xfb8   :  { %10453 = vpow2.f32 %v7328_v44 }
 0xfb9   :  { %10455 = vpow2.f32 %v7329_v39 }
 0xfba   :  { %10457 = vpow2.f32 %v7330_v3 }
 0xfbb   :  { %10459 = vtanh.f32 %v10061_v48  ;;  %v14119_v48 = vld [vmem:[#allocation99_spill] sm:$0xff] }
 0xfc2   :  { %v10454_v45 = vpop.eup %10453 }
 0xfc3   :  { %v10456_v25 = vpop.eup %10455  ;;  %v5695_v18 = vadd.f32 1.0, %v10454_v45  ;;  %v14120_v45 = vld [vmem:[#allocation100_spill] sm:$0xff] }
 0xfc4   :  { %v5701_v40 = vadd.f32 1.0, %v10456_v25  ;;  %v10458_v26 = vpop.eup %10457  ;;  %v14121_v25 = vld [vmem:[#allocation101_spill] sm:$0xff] }
 0xfc5   :  { %10461 = vrcp.f32 %v5695_v18  ;;  %v10460_v1 = vpop.eup %10459  ;;  %v5708_v44 = vadd.f32 1.0, %v10458_v26  ;;  %v14123_v18 = vld [vmem:[#allocation103_spill] sm:$0xff]  ;;  %v14125_v26 = vld [vmem:[#allocation105_spill] sm:$0xff] }
 0xfc6   :  { %10463 = vrcp.f32 %v5701_v40  ;;  %v14124_v40 = vld [vmem:[#allocation104_spill] sm:$0xff] }
 0xfc7   :  { %10465 = vrcp.f32 %v5708_v44  ;;  %v14130_v44 = vld [vmem:[#allocation110_spill] sm:$0xff] }
 0xfcf   :  { %v10462_v34 = vpop.eup %10461 }
 0xfd0   :  { %v10464_v36 = vpop.eup %10463  ;;  %v5712_v53 = vmul.f32 %v10462_v34, %v10460_v1  ;;  %v14126_v1 = vld [vmem:[#allocation106_spill] sm:$0xff]  ;;  %v14127_v34 = vld [vmem:[#allocation107_spill] sm:$0xff] }
 0xfd1   :  { %v5711_v39 = vmul.f32 %v10464_v36, %v12338_v32  ;;  %v10466_v58 = vpop.eup %10465  ;;  %v14122_v32 = vld [vmem:[#allocation102_spill] sm:$0xff]  ;;  %v14128_v36 = vld [vmem:[#allocation108_spill] sm:$0xff] }
 0xfd3   :  { %v12547_v11 = vadd.f32 %v5712_v53, %v5711_v39  ;;  %v14129_v53 = vld [vmem:[#allocation109_spill] sm:$0xff]  ;;  %v14131_v39 = vld [vmem:[#allocation111_spill] sm:$0xff] }
 0xfd5   :  { %10467 = vtanh.f32 %v12547_v11 }
 0xfdf   :  { %v10468_v42 = vpop.eup %10467 }
 0xfe0   :  { %v12550_v3 = vmul.f32 %v10468_v42, %v10466_v58  ;;  %v14132_v58 = vld [vmem:[#allocation112_spill] sm:$0xff]  ;;  %v14133_v42 = vld [vmem:[#allocation113_spill] sm:$0xff] }
 0xfe2   :  { %5781 = vmatmul.mubr.f32.vlgmr.msra.gmra.mrb[40].mxu0 %v12550_v3  ;;  %5852 = vmatmul.mubr.f32.vlgmr.msra.gmra.mrb[40].mxu1 %v12550_v3 }
 0xfe3   :  { %9500 = vmatpush1.bf16.msra.mxu0 %v14119_v48  ;;  %9532 = vmatpush1.bf16.msra.mxu1 %v14120_v45 }
 0xfe4   :  { %9502 = vmatprep.subr.bf16.mxu0 %v14121_v25  ;;  %9534 = vmatprep.subr.bf16.mxu1 %v14122_v32 }
 0xfe5   :  { %5922 = vmatprep.mubr.f32.mxu0 %v13351_v62  ;;  %5993 = vmatprep.mubr.f32.mxu1 %v13351_v62 }
 0xfe7   :  { %9504 = vmatpush1.bf16.msra.mxu0 %v14123_v18  ;;  %9536 = vmatpush1.bf16.msra.mxu1 %v14124_v40  ;;  %v14134_v18 = vld [vmem:[#allocation114_spill] sm:$0xff]  ;;  %v14135_v40 = vld [vmem:[#allocation115_spill] sm:$0xff] }
 0xfe8   :  { %9506 = vmatprep.subr.bf16.mxu0 %v14125_v26  ;;  %9538 = vmatprep.subr.bf16.mxu1 %v14126_v1  ;;  %v14136_v26 = vld [vmem:[#allocation116_spill] sm:$0xff]  ;;  %v14137_v1 = vld [vmem:[#allocation117_spill] sm:$0xff] }
 0xfeb   :  { %9508 = vmatpush1.bf16.msra.mxu0 %v14127_v34  ;;  %9540 = vmatpush1.bf16.msra.mxu1 %v14128_v36  ;;  %v14138_v34 = vld [vmem:[#allocation118_spill] sm:$0xff]  ;;  %v14139_v36 = vld [vmem:[#allocation119_spill] sm:$0xff] }
 0xfec   :  { %9510 = vmatprep.subr.bf16.mxu0 %v14129_v53  ;;  %9542 = vmatprep.subr.bf16.mxu1 %v14130_v44  ;;  %v14140_v53 = vld [vmem:[#allocation120_spill] sm:$0xff]  ;;  %v14141_v44 = vld [vmem:[#allocation121_spill] sm:$0xff] }
 0xfef   :  { %9512 = vmatpush1.bf16.msra.mxu0 %v14131_v39  ;;  %9544 = vmatpush1.bf16.msra.mxu1 %v14132_v58  ;;  %v14142_v39 = vld [vmem:[#allocation122_spill] sm:$0xff]  ;;  %v14143_v58 = vld [vmem:[#allocation123_spill] sm:$0xff] }
 0xff0   :  { %9514 = vmatprep.subr.bf16.mxu0 %v14133_v42  ;;  %9546 = vmatprep.subr.bf16.mxu1 %v14134_v18  ;;  %v14144_v42 = vld [vmem:[#allocation124_spill] sm:$0xff]  ;;  %v14145_v18 = vld [vmem:[#allocation125_spill] sm:$0xff] }
 0xff3   :  { %9516 = vmatpush1.bf16.msra.mxu0 %v14135_v40  ;;  %9548 = vmatpush1.bf16.msra.mxu1 %v14136_v26  ;;  %v14146_v40 = vld [vmem:[#allocation126_spill] sm:$0xff]  ;;  %v14147_v26 = vld [vmem:[#allocation127_spill] sm:$0xff] }
 0xff4   :  { %9518 = vmatprep.subr.bf16.mxu0 %v14137_v1  ;;  %9550 = vmatprep.subr.bf16.mxu1 %v14138_v34  ;;  %v14148_v1 = vld [vmem:[#allocation128_spill] sm:$0xff]  ;;  %v14149_v34 = vld [vmem:[#allocation129_spill] sm:$0xff] }
 0xff7   :  { %9520 = vmatpush1.bf16.msra.mxu0 %v14139_v36  ;;  %9552 = vmatpush1.bf16.msra.mxu1 %v14140_v53  ;;  %v14150_v36 = vld [vmem:[#allocation130_spill] sm:$0xff]  ;;  %v14183_v53 = vld [vmem:[#allocation40_spill] sm:$0xff] }
 0xff8   :  { %9522 = vmatprep.subr.bf16.mxu0 %v14141_v44  ;;  %9554 = vmatprep.subr.bf16.mxu1 %v14142_v39  ;;  %v14151_v39 = vld [vmem:[#allocation131_spill] sm:$0xff]  ;;  %v14165_v44 = vld [vmem:[#allocation145_spill] sm:$0xff] }
 0xffb   :  { %9524 = vmatpush1.bf16.msra.mxu0 %v14143_v58  ;;  %9556 = vmatpush1.bf16.msra.mxu1 %v14144_v42  ;;  %v14152_v58 = vld [vmem:[#allocation132_spill] sm:$0xff]  ;;  %v14153_v42 = vld [vmem:[#allocation133_spill] sm:$0xff] }
 0xffc   :  { %9526 = vmatprep.subr.bf16.mxu0 %v14145_v18  ;;  %9558 = vmatprep.subr.bf16.mxu1 %v14146_v40  ;;  %v14154_v18 = vld [vmem:[#allocation134_spill] sm:$0xff]  ;;  %v14164_v40 = vld [vmem:[#allocation144_spill] sm:$0xff] }
 0xfff   :  { %9528 = vmatpush1.bf16.msra.mxu0 %v14147_v26  ;;  %9560 = vmatpush1.bf16.msra.mxu1 %v14148_v1  ;;  %v14155_v1 = vld [vmem:[#allocation135_spill] sm:$0xff]  ;;  %v14158_v26 = vld [vmem:[#allocation138_spill] sm:$0xff] }
0x1000   :  { %9562 = vmatprep.subr.bf16.mxu0 %v14149_v34  ;;  %9594 = vmatprep.subr.bf16.mxu1 %v14150_v36  ;;  %v14156_v34 = vld [vmem:[#allocation136_spill] sm:$0xff]  ;;  %v14157_v36 = vld [vmem:[#allocation137_spill] sm:$0xff] }
0x1002   :  { %5923 = vmatmul.mubr.f32.vlgmr.msra.gmra.mrb[40].mxu0 %v12425_v29  ;;  %5994 = vmatmul.mubr.f32.vlgmr.msra.gmra.mrb[40].mxu1 %v12425_v29  ;;  %v14159_v29 = vld [vmem:[#allocation139_spill] sm:$0xff] }
0x1003   :  { %9564 = vmatpush1.bf16.msra.mxu0 %v14151_v39  ;;  %9596 = vmatpush1.bf16.msra.mxu1 %v14152_v58  ;;  %v14160_v39 = vld [vmem:[#allocation140_spill] sm:$0xff]  ;;  %v14161_v58 = vld [vmem:[#allocation141_spill] sm:$0xff] }
0x1004   :  { %9566 = vmatprep.subr.bf16.mxu0 %v14153_v42  ;;  %9598 = vmatprep.subr.bf16.mxu1 %v14154_v18  ;;  %v14162_v42 = vld [vmem:[#allocation142_spill] sm:$0xff]  ;;  %v14163_v18 = vld [vmem:[#allocation143_spill] sm:$0xff] }
0x1005   :  { %6092 = vmatprep.mubr.f32.mxu0 %v13351_v62  ;;  %6163 = vmatprep.mubr.f32.mxu1 %v13351_v62 }
0x1007   :  { %9568 = vmatpush1.bf16.msra.mxu0 %v14155_v1  ;;  %9600 = vmatpush1.bf16.msra.mxu1 %v14156_v34  ;;  %v14166_v1 = vld [vmem:[#allocation146_spill] sm:$0xff]  ;;  %v14167_v34 = vld [vmem:[#allocation147_spill] sm:$0xff] }
0x1008   :  { %9570 = vmatprep.subr.bf16.mxu0 %v14157_v36  ;;  %9602 = vmatprep.subr.bf16.mxu1 %v14158_v26  ;;  %v14168_v36 = vld [vmem:[#allocation148_spill] sm:$0xff]  ;;  %v14169_v26 = vld [vmem:[#allocation149_spill] sm:$0xff] }
0x100b   :  { %9572 = vmatpush1.bf16.msra.mxu0 %v14159_v29  ;;  %9604 = vmatpush1.bf16.msra.mxu1 %v14160_v39  ;;  %v14170_v29 = vld [vmem:[#allocation150_spill] sm:$0xff]  ;;  %v14171_v39 = vld [vmem:[#allocation151_spill] sm:$0xff] }
0x100c   :  { %9574 = vmatprep.subr.bf16.mxu0 %v14161_v58  ;;  %9606 = vmatprep.subr.bf16.mxu1 %v14162_v42  ;;  %v14172_v58 = vld [vmem:[#allocation152_spill] sm:$0xff]  ;;  %v14173_v42 = vld [vmem:[#allocation153_spill] sm:$0xff] }
0x100f   :  { %9576 = vmatpush1.bf16.msra.mxu0 %v14163_v18  ;;  %9608 = vmatpush1.bf16.msra.mxu1 %v14164_v40  ;;  %v14174_v18 = vld [vmem:[#allocation154_spill] sm:$0xff]  ;;  %v14175_v40 = vld [vmem:[#allocation155_spill] sm:$0xff] }
0x1010   :  { %9578 = vmatprep.subr.bf16.mxu0 %v14165_v44  ;;  %9610 = vmatprep.subr.bf16.mxu1 %v14166_v1  ;;  %v14176_v44 = vld [vmem:[#allocation156_spill] sm:$0xff]  ;;  %v14177_v1 = vld [vmem:[#allocation157_spill] sm:$0xff] }
0x1013   :  { %9580 = vmatpush1.bf16.msra.mxu0 %v14167_v34  ;;  %9612 = vmatpush1.bf16.msra.mxu1 %v14168_v36  ;;  %v14178_v34 = vld [vmem:[#allocation158_spill] sm:$0xff]  ;;  %v14179_v36 = vld [vmem:[#allocation159_spill] sm:$0xff] }
0x1014   :  { %9582 = vmatprep.subr.bf16.mxu0 %v14169_v26  ;;  %9614 = vmatprep.subr.bf16.mxu1 %v14170_v29  ;;  %v14180_v26 = vld [vmem:[#allocation160_spill] sm:$0xff]  ;;  %v14181_v29 = vld [vmem:[#allocation161_spill] sm:$0xff] }
0x1017   :  { %9584 = vmatpush1.bf16.msra.mxu0 %v14171_v39  ;;  %9616 = vmatpush1.bf16.msra.mxu1 %v14172_v58  ;;  %v14182_v39 = vld [vmem:[#allocation162_spill] sm:$0xff] }
0x1018   :  { %9586 = vmatprep.subr.bf16.mxu0 %v14173_v42  ;;  %9618 = vmatprep.subr.bf16.mxu1 %v14174_v18 }
0x101b   :  { %9588 = vmatpush1.bf16.msra.mxu0 %v14175_v40  ;;  %9620 = vmatpush1.bf16.msra.mxu1 %v14176_v44 }
0x101c   :  { %9590 = vmatprep.subr.bf16.mxu0 %v14177_v1  ;;  %9622 = vmatprep.subr.bf16.mxu1 %v14178_v34 }
0x101f   :  { %9592 = vmatpush1.bf16.msra.mxu0 %v14179_v36  ;;  %9624 = vmatpush1.bf16.msra.mxu1 %v14180_v26 }
0x1020   :  { %9626 = vmatprep.subr.bf16.mxu0 %v14181_v29  ;;  %9658 = vmatprep.subr.bf16.mxu1 %v14182_v39 }
0x10d5   :  { %v5924_v58 = vpop.f32.mrb[40].mxu0  ;;  %v5995_v42 = vpop.f32.mrb[40].mxu1 }
0x10d6   :  { %v6000_v18 = vadd.f32 %v5924_v58, %v14183_v53  ;;  %v5926_v32 = vpop.f32.mrb[41].mxu0  ;;  %v5997_v40 = vpop.f32.mrb[41].mxu1  ;;  %v6002_v26 = vadd.f32 %v5995_v42, %v13531_v24 }
0x10d7   :  { %v6001_v44 = vadd.f32 %v5926_v32, %v13663_v56  ;;  %v6003_v36 = vadd.f32 %v5997_v40, %v13530_v57 }
0x10d8   :  { %v7331_v25 = vmul.f32 -1.442695, %v6000_v18 }
0x10d9   :  { %v7332_v1 = vmul.f32 -1.442695, %v6001_v44  ;;  %v7333_v34 = vmul.f32 -1.442695, %v6003_v36 }
0x10da   :  { %10469 = vpow2.f32 %v7331_v25 }
0x10db   :  { %10471 = vpow2.f32 %v7332_v1 }
0x10dc   :  { %10473 = vpow2.f32 %v7333_v34  ;;  %v5521_v34 = vadd.f32 %v12535_v23, %v13533_v43 }
0x10dd   :  { %10475 = vtanh.f32 %v6002_v26 }
0x10de   :  { %v7327_v36 = vmul.f32 -1.442695, %v5521_v34  ;;  %v14193_v34 = vld [vmem:[#allocation31_spill] sm:$0xff] }
0x10e4   :  { %v10470_v29 = vpop.eup %10469 }
0x10e5   :  { %v10472_v45 = vpop.eup %10471  ;;  %v6007_v39 = vadd.f32 1.0, %v10470_v29  ;;  %v14184_v29 = vld [vmem:[#allocation22_spill] sm:$0xff] }
0x10e6   :  { %v6013_v48 = vadd.f32 1.0, %v10472_v45  ;;  %v10474_v58 = vpop.eup %10473 }
0x10e7   :  { %10477 = vrcp.f32 %v6007_v39  ;;  %v10476_v53 = vpop.eup %10475  ;;  %v6020_v25 = vadd.f32 1.0, %v10474_v58  ;;  %v14185_v58 = vld [vmem:[#allocation23_spill] sm:$0xff] }
0x10e8   :  { %10479 = vrcp.f32 %v6013_v48 }
0x10e9   :  { %10481 = vrcp.f32 %v6020_v25  ;;  %v14189_v25 = vld [vmem:[#allocation27_spill] sm:$0xff] }
0x10f1   :  { %v10478_v32 = vpop.eup %10477 }
0x10f2   :  { %v10480_v18 = vpop.eup %10479  ;;  %v6024_v44 = vmul.f32 %v10478_v32, %v10476_v53  ;;  %v14186_v32 = vld [vmem:[#allocation24_spill] sm:$0xff] }
0x10f3   :  { %v6023_v1 = vmul.f32 %v10480_v18, %v12420_v50  ;;  %v10482_v26 = vpop.eup %10481  ;;  %v14187_v18 = vld [vmem:[#allocation25_spill] sm:$0xff] }
0x10f5   :  { %v12629_v40 = vadd.f32 %v6024_v44, %v6023_v1  ;;  %v14188_v44 = vld [vmem:[#allocation26_spill] sm:$0xff] }
0x10f6   :  { %v14192_v1 = vld [vmem:[#allocation30_spill] sm:$0xff] }
0x10f7   :  { %10483 = vtanh.f32 %v12629_v40 }
0x10f8   :  { %10485 = vpow2.f32 %v7327_v36  ;;  %v14196_v36 = vld [vmem:[#allocation34_spill] sm:$0xff] }
0x10f9   :  { %10487 = vtanh.f32 %v12540_v30 }
0x1101   :  { %v10484_v45 = vpop.eup %10483 }
0x1102   :  { %v12634_v48 = vmul.f32 %v10484_v45, %v10482_v26  ;;  %v10486_v50 = vpop.eup %10485  ;;  %v14194_v26 = vld [vmem:[#allocation32_spill] sm:$0xff]  ;;  %v14195_v45 = vld [vmem:[#allocation33_spill] sm:$0xff] }
0x1103   :  { %v5538_v23 = vadd.f32 1.0, %v10486_v50  ;;  %v10488_v53 = vpop.eup %10487  ;;  %v14197_v50 = vld [vmem:[#allocation35_spill] sm:$0xff] }
0x1104   :  { %6093 = vmatmul.mubr.f32.vlgmr.msra.gmra.mrb[42].mxu0 %v12634_v48  ;;  %6164 = vmatmul.mubr.f32.vlgmr.msra.gmra.mrb[42].mxu1 %v12634_v48 }
0x1105   :  { %9628 = vmatpush1.bf16.msra.mxu0 %v13534_v37  ;;  %9660 = vmatpush1.bf16.msra.mxu1 %v13535_v54  ;;  %10489 = vrcp.f32 %v5538_v23  ;;  %v14198_v23 = vld [vmem:[#allocation36_spill] sm:$0xff] }
0x1106   :  { %9630 = vmatprep.subr.bf16.mxu0 %v13536_v47  ;;  %9662 = vmatprep.subr.bf16.mxu1 %v13537_v55 }
0x1107   :  { %6234 = vmatprep.mubr.f32.mxu0 %v13351_v62  ;;  %6305 = vmatprep.mubr.f32.mxu1 %v13351_v62 }
0x1109   :  { %9632 = vmatpush1.bf16.msra.mxu0 %v13664_v12  ;;  %9664 = vmatpush1.bf16.msra.mxu1 %v13665_v10 }
0x110a   :  { %9634 = vmatprep.subr.bf16.mxu0 %v13666_v22  ;;  %9666 = vmatprep.subr.bf16.mxu1 %v13667_v4 }
0x110d   :  { %9636 = vmatpush1.bf16.msra.mxu0 %v13668_v52  ;;  %9668 = vmatpush1.bf16.msra.mxu1 %v13543_v9 }
0x110e   :  { %9638 = vmatprep.subr.bf16.mxu0 %v13544_v33  ;;  %9670 = vmatprep.subr.bf16.mxu1 %v13545_v31 }
0x110f   :  { %v10490_v39 = vpop.eup %10489 }
0x1110   :  { %v5545_v42 = vmul.f32 %v10490_v39, %v10488_v53  ;;  %v14199_v53 = vld [vmem:[#allocation37_spill] sm:$0xff]  ;;  %v14200_v39 = vld [vmem:[#allocation38_spill] sm:$0xff] }
0x1111   :  { %9640 = vmatpush1.bf16.msra.mxu0 %v13546_v13  ;;  %9672 = vmatpush1.bf16.msra.mxu1 %v13547_v41 }
0x1112   :  { %9642 = vmatprep.subr.bf16.mxu0 %v13548_v15  ;;  %9674 = vmatprep.subr.bf16.mxu1 %v13549_v19 }
0x1115   :  { %9644 = vmatpush1.bf16.msra.mxu0 %v13550_v7  ;;  %9676 = vmatpush1.bf16.msra.mxu1 %v13551_v60 }
0x1116   :  { %9646 = vmatprep.subr.bf16.mxu0 %v13669_v59  ;;  %9678 = vmatprep.subr.bf16.mxu1 %v11380_v6 }
0x1119   :  { %9648 = vmatpush1.bf16.msra.mxu0 %v11384_v0  ;;  %9680 = vmatpush1.bf16.msra.mxu1 %v11386_v21 }
0x111a   :  { %9650 = vmatprep.subr.bf16.mxu0 %v11390_v28  ;;  %9682 = vmatprep.subr.bf16.mxu1 %v11392_v38 }
0x111d   :  { %9652 = vmatpush1.bf16.msra.mxu0 %v11396_v35  ;;  %9684 = vmatpush1.bf16.msra.mxu1 %v11398_v16 }
0x111e   :  { %9654 = vmatprep.subr.bf16.mxu0 %v11402_v61  ;;  %9686 = vmatprep.subr.bf16.mxu1 %v11404_v27 }
0x1121   :  { %9656 = vmatpush1.bf16.msra.mxu0 %v11408_v20  ;;  %9688 = vmatpush1.bf16.msra.mxu1 %v11410_v51 }
0x1122   :  { %9690 = vmatprep.subr.bf16.mxu0 %v10766_v14  ;;  %9722 = vmatprep.subr.bf16.mxu1 %v10768_v17  ;;  %v14190_v14 = vld [vmem:[#allocation28_spill] sm:$0xff]  ;;  %v14191_v17 = vld [vmem:[#allocation29_spill] sm:$0xff] }
0x1124   :  { %6235 = vmatmul.mubr.f32.vlgmr.msra.gmra.mrb[42].mxu0 %v5545_v42  ;;  %6306 = vmatmul.mubr.f32.vlgmr.msra.gmra.mrb[42].mxu1 %v5545_v42  ;;  %v14201_v42 = vld [vmem:[#allocation39_spill] sm:$0xff] }
0x1125   :  { %9692 = vmatpush1.bf16.msra.mxu0 %v14184_v29  ;;  %9724 = vmatpush1.bf16.msra.mxu1 %v14185_v58  ;;  %v14202_v29 = vld [vmem:[#allocation42_spill] sm:$0xff]  ;;  %v14203_v58 = vld [vmem:[#allocation43_spill] sm:$0xff] }
0x1126   :  { %9694 = vmatprep.subr.bf16.mxu0 %v14186_v32  ;;  %9726 = vmatprep.subr.bf16.mxu1 %v14187_v18  ;;  %v14204_v32 = vld [vmem:[#allocation44_spill] sm:$0xff]  ;;  %v14205_v18 = vld [vmem:[#allocation45_spill] sm:$0xff] }
0x1127   :  { %6404 = vmatprep.mubr.f32.mxu0 %v13351_v62  ;;  %6475 = vmatprep.mubr.f32.mxu1 %v13351_v62 }
0x1129   :  { %9696 = vmatpush1.bf16.msra.mxu0 %v14188_v44  ;;  %9728 = vmatpush1.bf16.msra.mxu1 %v14189_v25  ;;  %v14206_v44 = vld [vmem:[#allocation46_spill] sm:$0xff]  ;;  %v14207_v25 = vld [vmem:[#allocation47_spill] sm:$0xff] }
0x112a   :  { %9698 = vmatprep.subr.bf16.mxu0 %v14190_v14  ;;  %9730 = vmatprep.subr.bf16.mxu1 %v14191_v17  ;;  %v14208_v14 = vld [vmem:[#allocation48_spill] sm:$0xff]  ;;  %v14209_v17 = vld [vmem:[#allocation49_spill] sm:$0xff] }
0x112d   :  { %9700 = vmatpush1.bf16.msra.mxu0 %v14192_v1  ;;  %9732 = vmatpush1.bf16.msra.mxu1 %v14193_v34  ;;  %v14210_v1 = vld [vmem:[#allocation50_spill] sm:$0xff]  ;;  %v14211_v34 = vld [vmem:[#allocation51_spill] sm:$0xff] }
0x112e   :  { %9702 = vmatprep.subr.bf16.mxu0 %v14194_v26  ;;  %9734 = vmatprep.subr.bf16.mxu1 %v14195_v45  ;;  %v14212_v26 = vld [vmem:[#allocation52_spill] sm:$0xff]  ;;  %v14213_v45 = vld [vmem:[#allocation53_spill] sm:$0xff] }
0x1131   :  { %9704 = vmatpush1.bf16.msra.mxu0 %v14196_v36  ;;  %9736 = vmatpush1.bf16.msra.mxu1 %v14197_v50  ;;  %v14214_v36 = vld [vmem:[#allocation65_spill] sm:$0xff]  ;;  %v14215_v50 = vld [vmem:[#allocation66_spill] sm:$0xff] }
0x1132   :  { %9706 = vmatprep.subr.bf16.mxu0 %v14198_v23  ;;  %9738 = vmatprep.subr.bf16.mxu1 %v14199_v53  ;;  %v14216_v23 = vld [vmem:[#allocation67_spill] sm:$0xff]  ;;  %v14217_v53 = vld [vmem:[#allocation68_spill] sm:$0xff] }
0x1135   :  { %9708 = vmatpush1.bf16.msra.mxu0 %v14200_v39  ;;  %9740 = vmatpush1.bf16.msra.mxu1 %v14201_v42  ;;  %v14218_v39 = vld [vmem:[#allocation69_spill] sm:$0xff]  ;;  %v14219_v42 = vld [vmem:[#allocation70_spill] sm:$0xff] }
0x1136   :  { %9710 = vmatprep.subr.bf16.mxu0 %v14202_v29  ;;  %9742 = vmatprep.subr.bf16.mxu1 %v14203_v58  ;;  %v14220_v29 = vld [vmem:[#allocation71_spill] sm:$0xff]  ;;  %v14221_v58 = vld [vmem:[#allocation72_spill] sm:$0xff] }
0x1139   :  { %9712 = vmatpush1.bf16.msra.mxu0 %v14204_v32  ;;  %9744 = vmatpush1.bf16.msra.mxu1 %v14205_v18  ;;  %v14222_v32 = vld [vmem:[#allocation73_spill] sm:$0xff]  ;;  %v14223_v18 = vld [vmem:[#allocation74_spill] sm:$0xff] }
0x113a   :  { %9714 = vmatprep.subr.bf16.mxu0 %v14206_v44  ;;  %9746 = vmatprep.subr.bf16.mxu1 %v14207_v25  ;;  %v14225_v44 = vld [vmem:[#allocation76_spill] sm:$0xff]  ;;  %v14226_v25 = vld [vmem:[#allocation77_spill] sm:$0xff] }
0x113d   :  { %9716 = vmatpush1.bf16.msra.mxu0 %v14208_v14  ;;  %9748 = vmatpush1.bf16.msra.mxu1 %v14209_v17  ;;  %v14227_v14 = vld [vmem:[#allocation78_spill] sm:$0xff]  ;;  %v14228_v17 = vld [vmem:[#allocation79_spill] sm:$0xff] }
0x113e   :  { %9718 = vmatprep.subr.bf16.mxu0 %v14210_v1  ;;  %9750 = vmatprep.subr.bf16.mxu1 %v14211_v34  ;;  %v14229_v1 = vld [vmem:[#allocation80_spill] sm:$0xff]  ;;  %v14230_v34 = vld [vmem:[#allocation81_spill] sm:$0xff] }
0x1141   :  { %9720 = vmatpush1.bf16.msra.mxu0 %v14212_v26  ;;  %9752 = vmatpush1.bf16.msra.mxu1 %v14213_v45  ;;  %v14231_v26 = vld [vmem:[#allocation82_spill] sm:$0xff]  ;;  %v14232_v45 = vld [vmem:[#allocation83_spill] sm:$0xff] }
0x1142   :  { %9754 = vmatprep.subr.bf16.mxu0 %v14214_v36  ;;  %9786 = vmatprep.subr.bf16.mxu1 %v14215_v50  ;;  %v14233_v36 = vld [vmem:[#allocation84_spill] sm:$0xff]  ;;  %v14234_v50 = vld [vmem:[#allocation85_spill] sm:$0xff] }
0x1144   :  { %6405 = vmatmul.mubr.f32.vlgmr.msra.gmra.mrb[14].mxu0 %v12550_v3  ;;  %6476 = vmatmul.mubr.f32.vlgmr.msra.gmra.mrb[14].mxu1 %v12550_v3  ;;  %v14224_v3 = vld [vmem:[#allocation75_spill] sm:$0xff] }
0x1145   :  { %9756 = vmatpush1.bf16.msra.mxu0 %v14216_v23  ;;  %9788 = vmatpush1.bf16.msra.mxu1 %v14217_v53  ;;  %v14235_v23 = vld [vmem:[#allocation86_spill] sm:$0xff]  ;;  %v14236_v53 = vld [vmem:[#allocation87_spill] sm:$0xff] }
0x1146   :  { %9758 = vmatprep.subr.bf16.mxu0 %v14218_v39  ;;  %9790 = vmatprep.subr.bf16.mxu1 %v14219_v42  ;;  %v14237_v39 = vld [vmem:[#allocation88_spill] sm:$0xff]  ;;  %v14238_v42 = vld [vmem:[#allocation89_spill] sm:$0xff] }
0x1147   :  { %6574 = vmatprep.mubr.f32.mxu0 %v13351_v62  ;;  %6645 = vmatprep.mubr.f32.mxu1 %v13351_v62 }
0x1149   :  { %9760 = vmatpush1.bf16.msra.mxu0 %v14220_v29  ;;  %9792 = vmatpush1.bf16.msra.mxu1 %v14221_v58  ;;  %v14239_v29 = vld [vmem:[#allocation90_spill] sm:$0xff]  ;;  %v14240_v58 = vld [vmem:[#allocation91_spill] sm:$0xff] }
0x114a   :  { %9762 = vmatprep.subr.bf16.mxu0 %v14222_v32  ;;  %9794 = vmatprep.subr.bf16.mxu1 %v14223_v18  ;;  %v14241_v32 = vld [vmem:[#allocation92_spill] sm:$0xff]  ;;  %v14242_v18 = vld [vmem:[#allocation93_spill] sm:$0xff] }
0x114d   :  { %9764 = vmatpush1.bf16.msra.mxu0 %v14224_v3  ;;  %9796 = vmatpush1.bf16.msra.mxu1 %v14225_v44  ;;  %v14243_v3 = vld [vmem:[#allocation94_spill] sm:$0xff]  ;;  %v14244_v44 = vld [vmem:[#allocation95_spill] sm:$0xff] }
0x114e   :  { %9766 = vmatprep.subr.bf16.mxu0 %v14226_v25  ;;  %9798 = vmatprep.subr.bf16.mxu1 %v14227_v14  ;;  %v14245_v25 = vld [vmem:[#allocation96_spill] sm:$0xff]  ;;  %v14246_v14 = vld [vmem:[#allocation97_spill] sm:$0xff] }
0x1151   :  { %9768 = vmatpush1.bf16.msra.mxu0 %v14228_v17  ;;  %9800 = vmatpush1.bf16.msra.mxu1 %v14229_v1  ;;  %v14247_v17 = vld [vmem:[#allocation98_spill] sm:$0xff] }
0x1152   :  { %9770 = vmatprep.subr.bf16.mxu0 %v14230_v34  ;;  %9802 = vmatprep.subr.bf16.mxu1 %v14231_v26  ;;  %v14248_v26 = vld [vmem:[#allocation41_spill] sm:$0xff] }
0x1155   :  { %9772 = vmatpush1.bf16.msra.mxu0 %v14232_v45  ;;  %9804 = vmatpush1.bf16.msra.mxu1 %v14233_v36 }
0x1156   :  { %9774 = vmatprep.subr.bf16.mxu0 %v14234_v50  ;;  %9806 = vmatprep.subr.bf16.mxu1 %v14235_v23 }
0x1159   :  { %9776 = vmatpush1.bf16.msra.mxu0 %v14236_v53  ;;  %9808 = vmatpush1.bf16.msra.mxu1 %v14237_v39 }
0x115a   :  { %9778 = vmatprep.subr.bf16.mxu0 %v14238_v42  ;;  %9810 = vmatprep.subr.bf16.mxu1 %v14239_v29 }
0x115d   :  { %9780 = vmatpush1.bf16.msra.mxu0 %v14240_v58  ;;  %9812 = vmatpush1.bf16.msra.mxu1 %v14241_v32 }
0x115e   :  { %9782 = vmatprep.subr.bf16.mxu0 %v14242_v18  ;;  %9814 = vmatprep.subr.bf16.mxu1 %v14243_v3 }
0x1161   :  { %9784 = vmatpush1.bf16.msra.mxu0 %v14244_v44  ;;  %9816 = vmatpush1.bf16.msra.mxu1 %v14245_v25 }
0x1162   :  { %9818 = vmatprep.subr.bf16.mxu0 %v14246_v14  ;;  %9850 = vmatprep.subr.bf16.mxu1 %v14247_v17 }
0x11f7   :  { %v6236_v1 = vpop.f32.mrb[42].mxu0  ;;  %v6307_v34 = vpop.f32.mrb[42].mxu1 }
0x11f8   :  { %v6312_v45 = vadd.f32 %v6236_v1, %v14248_v26  ;;  %v6238_v36 = vpop.f32.mrb[43].mxu0  ;;  %v12744_v50 = vpop.f32.mrb[43].mxu1  ;;  %v6314_v42 = vadd.f32 %v6307_v34, %v13988_v5 }
0x11f9   :  { %v6313_v23 = vadd.f32 %v6238_v36, %v13725_v49 }
0x11fa   :  { %v7334_v53 = vmul.f32 -1.442695, %v6312_v45 }
0x11fb   :  { %v7335_v39 = vmul.f32 -1.442695, %v6313_v23 }
0x11fc   :  { %10491 = vpow2.f32 %v7334_v53 }
0x11fd   :  { %10493 = vpow2.f32 %v7335_v39 }
0x11fe   :  { %10495 = vtanh.f32 %v6314_v42 }
0x1206   :  { %v10492_v29 = vpop.eup %10491 }
0x1207   :  { %v10494_v58 = vpop.eup %10493  ;;  %v6319_v32 = vadd.f32 1.0, %v10492_v29 }
0x1208   :  { %v6325_v18 = vadd.f32 1.0, %v10494_v58  ;;  %v10496_v3 = vpop.eup %10495 }
0x1209   :  { %10497 = vrcp.f32 %v6319_v32 }
0x120a   :  { %10499 = vrcp.f32 %v6325_v18 }
0x1213   :  { %v10498_v44 = vpop.eup %10497 }
0x1214   :  { %v10500_v25 = vpop.eup %10499  ;;  %v6336_v14 = vmul.f32 %v10498_v44, %v10496_v3 }
0x1215   :  { %v6335_v17 = vmul.f32 %v10500_v25, %v12540_v30 }
0x1217   :  { %v12749_v1 = vadd.f32 %v6336_v14, %v6335_v17  ;;  %v6406_v45 = vpop.f32.mrb[14].mxu0  ;;  %v6477_v36 = vpop.f32.mrb[14].mxu1 }
0x1218   :  { %v10047_v23 = vadd.f32 %v6406_v45, %v13594_v8  ;;  %v6408_v34 = vpop.f32.mrb[15].mxu0  ;;  %v6479_v53 = vpop.f32.mrb[15].mxu1  ;;  %v10063_v18 = vadd.f32 %v6477_v36, %v13463_v63 }
0x1219   :  { %v10048_v39 = vadd.f32 %v6408_v34, %v13858_v46  ;;  %v10064_v58 = vadd.f32 %v6479_v53, %v13462_v2 }
0x121a   :  { %v7337_v42 = vmul.f32 -1.442695, %v10047_v23 }
0x121b   :  { %v7338_v29 = vmul.f32 -1.442695, %v10048_v39  ;;  %v7339_v32 = vmul.f32 -1.442695, %v10064_v58  ;;  %v14249_v39 = vld [vmem:[#allocation99_spill] sm:$0xff]  ;;  %v14252_v58 = vld [vmem:[#allocation102_spill] sm:$0xff] }
0x121c   :  { %10501 = vpow2.f32 %v7337_v42  ;;  %v14250_v42 = vld [vmem:[#allocation100_spill] sm:$0xff] }
0x121d   :  { %10503 = vpow2.f32 %v7338_v29  ;;  %v14251_v29 = vld [vmem:[#allocation101_spill] sm:$0xff] }
0x121e   :  { %10505 = vpow2.f32 %v7339_v32  ;;  %v14254_v32 = vld [vmem:[#allocation104_spill] sm:$0xff] }
0x121f   :  { %10507 = vtanh.f32 %v10063_v18  ;;  %v14255_v18 = vld [vmem:[#allocation105_spill] sm:$0xff] }
0x1226   :  { %v10502_v30 = vpop.eup %10501 }
0x1227   :  { %v10504_v3 = vpop.eup %10503  ;;  %v6489_v44 = vadd.f32 1.0, %v10502_v30  ;;  %v14256_v30 = vld [vmem:[#allocation106_spill] sm:$0xff] }
0x1228   :  { %v6495_v25 = vadd.f32 1.0, %v10504_v3  ;;  %v10506_v8 = vpop.eup %10505  ;;  %v14257_v3 = vld [vmem:[#allocation107_spill] sm:$0xff] }
0x1229   :  { %10509 = vrcp.f32 %v6489_v44  ;;  %v10508_v14 = vpop.eup %10507  ;;  %v6502_v23 = vadd.f32 1.0, %v10506_v8  ;;  %v14258_v44 = vld [vmem:[#allocation108_spill] sm:$0xff]  ;;  %v14260_v8 = vld [vmem:[#allocation110_spill] sm:$0xff] }
0x122a   :  { %10511 = vrcp.f32 %v6495_v25  ;;  %v14259_v25 = vld [vmem:[#allocation109_spill] sm:$0xff] }
0x122b   :  { %10513 = vrcp.f32 %v6502_v23  ;;  %v14265_v23 = vld [vmem:[#allocation115_spill] sm:$0xff] }
0x1233   :  { %v10510_v46 = vpop.eup %10509 }
0x1234   :  { %v10512_v17 = vpop.eup %10511  ;;  %v6506_v45 = vmul.f32 %v10510_v46, %v10508_v14  ;;  %v14261_v14 = vld [vmem:[#allocation111_spill] sm:$0xff]  ;;  %v14262_v46 = vld [vmem:[#allocation112_spill] sm:$0xff] }
0x1235   :  { %v6505_v34 = vmul.f32 %v10512_v17, %v12547_v11  ;;  %v10514_v63 = vpop.eup %10513  ;;  %v14253_v11 = vld [vmem:[#allocation103_spill] sm:$0xff]  ;;  %v14263_v17 = vld [vmem:[#allocation113_spill] sm:$0xff] }
0x1237   :  { %v6507_v2 = vadd.f32 %v6506_v45, %v6505_v34  ;;  %v14264_v45 = vld [vmem:[#allocation114_spill] sm:$0xff]  ;;  %v14266_v34 = vld [vmem:[#allocation116_spill] sm:$0xff] }
0x1239   :  { %10515 = vtanh.f32 %v6507_v2  ;;  %v14267_v2 = vld [vmem:[#allocation117_spill] sm:$0xff] }
0x1243   :  { %v10516_v36 = vpop.eup %10515 }
0x1244   :  { %v6509_v53 = vmul.f32 %v10516_v36, %v10514_v63  ;;  %v14268_v63 = vld [vmem:[#allocation118_spill] sm:$0xff]  ;;  %v14269_v36 = vld [vmem:[#allocation119_spill] sm:$0xff] }
0x1246   :  { %6575 = vmatmul.mubr.f32.vlgmr.msra.gmra.mrb[44].mxu0 %v6509_v53  ;;  %6646 = vmatmul.mubr.f32.vlgmr.msra.gmra.mrb[44].mxu1 %v6509_v53  ;;  %v14270_v53 = vld [vmem:[#allocation120_spill] sm:$0xff] }
0x1247   :  { %9820 = vmatpush1.bf16.msra.mxu0 %v14249_v39  ;;  %9852 = vmatpush1.bf16.msra.mxu1 %v14250_v42  ;;  %v14271_v39 = vld [vmem:[#allocation121_spill] sm:$0xff]  ;;  %v14272_v42 = vld [vmem:[#allocation122_spill] sm:$0xff] }
0x1248   :  { %9822 = vmatprep.subr.bf16.mxu0 %v14251_v29  ;;  %9854 = vmatprep.subr.bf16.mxu1 %v14252_v58  ;;  %v14273_v29 = vld [vmem:[#allocation123_spill] sm:$0xff]  ;;  %v14274_v58 = vld [vmem:[#allocation124_spill] sm:$0xff] }
0x1249   :  { %6716 = vmatprep.mubr.f32.mxu0 %v13351_v62  ;;  %6787 = vmatprep.mubr.f32.mxu1 %v13351_v62 }
0x124b   :  { %9824 = vmatpush1.bf16.msra.mxu0 %v14253_v11  ;;  %9856 = vmatpush1.bf16.msra.mxu1 %v14254_v32  ;;  %v14275_v11 = vld [vmem:[#allocation125_spill] sm:$0xff]  ;;  %v14276_v32 = vld [vmem:[#allocation126_spill] sm:$0xff] }
0x124c   :  { %9826 = vmatprep.subr.bf16.mxu0 %v14255_v18  ;;  %9858 = vmatprep.subr.bf16.mxu1 %v14256_v30  ;;  %v14277_v18 = vld [vmem:[#allocation127_spill] sm:$0xff]  ;;  %v14278_v30 = vld [vmem:[#allocation128_spill] sm:$0xff] }
0x124f   :  { %9828 = vmatpush1.bf16.msra.mxu0 %v14257_v3  ;;  %9860 = vmatpush1.bf16.msra.mxu1 %v14258_v44  ;;  %v14279_v3 = vld [vmem:[#allocation129_spill] sm:$0xff]  ;;  %v14280_v44 = vld [vmem:[#allocation130_spill] sm:$0xff] }
0x1250   :  { %9830 = vmatprep.subr.bf16.mxu0 %v14259_v25  ;;  %9862 = vmatprep.subr.bf16.mxu1 %v14260_v8  ;;  %v14281_v25 = vld [vmem:[#allocation131_spill] sm:$0xff]  ;;  %v14282_v8 = vld [vmem:[#allocation132_spill] sm:$0xff] }
0x1253   :  { %9832 = vmatpush1.bf16.msra.mxu0 %v14261_v14  ;;  %9864 = vmatpush1.bf16.msra.mxu1 %v14262_v46  ;;  %v14283_v14 = vld [vmem:[#allocation133_spill] sm:$0xff]  ;;  %v14284_v46 = vld [vmem:[#allocation134_spill] sm:$0xff] }
0x1254   :  { %9834 = vmatprep.subr.bf16.mxu0 %v14263_v17  ;;  %9866 = vmatprep.subr.bf16.mxu1 %v14264_v45  ;;  %v14285_v17 = vld [vmem:[#allocation135_spill] sm:$0xff]  ;;  %v14286_v45 = vld [vmem:[#allocation136_spill] sm:$0xff] }
0x1257   :  { %9836 = vmatpush1.bf16.msra.mxu0 %v14265_v23  ;;  %9868 = vmatpush1.bf16.msra.mxu1 %v14266_v34  ;;  %v14287_v23 = vld [vmem:[#allocation137_spill] sm:$0xff]  ;;  %v14288_v34 = vld [vmem:[#allocation138_spill] sm:$0xff] }
0x1258   :  { %9838 = vmatprep.subr.bf16.mxu0 %v14267_v2  ;;  %9870 = vmatprep.subr.bf16.mxu1 %v14268_v63  ;;  %v14290_v2 = vld [vmem:[#allocation140_spill] sm:$0xff]  ;;  %v14291_v63 = vld [vmem:[#allocation141_spill] sm:$0xff] }
0x125b   :  { %9840 = vmatpush1.bf16.msra.mxu0 %v14269_v36  ;;  %9872 = vmatpush1.bf16.msra.mxu1 %v14270_v53  ;;  %v14292_v36 = vld [vmem:[#allocation142_spill] sm:$0xff]  ;;  %v14293_v53 = vld [vmem:[#allocation143_spill] sm:$0xff] }
0x125c   :  { %9842 = vmatprep.subr.bf16.mxu0 %v14271_v39  ;;  %9874 = vmatprep.subr.bf16.mxu1 %v14272_v42  ;;  %v14294_v39 = vld [vmem:[#allocation144_spill] sm:$0xff]  ;;  %v14295_v42 = vld [vmem:[#allocation145_spill] sm:$0xff] }
0x125f   :  { %9844 = vmatpush1.bf16.msra.mxu0 %v14273_v29  ;;  %9876 = vmatpush1.bf16.msra.mxu1 %v14274_v58  ;;  %v14296_v29 = vld [vmem:[#allocation146_spill] sm:$0xff]  ;;  %v14297_v58 = vld [vmem:[#allocation147_spill] sm:$0xff] }
0x1260   :  { %9846 = vmatprep.subr.bf16.mxu0 %v14275_v11  ;;  %9878 = vmatprep.subr.bf16.mxu1 %v14276_v32  ;;  %v14298_v11 = vld [vmem:[#allocation148_spill] sm:$0xff]  ;;  %v14299_v32 = vld [vmem:[#allocation149_spill] sm:$0xff] }
0x1263   :  { %9848 = vmatpush1.bf16.msra.mxu0 %v14277_v18  ;;  %9880 = vmatpush1.bf16.msra.mxu1 %v14278_v30  ;;  %v14300_v18 = vld [vmem:[#allocation150_spill] sm:$0xff]  ;;  %v14301_v30 = vld [vmem:[#allocation151_spill] sm:$0xff] }
0x1264   :  { %9882 = vmatprep.subr.bf16.mxu0 %v14279_v3  ;;  %9914 = vmatprep.subr.bf16.mxu1 %v14280_v44  ;;  %v14302_v3 = vld [vmem:[#allocation152_spill] sm:$0xff]  ;;  %v14303_v44 = vld [vmem:[#allocation153_spill] sm:$0xff] }
0x1266   :  { %6717 = vmatmul.mubr.f32.vlgmr.msra.gmra.mrb[44].mxu0 %v12634_v48  ;;  %6788 = vmatmul.mubr.f32.vlgmr.msra.gmra.mrb[44].mxu1 %v12634_v48  ;;  %v14289_v48 = vld [vmem:[#allocation139_spill] sm:$0xff] }
0x1267   :  { %9884 = vmatpush1.bf16.msra.mxu0 %v14281_v25  ;;  %9916 = vmatpush1.bf16.msra.mxu1 %v14282_v8  ;;  %v14304_v25 = vld [vmem:[#allocation154_spill] sm:$0xff]  ;;  %v14305_v8 = vld [vmem:[#allocation155_spill] sm:$0xff] }
0x1268   :  { %9886 = vmatprep.subr.bf16.mxu0 %v14283_v14  ;;  %9918 = vmatprep.subr.bf16.mxu1 %v14284_v46  ;;  %v14306_v14 = vld [vmem:[#allocation156_spill] sm:$0xff]  ;;  %v14307_v46 = vld [vmem:[#allocation157_spill] sm:$0xff] }
0x1269   :  { %6886 = vmatprep.mubr.f32.mxu0 %v13351_v62  ;;  %6957 = vmatprep.mubr.f32.mxu1 %v13351_v62 }
0x126b   :  { %9888 = vmatpush1.bf16.msra.mxu0 %v14285_v17  ;;  %9920 = vmatpush1.bf16.msra.mxu1 %v14286_v45  ;;  %v14308_v17 = vld [vmem:[#allocation158_spill] sm:$0xff]  ;;  %v14309_v45 = vld [vmem:[#allocation159_spill] sm:$0xff] }
0x126c   :  { %9890 = vmatprep.subr.bf16.mxu0 %v14287_v23  ;;  %9922 = vmatprep.subr.bf16.mxu1 %v14288_v34  ;;  %v14310_v23 = vld [vmem:[#allocation160_spill] sm:$0xff]  ;;  %v14311_v34 = vld [vmem:[#allocation161_spill] sm:$0xff] }
0x126f   :  { %9892 = vmatpush1.bf16.msra.mxu0 %v14289_v48  ;;  %9924 = vmatpush1.bf16.msra.mxu1 %v14290_v2  ;;  %v14312_v48 = vld [vmem:[#allocation162_spill] sm:$0xff] }
0x1270   :  { %9894 = vmatprep.subr.bf16.mxu0 %v14291_v63  ;;  %9926 = vmatprep.subr.bf16.mxu1 %v14292_v36  ;;  %v14313_v36 = vld [vmem:[#allocation40_spill] sm:$0xff] }
0x1273   :  { %9896 = vmatpush1.bf16.msra.mxu0 %v14293_v53  ;;  %9928 = vmatpush1.bf16.msra.mxu1 %v14294_v39 }
0x1274   :  { %9898 = vmatprep.subr.bf16.mxu0 %v14295_v42  ;;  %9930 = vmatprep.subr.bf16.mxu1 %v14296_v29 }
0x1277   :  { %9900 = vmatpush1.bf16.msra.mxu0 %v14297_v58  ;;  %9932 = vmatpush1.bf16.msra.mxu1 %v14298_v11 }
0x1278   :  { %9902 = vmatprep.subr.bf16.mxu0 %v14299_v32  ;;  %9934 = vmatprep.subr.bf16.mxu1 %v14300_v18 }
0x127b   :  { %9904 = vmatpush1.bf16.msra.mxu0 %v14301_v30  ;;  %9936 = vmatpush1.bf16.msra.mxu1 %v14302_v3 }
0x127c   :  { %9906 = vmatprep.subr.bf16.mxu0 %v14303_v44  ;;  %9938 = vmatprep.subr.bf16.mxu1 %v14304_v25 }
0x127f   :  { %9908 = vmatpush1.bf16.msra.mxu0 %v14305_v8  ;;  %9940 = vmatpush1.bf16.msra.mxu1 %v14306_v14 }
0x1280   :  { %9910 = vmatprep.subr.bf16.mxu0 %v14307_v46  ;;  %9942 = vmatprep.subr.bf16.mxu1 %v14308_v17 }
0x1283   :  { %9912 = vmatpush1.bf16.msra.mxu0 %v14309_v45  ;;  %9944 = vmatpush1.bf16.msra.mxu1 %v14310_v23 }
0x1284   :  { %9946 = vmatprep.subr.bf16.mxu0 %v14311_v34  ;;  %9978 = vmatprep.subr.bf16.mxu1 %v14312_v48 }
0x1339   :  { %v6718_v2 = vpop.f32.mrb[44].mxu0  ;;  %v6789_v63 = vpop.f32.mrb[44].mxu1 }
0x133a   :  { %v6794_v53 = vadd.f32 %v6718_v2, %v14313_v36  ;;  %v6720_v39 = vpop.f32.mrb[45].mxu0  ;;  %v6791_v42 = vpop.f32.mrb[45].mxu1  ;;  %v6796_v30 = vadd.f32 %v6789_v63, %v13531_v24  ;;  %v6315_v24 = vadd.f32 %v12744_v50, %v13533_v43 }
0x133b   :  { %v6795_v29 = vadd.f32 %v6720_v39, %v13663_v56  ;;  %v6797_v32 = vadd.f32 %v6791_v42, %v13530_v57 }
0x133c   :  { %v7340_v58 = vmul.f32 -1.442695, %v6794_v53  ;;  %v7336_v63 = vmul.f32 -1.442695, %v6315_v24 }
0x133d   :  { %v7341_v11 = vmul.f32 -1.442695, %v6795_v29  ;;  %v7342_v18 = vmul.f32 -1.442695, %v6797_v32 }
0x133e   :  { %10517 = vpow2.f32 %v7340_v58 }
0x133f   :  { %10519 = vpow2.f32 %v7341_v11 }
0x1340   :  { %10521 = vpow2.f32 %v7342_v18 }
0x1341   :  { %10523 = vtanh.f32 %v6796_v30 }
0x1348   :  { %v10518_v3 = vpop.eup %10517 }
0x1349   :  { %v10520_v44 = vpop.eup %10519  ;;  %v6801_v25 = vadd.f32 1.0, %v10518_v3 }
0x134a   :  { %v6807_v8 = vadd.f32 1.0, %v10520_v44  ;;  %v10522_v14 = vpop.eup %10521 }
0x134b   :  { %10525 = vrcp.f32 %v6801_v25  ;;  %v10524_v46 = vpop.eup %10523  ;;  %v6814_v23 = vadd.f32 1.0, %v10522_v14 }
0x134c   :  { %10527 = vrcp.f32 %v6807_v8 }
0x134d   :  { %10529 = vrcp.f32 %v6814_v23 }
0x1355   :  { %v10526_v56 = vpop.eup %10525 }
0x1356   :  { %v10528_v17 = vpop.eup %10527  ;;  %v6818_v45 = vmul.f32 %v10526_v56, %v10524_v46 }
0x1357   :  { %v6817_v34 = vmul.f32 %v10528_v17, %v12629_v40  ;;  %v10530_v48 = vpop.eup %10529 }
0x1359   :  { %v6819_v57 = vadd.f32 %v6818_v45, %v6817_v34  ;;  %v7346_v34 = vld [vmem:[%s12944_s9] ss:$0 sm:$0xff] }
0x135b   :  { %10531 = vtanh.f32 %v6819_v57 }
0x135c   :  { %10533 = vpow2.f32 %v7336_v63 }
0x135d   :  { %10535 = vtanh.f32 %v12749_v1 }
0x1365   :  { %v10532_v2 = vpop.eup %10531 }
0x1366   :  { %v6821_v36 = vmul.f32 %v10532_v2, %v10530_v48 }
0x1368   :  { %6887 = vmatmul.mubr.f32.vlgmr.msra.gmra.mrb[46].mxu0 %v6821_v36  ;;  %6958 = vmatmul.mubr.f32.vlgmr.msra.gmra.mrb[46].mxu1 %v6821_v36 }
0x1369   :  { %9948 = vmatpush1.bf16.msra.mxu0 %v13534_v37  ;;  %9980 = vmatpush1.bf16.msra.mxu1 %v13535_v54  ;;  %v10534_v37 = vpop.eup %10533 }
0x136a   :  { %9950 = vmatprep.subr.bf16.mxu0 %v13536_v47  ;;  %9982 = vmatprep.subr.bf16.mxu1 %v13537_v55  ;;  %v6332_v54 = vadd.f32 1.0, %v10534_v37  ;;  %v10536_v47 = vpop.eup %10535 }
0x136b   :  { %7028 = vmatprep.mubr.f32.mxu0 %v13351_v62  ;;  %7099 = vmatprep.mubr.f32.mxu1 %v13351_v62 }
0x136c   :  { %10537 = vrcp.f32 %v6332_v54 }
0x136d   :  { %9952 = vmatpush1.bf16.msra.mxu0 %v13664_v12  ;;  %9984 = vmatpush1.bf16.msra.mxu1 %v13665_v10  ;;  %v7147_v10 = vld [vmem:[%s12943_s8 + $0x68] sm:$0xff] }
0x136e   :  { %9954 = vmatprep.subr.bf16.mxu0 %v13666_v22  ;;  %9986 = vmatprep.subr.bf16.mxu1 %v13667_v4  ;;  %v7148_v4 = vld [vmem:[%s12943_s8 + $0x70] sm:$0xff] }
0x1371   :  { %9956 = vmatpush1.bf16.msra.mxu0 %v13668_v52  ;;  %9988 = vmatpush1.bf16.msra.mxu1 %v13543_v9  ;;  %v7143_v9 = vld [vmem:[%s12943_s8 + $0x48] sm:$0xff]  ;;  %v7149_v52 = vld [vmem:[%s12943_s8 + $0x78] sm:$0xff] }
0x1372   :  { %9958 = vmatprep.subr.bf16.mxu0 %v13544_v33  ;;  %9990 = vmatprep.subr.bf16.mxu1 %v13545_v31  ;;  %v7144_v31 = vld [vmem:[%s12943_s8 + $0x50] sm:$0xff] }
0x1375   :  { %9960 = vmatpush1.bf16.msra.mxu0 %v13546_v13  ;;  %9992 = vmatpush1.bf16.msra.mxu1 %v13547_v41  ;;  %v7145_v13 = vld [vmem:[%s12943_s8 + $0x58] sm:$0xff]  ;;  %v7146_v41 = vld [vmem:[%s12943_s8 + $0x60] sm:$0xff] }
0x1376   :  { %9962 = vmatprep.subr.bf16.mxu0 %v13548_v15  ;;  %9994 = vmatprep.subr.bf16.mxu1 %v13549_v19  ;;  %v10538_v55 = vpop.eup %10537  ;;  %v7140_v15 = vld [vmem:[%s12943_s8 + $0x30] sm:$0xff]  ;;  %v7141_v19 = vld [vmem:[%s12943_s8 + $0x38] sm:$0xff]  ;;  %v10025_v12 = vpack.c.bf16 %v7145_v13, %v7144_v31  ;;  %v10028_v22 = vpack.c.bf16 %v7147_v10, %v7146_v41 }
0x1379   :  { %9964 = vmatpush1.bf16.msra.mxu0 %v13550_v7  ;;  %9996 = vmatpush1.bf16.msra.mxu1 %v13551_v60  ;;  %v10019_v7 = vpack.c.bf16 %v7141_v19, %v7140_v15  ;;  %v7142_v60 = vld [vmem:[%s12943_s8 + $0x40] sm:$0xff] }
0x137a   :  { %9966 = vmatprep.subr.bf16.mxu0 %v13669_v59  ;;  %9998 = vmatprep.subr.bf16.mxu1 %v11380_v6  ;;  %v6339_v6 = vmul.f32 %v10538_v55, %v10536_v47  ;;  %v10022_v33 = vpack.c.bf16 %v7143_v9, %v7142_v60  ;;  %v10031_v59 = vpack.c.bf16 %v7149_v52, %v7148_v4 }
0x137d   :  { %9968 = vmatpush1.bf16.msra.mxu0 %v11384_v0  ;;  %10000 = vmatpush1.bf16.msra.mxu1 %v11386_v21  ;;  %v7134_v0 = vld [vmem:[%s12943_s8] sm:$0xff]  ;;  %v7135_v21 = vld [vmem:[%s12943_s8 + $0x8] sm:$0xff] }
0x137e   :  { %9970 = vmatprep.subr.bf16.mxu0 %v11390_v28  ;;  %10002 = vmatprep.subr.bf16.mxu1 %v11392_v38  ;;  %v10010_v28 = vpack.c.bf16 %v7135_v21, %v7134_v0  ;;  %v10682_v38 = vmov 0.0|0.0  }
0x1381   :  { %9972 = vmatpush1.bf16.msra.mxu0 %v11396_v35  ;;  %10004 = vmatpush1.bf16.msra.mxu1 %v11398_v16  ;;  %v7136_v35 = vld [vmem:[%s12943_s8 + $0x10] sm:$0xff]  ;;  %v7137_v16 = vld [vmem:[%s12943_s8 + $0x18] sm:$0xff] }
0x1382   :  { %9974 = vmatprep.subr.bf16.mxu0 %v11402_v61  ;;  %10006 = vmatprep.subr.bf16.mxu1 %v11404_v27  ;;  %v10013_v61 = vpack.c.bf16 %v7137_v16, %v7136_v35  ;;  %v7138_v27 = vld [vmem:[%s12943_s8 + $0x20] sm:$0xff] }
0x1385   :  { %9976 = vmatpush1.bf16.msra.mxu0 %v11408_v20  ;;  %10008 = vmatpush1.bf16.msra.mxu1 %v11410_v51  ;;  %v7139_v20 = vld [vmem:[%s12943_s8 + $0x28] sm:$0xff] }
0x1386   :  { %10009 = vmatprep.subr.bf16.mxu0 %v10682_v38  ;;  %v10016_v51 = vpack.c.bf16 %v7139_v20, %v7138_v27 }
0x1388   :  { %7029 = vmatmul.mubr.f32.vlgmr.msra.gmra.mrb[46].mxu0 %v6339_v6  ;;  %7100 = vmatmul.mubr.f32.vlgmr.msra.gmra.mrb[46].mxu1 %v6339_v6 }
0x1389   :  { %10011 = vmatpush3.bf16.msra.mxu0 %v10010_v28  ;;  %7398 = vmatprep.mubr.msk.f32.mxu0 %vm10683_vm1, %v13351_v62 }
0x138a   :  { %10012 = vmatprep.subr.bf16.mxu0 %v10682_v38 }
0x138d   :  { %10014 = vmatpush3.bf16.msra.mxu0 %v10013_v61 }
0x138e   :  { %10015 = vmatprep.subr.bf16.mxu0 %v10682_v38 }
0x1391   :  { %10017 = vmatpush3.bf16.msra.mxu0 %v10016_v51 }
0x1392   :  { %10018 = vmatprep.subr.bf16.mxu0 %v10682_v38 }
0x1395   :  { %10020 = vmatpush3.bf16.msra.mxu0 %v10019_v7 }
0x1396   :  { %10021 = vmatprep.subr.bf16.mxu0 %v10682_v38 }
0x1399   :  { %10023 = vmatpush3.bf16.msra.mxu0 %v10022_v33 }
0x139a   :  { %10024 = vmatprep.subr.bf16.mxu0 %v10682_v38 }
0x139d   :  { %10026 = vmatpush3.bf16.msra.mxu0 %v10025_v12 }
0x139e   :  { %10027 = vmatprep.subr.bf16.mxu0 %v10682_v38 }
0x13a1   :  { %10029 = vmatpush3.bf16.msra.mxu0 %v10028_v22 }
0x13a2   :  { %10030 = vmatprep.subr.bf16.mxu0 %v10682_v38 }
0x13a5   :  { %10032 = vmatpush3.bf16.msra.mxu0 %v10031_v59 }
0x145b   :  { %v7030_v40 = vpop.f32.mrb[46].mxu0  ;;  %v7101_v50 = vpop.f32.mrb[46].mxu1 }
0x145c   :  { %v7106_v53 = vadd.f32 %v7030_v40, %v14248_v26  ;;  %v7032_v62 = vpop.f32.mrb[47].mxu0  ;;  %v7103_v39 = vpop.f32.mrb[47].mxu1  ;;  %v7108_v18 = vadd.f32 %v7101_v50, %v13988_v5 }
0x145d   :  { %v7107_v42 = vadd.f32 %v7032_v62, %v13725_v49  ;;  %v7109_v11 = vadd.f32 %v7103_v39, %v13533_v43 }
0x145e   :  { %v7343_v29 = vmul.f32 -1.442695, %v7106_v53 }
0x145f   :  { %v7344_v58 = vmul.f32 -1.442695, %v7107_v42  ;;  %v7345_v32 = vmul.f32 -1.442695, %v7109_v11 }
0x1460   :  { %10539 = vpow2.f32 %v7343_v29 }
0x1461   :  { %10541 = vpow2.f32 %v7344_v58 }
0x1462   :  { %10543 = vpow2.f32 %v7345_v32 }
0x1463   :  { %10545 = vtanh.f32 %v7108_v18 }
0x146a   :  { %v10540_v30 = vpop.eup %10539 }
0x146b   :  { %v10542_v3 = vpop.eup %10541  ;;  %v7113_v44 = vadd.f32 1.0, %v10540_v30 }
0x146c   :  { %v7119_v25 = vadd.f32 1.0, %v10542_v3  ;;  %v10544_v26 = vpop.eup %10543 }
0x146d   :  { %10547 = vrcp.f32 %v7113_v44  ;;  %v10546_v8 = vpop.eup %10545  ;;  %v7126_v56 = vadd.f32 1.0, %v10544_v26 }
0x146e   :  { %10549 = vrcp.f32 %v7119_v25 }
0x146f   :  { %10551 = vrcp.f32 %v7126_v56 }
0x1477   :  { %v10548_v49 = vpop.eup %10547 }
0x1478   :  { %v10550_v14 = vpop.eup %10549  ;;  %v7130_v46 = vmul.f32 %v10548_v49, %v10546_v8 }
0x1479   :  { %v7129_v17 = vmul.f32 %v10550_v14, %v12749_v1  ;;  %v10552_v5 = vpop.eup %10551 }
0x147b   :  { %v7131_v43 = vadd.f32 %v7130_v46, %v7129_v17 }
0x147d   :  { %10553 = vtanh.f32 %v7131_v43 }
0x1487   :  { %v10554_v45 = vpop.eup %10553 }
0x1488   :  { %v7133_v23 = vmul.f32 %v10554_v45, %v10552_v5 }
0x148a   :  { %7399 = vmatmul.mubr.f32.vlgmr.msra.gmra.mrb[48].mxu0 %v7133_v23 }
0x155d   :  { %v7223_v57 = vpop.f32.mrb[48].mxu0 }
0x155e   :  { %v7224_v24 = vadd.f32 %v7346_v34, %v7223_v57  ;;  %v7400_v48 = vpop.f32.mrb[49].mxu0 }
0x1560   :  { %7228 = vst.msk [vmem:[#allocation10] sm:$0xff] %vm7227_vm2, %v7224_v24 }
0x1561   :  { %10654 = shalt.err (!%p10651_p8)
}
0x1562   :  { %s10655_s20 = scalar_lea.hbm %s12945_s10, 128 }
0x1563   :  { %p10656_p9 = scmp.ne.s32.totalorder %s12945_s10, %s10655_s20  ;;  %p10659_p10 = scmp.lt.u32.totalorder %s10655_s20, %s12945_s10 }
0x1565   :  { %p10661_p11 = pnand %p10659_p10, %p10656_p9 }
0x1567   :  { %10664 = shalt.err (!%p10661_p11)
}
0x1568   :  { %7238 = dma.vmem_to_hbm [thread:$0]  %s7236_s14, 128, %s12945_s10, [#allocation7]  }
0x1569   :  { %10673 = dma.done.wait [#allocation7], 128  }
0x156a   :  { %10674 = vsyncadd [#allocation7], 4294967168 }
0x156b   :  { %7242 = vsyncpa [#allocation6], 1 }
0x156c   :  { %7243 = vsyncpa [#allocation9], 1 }
0x156d   :  { %7244 = vsyncpa [#allocation7], 1 }
0x156e   :  { %7245 = vsyncmov [#allocation4] }
0x1571   :  { %s7246_s26 = vpop.sfrf %7245 }
0x1572   :  { %p7347_p12 = scmp.ne.s32.totalorder %s7246_s26, 0 }
0x1574   :  { %7250 = shalt.err (%p7347_p12)  }
0x1575   :  { %7252 = vsyncmov [#allocation4 + $0x1] }
0x1578   :  { %s7253_s27 = vpop.sfrf %7252 }
0x1579   :  { %p7348_p13 = scmp.ne.s32.totalorder %s7253_s27, 0 }
0x157b   :  { %7257 = shalt.err (%p7348_p13)  }

</bundles_post_ra>
